<compile_context>
chip_gen: v6e
topology: v6e:2x2x1
jax: 0.10.0
libtpu: 0.0.40
codegen_flags: <defaults>
</compile_context>

<pallas_src>
import jax
import jax.numpy as jnp
import numpy as np
from jax import lax
from jax.experimental import pallas as pl
from jax.experimental.pallas import tpu as pltpu


def contracting_block_nhwc(x_nhwc, w1, b1, w2, b2):
    """x_nhwc: (N, H, W, C1); w1: (2C1, C1, 3, 3); w2: (2C1, 2C1, 3, 3).

    Returns pooled activations in NHWC: (N, Hp, Wp, 2C1).
    """
    N, H, W, C1 = x_nhwc.shape
    C2 = w1.shape[0]
    assert w1.shape == (C2, C1, 3, 3) and w2.shape == (C2, C2, 3, 3)
    # The full-width wrap-around scheme (conv rows computed at width W, with
    # the trailing invalid columns provably never consumed by valid outputs,
    # and 2 zero-filled y1 tail rows) requires these bounds.
    assert H >= 6 and W >= 6, "full-width conv scheme needs H, W >= 6"

    H1, W1 = H - 2, W - 2            # conv1 valid output extent
    H2, W2 = H1 - 2, W1 - 2          # conv2 valid output extent
    Hp, Wp = H2 // 2, W2 // 2        # pooled output extent (floor, as PyTorch)
    L1 = H1 * W - 2                  # conv1 rows computed (last valid idx + 1)
    L2 = H2 * W - 2                  # conv2 rows computed
    K1, K2 = 9 * C1, 9 * C2          # im2col contraction widths

    # ---- host-side layout work (hoisted out of the kernel) ----------------
    # (N, H, W, C1) -> (N, H*W, C1) row matrix, channels innermost, bf16.
    x_rows = x_nhwc.reshape(N, H * W, C1).astype(jnp.bfloat16)
    # OIHW -> (ky, kx, in, out) -> (9*Cin, Cout); im2col column = tap*Cin + cin.
    w1_pk = jnp.transpose(w1, (2, 3, 1, 0)).reshape(K1, C2).astype(jnp.bfloat16)
    w2_pk = jnp.transpose(w2, (2, 3, 1, 0)).reshape(K2, C2).astype(jnp.bfloat16)
    b1_2d = b1.reshape(1, C2).astype(jnp.float32)
    b2_2d = b2.reshape(1, C2).astype(jnp.float32)

    def kernel(x_ref, w1_ref, b1_ref, w2_ref, b2_ref, o_ref,
               im1, y1, im2, y2):
        # ---- conv1: im2col (9 contiguous row slices at lane offsets) ------
        for tap in range(9):
            ky, kx = divmod(tap, 3)
            im1[:, tap * C1:(tap + 1) * C1] = x_ref[0, pl.ds(ky * W + kx, L1), :]
        acc1 = jnp.dot(im1[...], w1_ref[...],
                       preferred_element_type=jnp.float32)
        y1_val = jnp.maximum(acc1 + b1_ref[...], 0.0)
        # Rows [L1, H1*W) are touched by conv2 tap windows but only ever feed
        # wrap-around (invalid) output columns; fold the zero fill into the
        # main store (single store, no extra narrow masked vst).
        y1[...] = jnp.concatenate(
            [y1_val, jnp.zeros((2, C2), jnp.float32)], axis=0
        ).astype(y1.dtype)

        # ---- conv2: im2col + single MXU matmul, f32 accumulation, ReLU ----
        for tap in range(9):
            ky, kx = divmod(tap, 3)
            im2[:, tap * C2:(tap + 1) * C2] = y1[pl.ds(ky * W + kx, L2), :]
        acc2 = jnp.dot(im2[...], w2_ref[...],
                       preferred_element_type=jnp.float32)
        y2[...] = jnp.maximum(acc2 + b2_ref[...], 0.0)

        # ---- 2x2 max pool, stride 2: strided row reads, per-row stores ----
        for ip in range(Hp):
            base = 2 * ip * W
            p = jnp.maximum(
                jnp.maximum(y2[pl.ds(base, Wp, stride=2), :],
                            y2[pl.ds(base + 1, Wp, stride=2), :]),
                jnp.maximum(y2[pl.ds(base + W, Wp, stride=2), :],
                            y2[pl.ds(base + W + 1, Wp, stride=2), :]))
            o_ref[0, ip] = p.astype(o_ref.dtype)

    out_nhwc = pl.pallas_call(
        kernel,
        out_shape=jax.ShapeDtypeStruct((N, Hp, Wp, C2), x_nhwc.dtype),
        grid_spec=pltpu.PrefetchScalarGridSpec(
            num_scalar_prefetch=0,
            grid=(N,),
            in_specs=[
                pl.BlockSpec((1, H * W, C1), lambda n: (n, 0, 0)),
                pl.BlockSpec((K1, C2), lambda n: (0, 0)),
                pl.BlockSpec((1, C2), lambda n: (0, 0)),
                pl.BlockSpec((K2, C2), lambda n: (0, 0)),
                pl.BlockSpec((1, C2), lambda n: (0, 0)),
            ],
            out_specs=pl.BlockSpec((1, Hp, Wp, C2), lambda n: (n, 0, 0, 0)),
            scratch_shapes=[
                pltpu.VMEM((L1, K1), jnp.bfloat16),      # conv1 im2col
                pltpu.VMEM((H1 * W, C2), jnp.bfloat16),  # ReLU(conv1) rows
                pltpu.VMEM((L2, K2), jnp.bfloat16),      # conv2 im2col
                pltpu.VMEM((L2, C2), jnp.float32),       # ReLU(conv2) rows
            ],
        ),
        compiler_params=pltpu.CompilerParams(
            dimension_semantics=("parallel",),
            vmem_limit_bytes=32 * 1024 * 1024,
        ),
    )(x_rows, w1_pk, b1_2d, w2_pk, b2_2d)

    return out_nhwc


def contracting_block(x_nchw, w1, b1, w2, b2):
    """PyTorch-compatible NCHW wrapper.  A real U-Net should stay NHWC
    end-to-end (call contracting_block_nhwc) to avoid the two host-side
    transposes, which are pure HBM traffic at real sizes."""
    x_nhwc = jnp.transpose(x_nchw, (0, 2, 3, 1))
    out_nhwc = contracting_block_nhwc(x_nhwc, w1, b1, w2, b2)
    return jnp.transpose(out_nhwc, (0, 3, 1, 2))          # NHWC -> NCHW


def reference_forward(x, w1, b1, w2, b2):
    """Pure-JAX reference matching PyTorch semantics (NCHW, f32)."""
    dn = ("NCHW", "OIHW", "NCHW")
    y = lax.conv_general_dilated(x, w1, (1, 1), "VALID", dimension_numbers=dn)
    y = jnp.maximum(y + b1[None, :, None, None], 0.0)
    y = lax.conv_general_dilated(y, w2, (1, 1), "VALID", dimension_numbers=dn)
    y = jnp.maximum(y + b2[None, :, None, None], 0.0)
    y = lax.reduce_window(y, -jnp.inf, lax.max,
                          (1, 1, 2, 2), (1, 1, 2, 2), "VALID")
    return y


if __name__ == "__main__":
    # Deterministic synthetic parameters (ContractingBlock(input_channels=4)).
    C1, C2 = 4, 8
    key = jax.random.PRNGKey(0)
    k1, k2, k3, k4, k5 = jax.random.split(key, 5)
    w1 = jax.random.normal(k1, (C2, C1, 3, 3), jnp.float32) * 0.1
    b1 = jax.random.normal(k2, (C2,), jnp.float32) * 0.1
    w2 = jax.random.normal(k3, (C2, C2, 3, 3), jnp.float32) * 0.1
    b2 = jax.random.normal(k4, (C2,), jnp.float32) * 0.1
    x = jax.random.normal(k5, (2, C1, 16, 16), jnp.float32)   # NCHW input

    fwd = jax.jit(contracting_block)
    out = jax.block_until_ready(fwd(x, w1, b1, w2, b2))       # (2, 8, 6, 6)

    # Reference sees the same bf16-quantized inputs/weights the kernel uses;
    # the remaining tolerance covers bf16 rounding of the conv1 intermediate
    # and MXU-vs-XLA f32 summation-order differences.
    xq = x.astype(jnp.bfloat16).astype(jnp.float32)
    w1q = w1.astype(jnp.bfloat16).astype(jnp.float32)
    w2q = w2.astype(jnp.bfloat16).astype(jnp.float32)
    ref = reference_forward(xq, w1q, b1, w2q, b2)
    np.testing.assert_allclose(np.asarray(out), np.asarray(ref),
                               rtol=1e-2, atol=1e-2)
    print("KERNEL_OK")
</pallas_src>

<mosaic_0001>
module attributes {stable_mosaic.version = 11 : i64} {
  func.func @kernel(%arg0: i32, %arg1: memref<1x256x4xbf16, #tpu.memory_space<vmem>>, %arg2: memref<36x8xbf16, #tpu.memory_space<vmem>>, %arg3: memref<1x8xf32, #tpu.memory_space<vmem>>, %arg4: memref<72x8xbf16, #tpu.memory_space<vmem>>, %arg5: memref<1x8xf32, #tpu.memory_space<vmem>>, %arg6: memref<1x6x6x8xf32, #tpu.memory_space<vmem>>, %arg7: memref<222x36xbf16, #tpu.memory_space<vmem>>, %arg8: memref<224x8xbf16, #tpu.memory_space<vmem>>, %arg9: memref<190x72xbf16, #tpu.memory_space<vmem>>, %arg10: memref<190x8xf32, #tpu.memory_space<vmem>>) attributes {dimension_semantics = [#tpu.dimension_semantics<parallel>], iteration_bounds = array<i64: 2>, scalar_prefetch = 0 : i64, scratch_operands = 4 : i64, tpu.core_type = #tpu.core_type<tc>, window_params = [{transform_indices = @transform_0, window_bounds = array<i64: 1, 256, 4>}, {pipeline_mode = #tpu.pipeline_mode<synchronous>, transform_indices = @transform_1, window_bounds = array<i64: 36, 8>}, {pipeline_mode = #tpu.pipeline_mode<synchronous>, transform_indices = @transform_2, window_bounds = array<i64: 1, 8>}, {pipeline_mode = #tpu.pipeline_mode<synchronous>, transform_indices = @transform_3, window_bounds = array<i64: 72, 8>}, {pipeline_mode = #tpu.pipeline_mode<synchronous>, transform_indices = @transform_4, window_bounds = array<i64: 1, 8>}, {transform_indices = @transform_5, window_bounds = array<i64: 1, 6, 6, 8>}]} {
    %c0 = arith.constant 0 : index
    %c0_0 = arith.constant 0 : index
    %c0_1 = arith.constant 0 : index
    %0 = vector.load %arg1[%c0, %c0_0, %c0_1] : memref<1x256x4xbf16, #tpu.memory_space<vmem>>, vector<1x222x4xbf16>
    %1 = vector.shape_cast %0 : vector<1x222x4xbf16> to vector<222x4xbf16>
    %c0_2 = arith.constant 0 : index
    %c0_3 = arith.constant 0 : index
    %2 = vector.load %arg7[%c0_2, %c0_3] : memref<222x36xbf16, #tpu.memory_space<vmem>>, vector<222x4xbf16>
    tpu.vector_store %arg7[%c0_2, %c0_3], %1 {strides = array<i32>} : memref<222x36xbf16, #tpu.memory_space<vmem>>, vector<222x4xbf16>,
    %c0_4 = arith.constant 0 : index
    %c1 = arith.constant 1 : index
    %c0_5 = arith.constant 0 : index
    %3 = vector.load %arg1[%c0_4, %c1, %c0_5] : memref<1x256x4xbf16, #tpu.memory_space<vmem>>, vector<1x222x4xbf16>
    %4 = vector.shape_cast %3 : vector<1x222x4xbf16> to vector<222x4xbf16>
    %c0_6 = arith.constant 0 : index
    %c4 = arith.constant 4 : index
    %5 = vector.load %arg7[%c0_6, %c4] : memref<222x36xbf16, #tpu.memory_space<vmem>>, vector<222x4xbf16>
    tpu.vector_store %arg7[%c0_6, %c4], %4 {strides = array<i32>} : memref<222x36xbf16, #tpu.memory_space<vmem>>, vector<222x4xbf16>,
    %c0_7 = arith.constant 0 : index
    %c2 = arith.constant 2 : index
    %c0_8 = arith.constant 0 : index
    %6 = vector.load %arg1[%c0_7, %c2, %c0_8] : memref<1x256x4xbf16, #tpu.memory_space<vmem>>, vector<1x222x4xbf16>
    %7 = vector.shape_cast %6 : vector<1x222x4xbf16> to vector<222x4xbf16>
    %c0_9 = arith.constant 0 : index
    %c8 = arith.constant 8 : index
    %8 = vector.load %arg7[%c0_9, %c8] : memref<222x36xbf16, #tpu.memory_space<vmem>>, vector<222x4xbf16>
    tpu.vector_store %arg7[%c0_9, %c8], %7 {strides = array<i32>} : memref<222x36xbf16, #tpu.memory_space<vmem>>, vector<222x4xbf16>,
    %c0_10 = arith.constant 0 : index
    %c16 = arith.constant 16 : index
    %c0_11 = arith.constant 0 : index
    %9 = vector.load %arg1[%c0_10, %c16, %c0_11] : memref<1x256x4xbf16, #tpu.memory_space<vmem>>, vector<1x222x4xbf16>
    %10 = vector.shape_cast %9 : vector<1x222x4xbf16> to vector<222x4xbf16>
    %c0_12 = arith.constant 0 : index
    %c12 = arith.constant 12 : index
    %11 = vector.load %arg7[%c0_12, %c12] : memref<222x36xbf16, #tpu.memory_space<vmem>>, vector<222x4xbf16>
    tpu.vector_store %arg7[%c0_12, %c12], %10 {strides = array<i32>} : memref<222x36xbf16, #tpu.memory_space<vmem>>, vector<222x4xbf16>,
    %c0_13 = arith.constant 0 : index
    %c17 = arith.constant 17 : index
    %c0_14 = arith.constant 0 : index
    %12 = vector.load %arg1[%c0_13, %c17, %c0_14] : memref<1x256x4xbf16, #tpu.memory_space<vmem>>, vector<1x222x4xbf16>
    %13 = vector.shape_cast %12 : vector<1x222x4xbf16> to vector<222x4xbf16>
    %c0_15 = arith.constant 0 : index
    %c16_16 = arith.constant 16 : index
    %14 = vector.load %arg7[%c0_15, %c16_16] : memref<222x36xbf16, #tpu.memory_space<vmem>>, vector<222x4xbf16>
    tpu.vector_store %arg7[%c0_15, %c16_16], %13 {strides = array<i32>} : memref<222x36xbf16, #tpu.memory_space<vmem>>, vector<222x4xbf16>,
    %c0_17 = arith.constant 0 : index
    %c18 = arith.constant 18 : index
    %c0_18 = arith.constant 0 : index
    %15 = vector.load %arg1[%c0_17, %c18, %c0_18] : memref<1x256x4xbf16, #tpu.memory_space<vmem>>, vector<1x222x4xbf16>
    %16 = vector.shape_cast %15 : vector<1x222x4xbf16> to vector<222x4xbf16>
    %c0_19 = arith.constant 0 : index
    %c20 = arith.constant 20 : index
    %17 = vector.load %arg7[%c0_19, %c20] : memref<222x36xbf16, #tpu.memory_space<vmem>>, vector<222x4xbf16>
    tpu.vector_store %arg7[%c0_19, %c20], %16 {strides = array<i32>} : memref<222x36xbf16, #tpu.memory_space<vmem>>, vector<222x4xbf16>,
    %c0_20 = arith.constant 0 : index
    %c32 = arith.constant 32 : index
    %c0_21 = arith.constant 0 : index
    %18 = vector.load %arg1[%c0_20, %c32, %c0_21] : memref<1x256x4xbf16, #tpu.memory_space<vmem>>, vector<1x222x4xbf16>
    %19 = vector.shape_cast %18 : vector<1x222x4xbf16> to vector<222x4xbf16>
    %c0_22 = arith.constant 0 : index
    %c24 = arith.constant 24 : index
    %20 = vector.load %arg7[%c0_22, %c24] : memref<222x36xbf16, #tpu.memory_space<vmem>>, vector<222x4xbf16>
    tpu.vector_store %arg7[%c0_22, %c24], %19 {strides = array<i32>} : memref<222x36xbf16, #tpu.memory_space<vmem>>, vector<222x4xbf16>,
    %c0_23 = arith.constant 0 : index
    %c33 = arith.constant 33 : index
    %c0_24 = arith.constant 0 : index
    %21 = vector.load %arg1[%c0_23, %c33, %c0_24] : memref<1x256x4xbf16, #tpu.memory_space<vmem>>, vector<1x222x4xbf16>
    %22 = vector.shape_cast %21 : vector<1x222x4xbf16> to vector<222x4xbf16>
    %c0_25 = arith.constant 0 : index
    %c28 = arith.constant 28 : index
    %23 = vector.load %arg7[%c0_25, %c28] : memref<222x36xbf16, #tpu.memory_space<vmem>>, vector<222x4xbf16>
    tpu.vector_store %arg7[%c0_25, %c28], %22 {strides = array<i32>} : memref<222x36xbf16, #tpu.memory_space<vmem>>, vector<222x4xbf16>,
    %c0_26 = arith.constant 0 : index
    %c34 = arith.constant 34 : index
    %c0_27 = arith.constant 0 : index
    %24 = vector.load %arg1[%c0_26, %c34, %c0_27] : memref<1x256x4xbf16, #tpu.memory_space<vmem>>, vector<1x222x4xbf16>
    %25 = vector.shape_cast %24 : vector<1x222x4xbf16> to vector<222x4xbf16>
    %c0_28 = arith.constant 0 : index
    %c32_29 = arith.constant 32 : index
    %26 = vector.load %arg7[%c0_28, %c32_29] : memref<222x36xbf16, #tpu.memory_space<vmem>>, vector<222x4xbf16>
    tpu.vector_store %arg7[%c0_28, %c32_29], %25 {strides = array<i32>} : memref<222x36xbf16, #tpu.memory_space<vmem>>, vector<222x4xbf16>,
    %c0_30 = arith.constant 0 : index
    %c0_31 = arith.constant 0 : index
    %27 = vector.load %arg7[%c0_30, %c0_31] : memref<222x36xbf16, #tpu.memory_space<vmem>>, vector<222x36xbf16>
    %c0_32 = arith.constant 0 : index
    %c0_33 = arith.constant 0 : index
    %28 = vector.load %arg2[%c0_32, %c0_33] : memref<36x8xbf16, #tpu.memory_space<vmem>>, vector<36x8xbf16>
    %cst = arith.constant dense<0.000000e+00> : vector<222x8xf32>
    %29 = tpu.matmul %27, %28, %cst {dimension_numbers = #tpu.dot_dimension_numbers<[1], [0], [0], [1], [0, 0, 1, 1], [], []>} : vector<222x36xbf16>, vector<36x8xbf16>, vector<222x8xf32> -> vector<222x8xf32>
    %c0_34 = arith.constant 0 : index
    %c0_35 = arith.constant 0 : index
    %30 = vector.load %arg3[%c0_34, %c0_35] : memref<1x8xf32, #tpu.memory_space<vmem>>, vector<1x8xf32>
    %31 = vector.broadcast %30 : vector<1x8xf32> to vector<222x8xf32>
    %32 = arith.addf %29, %31 : vector<222x8xf32>
    %cst_36 = arith.constant 0.000000e+00 : f32
    %33 = vector.broadcast %cst_36 : f32 to vector<222x8xf32>
    %34 = arith.maximumf %32, %33 : vector<222x8xf32>
    %cst_37 = arith.constant 0.000000e+00 : f32
    %35 = vector.broadcast %cst_37 : f32 to vector<2x8xf32>
    %36 = tpu.concatenate %34, %35 in 0 : vector<222x8xf32>, vector<2x8xf32> -> vector<224x8xf32>
    %37 = arith.truncf %36 : vector<224x8xf32> to vector<224x8xbf16>
    %c0_38 = arith.constant 0 : index
    %c0_39 = arith.constant 0 : index
    %38 = vector.load %arg8[%c0_38, %c0_39] : memref<224x8xbf16, #tpu.memory_space<vmem>>, vector<224x8xbf16>
    tpu.vector_store %arg8[%c0_38, %c0_39], %37 {strides = array<i32>} : memref<224x8xbf16, #tpu.memory_space<vmem>>, vector<224x8xbf16>,
    %c0_40 = arith.constant 0 : index
    %c0_41 = arith.constant 0 : index
    %39 = vector.load %arg8[%c0_40, %c0_41] : memref<224x8xbf16, #tpu.memory_space<vmem>>, vector<190x8xbf16>
    %c0_42 = arith.constant 0 : index
    %c0_43 = arith.constant 0 : index
    %40 = vector.load %arg9[%c0_42, %c0_43] : memref<190x72xbf16, #tpu.memory_space<vmem>>, vector<190x8xbf16>
    tpu.vector_store %arg9[%c0_42, %c0_43], %39 {strides = array<i32>} : memref<190x72xbf16, #tpu.memory_space<vmem>>, vector<190x8xbf16>,
    %c1_44 = arith.constant 1 : index
    %c0_45 = arith.constant 0 : index
    %41 = vector.load %arg8[%c1_44, %c0_45] : memref<224x8xbf16, #tpu.memory_space<vmem>>, vector<190x8xbf16>
    %c0_46 = arith.constant 0 : index
    %c8_47 = arith.constant 8 : index
    %42 = vector.load %arg9[%c0_46, %c8_47] : memref<190x72xbf16, #tpu.memory_space<vmem>>, vector<190x8xbf16>
    tpu.vector_store %arg9[%c0_46, %c8_47], %41 {strides = array<i32>} : memref<190x72xbf16, #tpu.memory_space<vmem>>, vector<190x8xbf16>,
    %c2_48 = arith.constant 2 : index
    %c0_49 = arith.constant 0 : index
    %43 = vector.load %arg8[%c2_48, %c0_49] : memref<224x8xbf16, #tpu.memory_space<vmem>>, vector<190x8xbf16>
    %c0_50 = arith.constant 0 : index
    %c16_51 = arith.constant 16 : index
    %44 = vector.load %arg9[%c0_50, %c16_51] : memref<190x72xbf16, #tpu.memory_space<vmem>>, vector<190x8xbf16>
    tpu.vector_store %arg9[%c0_50, %c16_51], %43 {strides = array<i32>} : memref<190x72xbf16, #tpu.memory_space<vmem>>, vector<190x8xbf16>,
    %c16_52 = arith.constant 16 : index
    %c0_53 = arith.constant 0 : index
    %45 = vector.load %arg8[%c16_52, %c0_53] : memref<224x8xbf16, #tpu.memory_space<vmem>>, vector<190x8xbf16>
    %c0_54 = arith.constant 0 : index
    %c24_55 = arith.constant 24 : index
    %46 = vector.load %arg9[%c0_54, %c24_55] : memref<190x72xbf16, #tpu.memory_space<vmem>>, vector<190x8xbf16>
    tpu.vector_store %arg9[%c0_54, %c24_55], %45 {strides = array<i32>} : memref<190x72xbf16, #tpu.memory_space<vmem>>, vector<190x8xbf16>,
    %c17_56 = arith.constant 17 : index
    %c0_57 = arith.constant 0 : index
    %47 = vector.load %arg8[%c17_56, %c0_57] : memref<224x8xbf16, #tpu.memory_space<vmem>>, vector<190x8xbf16>
    %c0_58 = arith.constant 0 : index
    %c32_59 = arith.constant 32 : index
    %48 = vector.load %arg9[%c0_58, %c32_59] : memref<190x72xbf16, #tpu.memory_space<vmem>>, vector<190x8xbf16>
    tpu.vector_store %arg9[%c0_58, %c32_59], %47 {strides = array<i32>} : memref<190x72xbf16, #tpu.memory_space<vmem>>, vector<190x8xbf16>,
    %c18_60 = arith.constant 18 : index
    %c0_61 = arith.constant 0 : index
    %49 = vector.load %arg8[%c18_60, %c0_61] : memref<224x8xbf16, #tpu.memory_space<vmem>>, vector<190x8xbf16>
    %c0_62 = arith.constant 0 : index
    %c40 = arith.constant 40 : index
    %50 = vector.load %arg9[%c0_62, %c40] : memref<190x72xbf16, #tpu.memory_space<vmem>>, vector<190x8xbf16>
    tpu.vector_store %arg9[%c0_62, %c40], %49 {strides = array<i32>} : memref<190x72xbf16, #tpu.memory_space<vmem>>, vector<190x8xbf16>,
    %c32_63 = arith.constant 32 : index
    %c0_64 = arith.constant 0 : index
    %51 = vector.load %arg8[%c32_63, %c0_64] : memref<224x8xbf16, #tpu.memory_space<vmem>>, vector<190x8xbf16>
    %c0_65 = arith.constant 0 : index
    %c48 = arith.constant 48 : index
    %52 = vector.load %arg9[%c0_65, %c48] : memref<190x72xbf16, #tpu.memory_space<vmem>>, vector<190x8xbf16>
    tpu.vector_store %arg9[%c0_65, %c48], %51 {strides = array<i32>} : memref<190x72xbf16, #tpu.memory_space<vmem>>, vector<190x8xbf16>,
    %c33_66 = arith.constant 33 : index
    %c0_67 = arith.constant 0 : index
    %53 = vector.load %arg8[%c33_66, %c0_67] : memref<224x8xbf16, #tpu.memory_space<vmem>>, vector<190x8xbf16>
    %c0_68 = arith.constant 0 : index
    %c56 = arith.constant 56 : index
    %54 = vector.load %arg9[%c0_68, %c56] : memref<190x72xbf16, #tpu.memory_space<vmem>>, vector<190x8xbf16>
    tpu.vector_store %arg9[%c0_68, %c56], %53 {strides = array<i32>} : memref<190x72xbf16, #tpu.memory_space<vmem>>, vector<190x8xbf16>,
    %c34_69 = arith.constant 34 : index
    %c0_70 = arith.constant 0 : index
    %55 = vector.load %arg8[%c34_69, %c0_70] : memref<224x8xbf16, #tpu.memory_space<vmem>>, vector<190x8xbf16>
    %c0_71 = arith.constant 0 : index
    %c64 = arith.constant 64 : index
    %56 = vector.load %arg9[%c0_71, %c64] : memref<190x72xbf16, #tpu.memory_space<vmem>>, vector<190x8xbf16>
    tpu.vector_store %arg9[%c0_71, %c64], %55 {strides = array<i32>} : memref<190x72xbf16, #tpu.memory_space<vmem>>, vector<190x8xbf16>,
    %c0_72 = arith.constant 0 : index
    %c0_73 = arith.constant 0 : index
    %57 = vector.load %arg9[%c0_72, %c0_73] : memref<190x72xbf16, #tpu.memory_space<vmem>>, vector<190x72xbf16>
    %c0_74 = arith.constant 0 : index
    %c0_75 = arith.constant 0 : index
    %58 = vector.load %arg4[%c0_74, %c0_75] : memref<72x8xbf16, #tpu.memory_space<vmem>>, vector<72x8xbf16>
    %cst_76 = arith.constant dense<0.000000e+00> : vector<190x8xf32>
    %59 = tpu.matmul %57, %58, %cst_76 {dimension_numbers = #tpu.dot_dimension_numbers<[1], [0], [0], [1], [0, 0, 1, 1], [], []>} : vector<190x72xbf16>, vector<72x8xbf16>, vector<190x8xf32> -> vector<190x8xf32>
    %c0_77 = arith.constant 0 : index
    %c0_78 = arith.constant 0 : index
    %60 = vector.load %arg5[%c0_77, %c0_78] : memref<1x8xf32, #tpu.memory_space<vmem>>, vector<1x8xf32>
    %61 = vector.broadcast %60 : vector<1x8xf32> to vector<190x8xf32>
    %62 = arith.addf %59, %61 : vector<190x8xf32>
    %cst_79 = arith.constant 0.000000e+00 : f32
    %63 = vector.broadcast %cst_79 : f32 to vector<190x8xf32>
    %64 = arith.maximumf %62, %63 : vector<190x8xf32>
    %c0_80 = arith.constant 0 : index
    %c0_81 = arith.constant 0 : index
    %65 = vector.load %arg10[%c0_80, %c0_81] : memref<190x8xf32, #tpu.memory_space<vmem>>, vector<190x8xf32>
    tpu.vector_store %arg10[%c0_80, %c0_81], %64 {strides = array<i32>} : memref<190x8xf32, #tpu.memory_space<vmem>>, vector<190x8xf32>,
    %c0_82 = arith.constant 0 : index
    %c0_83 = arith.constant 0 : index
    %66 = tpu.strided_load %arg10[%c0_82, %c0_83] {strides = array<i32: 2, 1>} : memref<190x8xf32, #tpu.memory_space<vmem>>, vector<6x8xf32>
    %c1_84 = arith.constant 1 : index
    %c0_85 = arith.constant 0 : index
    %67 = tpu.strided_load %arg10[%c1_84, %c0_85] {strides = array<i32: 2, 1>} : memref<190x8xf32, #tpu.memory_space<vmem>>, vector<6x8xf32>
    %68 = arith.maximumf %66, %67 : vector<6x8xf32>
    %c16_86 = arith.constant 16 : index
    %c0_87 = arith.constant 0 : index
    %69 = tpu.strided_load %arg10[%c16_86, %c0_87] {strides = array<i32: 2, 1>} : memref<190x8xf32, #tpu.memory_space<vmem>>, vector<6x8xf32>
    %c17_88 = arith.constant 17 : index
    %c0_89 = arith.constant 0 : index
    %70 = tpu.strided_load %arg10[%c17_88, %c0_89] {strides = array<i32: 2, 1>} : memref<190x8xf32, #tpu.memory_space<vmem>>, vector<6x8xf32>
    %71 = arith.maximumf %69, %70 : vector<6x8xf32>
    %72 = arith.maximumf %68, %71 : vector<6x8xf32>
    %c0_90 = arith.constant 0 : index
    %c0_91 = arith.constant 0 : index
    %c0_92 = arith.constant 0 : index
    %c0_93 = arith.constant 0 : index
    %73 = vector.load %arg6[%c0_90, %c0_91, %c0_92, %c0_93] : memref<1x6x6x8xf32, #tpu.memory_space<vmem>>, vector<1x1x6x8xf32>
    %74 = vector.shape_cast %73 : vector<1x1x6x8xf32> to vector<6x8xf32>
    %75 = vector.shape_cast %72 : vector<6x8xf32> to vector<1x1x6x8xf32>
    tpu.vector_store %arg6[%c0_90, %c0_91, %c0_92, %c0_93], %75 {strides = array<i32>} : memref<1x6x6x8xf32, #tpu.memory_space<vmem>>, vector<1x1x6x8xf32>,
    %c32_94 = arith.constant 32 : index
    %c0_95 = arith.constant 0 : index
    %76 = tpu.strided_load %arg10[%c32_94, %c0_95] {strides = array<i32: 2, 1>} : memref<190x8xf32, #tpu.memory_space<vmem>>, vector<6x8xf32>
    %c33_96 = arith.constant 33 : index
    %c0_97 = arith.constant 0 : index
    %77 = tpu.strided_load %arg10[%c33_96, %c0_97] {strides = array<i32: 2, 1>} : memref<190x8xf32, #tpu.memory_space<vmem>>, vector<6x8xf32>
    %78 = arith.maximumf %76, %77 : vector<6x8xf32>
    %c48_98 = arith.constant 48 : index
    %c0_99 = arith.constant 0 : index
    %79 = tpu.strided_load %arg10[%c48_98, %c0_99] {strides = array<i32: 2, 1>} : memref<190x8xf32, #tpu.memory_space<vmem>>, vector<6x8xf32>
    %c49 = arith.constant 49 : index
    %c0_100 = arith.constant 0 : index
    %80 = tpu.strided_load %arg10[%c49, %c0_100] {strides = array<i32: 2, 1>} : memref<190x8xf32, #tpu.memory_space<vmem>>, vector<6x8xf32>
    %81 = arith.maximumf %79, %80 : vector<6x8xf32>
    %82 = arith.maximumf %78, %81 : vector<6x8xf32>
    %c0_101 = arith.constant 0 : index
    %c1_102 = arith.constant 1 : index
    %c0_103 = arith.constant 0 : index
    %c0_104 = arith.constant 0 : index
    %83 = vector.load %arg6[%c0_101, %c1_102, %c0_103, %c0_104] : memref<1x6x6x8xf32, #tpu.memory_space<vmem>>, vector<1x1x6x8xf32>
    %84 = vector.shape_cast %83 : vector<1x1x6x8xf32> to vector<6x8xf32>
    %85 = vector.shape_cast %82 : vector<6x8xf32> to vector<1x1x6x8xf32>
    tpu.vector_store %arg6[%c0_101, %c1_102, %c0_103, %c0_104], %85 {strides = array<i32>} : memref<1x6x6x8xf32, #tpu.memory_space<vmem>>, vector<1x1x6x8xf32>,
    %c64_105 = arith.constant 64 : index
    %c0_106 = arith.constant 0 : index
    %86 = tpu.strided_load %arg10[%c64_105, %c0_106] {strides = array<i32: 2, 1>} : memref<190x8xf32, #tpu.memory_space<vmem>>, vector<6x8xf32>
    %c65 = arith.constant 65 : index
    %c0_107 = arith.constant 0 : index
    %87 = tpu.strided_load %arg10[%c65, %c0_107] {strides = array<i32: 2, 1>} : memref<190x8xf32, #tpu.memory_space<vmem>>, vector<6x8xf32>
    %88 = arith.maximumf %86, %87 : vector<6x8xf32>
    %c80 = arith.constant 80 : index
    %c0_108 = arith.constant 0 : index
    %89 = tpu.strided_load %arg10[%c80, %c0_108] {strides = array<i32: 2, 1>} : memref<190x8xf32, #tpu.memory_space<vmem>>, vector<6x8xf32>
    %c81 = arith.constant 81 : index
    %c0_109 = arith.constant 0 : index
    %90 = tpu.strided_load %arg10[%c81, %c0_109] {strides = array<i32: 2, 1>} : memref<190x8xf32, #tpu.memory_space<vmem>>, vector<6x8xf32>
    %91 = arith.maximumf %89, %90 : vector<6x8xf32>
    %92 = arith.maximumf %88, %91 : vector<6x8xf32>
    %c0_110 = arith.constant 0 : index
    %c2_111 = arith.constant 2 : index
    %c0_112 = arith.constant 0 : index
    %c0_113 = arith.constant 0 : index
    %93 = vector.load %arg6[%c0_110, %c2_111, %c0_112, %c0_113] : memref<1x6x6x8xf32, #tpu.memory_space<vmem>>, vector<1x1x6x8xf32>
    %94 = vector.shape_cast %93 : vector<1x1x6x8xf32> to vector<6x8xf32>
    %95 = vector.shape_cast %92 : vector<6x8xf32> to vector<1x1x6x8xf32>
    tpu.vector_store %arg6[%c0_110, %c2_111, %c0_112, %c0_113], %95 {strides = array<i32>} : memref<1x6x6x8xf32, #tpu.memory_space<vmem>>, vector<1x1x6x8xf32>,
    %c96 = arith.constant 96 : index
    %c0_114 = arith.constant 0 : index
    %96 = tpu.strided_load %arg10[%c96, %c0_114] {strides = array<i32: 2, 1>} : memref<190x8xf32, #tpu.memory_space<vmem>>, vector<6x8xf32>
    %c97 = arith.constant 97 : index
    %c0_115 = arith.constant 0 : index
    %97 = tpu.strided_load %arg10[%c97, %c0_115] {strides = array<i32: 2, 1>} : memref<190x8xf32, #tpu.memory_space<vmem>>, vector<6x8xf32>
    %98 = arith.maximumf %96, %97 : vector<6x8xf32>
    %c112 = arith.constant 112 : index
    %c0_116 = arith.constant 0 : index
    %99 = tpu.strided_load %arg10[%c112, %c0_116] {strides = array<i32: 2, 1>} : memref<190x8xf32, #tpu.memory_space<vmem>>, vector<6x8xf32>
    %c113 = arith.constant 113 : index
    %c0_117 = arith.constant 0 : index
    %100 = tpu.strided_load %arg10[%c113, %c0_117] {strides = array<i32: 2, 1>} : memref<190x8xf32, #tpu.memory_space<vmem>>, vector<6x8xf32>
    %101 = arith.maximumf %99, %100 : vector<6x8xf32>
    %102 = arith.maximumf %98, %101 : vector<6x8xf32>
    %c0_118 = arith.constant 0 : index
    %c3 = arith.constant 3 : index
    %c0_119 = arith.constant 0 : index
    %c0_120 = arith.constant 0 : index
    %103 = vector.load %arg6[%c0_118, %c3, %c0_119, %c0_120] : memref<1x6x6x8xf32, #tpu.memory_space<vmem>>, vector<1x1x6x8xf32>
    %104 = vector.shape_cast %103 : vector<1x1x6x8xf32> to vector<6x8xf32>
    %105 = vector.shape_cast %102 : vector<6x8xf32> to vector<1x1x6x8xf32>
    tpu.vector_store %arg6[%c0_118, %c3, %c0_119, %c0_120], %105 {strides = array<i32>} : memref<1x6x6x8xf32, #tpu.memory_space<vmem>>, vector<1x1x6x8xf32>,
    %c128 = arith.constant 128 : index
    %c0_121 = arith.constant 0 : index
    %106 = tpu.strided_load %arg10[%c128, %c0_121] {strides = array<i32: 2, 1>} : memref<190x8xf32, #tpu.memory_space<vmem>>, vector<6x8xf32>
    %c129 = arith.constant 129 : index
    %c0_122 = arith.constant 0 : index
    %107 = tpu.strided_load %arg10[%c129, %c0_122] {strides = array<i32: 2, 1>} : memref<190x8xf32, #tpu.memory_space<vmem>>, vector<6x8xf32>
    %108 = arith.maximumf %106, %107 : vector<6x8xf32>
    %c144 = arith.constant 144 : index
    %c0_123 = arith.constant 0 : index
    %109 = tpu.strided_load %arg10[%c144, %c0_123] {strides = array<i32: 2, 1>} : memref<190x8xf32, #tpu.memory_space<vmem>>, vector<6x8xf32>
    %c145 = arith.constant 145 : index
    %c0_124 = arith.constant 0 : index
    %110 = tpu.strided_load %arg10[%c145, %c0_124] {strides = array<i32: 2, 1>} : memref<190x8xf32, #tpu.memory_space<vmem>>, vector<6x8xf32>
    %111 = arith.maximumf %109, %110 : vector<6x8xf32>
    %112 = arith.maximumf %108, %111 : vector<6x8xf32>
    %c0_125 = arith.constant 0 : index
    %c4_126 = arith.constant 4 : index
    %c0_127 = arith.constant 0 : index
    %c0_128 = arith.constant 0 : index
    %113 = vector.load %arg6[%c0_125, %c4_126, %c0_127, %c0_128] : memref<1x6x6x8xf32, #tpu.memory_space<vmem>>, vector<1x1x6x8xf32>
    %114 = vector.shape_cast %113 : vector<1x1x6x8xf32> to vector<6x8xf32>
    %115 = vector.shape_cast %112 : vector<6x8xf32> to vector<1x1x6x8xf32>
    tpu.vector_store %arg6[%c0_125, %c4_126, %c0_127, %c0_128], %115 {strides = array<i32>} : memref<1x6x6x8xf32, #tpu.memory_space<vmem>>, vector<1x1x6x8xf32>,
    %c160 = arith.constant 160 : index
    %c0_129 = arith.constant 0 : index
    %116 = tpu.strided_load %arg10[%c160, %c0_129] {strides = array<i32: 2, 1>} : memref<190x8xf32, #tpu.memory_space<vmem>>, vector<6x8xf32>
    %c161 = arith.constant 161 : index
    %c0_130 = arith.constant 0 : index
    %117 = tpu.strided_load %arg10[%c161, %c0_130] {strides = array<i32: 2, 1>} : memref<190x8xf32, #tpu.memory_space<vmem>>, vector<6x8xf32>
    %118 = arith.maximumf %116, %117 : vector<6x8xf32>
    %c176 = arith.constant 176 : index
    %c0_131 = arith.constant 0 : index
    %119 = tpu.strided_load %arg10[%c176, %c0_131] {strides = array<i32: 2, 1>} : memref<190x8xf32, #tpu.memory_space<vmem>>, vector<6x8xf32>
    %c177 = arith.constant 177 : index
    %c0_132 = arith.constant 0 : index
    %120 = tpu.strided_load %arg10[%c177, %c0_132] {strides = array<i32: 2, 1>} : memref<190x8xf32, #tpu.memory_space<vmem>>, vector<6x8xf32>
    %121 = arith.maximumf %119, %120 : vector<6x8xf32>
    %122 = arith.maximumf %118, %121 : vector<6x8xf32>
    %c0_133 = arith.constant 0 : index
    %c5 = arith.constant 5 : index
    %c0_134 = arith.constant 0 : index
    %c0_135 = arith.constant 0 : index
    %123 = vector.load %arg6[%c0_133, %c5, %c0_134, %c0_135] : memref<1x6x6x8xf32, #tpu.memory_space<vmem>>, vector<1x1x6x8xf32>
    %124 = vector.shape_cast %123 : vector<1x1x6x8xf32> to vector<6x8xf32>
    %125 = vector.shape_cast %122 : vector<6x8xf32> to vector<1x1x6x8xf32>
    tpu.vector_store %arg6[%c0_133, %c5, %c0_134, %c0_135], %125 {strides = array<i32>} : memref<1x6x6x8xf32, #tpu.memory_space<vmem>>, vector<1x1x6x8xf32>,
    return
  }
  func.func @transform_0(%arg0: i32) -> (i32, i32, i32) {
    %c0_i32 = arith.constant 0 : i32
    %c0_i32_0 = arith.constant 0 : i32
    %c0_i32_1 = arith.constant 0 : i32
    return %arg0, %c0_i32, %c0_i32_0 : i32, i32, i32
  }
  func.func @transform_1(%arg0: i32) -> (i32, i32) {
    %c0_i32 = arith.constant 0 : i32
    %c0_i32_0 = arith.constant 0 : i32
    %c0_i32_1 = arith.constant 0 : i32
    return %c0_i32, %c0_i32_0 : i32, i32
  }
  func.func @transform_2(%arg0: i32) -> (i32, i32) {
    %c0_i32 = arith.constant 0 : i32
    %c0_i32_0 = arith.constant 0 : i32
    %c0_i32_1 = arith.constant 0 : i32
    return %c0_i32, %c0_i32_0 : i32, i32
  }
  func.func @transform_3(%arg0: i32) -> (i32, i32) {
    %c0_i32 = arith.constant 0 : i32
    %c0_i32_0 = arith.constant 0 : i32
    %c0_i32_1 = arith.constant 0 : i32
    return %c0_i32, %c0_i32_0 : i32, i32
  }
  func.func @transform_4(%arg0: i32) -> (i32, i32) {
    %c0_i32 = arith.constant 0 : i32
    %c0_i32_0 = arith.constant 0 : i32
    %c0_i32_1 = arith.constant 0 : i32
    return %c0_i32, %c0_i32_0 : i32, i32
  }
  func.func @transform_5(%arg0: i32) -> (i32, i32, i32, i32) {
    %c0_i32 = arith.constant 0 : i32
    %c0_i32_0 = arith.constant 0 : i32
    %c0_i32_1 = arith.constant 0 : i32
    %c0_i32_2 = arith.constant 0 : i32
    return %arg0, %c0_i32, %c0_i32_0, %c0_i32_1 : i32, i32, i32, i32
  }
}

</mosaic_0001>

<bundles_post_ra>
// kernel: contracting_block.1
= control target key start
LH: loop header
LB: loop body
LE: loop exit
PB: predicated region body
PF: predicated region fallthrough
CT: control target
= control target key end

     0   :  { %s6043_s18 = smov 0   ;;  %s8416_s0 = inlined_call_operand.vmem [shape: bf16[2,256,4], index: 0, kind: input, shape index: {}]   ;;  %s8417_s1 = inlined_call_operand.vmem [shape: bf16[36,8], index: 1, kind: input, shape index: {}]   ;;  %s8418_s2 = inlined_call_operand.vmem [shape: f32[1,8], index: 2, kind: input, shape index: {}]   ;;  %s8419_s3 = inlined_call_operand.vmem [shape: bf16[72,8], index: 3, kind: input, shape index: {}]   ;;  %s8420_s4 = inlined_call_operand.vmem [shape: f32[1,8], index: 4, kind: input, shape index: {}]   ;;  %s8421_s5 = inlined_call_operand.vmem [shape: f32[2,6,6,8], index: 5, kind: output, shape index: {}]  }
   0x1 LB: > { %s5693_s19 = sadd.s32 4294967295, %s5999_s18   ;;  %p5697_p0 = scmp.ge.s32.totalorder %s5999_s18, 1  ;;  %s5999_s18 = sphi %s6043_s18, %s15_s18  }
   0x2   : > { %p187_p1 = scmp.lt.s32.totalorder %s5999_s18, 3 }
   0x4   : > { %p188_p2 = pnand %p5697_p0, %p187_p1 }
   0x5   : > { %p215_p3 = scmp.lt.s32.totalorder (!%p188_p2), %s5693_s19, 1  ;;  %s6001_s24 = smov (!%p188_p2), 4  }
   0x6   : > { %191 = sbr.rel (%p188_p2) target bundleno = 1453 (0x5ad), region = 40  ;;  %s6002_s25 = smov (!%p188_p2), 8  }
   0x7   : > { %s6003_s26 = smov (!%p188_p2), 12   ;;  %s6004_s27 = smov (!%p188_p2), 16  }
   0x8   : > { %s6005_s28 = smov (!%p188_p2), 20   ;;  %s6006_s29 = smov (!%p188_p2), 24  }
   0x9   : > { %s6007_s9 = smov (!%p188_p2), 28   ;;  %s6008_s12 = smov (!%p188_p2), 32  }
   0xa   : > { %s6009_s15 = smov (!%p188_p2), 40   ;;  %s6010_s16 = smov (!%p188_p2), 48  }
   0xb   : > { %vm312_vm0 = vsmask.f32 3328  ;;  %vm313_vm1 = vsmask.f32 7440  ;;  %s8427_s19 = smov (!%p215_p3, %s5693_s19), 1  ;;  %vm254_vm3 = vcmask 27648  }
   0xc   : > { %s5804_s20 = sshll.u32 %s8427_s19, 7  ;;  %vm6068_vm2 = vmor %vm312_vm0, %vm313_vm1  ;;  %vm764_vm4 = vcmask 1042432   ;;  %vm765_vm5 = vcmask 1046532   ;;  %vm282_vm7 = vcmask 26624   ;;  %vm678_vm8 = vcmask 60448   ;;  %s6012_s30 = smov 64  }
   0xd   : > { %s6057_s23 = scalar_lea.vmem %s8416_s0, %s5804_s20  ;;  %vm6224_vm6 = vmor %vm764_vm4, %vm765_vm5  ;;  %vm706_vm9 = vcmask 59424   ;;  %vm934_vm10 = vcmask 93248   ;;  %vm2820_vm11 = vcmask 1041408   ;;  %vm962_vm12 = vcmask 92224   ;;  %s5937_s10 = smul.u32 48, %s8427_s19 }
   0xe   : > { %v286_v0 = vld [vmem:[%s6057_s23 + $0x8] sm:$0xf]  ;;  %v287_v1 = vld [vmem:[%s6057_s23 + $0xc] sm:$0xf]  ;;  %v284_v2 = vld [vmem:[%s6057_s23] sm:$0xf] }
   0xf   : > { %v335_v3 = vshll.u32 %v286_v0, 16  ;;  %v339_v4 = vshrl.u32 %v286_v0, 16  ;;  %v345_v5 = vshll.u32 %v287_v1, 16  ;;  %v349_v6 = vshrl.u32 %v287_v1, 16  ;;  %v285_v7 = vld [vmem:[%s6057_s23 + $0x4] sm:$0xf]  ;;  %s8333_s13 = scalar_lea.vmem %s8421_s5, %s5937_s10 }
  0x10   : > { %v316_v8 = vshrl.u32 %v284_v2, 16  ;;  %v319_v9 = vshll.u32 %v284_v2, 16  ;;  %v325_v10 = vshll.u32 %v285_v7, 16  ;;  %v329_v11 = vshrl.u32 %v285_v7, 16  ;;  %v288_v12 = vld [vmem:[%s6057_s23 + $0x10] sm:$0xf] }
  0x11   : > { %v337_v13 = vrot.slane %v335_v3, 5  ;;  %v341_v14 = vrot.slane %v339_v4, 4  ;;  %v347_v15 = vrot.slane %v345_v5, 5  ;;  %v351_v16 = vrot.slane %v349_v6, 4  ;;  %v289_v17 = vld [vmem:[%s6057_s23 + $0x14] sm:$0xf] }
  0x12   : > { %v318_v18 = vrot.slane %v316_v8, 4  ;;  %v321_v19 = vrot.slane %v319_v9, 5  ;;  %v327_v20 = vrot.slane %v325_v10, 5  ;;  %v331_v21 = vrot.slane %v329_v11, 4  ;;  %v290_v22 = vld [vmem:[%s6057_s23 + $0x18] sm:$0xf] }
  0x13   : > { %v342_v23 = vor.u32 %v341_v14, %v337_v13  ;;  %v352_v24 = vor.u32 %v351_v16, %v347_v15  ;;  %v355_v25 = vshll.u32 %v288_v12, 16  ;;  %v359_v26 = vshrl.u32 %v288_v12, 16  ;;  %v291_v36 = vld [vmem:[%s6057_s23 + $0x1c] sm:$0xf]  ;;  %v292_v41 = vld [vmem:[%s6057_s23 + $0x20] sm:$0xf] }
  0x14   : > { %v322_v28 = vor.u32 %v321_v19, %v318_v18  ;;  %v332_v29 = vor.u32 %v331_v21, %v327_v20  ;;  %v365_v30 = vshll.u32 %v289_v17, 16  ;;  %v369_v31 = vshrl.u32 %v289_v17, 16  ;;  %v293_v46 = vld [vmem:[%s6057_s23 + $0x24] sm:$0xf]  ;;  %v294_v58 = vld [vmem:[%s6057_s23 + $0x28] sm:$0xf] }
  0x15   : > { %v343_v32 = vrot.slane %v342_v23, 4  ;;  %v353_v33 = vrot.slane %v352_v24, 4  ;;  %v357_v34 = vrot.slane %v355_v25, 5  ;;  %v375_v35 = vshll.u32 %v290_v22, 16  ;;  %v295_v0 = vld [vmem:[%s6057_s23 + $0x2c] sm:$0xf] }
  0x16   : > { %v323_v37 = vrot.slane %v322_v28, 4  ;;  %v333_v38 = vrot.slane %v332_v29, 4  ;;  %v367_v39 = vrot.slane %v365_v30, 5  ;;  %v371_v40 = vrot.slane %v369_v31, 4  ;;  %v296_v9 = vld [vmem:[%s6057_s23 + $0x30] sm:$0xf] }
  0x17   : > { %v348_v42 = vsel %vm6068_vm2, %v343_v32, %v347_v15  ;;  %v358_v43 = vsel %vm6068_vm2, %v353_v33, %v357_v34  ;;  %v377_v44 = vrot.slane %v375_v35, 5  ;;  %v379_v45 = vshrl.u32 %v290_v22, 16  ;;  %v297_v17 = vld [vmem:[%s6057_s23 + $0x34] sm:$0xf]  ;;  %v298_v22 = vld [vmem:[%s6057_s23 + $0x38] sm:$0xf] }
  0x18   : > { %598 = vrot.lane.b32.xlu1 %v348_v42, %s6001_s24  ;;  %v328_v47 = vsel %vm6068_vm2, %v323_v37, %v327_v20  ;;  %v338_v48 = vsel %vm6068_vm2, %v333_v38, %v337_v13  ;;  %v372_v49 = vor.u32 %v371_v40, %v367_v39  ;;  %v361_v50 = vrot.slane %v359_v26, 4  ;;  %v299_v32 = vld [vmem:[%s6057_s23 + $0x3c] sm:$0xf]  ;;  %v300_v37 = vld [vmem:[%s6057_s23 + $0x40] sm:$0xf] }
  0x19   : > { %594 = vrot.lane.b32.xlu0 %v328_v47, %s6001_s24  ;;  %v385_v51 = vshll.u32 %v291_v36, 16  ;;  %v389_v52 = vshrl.u32 %v291_v36, 16  ;;  %v395_v53 = vshll.u32 %v292_v41, 16  ;;  %v399_v54 = vshrl.u32 %v292_v41, 16 }
  0x1a   : > { %v373_v55 = vrot.slane %v372_v49, 4  ;;  %v362_v56 = vor.u32 %v361_v50, %v357_v34  ;;  %v381_v57 = vrot.slane %v379_v45, 4  ;;  %v405_v59 = vshll.u32 %v293_v46, 16  ;;  %v301_v50 = vld [vmem:[%s6057_s23 + $0x44] sm:$0xf] }
  0x1b   : > { %v387_v60 = vrot.slane %v385_v51, 5  ;;  %v391_v61 = vrot.slane %v389_v52, 4  ;;  %v397_v62 = vrot.slane %v395_v53, 5  ;;  %v409_v63 = vshrl.u32 %v293_v46, 16 }
  0x1c   : > { %600 = vrot.lane.b32.xlu1 %v358_v43, %s6001_s24  ;;  %v378_v1 = vsel %vm6068_vm2, %v373_v55, %v377_v44  ;;  %v363_v2 = vrot.slane %v362_v56, 4  ;;  %v382_v3 = vor.u32 %v381_v57, %v377_v44  ;;  %v407_v4 = vrot.slane %v405_v59, 5  ;;  %v302_v55 = vld [vmem:[%s6057_s23 + $0x48] sm:$0xf] }
  0x1d   : > { %596 = vrot.lane.b32.xlu0 %v338_v48, %s6001_s24  ;;  %v392_v5 = vor.u32 %v391_v61, %v387_v60  ;;  %v411_v6 = vrot.slane %v409_v63, 4  ;;  %v415_v7 = vshll.u32 %v294_v58, 16  ;;  %v419_v8 = vshrl.u32 %v294_v58, 16 }
  0x1e   : > { %v368_v10 = vsel %vm6068_vm2, %v363_v2, %v367_v39  ;;  %v383_v11 = vrot.slane %v382_v3, 4  ;;  %v401_v12 = vrot.slane %v399_v54, 4  ;;  %v425_v13 = vshll.u32 %v295_v0, 16 }
  0x1f   : > { %v393_v14 = vrot.slane %v392_v5, 4  ;;  %v412_v15 = vor.u32 %v411_v6, %v407_v4  ;;  %v429_v16 = vshrl.u32 %v295_v0, 16  ;;  %v417_v18 = vrot.slane %v415_v7, 5  ;;  %v303_v0 = vld [vmem:[%s6057_s23 + $0x4c] sm:$0xf] }
  0x20   : > { %604 = vrot.lane.b32.xlu1 %v378_v1, %s6001_s24  ;;  %v402_v19 = vor.u32 %v401_v12, %v397_v62  ;;  %v427_v20 = vrot.slane %v425_v13, 5  ;;  %v435_v21 = vshll.u32 %v296_v9, 16  ;;  %v439_v26 = vshrl.u32 %v296_v9, 16  ;;  %v304_v5 = vld [vmem:[%s6057_s23 + $0x50] sm:$0xf] }
  0x21   : > { %602 = vrot.lane.b32.xlu0 %v368_v10, %s6001_s24  ;;  %v398_v23 = vsel %vm6068_vm2, %v393_v14, %v397_v62  ;;  %v413_v24 = vrot.slane %v412_v15, 4  ;;  %v431_v25 = vrot.slane %v429_v16, 4  ;;  %v388_v28 = vsel %vm6068_vm2, %v383_v11, %v387_v60 }
  0x22   : > { %v403_v29 = vrot.slane %v402_v19, 4  ;;  %v421_v30 = vrot.slane %v419_v8, 4  ;;  %v445_v31 = vshll.u32 %v297_v17, 16  ;;  %v437_v34 = vrot.slane %v435_v21, 5 }
  0x23   : > { %v432_v33 = vor.u32 %v431_v25, %v427_v20  ;;  %v449_v35 = vshrl.u32 %v297_v17, 16  ;;  %v455_v36 = vshll.u32 %v298_v22, 16  ;;  %v418_v38 = vsel %vm6068_vm2, %v413_v24, %v417_v18  ;;  %v305_v17 = vld [vmem:[%s6057_s23 + $0x54] sm:$0xf]  ;;  %v306_v25 = vld [vmem:[%s6057_s23 + $0x58] sm:$0xf] }
  0x24   : > { %608 = vrot.lane.b32.xlu1 %v398_v23, %s6001_s24  ;;  %v408_v39 = vsel %vm6068_vm2, %v403_v29, %v407_v4  ;;  %v422_v40 = vor.u32 %v421_v30, %v417_v18  ;;  %v447_v41 = vrot.slane %v445_v31, 5  ;;  %v459_v44 = vshrl.u32 %v298_v22, 16  ;;  %v307_v31 = vld [vmem:[%s6057_s23 + $0x5c] sm:$0xf] }
  0x25   : > { %606 = vrot.lane.b32.xlu0 %v388_v28, %s6001_s24  ;;  %v433_v42 = vrot.slane %v432_v33, 4  ;;  %v451_v43 = vrot.slane %v449_v35, 4  ;;  %v441_v45 = vrot.slane %v439_v26, 4  ;;  %v465_v47 = vshll.u32 %v299_v32, 16 }
  0x26   : > { %v423_v46 = vrot.slane %v422_v40, 4  ;;  %v469_v48 = vshrl.u32 %v299_v32, 16  ;;  %v475_v49 = vshll.u32 %v300_v37, 16  ;;  %v457_v53 = vrot.slane %v455_v36, 5  ;;  %v308_v36 = vld [vmem:[%s6057_s23 + $0x60] sm:$0xf] }
  0x27   : > { %v438_v51 = vsel %vm6068_vm2, %v433_v42, %v437_v34  ;;  %v452_v52 = vor.u32 %v451_v43, %v447_v41  ;;  %v442_v54 = vor.u32 %v441_v45, %v437_v34  ;;  %v467_v57 = vrot.slane %v465_v47, 5 }
  0x28   : > { %612 = vrot.lane.b32.xlu1 %v418_v38, %s6001_s24  ;;  %v428_v56 = vsel %vm6068_vm2, %v423_v46, %v427_v20  ;;  %v471_v58 = vrot.slane %v469_v48, 4  ;;  %v479_v59 = vshrl.u32 %v300_v37, 16  ;;  %v461_v62 = vrot.slane %v459_v44, 4 }
  0x29   : > { %610 = vrot.lane.b32.xlu0 %v408_v39, %s6001_s24  ;;  %v453_v60 = vrot.slane %v452_v52, 4  ;;  %v443_v61 = vrot.slane %v442_v54, 4  ;;  %v485_v63 = vshll.u32 %v301_v50, 16  ;;  %v477_v2 = vrot.slane %v475_v49, 5  ;;  %v309_v49 = vld [vmem:[%s6057_s23 + $0x64] sm:$0xf] }
  0x2a   : > { %v472_v1 = vor.u32 %v471_v58, %v467_v57  ;;  %v489_v3 = vshrl.u32 %v301_v50, 16  ;;  %v495_v4 = vshll.u32 %v302_v55, 16  ;;  %v462_v6 = vor.u32 %v461_v62, %v457_v53  ;;  %v310_v58 = vld [vmem:[%s6057_s23 + $0x68] sm:$0xf] }
  0x2b   : > { %v6120_v7 = vrot.slane %v485_v63, 5  ;;  %v499_v8 = vshrl.u32 %v302_v55, 16  ;;  %v458_v9 = vsel %vm6068_vm2, %v453_v60, %v457_v53  ;;  %v481_v12 = vrot.slane %v479_v59, 4 }
  0x2c   : > { %616 = vrot.lane.b32.xlu1 %v438_v51, %s6001_s24  ;;  %v473_v10 = vrot.slane %v472_v1, 4  ;;  %v491_v11 = vrot.slane %v489_v3, 4  ;;  %v448_v13 = vsel %vm6068_vm2, %v443_v61, %v447_v41  ;;  %v505_v14 = vshll.u32 %v303_v0, 16 }
  0x2d   : > { %614 = vrot.lane.b32.xlu0 %v428_v56, %s6001_s24  ;;  %v509_v15 = vshrl.u32 %v303_v0, 16  ;;  %v515_v16 = vshll.u32 %v304_v5, 16  ;;  %v463_v18 = vrot.slane %v462_v6, 4  ;;  %v497_v20 = vrot.slane %v495_v4, 5 }
  0x2e   : > { %v492_v19 = vor.u32 %v491_v11, %v6120_v7  ;;  %v482_v21 = vor.u32 %v481_v12, %v477_v2  ;;  %v6130_v22 = vrot.slane %v505_v14, 5  ;;  %v519_v24 = vshrl.u32 %v304_v5, 16 }
  0x2f   : > { %v511_v23 = vrot.slane %v509_v15, 4  ;;  %v478_v26 = vsel %vm6068_vm2, %v473_v10, %v477_v2  ;;  %v501_v29 = vrot.slane %v499_v8, 4  ;;  %v525_v30 = vshll.u32 %v305_v17, 16  ;;  %v311_v2 = vld [vmem:[%s6057_s23 + $0x6c] sm:$0xf] }
  0x30   : > { %620 = vrot.lane.b32.xlu1 %v458_v9, %s6001_s24  ;;  %v493_v28 = vrot.slane %v492_v19, 4  ;;  %v483_v32 = vrot.slane %v482_v21, 4  ;;  %v517_v34 = vrot.slane %v515_v16, 5  ;;  %v529_v35 = vshrl.u32 %v305_v17, 16  ;;  %v226_v8 = vld [vmem:[%s6057_s23] sm:$0xf] }
  0x31   : > { %618 = vrot.lane.b32.xlu0 %v448_v13, %s6001_s24  ;;  %v512_v33 = vor.u32 %v511_v23, %v6130_v22  ;;  %v468_v37 = vsel %vm6068_vm2, %v463_v18, %v467_v57  ;;  %v502_v38 = vor.u32 %v501_v29, %v497_v20  ;;  %v6142_v39 = vrot.slane %v525_v30, 5  ;;  %255 = vst.msk [vmem:[#allocation2] sm:$0xf] %vm254_vm3, %v226_v8  ;;  %v229_v15 = vld [vmem:[%s6057_s23 + $0xc] sm:$0xf] }
  0x32   : > { %v535_v40 = vshll.u32 %v306_v25, 16  ;;  %v531_v42 = vrot.slane %v529_v35, 4  ;;  %v539_v43 = vshrl.u32 %v306_v25, 16  ;;  %v521_v44 = vrot.slane %v519_v24, 4  ;;  %v227_v16 = vld [vmem:[%s6057_s23 + $0x4] sm:$0xf] }
  0x33   : > { %v513_v41 = vrot.slane %v512_v33, 4  ;;  %v498_v45 = vsel %vm6068_vm2, %v493_v28, %v497_v20  ;;  %v545_v46 = vshll.u32 %v307_v31, 16  ;;  %v549_v47 = vshrl.u32 %v307_v31, 16  ;;  %258 = vst.msk [vmem:[#allocation2 + $0xc] sm:$0xf] %vm254_vm3, %v229_v15 }
  0x34   : > { %624 = vrot.lane.b32.xlu1 %v478_v26, %s6001_s24  ;;  %v555_v48 = vshll.u32 %v308_v36, 16  ;;  %v488_v50 = vsel %vm6068_vm2, %v483_v32, %v6120_v7  ;;  %v503_v51 = vrot.slane %v502_v38, 4  ;;  %v532_v52 = vor.u32 %v531_v42, %v6142_v39  ;;  %v228_v7 = vld [vmem:[%s6057_s23 + $0x8] sm:$0xf]  ;;  %256 = vst.msk [vmem:[#allocation2 + $0x4] sm:$0xf] %vm254_vm3, %v227_v16 }
  0x35   : > { %622 = vrot.lane.b32.xlu0 %v468_v37, %s6001_s24  ;;  %v522_v53 = vor.u32 %v521_v44, %v517_v34  ;;  %v537_v54 = vrot.slane %v535_v40, 5  ;;  %v6153_v55 = vrot.slane %v545_v46, 5  ;;  %v551_v56 = vrot.slane %v549_v47, 4  ;;  %257 = vst.msk [vmem:[#allocation2 + $0x8] sm:$0xf] %vm254_vm3, %v228_v7 }
  0x36   : > { %v559_v57 = vshrl.u32 %v308_v36, 16  ;;  %v518_v59 = vsel %vm6068_vm2, %v513_v41, %v517_v34  ;;  %v541_v60 = vrot.slane %v539_v43, 4  ;;  %v565_v61 = vshll.u32 %v309_v49, 16  ;;  %v231_v25 = vld [vmem:[%s6057_s23 + $0x14] sm:$0xf] }
  0x37   : > { %v533_v62 = vrot.slane %v532_v52, 4  ;;  %v523_v63 = vrot.slane %v522_v53, 4  ;;  %v557_v0 = vrot.slane %v555_v48, 5  ;;  %v569_v1 = vshrl.u32 %v309_v49, 16  ;;  %260 = vst.msk [vmem:[#allocation2 + $0x14] sm:$0xf] %vm254_vm3, %v231_v25 }
  0x38   : > { %628 = vrot.lane.b32.xlu1 %v498_v45, %s6001_s24  ;;  %v508_v3 = vsel %vm6068_vm2, %v503_v51, %v6130_v22  ;;  %v552_v4 = vor.u32 %v551_v56, %v6153_v55  ;;  %v6165_v5 = vrot.slane %v565_v61, 5  ;;  %v575_v6 = vshll.u32 %v310_v58, 16  ;;  %v230_v26 = vld [vmem:[%s6057_s23 + $0x10] sm:$0xf]  ;;  %v233_v32 = vld [vmem:[%s6057_s23 + $0x1c] sm:$0xf] }
  0x39   : > { %626 = vrot.lane.b32.xlu0 %v488_v50, %s6001_s24  ;;  %v542_v9 = vor.u32 %v541_v60, %v537_v54  ;;  %v571_v10 = vrot.slane %v569_v1, 4  ;;  %v579_v11 = vshrl.u32 %v310_v58, 16  ;;  %v561_v12 = vrot.slane %v559_v57, 4  ;;  %259 = vst.msk [vmem:[#allocation2 + $0x10] sm:$0xf] %vm254_vm3, %v230_v26 }
  0x3a   : > { %v585_v13 = vshll.u32 %v311_v2, 16  ;;  %v589_v14 = vshrl.u32 %v311_v2, 16  ;;  %v538_v17 = vsel %vm6068_vm2, %v533_v62, %v537_v54  ;;  %v528_v18 = vsel %vm6068_vm2, %v523_v63, %v6142_v39  ;;  %v232_v33 = vld [vmem:[%s6057_s23 + $0x18] sm:$0xf]  ;;  %v709_v37 = vld [vmem:[%s6057_s23 + $0x4] sm:$0xf] }
  0x3b   : > { %v553_v19 = vrot.slane %v552_v4, 4  ;;  %v572_v20 = vor.u32 %v571_v10, %v6165_v5  ;;  %v543_v21 = vrot.slane %v542_v9, 4  ;;  %v577_v22 = vrot.slane %v575_v6, 5  ;;  %262 = vst.msk [vmem:[#allocation2 + $0x1c] sm:$0xf] %vm254_vm3, %v233_v32 }
  0x3c   : > { %632 = vrot.lane.b32.xlu1 %v518_v59, %s6001_s24  ;;  %v562_v23 = vor.u32 %v561_v12, %v557_v0  ;;  %v581_v24 = vrot.slane %v579_v11, 4  ;;  %v587_v28 = vrot.slane %v585_v13, 5  ;;  %v591_v29 = vrot.slane %v589_v14, 4  ;;  %261 = vst.msk [vmem:[#allocation2 + $0x18] sm:$0xf] %vm254_vm3, %v232_v33 }
  0x3d   : > { %630 = vrot.lane.b32.xlu0 %v508_v3, %s6001_s24  ;;  %v558_v30 = vsel %vm6068_vm2, %v553_v19, %v557_v0  ;;  %v573_v31 = vrot.slane %v572_v20, 4  ;;  %v548_v34 = vsel %vm6068_vm2, %v543_v21, %v6153_v55  ;;  %v235_v39 = vld [vmem:[%s6057_s23 + $0x24] sm:$0xf]  ;;  %v234_v40 = vld [vmem:[%s6057_s23 + $0x20] sm:$0xf]  ;;  %v769_v43 = vrot.slane %v709_v37, 5 }
  0x3e   : > { %v563_v35 = vrot.slane %v562_v23, 4  ;;  %v582_v36 = vor.u32 %v581_v24, %v577_v22  ;;  %v592_v38 = vor.u32 %v591_v29, %v587_v28  ;;  %v710_v42 = vld [vmem:[%s6057_s23 + $0x8] sm:$0xf]  ;;  %264 = vst.msk [vmem:[#allocation2 + $0x24] sm:$0xf] %vm254_vm3, %v235_v39  ;;  %vm1104_vm13 = vcmask 126048  }
  0x3f   : > { %v578_v41 = vsel %vm6068_vm2, %v573_v31, %v577_v22  ;;  %263 = vst.msk [vmem:[#allocation2 + $0x20] sm:$0xf] %vm254_vm3, %v234_v40  ;;  %v711_v46 = vld [vmem:[%s6057_s23 + $0xc] sm:$0xf]  ;;  %v708_v48 = vld [vmem:[%s6057_s23] sm:$0xe] }
  0x40   : > { %636 = vrot.lane.b32.xlu1 %v538_v17, %s6001_s24  ;;  %v568_v44 = vsel %vm6068_vm2, %v563_v35, %v6165_v5  ;;  %v583_v45 = vrot.slane %v582_v36, 4  ;;  %v237_v47 = vld [vmem:[%s6057_s23 + $0x2c] sm:$0xf]  ;;  %v236_v49 = vld [vmem:[%s6057_s23 + $0x28] sm:$0xf]  ;;  %v593_v50 = vrot.slane %v592_v38, 4 }
  0x41   : > { %634 = vrot.lane.b32.xlu0 %v528_v18, %s6001_s24  ;;  %266 = vst.msk [vmem:[#allocation2 + $0x2c] sm:$0xf] %vm254_vm3, %v237_v47  ;;  %v712_v51 = vld [vmem:[%s6057_s23 + $0x10] sm:$0xf]  ;;  %265 = vst.msk [vmem:[#allocation2 + $0x28] sm:$0xf] %vm254_vm3, %v236_v49 }
  0x42   : > { %v771_v52 = vrot.slane %v769_v43, 4  ;;  %v772_v53 = vrot.slane %v710_v42, 5  ;;  %v775_v54 = vrot.slane %v711_v46, 5  ;;  %v239_v55 = vld [vmem:[%s6057_s23 + $0x34] sm:$0xf]  ;;  %v588_v56 = vsel %vm6068_vm2, %v583_v45, %v587_v28 }
  0x43   : > { %v5701_v58 = vrot.slane %v708_v48, 9  ;;  %v713_v59 = vld [vmem:[%s6057_s23 + $0x14] sm:$0xf]  ;;  %268 = vst.msk [vmem:[#allocation2 + $0x34] sm:$0xf] %vm254_vm3, %v239_v55  ;;  %v778_v1 = vrot.slane %v712_v51, 5 }
  0x44   : > { %640 = vrot.lane.b32.xlu1 %v558_v30, %s6001_s24  ;;  %v238_v60 = vld [vmem:[%s6057_s23 + $0x30] sm:$0xf]  ;;  %v241_v61 = vld [vmem:[%s6057_s23 + $0x3c] sm:$0xf]  ;;  %v240_v62 = vld [vmem:[%s6057_s23 + $0x38] sm:$0xf]  ;;  %v773_v63 = vsel %vm6224_vm6, %v771_v52, %v772_v53 }
  0x45   : > { %638 = vrot.lane.b32.xlu0 %v548_v34, %s6001_s24  ;;  %267 = vst.msk [vmem:[#allocation2 + $0x30] sm:$0xf] %vm254_vm3, %v238_v60  ;;  %v777_v0 = vrot.slane %v775_v54, 4  ;;  %v714_v2 = vld [vmem:[%s6057_s23 + $0x18] sm:$0xf]  ;;  %v781_v3 = vrot.slane %v713_v59, 5  ;;  %v770_v4 = vsel %vm6224_vm6, %v5701_v58, %v769_v43 }
  0x46   : > { %270 = vst.msk [vmem:[#allocation2 + $0x3c] sm:$0xf] %vm254_vm3, %v241_v61  ;;  %269 = vst.msk [vmem:[#allocation2 + $0x38] sm:$0xf] %vm254_vm3, %v240_v62  ;;  %v774_v5 = vrot.slane %v772_v53, 4  ;;  %v784_v12 = vrot.slane %v714_v2, 5 }
  0x47   : > { %v715_v6 = vld [vmem:[%s6057_s23 + $0x1c] sm:$0xf]  ;;  %v243_v7 = vld [vmem:[%s6057_s23 + $0x44] sm:$0xf]  ;;  %v242_v8 = vld [vmem:[%s6057_s23 + $0x40] sm:$0xf]  ;;  %v779_v10 = vsel %vm6224_vm6, %v777_v0, %v778_v1 }
  0x48   : > { %644 = vrot.lane.b32.xlu1 %v578_v41, %s6001_s24  ;;  %272 = vst.msk [vmem:[#allocation2 + $0x44] sm:$0xf] %vm254_vm3, %v243_v7  ;;  %v716_v9 = vld [vmem:[%s6057_s23 + $0x20] sm:$0xf]  ;;  %271 = vst.msk [vmem:[#allocation2 + $0x40] sm:$0xf] %vm254_vm3, %v242_v8  ;;  %v776_v15 = vsel %vm6224_vm6, %v774_v5, %v775_v54 }
  0x49   : > { %642 = vrot.lane.b32.xlu0 %v568_v44, %s6001_s24  ;;  %v783_v11 = vrot.slane %v781_v3, 4  ;;  %v787_v13 = vrot.slane %v715_v6, 5  ;;  %v245_v14 = vld [vmem:[%s6057_s23 + $0x4c] sm:$0xf]  ;;  %v780_v16 = vrot.slane %v778_v1, 4  ;;  %v790_v20 = vrot.slane %v716_v9, 5 }
  0x4a   : > { %v717_v17 = vld [vmem:[%s6057_s23 + $0x24] sm:$0xf]  ;;  %274 = vst.msk [vmem:[#allocation2 + $0x4c] sm:$0xf] %vm254_vm3, %v245_v14  ;;  %v244_v18 = vld [vmem:[%s6057_s23 + $0x48] sm:$0xf] }
  0x4b   : > { %273 = vst.msk [vmem:[#allocation2 + $0x48] sm:$0xf] %vm254_vm3, %v244_v18  ;;  %v247_v19 = vld [vmem:[%s6057_s23 + $0x54] sm:$0xf]  ;;  %v718_v21 = vld [vmem:[%s6057_s23 + $0x28] sm:$0xf]  ;;  %v785_v23 = vsel %vm6224_vm6, %v783_v11, %v784_v12  ;;  %v782_v29 = vsel %vm6224_vm6, %v780_v16, %v781_v3 }
  0x4c   : > { %648 = vrot.lane.b32.xlu1 %v593_v50, %s6001_s24  ;;  %276 = vst.msk [vmem:[#allocation2 + $0x54] sm:$0xf] %vm254_vm3, %v247_v19  ;;  %v246_v22 = vld [vmem:[%s6057_s23 + $0x50] sm:$0xf]  ;;  %v789_v24 = vrot.slane %v787_v13, 4  ;;  %v793_v25 = vrot.slane %v717_v17, 5 }
  0x4d   : > { %646 = vrot.lane.b32.xlu0 %v588_v56, %s6001_s24  ;;  %275 = vst.msk [vmem:[#allocation2 + $0x50] sm:$0xf] %vm254_vm3, %v246_v22  ;;  %v249_v26 = vld [vmem:[%s6057_s23 + $0x5c] sm:$0xf]  ;;  %v248_v28 = vld [vmem:[%s6057_s23 + $0x58] sm:$0xf] }
  0x4e   : > { %v786_v30 = vrot.slane %v784_v12, 4  ;;  %v719_v31 = vld [vmem:[%s6057_s23 + $0x2c] sm:$0xf]  ;;  %278 = vst.msk [vmem:[#allocation2 + $0x5c] sm:$0xf] %vm254_vm3, %v249_v26  ;;  %v791_v36 = vsel %vm6224_vm6, %v789_v24, %v790_v20  ;;  %v795_v37 = vrot.slane %v793_v25, 4 }
  0x4f   : > { %277 = vst.msk [vmem:[#allocation2 + $0x58] sm:$0xf] %vm254_vm3, %v248_v28  ;;  %v251_v32 = vld [vmem:[%s6057_s23 + $0x64] sm:$0xf]  ;;  %v250_v33 = vld [vmem:[%s6057_s23 + $0x60] sm:$0xf] }
  0x50   : > { %852 = vrot.lane.b32.xlu1 %v773_v63, %s6002_s25  ;;  %280 = vst.msk [vmem:[#allocation2 + $0x64] sm:$0xf] %vm254_vm3, %v251_v32  ;;  %279 = vst.msk [vmem:[#allocation2 + $0x60] sm:$0xf] %vm254_vm3, %v250_v33  ;;  %v253_v34 = vld [vmem:[%s6057_s23 + $0x6c] sm:$0x7]  ;;  %v788_v40 = vsel %vm6224_vm6, %v786_v30, %v787_v13 }
  0x51   : > { %850 = vrot.lane.b32.xlu0 %v770_v4, %s6002_s25  ;;  %v252_v35 = vld [vmem:[%s6057_s23 + $0x68] sm:$0xf]  ;;  %v796_v38 = vrot.slane %v718_v21, 5  ;;  %v799_v39 = vrot.slane %v719_v31, 5  ;;  %283 = vst.msk [vmem:[#allocation2 + $0x6c] sm:$0x7] %vm282_vm7, %v253_v34 }
  0x52   : > { %281 = vst.msk [vmem:[#allocation2 + $0x68] sm:$0xf] %vm254_vm3, %v252_v35  ;;  %v792_v41 = vrot.slane %v790_v20, 4  ;;  %v720_v42 = vld [vmem:[%s6057_s23 + $0x30] sm:$0xf]  ;;  %vm1132_vm14 = vcmask 125024  }
  0x53   : > { %v721_v43 = vld [vmem:[%s6057_s23 + $0x34] sm:$0xf]  ;;  %v797_v44 = vsel %vm6224_vm6, %v795_v37, %v796_v38  ;;  %v801_v45 = vrot.slane %v799_v39, 4  ;;  %v802_v46 = vrot.slane %v720_v42, 5  ;;  %v798_v49 = vrot.slane %v796_v38, 4 }
  0x54   : > { %856 = vrot.lane.b32.xlu1 %v779_v10, %s6002_s25  ;;  %v805_v47 = vrot.slane %v721_v43, 5  ;;  %v794_v48 = vsel %vm6224_vm6, %v792_v41, %v793_v25  ;;  %v722_v50 = vld [vmem:[%s6057_s23 + $0x38] sm:$0xf]  ;;  %v723_v51 = vld [vmem:[%s6057_s23 + $0x3c] sm:$0xf]  ;;  %vm1525_vm15 = vcmask 158848  }
  0x55   : > { %854 = vrot.lane.b32.xlu0 %v776_v15, %s6002_s25  ;;  %v803_v52 = vsel %vm6224_vm6, %v801_v45, %v802_v46  ;;  %v808_v54 = vrot.slane %v722_v50, 5  ;;  %v811_v55 = vrot.slane %v723_v51, 5  ;;  %v800_v56 = vsel %vm6224_vm6, %v798_v49, %v799_v39  ;;  %v724_v59 = vld [vmem:[%s6057_s23 + $0x40] sm:$0xf]  ;;  %v725_v60 = vld [vmem:[%s6057_s23 + $0x44] sm:$0xf] }
  0x56   : > { %v807_v53 = vrot.slane %v805_v47, 4  ;;  %v804_v58 = vrot.slane %v802_v46, 4  ;;  %v814_v63 = vrot.slane %v724_v59, 5  ;;  %v817_v0 = vrot.slane %v725_v60, 5  ;;  %v726_v3 = vld [vmem:[%s6057_s23 + $0x48] sm:$0xf] }
  0x57   : > { %v813_v62 = vrot.slane %v811_v55, 4  ;;  %v810_v2 = vrot.slane %v808_v54, 4  ;;  %v727_v4 = vld [vmem:[%s6057_s23 + $0x4c] sm:$0xf]  ;;  %v820_v7 = vrot.slane %v726_v3, 5  ;;  %vm1778_vm0 = vcmask 191648  }
  0x58   : > { %860 = vrot.lane.b32.xlu1 %v785_v23, %s6002_s25  ;;  %v809_v61 = vsel %vm6224_vm6, %v807_v53, %v808_v54  ;;  %v806_v1 = vsel %vm6224_vm6, %v804_v58, %v805_v47  ;;  %v819_v6 = vrot.slane %v817_v0, 4  ;;  %v823_v8 = vrot.slane %v727_v4, 5  ;;  %v728_v11 = vld [vmem:[%s6057_s23 + $0x50] sm:$0xf]  ;;  %v729_v12 = vld [vmem:[%s6057_s23 + $0x54] sm:$0xf] }
  0x59   : > { %858 = vrot.lane.b32.xlu0 %v782_v29, %s6002_s25  ;;  %v815_v5 = vsel %vm6224_vm6, %v813_v62, %v814_v63  ;;  %v812_v9 = vsel %vm6224_vm6, %v810_v2, %v811_v55  ;;  %v816_v10 = vrot.slane %v814_v63, 4  ;;  %v730_v13 = vld [vmem:[%s6057_s23 + $0x58] sm:$0xf]  ;;  %v826_v16 = vrot.slane %v728_v11, 5  ;;  %v731_v18 = vld [vmem:[%s6057_s23 + $0x5c] sm:$0xf] }
  0x5a   : > { %v821_v14 = vsel %vm6224_vm6, %v819_v6, %v820_v7  ;;  %v825_v15 = vrot.slane %v823_v8, 4  ;;  %v829_v17 = vrot.slane %v729_v12, 5  ;;  %v822_v20 = vrot.slane %v820_v7, 4  ;;  %v732_v21 = vld [vmem:[%s6057_s23 + $0x60] sm:$0xf] }
  0x5b   : > { %v818_v19 = vsel %vm6224_vm6, %v816_v10, %v817_v0  ;;  %v832_v24 = vrot.slane %v730_v13, 5  ;;  %v835_v25 = vrot.slane %v731_v18, 5  ;;  %v733_v26 = vld [vmem:[%s6057_s23 + $0x64] sm:$0xf]  ;;  %v828_v29 = vrot.slane %v826_v16, 4 }
  0x5c   : > { %864 = vrot.lane.b32.xlu1 %v791_v36, %s6002_s25  ;;  %v827_v22 = vsel %vm6224_vm6, %v825_v15, %v826_v16  ;;  %v831_v23 = vrot.slane %v829_v17, 4  ;;  %v824_v28 = vsel %vm6224_vm6, %v822_v20, %v823_v8  ;;  %v838_v32 = vrot.slane %v732_v21, 5  ;;  %v734_v36 = vld [vmem:[%s6057_s23 + $0x68] sm:$0xf]  ;;  %v965_v49 = vld [vmem:[%s6057_s23 + $0xc] sm:$0xf] }
  0x5d   : > { %862 = vrot.lane.b32.xlu0 %v788_v40, %s6002_s25  ;;  %v837_v31 = vrot.slane %v835_v25, 4  ;;  %v841_v33 = vrot.slane %v733_v26, 5  ;;  %v830_v34 = vsel %vm6224_vm6, %v828_v29, %v829_v17  ;;  %v834_v35 = vrot.slane %v832_v24, 4  ;;  %v735_v40 = vld [vmem:[%s6057_s23 + $0x6c] sm:$0xf] }
  0x5e   : > { %v833_v30 = vsel %vm6224_vm6, %v831_v23, %v832_v24  ;;  %v844_v39 = vrot.slane %v734_v36, 5  ;;  %v840_v42 = vrot.slane %v838_v32, 4  ;;  %v847_v43 = vrot.slane %v735_v40, 5  ;;  %v964_v50 = vld [vmem:[%s6057_s23 + $0x8] sm:$0xf] }
  0x5f   : > { %v839_v37 = vsel %vm6224_vm6, %v837_v31, %v838_v32  ;;  %v843_v38 = vrot.slane %v841_v33, 4  ;;  %v836_v41 = vsel %vm6224_vm6, %v834_v35, %v835_v25  ;;  %v967_v51 = vld [vmem:[%s6057_s23 + $0x14] sm:$0xf]  ;;  %v966_v53 = vld [vmem:[%s6057_s23 + $0x10] sm:$0xf]  ;;  %vm1948_vm1 = vcmask 224448  }
  0x60   : > { %868 = vrot.lane.b32.xlu1 %v797_v44, %s6002_s25  ;;  %v842_v45 = vsel %vm6224_vm6, %v840_v42, %v841_v33  ;;  %v846_v46 = vrot.slane %v844_v39, 4  ;;  %v849_v47 = vrot.slane %v847_v43, 4  ;;  %v969_v55 = vld [vmem:[%s6057_s23 + $0x1c] sm:$0xf]  ;;  %v968_v58 = vld [vmem:[%s6057_s23 + $0x18] sm:$0xf] }
  0x61   : > { %866 = vrot.lane.b32.xlu0 %v794_v48, %s6002_s25  ;;  %v845_v44 = vsel %vm6224_vm6, %v843_v38, %v844_v39  ;;  %v971_v60 = vld [vmem:[%s6057_s23 + $0x24] sm:$0xf]  ;;  %v970_v62 = vld [vmem:[%s6057_s23 + $0x20] sm:$0xf]  ;;  %v973_v0 = vld [vmem:[%s6057_s23 + $0x2c] sm:$0xf] }
  0x62   : > { %v848_v48 = vsel %vm6224_vm6, %v846_v46, %v847_v43  ;;  %v972_v2 = vld [vmem:[%s6057_s23 + $0x28] sm:$0xf]  ;;  %v975_v4 = vld [vmem:[%s6057_s23 + $0x34] sm:$0xf]  ;;  %v974_v6 = vld [vmem:[%s6057_s23 + $0x30] sm:$0xf] }
  0x63   : > { %v977_v8 = vld [vmem:[%s6057_s23 + $0x3c] sm:$0xf]  ;;  %v976_v10 = vld [vmem:[%s6057_s23 + $0x38] sm:$0xf]  ;;  %v979_v12 = vld [vmem:[%s6057_s23 + $0x44] sm:$0xf] }
  0x64   : > { %872 = vrot.lane.b32.xlu1 %v803_v52, %s6002_s25  ;;  %v981_v16 = vld [vmem:[%s6057_s23 + $0x4c] sm:$0xf]  ;;  %v980_v18 = vld [vmem:[%s6057_s23 + $0x48] sm:$0xf]  ;;  %v983_v21 = vld [vmem:[%s6057_s23 + $0x54] sm:$0xf] }
  0x65   : > { %870 = vrot.lane.b32.xlu0 %v800_v56, %s6002_s25  ;;  %v1135_v20 = vld [vmem:[%s6057_s23 + $0xc] sm:$0xf]  ;;  %v982_v24 = vld [vmem:[%s6057_s23 + $0x50] sm:$0xf]  ;;  %v985_v31 = vld [vmem:[%s6057_s23 + $0x5c] sm:$0xf] }
  0x66   : > { %v1172_v26 = vshll.u32 %v1135_v20, 16  ;;  %v1137_v32 = vld [vmem:[%s6057_s23 + $0x14] sm:$0xf]  ;;  %v1136_v36 = vld [vmem:[%s6057_s23 + $0x10] sm:$0xf]  ;;  %vm2369_vm3 = vcmask 257248  }
  0x67   : > { %v1192_v42 = vshll.u32 %v1137_v32, 16  ;;  %v1196_v43 = vshrl.u32 %v1137_v32, 16  ;;  %vm2622_vm4 = vcmask 290048   ;;  %vm2777_vm5 = vcmask 293888  }
  0x68   : > { %876 = vrot.lane.b32.xlu1 %v809_v61, %s6002_s25  ;;  %vm1553_vm7 = vcmask 157824  }
  0x69   : > { %874 = vrot.lane.b32.xlu0 %v806_v1, %s6002_s25 }
  0x6c   : > { %880 = vrot.lane.b32.xlu1 %v815_v5, %s6002_s25 }
  0x6d   : > { %878 = vrot.lane.b32.xlu0 %v812_v9, %s6002_s25 }
  0x70   : > { %884 = vrot.lane.b32.xlu1 %v821_v14, %s6002_s25  ;;  %v978_v14 = vld [vmem:[%s6057_s23 + $0x40] sm:$0xf] }
  0x71   : > { %882 = vrot.lane.b32.xlu0 %v818_v19, %s6002_s25 }
  0x74   : > { %888 = vrot.lane.b32.xlu1 %v827_v22, %s6002_s25  ;;  %v1134_v22 = vld [vmem:[%s6057_s23 + $0x8] sm:$0xf] }
  0x75   : > { %886 = vrot.lane.b32.xlu0 %v824_v28, %s6002_s25  ;;  %v1176_v28 = vshrl.u32 %v1135_v20, 16  ;;  %v1163_v29 = vshrl.u32 %v1134_v22, 16 }
  0x77   : > { %v1178_v38 = vrot.slane %v1176_v28, 4  ;;  %v1165_v39 = vrot.slane %v1163_v29, 4 }
  0x78   : > { %892 = vrot.lane.b32.xlu1 %v833_v30, %s6002_s25  ;;  %v1166_v30 = vshll.u32 %v1134_v22, 16 }
  0x79   : > { %890 = vrot.lane.b32.xlu0 %v830_v34, %s6002_s25  ;;  %v984_v34 = vld [vmem:[%s6057_s23 + $0x58] sm:$0xf] }
  0x7a   : > { %v1168_v40 = vrot.slane %v1166_v30, 5 }
  0x7c   : > { %896 = vrot.lane.b32.xlu1 %v839_v37, %s6002_s25  ;;  %v6430_v37 = vrot.slane %v1172_v26, 5 }
  0x7d   : > { %894 = vrot.lane.b32.xlu0 %v836_v41, %s6002_s25  ;;  %v1138_v41 = vld [vmem:[%s6057_s23 + $0x18] sm:$0xf] }
  0x80   : > { %900 = vrot.lane.b32.xlu1 %v845_v44, %s6002_s25  ;;  %v987_v44 = vld [vmem:[%s6057_s23 + $0x64] sm:$0xf] }
  0x81   : > { %898 = vrot.lane.b32.xlu0 %v842_v45, %s6002_s25  ;;  %v1139_v45 = vld [vmem:[%s6057_s23 + $0x1c] sm:$0xf] }
  0x84   : > { %904 = vrot.lane.b32.xlu1 %v849_v47, %s6002_s25  ;;  %v986_v47 = vld [vmem:[%s6057_s23 + $0x60] sm:$0xf] }
  0x85   : > { %902 = vrot.lane.b32.xlu0 %v848_v48, %s6002_s25  ;;  %v1182_v48 = vshll.u32 %v1136_v36, 16 }
  0x88   : > { %1022 = vrot.lane.b32.xlu1 %v965_v49, %s6003_s26  ;;  %v1186_v49 = vshrl.u32 %v1136_v36, 16 }
  0x89   : > { %1020 = vrot.lane.b32.xlu0 %v964_v50, %s6003_s26 }
  0x8a   : > { %v599_v52 = vpop.permute.xlu1 %598 }
  0x8b   : > { %681 = vst.msk [vmem:[#allocation2 + $0x8] sm:$0xf] %vm678_vm8, %v599_v52  ;;  %v595_v54 = vpop.permute.xlu0 %594  ;;  %v1202_v52 = vshll.u32 %v1138_v41, 16 }
  0x8c   : > { %679 = vst.msk [vmem:[#allocation2] sm:$0xf] %vm678_vm8, %v595_v54  ;;  %1026 = vrot.lane.b32.xlu1 %v967_v51, %s6003_s26  ;;  %v1179_v51 = vor.u32 %v1178_v38, %v6430_v37  ;;  %v6443_v54 = vrot.slane %v1192_v42, 5 }
  0x8d   : > { %1024 = vrot.lane.b32.xlu0 %v966_v53, %s6003_s26  ;;  %v1169_v53 = vor.u32 %v1168_v40, %v1165_v39 }
  0x8e   : > { %v601_v56 = vpop.permute.xlu1 %600 }
  0x8f   : > { %682 = vst.msk [vmem:[#allocation2 + $0xc] sm:$0xf] %vm678_vm8, %v601_v56  ;;  %v597_v59 = vpop.permute.xlu0 %596  ;;  %v1212_v56 = vshll.u32 %v1139_v45, 16 }
  0x90   : > { %680 = vst.msk [vmem:[#allocation2 + $0x4] sm:$0xf] %vm678_vm8, %v597_v59  ;;  %1030 = vrot.lane.b32.xlu1 %v969_v55, %s6003_s26  ;;  %v1198_v55 = vrot.slane %v1196_v43, 4  ;;  %v1206_v59 = vshrl.u32 %v1138_v41, 16  ;;  %v1144_v41 = vld [vmem:[%s6057_s23 + $0x30] sm:$0xf] }
  0x91   : > { %1028 = vrot.lane.b32.xlu0 %v968_v58, %s6003_s26  ;;  %v989_v58 = vld [vmem:[%s6057_s23 + $0x6c] sm:$0xf] }
  0x92   : > { %v605_v61 = vpop.permute.xlu1 %604 }
  0x93   : > { %684 = vst.msk [vmem:[#allocation2 + $0x14] sm:$0xf] %vm678_vm8, %v605_v61  ;;  %v603_v63 = vpop.permute.xlu0 %602  ;;  %v1216_v61 = vshrl.u32 %v1139_v45, 16 }
  0x94   : > { %683 = vst.msk [vmem:[#allocation2 + $0x10] sm:$0xf] %vm678_vm8, %v603_v63  ;;  %1034 = vrot.lane.b32.xlu1 %v971_v60, %s6003_s26  ;;  %v1140_v60 = vld [vmem:[%s6057_s23 + $0x20] sm:$0xf]  ;;  %v988_v63 = vld [vmem:[%s6057_s23 + $0x68] sm:$0xf] }
  0x95   : > { %1032 = vrot.lane.b32.xlu0 %v970_v62, %s6003_s26  ;;  %v1226_v20 = vshrl.u32 %v1140_v60, 16 }
  0x96   : > { %v609_v1 = vpop.permute.xlu1 %608 }
  0x97   : > { %686 = vst.msk [vmem:[#allocation2 + $0x1c] sm:$0xf] %vm678_vm8, %v609_v1  ;;  %v607_v3 = vpop.permute.xlu0 %606  ;;  %v1188_v1 = vrot.slane %v1186_v49, 4  ;;  %v1228_v40 = vrot.slane %v1226_v20, 4 }
  0x98   : > { %685 = vst.msk [vmem:[#allocation2 + $0x18] sm:$0xf] %vm678_vm8, %v607_v3  ;;  %1038 = vrot.lane.b32.xlu1 %v973_v0, %s6003_s26  ;;  %v1184_v0 = vrot.slane %v1182_v48, 5 }
  0x99   : > { %1036 = vrot.lane.b32.xlu0 %v972_v2, %s6003_s26  ;;  %v1141_v2 = vld [vmem:[%s6057_s23 + $0x24] sm:$0xf] }
  0x9a   : > { %v613_v5 = vpop.permute.xlu1 %612 }
  0x9b   : > { %688 = vst.msk [vmem:[#allocation2 + $0x24] sm:$0xf] %vm678_vm8, %v613_v5  ;;  %v611_v7 = vpop.permute.xlu0 %610  ;;  %v6451_v5 = vrot.slane %v1202_v52, 5  ;;  %v1147_v52 = vld [vmem:[%s6057_s23 + $0x3c] sm:$0xf] }
  0x9c   : > { %687 = vst.msk [vmem:[#allocation2 + $0x20] sm:$0xf] %vm678_vm8, %v611_v7  ;;  %1042 = vrot.lane.b32.xlu1 %v975_v4, %s6003_s26  ;;  %v1180_v4 = vrot.slane %v1179_v51, 4  ;;  %v1143_v7 = vld [vmem:[%s6057_s23 + $0x2c] sm:$0xf]  ;;  %v1262_v51 = vshll.u32 %v1144_v41, 16 }
  0x9d   : > { %1040 = vrot.lane.b32.xlu0 %v974_v6, %s6003_s26  ;;  %v1142_v6 = vld [vmem:[%s6057_s23 + $0x28] sm:$0xf]  ;;  %v1252_v22 = vshll.u32 %v1143_v7, 16 }
  0x9e   : > { %v617_v9 = vpop.permute.xlu1 %616  ;;  %v1185_v26 = vsel %vm6068_vm2, %v1180_v4, %v1184_v0 }
  0x9f   : > { %690 = vst.msk [vmem:[#allocation2 + $0x2c] sm:$0xf] %vm678_vm8, %v617_v9  ;;  %v615_v11 = vpop.permute.xlu0 %614  ;;  %v1199_v9 = vor.u32 %v1198_v55, %v6443_v54 }
  0xa0   : > { %689 = vst.msk [vmem:[#allocation2 + $0x28] sm:$0xf] %vm678_vm8, %v615_v11  ;;  %1046 = vrot.lane.b32.xlu1 %v977_v8, %s6003_s26  ;;  %v1170_v8 = vrot.slane %v1169_v53, 4  ;;  %v1222_v11 = vshll.u32 %v1140_v60, 16 }
  0xa1   : > { %1044 = vrot.lane.b32.xlu0 %v976_v10, %s6003_s26  ;;  %v6458_v10 = vrot.slane %v1212_v56, 5  ;;  %v1200_v29 = vrot.slane %v1199_v9, 4 }
  0xa2   : > { %v621_v13 = vpop.permute.xlu1 %620  ;;  %v1175_v28 = vsel %vm6068_vm2, %v1170_v8, %v6430_v37  ;;  %v6471_v30 = vrot.slane %v1222_v11, 5  ;;  %v6482_v37 = vrot.slane %v1252_v22, 5 }
  0xa3   : > { %692 = vst.msk [vmem:[#allocation2 + $0x34] sm:$0xf] %vm678_vm8, %v621_v13  ;;  %v619_v15 = vpop.permute.xlu0 %618  ;;  %v1218_v13 = vrot.slane %v1216_v61, 4 }
  0xa4   : > { %691 = vst.msk [vmem:[#allocation2 + $0x30] sm:$0xf] %vm678_vm8, %v619_v15  ;;  %1050 = vrot.lane.b32.xlu1 %v979_v12, %s6003_s26  ;;  %v991_v12 = vld [vmem:[%s6057_s23 + $0x74] sm:$0x7]  ;;  %v1232_v15 = vshll.u32 %v1141_v2, 16  ;;  %v1229_v56 = vor.u32 %v1228_v40, %v6471_v30 }
  0xa5   : > { %1048 = vrot.lane.b32.xlu0 %v978_v14, %s6003_s26  ;;  %v1208_v14 = vrot.slane %v1206_v59, 4  ;;  %v1219_v32 = vor.u32 %v1218_v13, %v6458_v10  ;;  %v1149_v13 = vld [vmem:[%s6057_s23 + $0x44] sm:$0xf] }
  0xa6   : > { %v625_v17 = vpop.permute.xlu1 %624  ;;  %v1230_v8 = vrot.slane %v1229_v56, 4  ;;  %v1312_v22 = vshll.u32 %v1149_v13, 16 }
  0xa7   : > { %694 = vst.msk [vmem:[#allocation2 + $0x3c] sm:$0xf] %vm678_vm8, %v625_v17  ;;  %v623_v19 = vpop.permute.xlu0 %622  ;;  %v1220_v48 = vrot.slane %v1219_v32, 4 }
  0xa8   : > { %693 = vst.msk [vmem:[#allocation2 + $0x38] sm:$0xf] %vm678_vm8, %v623_v19  ;;  %1054 = vrot.lane.b32.xlu1 %v981_v16, %s6003_s26  ;;  %v1236_v16 = vshrl.u32 %v1141_v2, 16  ;;  %v1189_v19 = vor.u32 %v1188_v1, %v1184_v0  ;;  %v1296_v1 = vshrl.u32 %v1147_v52, 16  ;;  %v1314_v40 = vrot.slane %v1312_v22, 5 }
  0xa9   : > { %1052 = vrot.lane.b32.xlu0 %v980_v18, %s6003_s26  ;;  %v990_v18 = vld [vmem:[%s6057_s23 + $0x70] sm:$0xf]  ;;  %v1225_v2 = vsel %vm6068_vm2, %v1220_v48, %v6471_v30  ;;  %v1151_v30 = vld [vmem:[%s6057_s23 + $0x4c] sm:$0xf] }
  0xaa   : > { %v629_v23 = vpop.permute.xlu1 %628  ;;  %v1190_v38 = vrot.slane %v1189_v19, 4 }
  0xab   : > { %696 = vst.msk [vmem:[#allocation2 + $0x44] sm:$0xf] %vm678_vm8, %v629_v23  ;;  %v627_v25 = vpop.permute.xlu0 %626 }
  0xac   : > { %695 = vst.msk [vmem:[#allocation2 + $0x40] sm:$0xf] %vm678_vm8, %v627_v25  ;;  %1058 = vrot.lane.b32.xlu1 %v983_v21, %s6003_s26  ;;  %v1242_v21 = vshll.u32 %v1142_v6, 16  ;;  %v1256_v25 = vshrl.u32 %v1143_v7, 16  ;;  %v1195_v55 = vsel %vm6068_vm2, %v1190_v38, %v6443_v54  ;;  %v1292_v54 = vshll.u32 %v1147_v52, 16 }
  0xad   : > { %1056 = vrot.lane.b32.xlu0 %v982_v24, %s6003_s26  ;;  %v1246_v24 = vshrl.u32 %v1142_v6, 16  ;;  %v1148_v6 = vld [vmem:[%s6057_s23 + $0x40] sm:$0xf] }
  0xae   : > { %v633_v33 = vpop.permute.xlu1 %632  ;;  %v6479_v39 = vrot.slane %v1242_v21, 5  ;;  %v1258_v43 = vrot.slane %v1256_v25, 4  ;;  %v1302_v19 = vshll.u32 %v1148_v6, 16  ;;  %v1306_v20 = vshrl.u32 %v1148_v6, 16 }
  0xaf   : > { %698 = vst.msk [vmem:[#allocation2 + $0x4c] sm:$0xf] %vm678_vm8, %v633_v33  ;;  %v631_v35 = vpop.permute.xlu0 %630  ;;  %v1209_v33 = vor.u32 %v1208_v14, %v6451_v5 }
  0xb0   : > { %697 = vst.msk [vmem:[#allocation2 + $0x48] sm:$0xf] %vm678_vm8, %v631_v35  ;;  %1062 = vrot.lane.b32.xlu1 %v985_v31, %s6003_s26  ;;  %v1145_v31 = vld [vmem:[%s6057_s23 + $0x34] sm:$0xf]  ;;  %v1238_v35 = vrot.slane %v1236_v16, 4  ;;  %v1259_v60 = vor.u32 %v1258_v43, %v6482_v37  ;;  %v1304_v38 = vrot.slane %v1302_v19, 5 }
  0xb1   : > { %1060 = vrot.lane.b32.xlu0 %v984_v34, %s6003_s26  ;;  %v6477_v34 = vrot.slane %v1232_v15, 5  ;;  %v1272_v45 = vshll.u32 %v1145_v31, 16  ;;  %v1210_v49 = vrot.slane %v1209_v33, 4  ;;  %v1336_v43 = vshrl.u32 %v1151_v30, 16  ;;  %v1555_v19 = vld [vmem:[%s6057_s23 + $0x8] sm:$0xe] }
  0xb2   : > { %v637_v46 = vpop.permute.xlu1 %636  ;;  %v1260_v15 = vrot.slane %v1259_v60, 4 }
  0xb3   : > { %700 = vst.msk [vmem:[#allocation2 + $0x54] sm:$0xf] %vm678_vm8, %v637_v46  ;;  %v635_v50 = vpop.permute.xlu0 %634  ;;  %v1276_v46 = vshrl.u32 %v1145_v31, 16  ;;  %v1235_v25 = vsel %vm6068_vm2, %v1230_v8, %v6477_v34 }
  0xb4   : > { %699 = vst.msk [vmem:[#allocation2 + $0x50] sm:$0xf] %vm678_vm8, %v635_v50  ;;  %1066 = vrot.lane.b32.xlu1 %v987_v44, %s6003_s26  ;;  %v1248_v44 = vrot.slane %v1246_v24, 4  ;;  %v1239_v50 = vor.u32 %v1238_v35, %v6477_v34  ;;  %v1150_v35 = vld [vmem:[%s6057_s23 + $0x48] sm:$0xf] }
  0xb5   : > { %1064 = vrot.lane.b32.xlu0 %v986_v47, %s6003_s26  ;;  %v1205_v47 = vsel %vm6068_vm2, %v1200_v29, %v6451_v5  ;;  %v1278_v0 = vrot.slane %v1276_v46, 4  ;;  %v1264_v5 = vrot.slane %v1262_v51, 5 }
  0xb6   : > { %v641_v62 = vpop.permute.xlu1 %640  ;;  %v1249_v61 = vor.u32 %v1248_v44, %v6479_v39  ;;  %v1240_v4 = vrot.slane %v1239_v50, 4 }
  0xb7   : > { %702 = vst.msk [vmem:[#allocation2 + $0x5c] sm:$0xf] %vm678_vm8, %v641_v62  ;;  %v639_v3 = vpop.permute.xlu0 %638  ;;  %v1146_v62 = vld [vmem:[%s6057_s23 + $0x38] sm:$0xf]  ;;  %v1265_v32 = vsel %vm6068_vm2, %v1260_v15, %v1264_v5 }
  0xb8   : > { %701 = vst.msk [vmem:[#allocation2 + $0x58] sm:$0xf] %vm678_vm8, %v639_v3  ;;  %1070 = vrot.lane.b32.xlu1 %v989_v58, %s6003_s26  ;;  %v1266_v58 = vshrl.u32 %v1144_v41, 16  ;;  %v1215_v3 = vsel %vm6068_vm2, %v1210_v49, %v6458_v10  ;;  %v1282_v9 = vshll.u32 %v1146_v62, 16  ;;  %v1286_v11 = vshrl.u32 %v1146_v62, 16 }
  0xb9   : > { %1068 = vrot.lane.b32.xlu0 %v988_v63, %s6003_s26  ;;  %v6501_v63 = vrot.slane %v1272_v45, 5  ;;  %v1250_v16 = vrot.slane %v1249_v61, 4  ;;  %v6518_v10 = vrot.slane %v1292_v54, 5  ;;  %v1245_v21 = vsel %vm6068_vm2, %v1240_v4, %v6479_v39  ;;  %v6549_v61 = vld [vmem:[%s6057_s23 + $0x50] sm:$0xf] }
  0xba   : > { %v645_v17 = vpop.permute.xlu1 %644  ;;  %v1288_v29 = vrot.slane %v1286_v11, 4  ;;  %v1308_v39 = vrot.slane %v1306_v20, 4 }
  0xbb   : > { %704 = vst.msk [vmem:[#allocation2 + $0x64] sm:$0xf] %vm678_vm8, %v645_v17  ;;  %v643_v23 = vpop.permute.xlu0 %642  ;;  %v1279_v17 = vor.u32 %v1278_v0, %v6501_v63  ;;  %v1255_v33 = vsel %vm6068_vm2, %v1250_v16, %v6482_v37  ;;  %v1322_v37 = vshll.u32 %v1150_v35, 16 }
  0xbc   : > { %703 = vst.msk [vmem:[#allocation2 + $0x60] sm:$0xf] %vm678_vm8, %v643_v23  ;;  %1074 = vrot.lane.b32.xlu1 %v991_v12, %s6003_s26  ;;  %v1268_v12 = vrot.slane %v1266_v58, 4  ;;  %v1316_v23 = vshrl.u32 %v1149_v13, 16  ;;  %v1309_v50 = vor.u32 %v1308_v39, %v1304_v38 }
  0xbd   : > { %1072 = vrot.lane.b32.xlu0 %v990_v18, %s6003_s26  ;;  %v1298_v18 = vrot.slane %v1296_v1, 4  ;;  %v1280_v34 = vrot.slane %v1279_v17, 4  ;;  %v1324_v60 = vrot.slane %v1322_v37, 5 }
  0xbe   : > { %v649_v36 = vpop.permute.xlu1 %648  ;;  %v1318_v41 = vrot.slane %v1316_v23, 4 }
  0xbf   : > { %707 = vst.msk [vmem:[#allocation2 + $0x6c] sm:$0x7] %vm706_vm9, %v649_v36  ;;  %v647_v42 = vpop.permute.xlu0 %646  ;;  %v1299_v36 = vor.u32 %v1298_v18, %v6518_v10  ;;  %vm1976_vm9 = vcmask 223424  }
  0xc0   : > { %705 = vst.msk [vmem:[#allocation2 + $0x68] sm:$0xf] %vm678_vm8, %v647_v42  ;;  %1443 = vrot.lane.b32.xlu1 %v1185_v26, %s6004_s27  ;;  %v1284_v26 = vrot.slane %v1282_v9, 5  ;;  %v1332_v42 = vshll.u32 %v1151_v30, 16  ;;  %v1319_v52 = vor.u32 %v1318_v41, %v1314_v40  ;;  %vm1806_vm8 = vcmask 190624  }
  0xc1   : > { %1441 = vrot.lane.b32.xlu0 %v1175_v28, %s6004_s27  ;;  %v1269_v28 = vor.u32 %v1268_v12, %v1264_v5  ;;  %v1300_v51 = vrot.slane %v1299_v36, 4  ;;  %v1310_v5 = vrot.slane %v1309_v50, 4 }
  0xc2   : > { %v853_v53 = vpop.permute.xlu1 %852  ;;  %v1289_v46 = vor.u32 %v1288_v29, %v1284_v26  ;;  %v1285_v49 = vsel %vm6068_vm2, %v1280_v34, %v1284_v26  ;;  %v1320_v1 = vrot.slane %v1319_v52, 4  ;;  %v1979_v29 = vld [vmem:[%s6057_s23 + $0x14] sm:$0xf] }
  0xc3   : > { %936 = vst.msk [vmem:[#allocation2 + $0x4] sm:$0xf] %vm934_vm10, %v853_v53  ;;  %v851_v59 = vpop.permute.xlu0 %850  ;;  %v1270_v45 = vrot.slane %v1269_v28, 4  ;;  %v1334_v53 = vrot.slane %v1332_v42, 5  ;;  %v1305_v54 = vsel %vm6068_vm2, %v1300_v51, %v1304_v38  ;;  %v1315_v16 = vsel %vm6068_vm2, %v1310_v5, %v1314_v40 }
  0xc4   : > { %935 = vst.msk [vmem:[#allocation2] sm:$0xf] %vm934_vm10, %v851_v59  ;;  %1447 = vrot.lane.b32.xlu1 %v1205_v47, %s6004_s27  ;;  %v1326_v47 = vshrl.u32 %v1150_v35, 16  ;;  %v1290_v59 = vrot.slane %v1289_v46, 4  ;;  %v1325_v9 = vsel %vm6068_vm2, %v1320_v1, %v1324_v60  ;;  %v5702_v28 = vrot.slane %v1555_v19, 9 }
  0xc5   : > { %1445 = vrot.lane.b32.xlu0 %v1195_v55, %s6004_s27  ;;  %v1338_v55 = vrot.slane %v1336_v43, 4  ;;  %v1275_v58 = vsel %vm6068_vm2, %v1270_v45, %v6501_v63  ;;  %v2016_v36 = vshll.u32 %v1979_v29, 16  ;;  %v2020_v38 = vshrl.u32 %v1979_v29, 16  ;;  %v1981_v43 = vld [vmem:[%s6057_s23 + $0x1c] sm:$0xf] }
  0xc6   : > { %v857_v7 = vpop.permute.xlu1 %856  ;;  %v1328_v62 = vrot.slane %v1326_v47, 4  ;;  %v1295_v4 = vsel %vm6068_vm2, %v1290_v59, %v6518_v10  ;;  %v1557_v10 = vld [vmem:[%s6057_s23 + $0x10] sm:$0xf]  ;;  %v1980_v45 = vld [vmem:[%s6057_s23 + $0x18] sm:$0xf]  ;;  %v2040_v50 = vshrl.u32 %v1981_v43, 16 }
  0xc7   : > { %938 = vst.msk [vmem:[#allocation2 + $0xc] sm:$0xf] %vm934_vm10, %v857_v7  ;;  %v855_v14 = vpop.permute.xlu0 %854  ;;  %v1339_v63 = vor.u32 %v1338_v55, %v1334_v53  ;;  %v1556_v7 = vld [vmem:[%s6057_s23 + $0xc] sm:$0xf]  ;;  %v1616_v23 = vrot.slane %v1557_v10, 5  ;;  %v6610_v47 = vrot.slane %v2016_v36, 5 }
  0xc8   : > { %937 = vst.msk [vmem:[#allocation2 + $0x8] sm:$0xf] %vm934_vm10, %v855_v14  ;;  %1451 = vrot.lane.b32.xlu1 %v1225_v2, %s6004_s27  ;;  %v1342_v2 = vshll.u32 %v6549_v61, 16  ;;  %v1329_v6 = vor.u32 %v1328_v62, %v1324_v60  ;;  %v1613_v13 = vrot.slane %v1556_v7, 5  ;;  %v1558_v14 = vld [vmem:[%s6057_s23 + $0x14] sm:$0xf] }
  0xc9   : > { %1449 = vrot.lane.b32.xlu0 %v1215_v3, %s6004_s27  ;;  %v1340_v11 = vrot.slane %v1339_v63, 4  ;;  %v1619_v20 = vrot.slane %v1558_v14, 5  ;;  %v1618_v35 = vrot.slane %v1616_v23, 4  ;;  %v2026_v52 = vshll.u32 %v1980_v45, 16  ;;  %v1809_v59 = vld [vmem:[%s6057_s23 + $0x14] sm:$0xf] }
  0xca   : > { %v861_v24 = vpop.permute.xlu1 %860  ;;  %v6568_v12 = vrot.slane %v1342_v2, 5  ;;  %v1330_v17 = vrot.slane %v1329_v6, 4  ;;  %v1615_v22 = vrot.slane %v1613_v13, 4  ;;  %v1614_v40 = vsel %vm6224_vm6, %v5702_v28, %v1613_v13  ;;  %v6619_v62 = vld [vmem:[%s6057_s23 + $0x20] sm:$0xf] }
  0xcb   : > { %940 = vst.msk [vmem:[#allocation2 + $0x14] sm:$0xf] %vm934_vm10, %v861_v24  ;;  %v859_v31 = vpop.permute.xlu0 %858  ;;  %v6583_v24 = vld [vmem:[%s6057_s23 + $0x18] sm:$0xf]  ;;  %v1620_v37 = vsel %vm6224_vm6, %v1618_v35, %v1619_v20  ;;  %v1808_v63 = vld [vmem:[%s6057_s23 + $0x10] sm:$0xf] }
  0xcc   : > { %939 = vst.msk [vmem:[#allocation2 + $0x10] sm:$0xf] %vm934_vm10, %v859_v31  ;;  %1455 = vrot.lane.b32.xlu1 %v1245_v21, %s6004_s27  ;;  %v1345_v21 = vsel %vm6068_vm2, %v1340_v11, %v6568_v12  ;;  %v1335_v26 = vsel %vm6068_vm2, %v1330_v17, %v1334_v53  ;;  %v1978_v31 = vld [vmem:[%s6057_s23 + $0x10] sm:$0xf]  ;;  %v1617_v34 = vsel %vm6224_vm6, %v1615_v22, %v1616_v23  ;;  %v2030_v53 = vshrl.u32 %v1980_v45, 16  ;;  %v5960_v45 = vld [vmem:[%s8417_s1] sm:$0xff]  }
  0xcd   : > { %1453 = vrot.lane.b32.xlu0 %v1235_v25, %s6004_s27  ;;  %v2007_v41 = vshrl.u32 %v1978_v31, 16  ;;  %v2010_v42 = vshll.u32 %v1978_v31, 16  ;;  %v2028_v2 = vrot.slane %v2026_v52, 5  ;;  %v2046_v6 = vshll.u32 %v6619_v62, 16  ;;  %v1811_v7 = vld [vmem:[%s6057_s23 + $0x1c] sm:$0xf] }
  0xce   : > { %v865_v44 = vpop.permute.xlu1 %864  ;;  %v1810_v13 = vld [vmem:[%s6057_s23 + $0x18] sm:$0xf]  ;;  %v5958_v10 = vld [vmem:[%s8417_s1 + $0x10] ss:$0 sps:$4 sm:$0x33]  }
  0xcf   : > { %942 = vst.msk [vmem:[#allocation2 + $0x1c] sm:$0xf] %vm934_vm10, %v865_v44  ;;  %v863_v48 = vpop.permute.xlu0 %862  ;;  %v2009_v55 = vrot.slane %v2007_v41, 4  ;;  %5935 = vmatprep.subr.msk.bf16.mxu0 %vm2820_vm11, %v5958_v10  ;;  %v2822_v22 = vsel %vm2820_vm11, %v5958_v10, 0  ;;  %v2401_v28 = vld [vmem:[%s6057_s23 + $0x18] sm:$0xf] }
  0xd0   : > { %941 = vst.msk [vmem:[#allocation2 + $0x18] sm:$0xf] %vm934_vm10, %v863_v48  ;;  %1459 = vrot.lane.b32.xlu1 %v1265_v32, %s6004_s27  ;;  %v1621_v32 = vrot.slane %v1619_v20, 4  ;;  %v2022_v48 = vrot.slane %v2020_v38, 4  ;;  %v2402_v29 = vld [vmem:[%s6057_s23 + $0x1c] sm:$0xf]  ;;  %5868 = vmatpush3.bf16.msra.mxu0 %v2822_v22 }
  0xd1   : > { %1457 = vrot.lane.b32.xlu0 %v1255_v33, %s6004_s27  ;;  %v1622_v33 = vrot.slane %v6583_v24, 5  ;;  %v2399_v31 = vld [vmem:[%s6057_s23 + $0x10] sm:$0xe]  ;;  %v2460_v36 = vrot.slane %v2401_v28, 5  ;;  %v2463_v38 = vrot.slane %v2402_v29, 5  ;;  %vm3111_vm11 = vcmask 60416  }
  0xd2   : > { %v869_v56 = vpop.permute.xlu1 %868  ;;  %v2023_v60 = vor.u32 %v2022_v48, %v6610_v47  ;;  %v5703_v41 = vrot.slane %v2399_v31, 9  ;;  %v1813_v28 = vld [vmem:[%s6057_s23 + $0x24] sm:$0xf] }
  0xd3   : > { %944 = vst.msk [vmem:[#allocation2 + $0x24] sm:$0xf] %vm934_vm10, %v869_v56  ;;  %v867_v0 = vpop.permute.xlu0 %866  ;;  %v1623_v46 = vsel %vm6224_vm6, %v1621_v32, %v1622_v33  ;;  %v2012_v56 = vrot.slane %v2010_v42, 5  ;;  %v5959_v32 = vld [vmem:[%s8417_s1 + $0x8] sm:$0xff]   ;;  %v6664_v42 = vld [vmem:[%s6057_s23 + $0x20] sm:$0xf] }
  0xd4   : > { %943 = vst.msk [vmem:[#allocation2 + $0x20] sm:$0xf] %vm934_vm10, %v867_v0  ;;  %1463 = vrot.lane.b32.xlu1 %v1285_v49, %s6004_s27  ;;  %v2036_v49 = vshll.u32 %v1981_v43, 16  ;;  %5869 = vmatprep.subr.bf16.mxu0 %v5959_v32  ;;  %v1560_v43 = vld [vmem:[%s6057_s23 + $0x1c] sm:$0xf]  ;;  %v2462_v52 = vrot.slane %v2460_v36, 4 }
  0xd5   : > { %1461 = vrot.lane.b32.xlu0 %v1275_v58, %s6004_s27  ;;  %5870 = vmatpush3.bf16.msra.mxu0 %v5959_v32  ;;  %v1625_v48 = vrot.slane %v1560_v43, 5 }
  0xd6   : > { %v873_v3 = vpop.permute.xlu1 %872  ;;  %v6621_v0 = vrot.slane %v2036_v49, 5  ;;  %v1562_v49 = vld [vmem:[%s6057_s23 + $0x24] sm:$0xf]  ;;  %5871 = vmatprep.subr.bf16.mxu0 %v5960_v45 }
  0xd7   : > { %946 = vst.msk [vmem:[#allocation2 + $0x2c] sm:$0xf] %vm934_vm10, %v873_v3  ;;  %v871_v8 = vpop.permute.xlu0 %870  ;;  %v2013_v3 = vor.u32 %v2012_v56, %v2009_v55  ;;  %v1631_v56 = vrot.slane %v1562_v49, 5  ;;  %v2404_v49 = vld [vmem:[%s6057_s23 + $0x24] sm:$0xf] }
  0xd8   : > { %945 = vst.msk [vmem:[#allocation2 + $0x28] sm:$0xf] %vm934_vm10, %v871_v8  ;;  %1467 = vrot.lane.b32.xlu1 %v1305_v54, %s6004_s27  ;;  %v2042_v54 = vrot.slane %v2040_v50, 4  ;;  %v2024_v8 = vrot.slane %v2023_v60, 4 }
  0xd9   : > { %1465 = vrot.lane.b32.xlu0 %v1295_v4, %s6004_s27  ;;  %v2032_v4 = vrot.slane %v2030_v53, 4  ;;  %v2014_v14 = vrot.slane %v2013_v3, 4  ;;  %v1561_v53 = vld [vmem:[%s6057_s23 + $0x20] sm:$0xf]  ;;  %5872 = vmatpush3.bf16.msra.mxu0 %v5960_v45 }
  0xda   : > { %v877_v15 = vpop.permute.xlu1 %876  ;;  %v2029_v19 = vsel %vm6068_vm2, %v2024_v8, %v2028_v2  ;;  %v1628_v60 = vrot.slane %v1561_v53, 5 }
  0xdb   : > { %948 = vst.msk [vmem:[#allocation2 + $0x34] sm:$0xf] %vm934_vm10, %v877_v15  ;;  %v875_v18 = vpop.permute.xlu0 %874  ;;  %v2033_v15 = vor.u32 %v2032_v4, %v2028_v2  ;;  %v1983_v2 = vld [vmem:[%s6057_s23 + $0x24] sm:$0xf]  ;;  %v1633_v4 = vrot.slane %v1631_v56, 4 }
  0xdc   : > { %947 = vst.msk [vmem:[#allocation2 + $0x30] sm:$0xf] %vm934_vm10, %v875_v18  ;;  %1471 = vrot.lane.b32.xlu1 %v1325_v9, %s6004_s27  ;;  %v2043_v9 = vor.u32 %v2042_v54, %v6621_v0  ;;  %v6639_v18 = vrot.slane %v2046_v6, 5  ;;  %v2056_v24 = vshll.u32 %v1983_v2, 16 }
  0xdd   : > { %1469 = vrot.lane.b32.xlu0 %v1315_v16, %s6004_s27  ;;  %v2400_v16 = vld [vmem:[%s6057_s23 + $0x14] sm:$0xf] }
  0xde   : > { %v881_v25 = vpop.permute.xlu1 %880  ;;  %v2044_v20 = vrot.slane %v2043_v9, 4 }
  0xdf   : > { %950 = vst.msk [vmem:[#allocation2 + $0x3c] sm:$0xf] %vm934_vm10, %v881_v25  ;;  %v879_v30 = vpop.permute.xlu0 %878  ;;  %v2019_v25 = vsel %vm6068_vm2, %v2014_v14, %v6610_v47  ;;  %v2466_v47 = vrot.slane %v6664_v42, 5 }
  0xe0   : > { %949 = vst.msk [vmem:[#allocation2 + $0x38] sm:$0xf] %vm934_vm10, %v879_v30  ;;  %1475 = vrot.lane.b32.xlu1 %v1345_v21, %s6004_s27  ;;  %v2457_v21 = vrot.slane %v2400_v16, 5  ;;  %v2049_v35 = vsel %vm6068_vm2, %v2044_v20, %v6639_v18 }
  0xe1   : > { %1473 = vrot.lane.b32.xlu0 %v1335_v26, %s6004_s27  ;;  %v2034_v26 = vrot.slane %v2033_v15, 4  ;;  %v1984_v15 = vld [vmem:[%s6057_s23 + $0x28] sm:$0xf] }
  0xe2   : > { %v885_v39 = vpop.permute.xlu1 %884  ;;  %v2066_v22 = vshll.u32 %v1984_v15, 16 }
  0xe3   : > { %952 = vst.msk [vmem:[#allocation2 + $0x44] sm:$0xf] %vm934_vm10, %v885_v39  ;;  %v883_v44 = vpop.permute.xlu0 %882 }
  0xe4   : > { %951 = vst.msk [vmem:[#allocation2 + $0x40] sm:$0xf] %vm934_vm10, %v883_v44  ;;  %1696 = vrot.lane.b32.xlu1 %v1617_v34, %s6005_s28  ;;  %v2459_v34 = vrot.slane %v2457_v21, 4 }
  0xe5   : > { %1694 = vrot.lane.b32.xlu0 %v1614_v40, %s6005_s28  ;;  %v2039_v40 = vsel %vm6068_vm2, %v2034_v26, %v6621_v0  ;;  %v6689_v0 = vld [vmem:[%s6057_s23 + $0x28] sm:$0xf] }
  0xe6   : > { %v889_v51 = vpop.permute.xlu1 %888 }
  0xe7   : > { %954 = vst.msk [vmem:[#allocation2 + $0x4c] sm:$0xf] %vm934_vm10, %v889_v51  ;;  %v887_v58 = vpop.permute.xlu0 %886  ;;  %v2458_v51 = vsel %vm6224_vm6, %v5703_v41, %v2457_v21  ;;  %v1815_v41 = vld [vmem:[%s6057_s23 + $0x2c] sm:$0xf] }
  0xe8   : > { %953 = vst.msk [vmem:[#allocation2 + $0x48] sm:$0xf] %vm934_vm10, %v887_v58  ;;  %1700 = vrot.lane.b32.xlu1 %v1623_v46, %s6005_s28  ;;  %v2461_v46 = vsel %vm6224_vm6, %v2459_v34, %v2460_v36  ;;  %v2068_v34 = vrot.slane %v2066_v22, 5 }
  0xe9   : > { %1698 = vrot.lane.b32.xlu0 %v1620_v37, %s6005_s28  ;;  %v2465_v37 = vrot.slane %v2463_v38, 4 }
  0xea   : > { %v893_v1 = vpop.permute.xlu1 %892 }
  0xeb   : > { %956 = vst.msk [vmem:[#allocation2 + $0x54] sm:$0xf] %vm934_vm10, %v893_v1  ;;  %v891_v5 = vpop.permute.xlu0 %890  ;;  %v2467_v58 = vsel %vm6224_vm6, %v2465_v37, %v2466_v47  ;;  %v2464_v1 = vsel %vm6224_vm6, %v2462_v52, %v2463_v38  ;;  %v6726_v38 = vld [vmem:[%s6057_s23 + $0x30] sm:$0xf] }
  0xec   : > { %955 = vst.msk [vmem:[#allocation2 + $0x50] sm:$0xf] %vm934_vm10, %v891_v5  ;;  %1866 = vrot.lane.b32.xlu1 %v1809_v59, %s6006_s29  ;;  %v1627_v59 = vrot.slane %v1625_v48, 4  ;;  %v1634_v5 = vrot.slane %v6689_v0, 5  ;;  %v2086_v45 = vshll.u32 %v6726_v38, 16 }
  0xed   : > { %1864 = vrot.lane.b32.xlu0 %v1808_v63, %s6006_s29  ;;  %v1624_v63 = vrot.slane %v1622_v33, 4  ;;  %v2060_v33 = vshrl.u32 %v1983_v2, 16 }
  0xee   : > { %v897_v11 = vpop.permute.xlu1 %896  ;;  %v1629_v6 = vsel %vm6224_vm6, %v1627_v59, %v1628_v60  ;;  %v1635_v16 = vsel %vm6224_vm6, %v1633_v4, %v1634_v5  ;;  %v6742_v53 = vrot.slane %v2086_v45, 5 }
  0xef   : > { %958 = vst.msk [vmem:[#allocation2 + $0x5c] sm:$0xf] %vm934_vm10, %v897_v11  ;;  %v895_v17 = vpop.permute.xlu0 %894  ;;  %v1626_v9 = vsel %vm6224_vm6, %v1624_v63, %v1625_v48  ;;  %v1630_v11 = vrot.slane %v1628_v60, 4  ;;  %v2405_v60 = vld [vmem:[%s6057_s23 + $0x28] sm:$0xf] }
  0xf0   : > { %957 = vst.msk [vmem:[#allocation2 + $0x58] sm:$0xf] %vm934_vm10, %v895_v17  ;;  %1870 = vrot.lane.b32.xlu1 %v1811_v7, %s6006_s29  ;;  %v2050_v7 = vshrl.u32 %v6619_v62, 16  ;;  %v2058_v62 = vrot.slane %v2056_v24, 5  ;;  %v2062_v17 = vrot.slane %v2060_v33, 4  ;;  %v2468_v33 = vrot.slane %v2466_v47, 4 }
  0xf1   : > { %1868 = vrot.lane.b32.xlu0 %v1810_v13, %s6006_s29  ;;  %v1985_v13 = vld [vmem:[%s6057_s23 + $0x2c] sm:$0xf]  ;;  %v1632_v21 = vsel %vm6224_vm6, %v1630_v11, %v1631_v56 }
  0xf2   : > { %v901_v23 = vpop.permute.xlu1 %900  ;;  %v2076_v10 = vshll.u32 %v1985_v13, 16  ;;  %v2063_v29 = vor.u32 %v2062_v17, %v2058_v62  ;;  %v1565_v17 = vld [vmem:[%s6057_s23 + $0x30] sm:$0xf] }
  0xf3   : > { %960 = vst.msk [vmem:[#allocation2 + $0x64] sm:$0xf] %vm934_vm10, %v901_v23  ;;  %v899_v30 = vpop.permute.xlu0 %898  ;;  %v2070_v23 = vshrl.u32 %v1984_v15, 16  ;;  %v1640_v22 = vrot.slane %v1565_v17, 5 }
  0xf4   : > { %959 = vst.msk [vmem:[#allocation2 + $0x60] sm:$0xf] %vm934_vm10, %v899_v30  ;;  %2287 = vrot.lane.b32.xlu1 %v2029_v19, %s6007_s9  ;;  %v2080_v19 = vshrl.u32 %v1985_v13, 16  ;;  %v2078_v30 = vrot.slane %v2076_v10, 5  ;;  %v2064_v43 = vrot.slane %v2063_v29, 4 }
  0xf5   : > { %2285 = vrot.lane.b32.xlu0 %v2019_v25, %s6007_s9  ;;  %v2052_v25 = vrot.slane %v2050_v7, 4  ;;  %v6760_v7 = vld [vmem:[%s6057_s23 + $0x30] sm:$0xf]  ;;  %v1987_v29 = vld [vmem:[%s6057_s23 + $0x34] sm:$0xf] }
  0xf6   : > { %v905_v39 = vpop.permute.xlu1 %904  ;;  %v2082_v31 = vrot.slane %v2080_v19, 4  ;;  %v2478_v42 = vrot.slane %v6760_v7, 5  ;;  %v2096_v0 = vshll.u32 %v1987_v29, 16 }
  0xf7   : > { %963 = vst.msk [vmem:[#allocation2 + $0x6c] sm:$0x7] %vm962_vm12, %v905_v39  ;;  %v903_v44 = vpop.permute.xlu0 %902  ;;  %v2053_v36 = vor.u32 %v2052_v25, %v6639_v18  ;;  %v2072_v39 = vrot.slane %v2070_v23, 4  ;;  %v1814_v18 = vld [vmem:[%s6057_s23 + $0x28] sm:$0xf]  ;;  %vm2650_vm12 = vcmask 289024  }
  0xf8   : > { %961 = vst.msk [vmem:[#allocation2 + $0x68] sm:$0xf] %vm934_vm10, %v903_v44  ;;  %2291 = vrot.lane.b32.xlu1 %v2049_v35, %s6007_s9  ;;  %v1812_v35 = vld [vmem:[%s6057_s23 + $0x20] sm:$0xf]  ;;  %v2083_v44 = vor.u32 %v2082_v31, %v2078_v30  ;;  %v6783_v23 = vld [vmem:[%s6057_s23 + $0x38] sm:$0xf] }
  0xf9   : > { %2289 = vrot.lane.b32.xlu0 %v2039_v40, %s6007_s9  ;;  %v2054_v37 = vrot.slane %v2053_v36, 4  ;;  %v2073_v48 = vor.u32 %v2072_v39, %v2068_v34  ;;  %vm2397_vm10 = vcmask 256224  }
  0xfa   : > { %v1023_v50 = vpop.permute.xlu1 %1022  ;;  %v2084_v52 = vrot.slane %v2083_v44, 4  ;;  %v1988_v44 = vld [vmem:[%s6057_s23 + $0x38] sm:$0xf] }
  0xfb   : > { %1106 = vst.msk [vmem:[#allocation2 + $0x4] sm:$0xf] %vm1104_vm13, %v1023_v50  ;;  %v1021_v55 = vpop.permute.xlu0 %1020  ;;  %v2074_v59 = vrot.slane %v2073_v48, 4 }
  0xfc   : > { %1105 = vst.msk [vmem:[#allocation2] sm:$0xf] %vm1104_vm13, %v1021_v55  ;;  %2540 = vrot.lane.b32.xlu1 %v2461_v46, %s6008_s12  ;;  %v2469_v55 = vrot.slane %v2404_v49, 5  ;;  %v2089_v63 = vsel %vm6068_vm2, %v2084_v52, %v6742_v53 }
  0xfd   : > { %2538 = vrot.lane.b32.xlu0 %v2458_v51, %s6008_s12  ;;  %v2069_v51 = vsel %vm6068_vm2, %v2064_v43, %v2068_v34  ;;  %v2079_v24 = vsel %vm6068_vm2, %v2074_v59, %v2078_v30  ;;  %v2090_v34 = vshrl.u32 %v6726_v38, 16  ;;  %v2098_v38 = vrot.slane %v2096_v0, 5 }
  0xfe   : > { %v1027_v54 = vpop.permute.xlu1 %1026  ;;  %v2471_v2 = vrot.slane %v2469_v55, 4 }
  0xff   : > { %1108 = vst.msk [vmem:[#allocation2 + $0xc] sm:$0xf] %vm1104_vm13, %v1027_v54  ;;  %v1025_v3 = vpop.permute.xlu0 %1024  ;;  %v2406_v54 = vld [vmem:[%s6057_s23 + $0x2c] sm:$0xf]  ;;  %v2092_v52 = vrot.slane %v2090_v34, 4 }
 0x100   : > { %1107 = vst.msk [vmem:[#allocation2 + $0x8] sm:$0xf] %vm1104_vm13, %v1025_v3  ;;  %2544 = vrot.lane.b32.xlu1 %v2467_v58, %s6008_s12  ;;  %v2059_v58 = vsel %vm6068_vm2, %v2054_v37, %v2058_v62  ;;  %v2472_v3 = vrot.slane %v2405_v60, 5  ;;  %v2475_v4 = vrot.slane %v2406_v54, 5  ;;  %v6853_v34 = vld [vmem:[%s6057_s23 + $0x40] sm:$0xf] }
 0x101   : > { %2542 = vrot.lane.b32.xlu0 %v2464_v1, %s6008_s12  ;;  %v2490_v7 = vrot.slane %v6853_v34, 5 }
 0x102   : > { %v1031_v8 = vpop.permute.xlu1 %1030  ;;  %v2473_v11 = vsel %vm6224_vm6, %v2471_v2, %v2472_v3  ;;  %v2477_v13 = vrot.slane %v2475_v4, 4  ;;  %v2474_v62 = vrot.slane %v2472_v3, 4  ;;  %v2093_v2 = vor.u32 %v2092_v52, %v6742_v53  ;;  %v6820_v3 = vld [vmem:[%s6057_s23 + $0x40] sm:$0xf] }
 0x103   : > { %1110 = vst.msk [vmem:[#allocation2 + $0x14] sm:$0xf] %vm1104_vm13, %v1031_v8  ;;  %v1029_v14 = vpop.permute.xlu0 %1028  ;;  %v1564_v8 = vld [vmem:[%s6057_s23 + $0x2c] sm:$0xf] }
 0x104   : > { %1109 = vst.msk [vmem:[#allocation2 + $0x10] sm:$0xf] %vm1104_vm13, %v1029_v14  ;;  %1704 = vrot.lane.b32.xlu1 %v1629_v6, %s6005_s28  ;;  %v1637_v47 = vrot.slane %v1564_v8, 5  ;;  %v1566_v14 = vld [vmem:[%s6057_s23 + $0x34] sm:$0xf] }
 0x105   : > { %1702 = vrot.lane.b32.xlu0 %v1626_v9, %s6005_s28  ;;  %v1643_v19 = vrot.slane %v1566_v14, 5  ;;  %v2408_v14 = vld [vmem:[%s6057_s23 + $0x34] sm:$0xf] }
 0x106   : > { %v1035_v20 = vpop.permute.xlu1 %1034 }
 0x107   : > { %1112 = vst.msk [vmem:[#allocation2 + $0x1c] sm:$0xf] %vm1104_vm13, %v1035_v20  ;;  %v1033_v26 = vpop.permute.xlu0 %1032  ;;  %v2479_v20 = vsel %vm6224_vm6, %v2477_v13, %v2478_v42  ;;  %v1645_v31 = vrot.slane %v1643_v19, 4  ;;  %v2094_v13 = vrot.slane %v2093_v2, 4 }
 0x108   : > { %1111 = vst.msk [vmem:[#allocation2 + $0x18] sm:$0xf] %vm1104_vm13, %v1033_v26  ;;  %1708 = vrot.lane.b32.xlu1 %v1635_v16, %s6005_s28  ;;  %v2470_v16 = vsel %vm6224_vm6, %v2468_v33, %v2469_v55  ;;  %v2476_v26 = vsel %vm6224_vm6, %v2474_v62, %v2475_v4 }
 0x109   : > { %1706 = vrot.lane.b32.xlu0 %v1632_v21, %s6005_s28  ;;  %v1639_v21 = vrot.slane %v1637_v47, 4 }
 0x10a   : > { %v1039_v32 = vpop.permute.xlu1 %1038 }
 0x10b   : > { %1114 = vst.msk [vmem:[#allocation2 + $0x24] sm:$0xf] %vm1104_vm13, %v1039_v32  ;;  %v1037_v40 = vpop.permute.xlu0 %1036  ;;  %v1646_v32 = vrot.slane %v6783_v23, 5 }
 0x10c   : > { %1113 = vst.msk [vmem:[#allocation2 + $0x20] sm:$0xf] %vm1104_vm13, %v1037_v40  ;;  %1874 = vrot.lane.b32.xlu1 %v1813_v28, %s6006_s29  ;;  %v1636_v28 = vrot.slane %v1634_v5, 4  ;;  %v2100_v5 = vshrl.u32 %v1987_v29, 16  ;;  %v1642_v40 = vrot.slane %v1640_v22, 4 }
 0x10d   : > { %1872 = vrot.lane.b32.xlu0 %v1812_v35, %s6006_s29  ;;  %v1641_v35 = vsel %vm6224_vm6, %v1639_v21, %v1640_v22  ;;  %v1647_v45 = vsel %vm6224_vm6, %v1645_v31, %v1646_v32  ;;  %v2409_v22 = vld [vmem:[%s6057_s23 + $0x38] sm:$0xf] }
 0x10e   : > { %v1043_v46 = vpop.permute.xlu1 %1042  ;;  %v1638_v39 = vsel %vm6224_vm6, %v1636_v28, %v1637_v47  ;;  %v1644_v49 = vsel %vm6224_vm6, %v1642_v40, %v1643_v19 }
 0x10f   : > { %1116 = vst.msk [vmem:[#allocation2 + $0x2c] sm:$0xf] %vm1104_vm13, %v1043_v46  ;;  %v1041_v50 = vpop.permute.xlu0 %1040  ;;  %v2102_v46 = vrot.slane %v2100_v5, 4  ;;  %v2480_v5 = vrot.slane %v2478_v42, 4 }
 0x110   : > { %1115 = vst.msk [vmem:[#allocation2 + $0x28] sm:$0xf] %vm1104_vm13, %v1041_v50  ;;  %1878 = vrot.lane.b32.xlu1 %v1815_v41, %s6006_s29  ;;  %v1989_v41 = vld [vmem:[%s6057_s23 + $0x3c] sm:$0xf]  ;;  %v2106_v50 = vshll.u32 %v1988_v44, 16 }
 0x111   : > { %1876 = vrot.lane.b32.xlu0 %v1814_v18, %s6006_s29  ;;  %v2116_v18 = vshll.u32 %v1989_v41, 16  ;;  %v2120_v37 = vshrl.u32 %v1989_v41, 16 }
 0x112   : > { %v1047_v56 = vpop.permute.xlu1 %1046 }
 0x113   : > { %1118 = vst.msk [vmem:[#allocation2 + $0x34] sm:$0xf] %vm1104_vm13, %v1047_v56  ;;  %v1045_v1 = vpop.permute.xlu0 %1044  ;;  %v1817_v56 = vld [vmem:[%s6057_s23 + $0x34] sm:$0xf]  ;;  %v2118_v59 = vrot.slane %v2116_v18, 5  ;;  %v2122_v60 = vrot.slane %v2120_v37, 4 }
 0x114   : > { %1117 = vst.msk [vmem:[#allocation2 + $0x30] sm:$0xf] %vm1104_vm13, %v1045_v1  ;;  %2295 = vrot.lane.b32.xlu1 %v2069_v51, %s6007_s9  ;;  %v2110_v51 = vshrl.u32 %v1988_v44, 16  ;;  %v1816_v1 = vld [vmem:[%s6057_s23 + $0x30] sm:$0xf] }
 0x115   : > { %2293 = vrot.lane.b32.xlu0 %v2059_v58, %s6007_s9  ;;  %v2103_v58 = vor.u32 %v2102_v46, %v2098_v38  ;;  %v2123_v8 = vor.u32 %v2122_v60, %v2118_v59  ;;  %v1570_v46 = vld [vmem:[%s6057_s23 + $0x44] sm:$0xf] }
 0x116   : > { %v1051_v6 = vpop.permute.xlu1 %1050  ;;  %v2112_v4 = vrot.slane %v2110_v51, 4  ;;  %v1991_v51 = vld [vmem:[%s6057_s23 + $0x44] sm:$0xf] }
 0x117   : > { %1120 = vst.msk [vmem:[#allocation2 + $0x3c] sm:$0xf] %vm1104_vm13, %v1051_v6  ;;  %v1049_v9 = vpop.permute.xlu0 %1048  ;;  %v2104_v33 = vrot.slane %v2103_v58, 4  ;;  %v2124_v62 = vrot.slane %v2123_v8, 4  ;;  %v6881_v58 = vld [vmem:[%s6057_s23 + $0x48] sm:$0xf] }
 0x118   : > { %1119 = vst.msk [vmem:[#allocation2 + $0x38] sm:$0xf] %vm1104_vm13, %v1049_v9  ;;  %2299 = vrot.lane.b32.xlu1 %v2089_v63, %s6007_s9  ;;  %v2108_v63 = vrot.slane %v2106_v50, 5  ;;  %v2126_v9 = vshll.u32 %v6820_v3, 16  ;;  %v1655_v50 = vrot.slane %v1570_v46, 5  ;;  %v2136_v60 = vshll.u32 %v1991_v51, 16 }
 0x119   : > { %2297 = vrot.lane.b32.xlu0 %v2079_v24, %s6007_s9  ;;  %v1819_v24 = vld [vmem:[%s6057_s23 + $0x3c] sm:$0xf]  ;;  %v1992_v8 = vld [vmem:[%s6057_s23 + $0x48] sm:$0xf] }
 0x11a   : > { %v1055_v15 = vpop.permute.xlu1 %1054  ;;  %v2113_v47 = vor.u32 %v2112_v4, %v2108_v63  ;;  %v6835_v17 = vrot.slane %v2126_v9, 5  ;;  %v1657_v23 = vrot.slane %v1655_v50, 4  ;;  %v6898_v9 = vrot.slane %v2136_v60, 5 }
 0x11b   : > { %1122 = vst.msk [vmem:[#allocation2 + $0x44] sm:$0xf] %vm1104_vm13, %v1055_v15  ;;  %v1053_v10 = vpop.permute.xlu0 %1052 }
 0x11c   : > { %1121 = vst.msk [vmem:[#allocation2 + $0x40] sm:$0xf] %vm1104_vm13, %v1053_v10  ;;  %2548 = vrot.lane.b32.xlu1 %v2473_v11, %s6008_s12  ;;  %v1818_v11 = vld [vmem:[%s6057_s23 + $0x38] sm:$0xf]  ;;  %v2481_v10 = vrot.slane %v2408_v14, 5  ;;  %v2114_v21 = vrot.slane %v2113_v47, 4  ;;  %v2129_v28 = vsel %vm6068_vm2, %v2124_v62, %v6835_v17 }
 0x11d   : > { %2546 = vrot.lane.b32.xlu0 %v2470_v16, %s6008_s12  ;;  %v2109_v16 = vsel %vm6068_vm2, %v2104_v33, %v2108_v63  ;;  %v2130_v63 = vshrl.u32 %v6820_v3, 16 }
 0x11e   : > { %v1059_v25 = vpop.permute.xlu1 %1058  ;;  %v2483_v29 = vrot.slane %v2481_v10, 4  ;;  %v2119_v0 = vsel %vm6068_vm2, %v2114_v21, %v2118_v59  ;;  %v2482_v44 = vsel %vm6224_vm6, %v2480_v5, %v2481_v10  ;;  %v1823_v5 = vld [vmem:[%s6057_s23 + $0x4c] sm:$0xf] }
 0x11f   : > { %1124 = vst.msk [vmem:[#allocation2 + $0x4c] sm:$0xf] %vm1104_vm13, %v1059_v25  ;;  %v1057_v30 = vpop.permute.xlu0 %1056  ;;  %v2410_v25 = vld [vmem:[%s6057_s23 + $0x3c] sm:$0xf]  ;;  %v2132_v62 = vrot.slane %v2130_v63, 4 }
 0x120   : > { %1123 = vst.msk [vmem:[#allocation2 + $0x48] sm:$0xf] %vm1104_vm13, %v1057_v30  ;;  %2552 = vrot.lane.b32.xlu1 %v2479_v20, %s6008_s12  ;;  %v2099_v20 = vsel %vm6068_vm2, %v2094_v13, %v2098_v38  ;;  %v2484_v30 = vrot.slane %v2409_v22, 5  ;;  %v2487_v31 = vrot.slane %v2410_v25, 5  ;;  %v1569_v38 = vld [vmem:[%s6057_s23 + $0x40] sm:$0xf] }
 0x121   : > { %2550 = vrot.lane.b32.xlu0 %v2476_v26, %s6008_s12 }
 0x122   : > { %v1063_v36 = vpop.permute.xlu1 %1062  ;;  %v2485_v40 = vsel %vm6224_vm6, %v2483_v29, %v2484_v30  ;;  %v2489_v41 = vrot.slane %v2487_v31, 4  ;;  %v2133_v29 = vor.u32 %v2132_v62, %v6835_v17  ;;  %v2412_v17 = vld [vmem:[%s6057_s23 + $0x44] sm:$0xf] }
 0x123   : > { %1126 = vst.msk [vmem:[#allocation2 + $0x54] sm:$0xf] %vm1104_vm13, %v1063_v36  ;;  %v1061_v43 = vpop.permute.xlu0 %1060  ;;  %v1568_v36 = vld [vmem:[%s6057_s23 + $0x3c] sm:$0xf]  ;;  %v2493_v46 = vrot.slane %v2412_v17, 5 }
 0x124   : > { %1125 = vst.msk [vmem:[#allocation2 + $0x50] sm:$0xf] %vm1104_vm13, %v1061_v43  ;;  %1712 = vrot.lane.b32.xlu1 %v1641_v35, %s6005_s28  ;;  %v1649_v42 = vrot.slane %v1568_v36, 5  ;;  %v2491_v37 = vsel %vm6224_vm6, %v2489_v41, %v2490_v7  ;;  %v1822_v41 = vld [vmem:[%s6057_s23 + $0x48] sm:$0xf] }
 0x125   : > { %1710 = vrot.lane.b32.xlu0 %v1638_v39, %s6005_s28 }
 0x126   : > { %v1067_v48 = vpop.permute.xlu1 %1066 }
 0x127   : > { %1128 = vst.msk [vmem:[#allocation2 + $0x5c] sm:$0xf] %vm1104_vm13, %v1067_v48  ;;  %v1065_v55 = vpop.permute.xlu0 %1064  ;;  %v1651_v48 = vrot.slane %v1649_v42, 4 }
 0x128   : > { %1127 = vst.msk [vmem:[#allocation2 + $0x58] sm:$0xf] %vm1104_vm13, %v1065_v55  ;;  %1716 = vrot.lane.b32.xlu1 %v1647_v45, %s6005_s28  ;;  %v2486_v45 = vrot.slane %v2484_v30, 4  ;;  %v6918_v30 = vld [vmem:[%s6057_s23 + $0x50] sm:$0xf] }
 0x129   : > { %1714 = vrot.lane.b32.xlu0 %v1644_v49, %s6005_s28  ;;  %v1652_v49 = vrot.slane %v1569_v38, 5 }
 0x12a   : > { %v1071_v54 = vpop.permute.xlu1 %1070  ;;  %v2488_v55 = vsel %vm6224_vm6, %v2486_v45, %v2487_v31 }
 0x12b   : > { %1130 = vst.msk [vmem:[#allocation2 + $0x64] sm:$0xf] %vm1104_vm13, %v1071_v54  ;;  %v1069_v6 = vpop.permute.xlu0 %1068  ;;  %v2140_v54 = vshrl.u32 %v1991_v51, 16  ;;  %v1346_v51 = vshrl.u32 %v6549_v61, 16 }
 0x12c   : > { %1129 = vst.msk [vmem:[#allocation2 + $0x60] sm:$0xf] %vm1104_vm13, %v1069_v6  ;;  %1882 = vrot.lane.b32.xlu1 %v1817_v56, %s6006_s29  ;;  %v1648_v56 = vrot.slane %v1646_v32, 4  ;;  %v1658_v32 = vrot.slane %v6881_v58, 5  ;;  %v1654_v6 = vrot.slane %v1652_v49, 4 }
 0x12d   : > { %1880 = vrot.lane.b32.xlu0 %v1816_v1, %s6006_s29  ;;  %v1653_v1 = vsel %vm6224_vm6, %v1651_v48, %v1652_v49  ;;  %v2413_v48 = vld [vmem:[%s6057_s23 + $0x48] sm:$0xf] }
 0x12e   : > { %v1075_v53 = vpop.permute.xlu1 %1074  ;;  %v1650_v4 = vsel %vm6224_vm6, %v1648_v56, %v1649_v42  ;;  %v1659_v3 = vsel %vm6224_vm6, %v1657_v23, %v1658_v32  ;;  %v1656_v14 = vsel %vm6224_vm6, %v1654_v6, %v1655_v50  ;;  %v2134_v42 = vrot.slane %v2133_v29, 4  ;;  %v1574_v29 = vld [vmem:[%s6057_s23 + $0x54] sm:$0xf] }
 0x12f   : > { %1133 = vst.msk [vmem:[#allocation2 + $0x6c] sm:$0x7] %vm1132_vm14, %v1075_v53  ;;  %v1073_v15 = vpop.permute.xlu0 %1072  ;;  %v2142_v53 = vrot.slane %v2140_v54, 4  ;;  %v2495_v54 = vrot.slane %v2493_v46, 4  ;;  %vm3187_vm14 = vcmask 59392  }
 0x130   : > { %1131 = vst.msk [vmem:[#allocation2 + $0x68] sm:$0xf] %vm1104_vm13, %v1073_v15  ;;  %1886 = vrot.lane.b32.xlu1 %v1819_v24, %s6006_s29  ;;  %v1993_v24 = vld [vmem:[%s6057_s23 + $0x4c] sm:$0xf]  ;;  %v2146_v15 = vshll.u32 %v1992_v8, 16  ;;  %vm3524_vm13 = vcmask 126016  }
 0x131   : > { %1884 = vrot.lane.b32.xlu0 %v1818_v11, %s6006_s29  ;;  %v2156_v11 = vshll.u32 %v1993_v24, 16  ;;  %v2160_v13 = vshrl.u32 %v1993_v24, 16  ;;  %v2492_v24 = vrot.slane %v2490_v7, 4 }
 0x132   : > { %v1444_v19 = vpop.permute.xlu1 %1443 }
 0x133   : > { %1527 = vst.msk [vmem:[#allocation2 + $0x4] sm:$0xf] %vm1525_vm15, %v1444_v19  ;;  %v1442_v26 = vpop.permute.xlu0 %1441  ;;  %v2143_v19 = vor.u32 %v2142_v53, %v6898_v9  ;;  %v6913_v21 = vrot.slane %v2156_v11, 5  ;;  %v2162_v22 = vrot.slane %v2160_v13, 4 }
 0x134   : > { %1526 = vst.msk [vmem:[#allocation2] sm:$0xf] %vm1525_vm15, %v1442_v26  ;;  %2303 = vrot.lane.b32.xlu1 %v2109_v16, %s6007_s9  ;;  %v2150_v16 = vshrl.u32 %v1992_v8, 16  ;;  %v1820_v26 = vld [vmem:[%s6057_s23 + $0x40] sm:$0xf] }
 0x135   : > { %2301 = vrot.lane.b32.xlu0 %v2099_v20, %s6007_s9  ;;  %v1821_v20 = vld [vmem:[%s6057_s23 + $0x44] sm:$0xf]  ;;  %v2163_v36 = vor.u32 %v2162_v22, %v6913_v21  ;;  %v6960_v8 = vld [vmem:[%s6057_s23 + $0x58] sm:$0xf] }
 0x136   : > { %v1448_v35 = vpop.permute.xlu1 %1447  ;;  %v2152_v31 = vrot.slane %v2150_v16, 4  ;;  %v1362_v13 = vshll.u32 %v6960_v8, 16 }
 0x137   : > { %1529 = vst.msk [vmem:[#allocation2 + $0xc] sm:$0xf] %vm1525_vm15, %v1448_v35  ;;  %v1446_v39 = vpop.permute.xlu0 %1445 }
 0x138   : > { %1528 = vst.msk [vmem:[#allocation2 + $0x8] sm:$0xf] %vm1525_vm15, %v1446_v39  ;;  %2307 = vrot.lane.b32.xlu1 %v2129_v28, %s6007_s9  ;;  %v2148_v28 = vrot.slane %v2146_v15, 5  ;;  %v2166_v39 = vshll.u32 %v6918_v30, 16  ;;  %v2494_v15 = vsel %vm6224_vm6, %v2492_v24, %v2493_v46  ;;  %v6982_v22 = vrot.slane %v1362_v13, 5 }
 0x139   : > { %2305 = vrot.lane.b32.xlu0 %v2119_v0, %s6007_s9  ;;  %v2144_v0 = vrot.slane %v2143_v19, 4  ;;  %v7033_v24 = vld [vmem:[%s6057_s23 + $0x60] sm:$0xf] }
 0x13a   : > { %v1452_v43 = vpop.permute.xlu1 %1451 }
 0x13b   : > { %1531 = vst.msk [vmem:[#allocation2 + $0x14] sm:$0xf] %vm1525_vm15, %v1452_v43  ;;  %v1450_v18 = vpop.permute.xlu0 %1449  ;;  %v2153_v43 = vor.u32 %v2152_v31, %v2148_v28  ;;  %v2149_v38 = vsel %vm6068_vm2, %v2144_v0, %v2148_v28 }
 0x13c   : > { %1530 = vst.msk [vmem:[#allocation2 + $0x10] sm:$0xf] %vm1525_vm15, %v1450_v18  ;;  %2556 = vrot.lane.b32.xlu1 %v2485_v40, %s6008_s12  ;;  %v2164_v18 = vrot.slane %v2163_v36, 4  ;;  %v1667_v36 = vrot.slane %v1574_v29, 5 }
 0x13d   : > { %2554 = vrot.lane.b32.xlu0 %v2482_v44, %s6008_s12  ;;  %v1153_v44 = vld [vmem:[%s6057_s23 + $0x54] sm:$0xf]  ;;  %v2154_v56 = vrot.slane %v2153_v43, 4 }
 0x13e   : > { %v1456_v52 = vpop.permute.xlu1 %1455  ;;  %v1352_v49 = vshll.u32 %v1153_v44, 16  ;;  %v1356_v50 = vshrl.u32 %v1153_v44, 16  ;;  %v1669_v58 = vrot.slane %v1667_v36, 4 }
 0x13f   : > { %1533 = vst.msk [vmem:[#allocation2 + $0x1c] sm:$0xf] %vm1525_vm15, %v1456_v52  ;;  %v1454_v59 = vpop.permute.xlu0 %1453  ;;  %v2159_v6 = vsel %vm6068_vm2, %v2154_v56, %v6913_v21 }
 0x140   : > { %1532 = vst.msk [vmem:[#allocation2 + $0x18] sm:$0xf] %vm1525_vm15, %v1454_v59  ;;  %2560 = vrot.lane.b32.xlu1 %v2491_v37, %s6008_s12  ;;  %v6936_v37 = vrot.slane %v2166_v39, 5  ;;  %v2414_v59 = vld [vmem:[%s6057_s23 + $0x4c] sm:$0xf]  ;;  %v1354_v63 = vrot.slane %v1352_v49, 5 }
 0x141   : > { %2558 = vrot.lane.b32.xlu0 %v2488_v55, %s6008_s12  ;;  %v2139_v55 = vsel %vm6068_vm2, %v2134_v42, %v6898_v9  ;;  %v2499_v23 = vrot.slane %v2414_v59, 5  ;;  %v1348_v9 = vrot.slane %v1346_v51, 4  ;;  %v1995_v42 = vld [vmem:[%s6057_s23 + $0x54] sm:$0xf] }
 0x142   : > { %v1460_v2 = vpop.permute.xlu1 %1459  ;;  %v2169_v61 = vsel %vm6068_vm2, %v2164_v18, %v6936_v37  ;;  %v2180_v46 = vshrl.u32 %v1995_v42, 16  ;;  %v2170_v18 = vshrl.u32 %v6918_v30, 16 }
 0x143   : > { %1535 = vst.msk [vmem:[#allocation2 + $0x24] sm:$0xf] %vm1525_vm15, %v1460_v2  ;;  %v1458_v33 = vpop.permute.xlu0 %1457  ;;  %v1358_v2 = vrot.slane %v1356_v50, 4  ;;  %v2501_v11 = vrot.slane %v2499_v23, 4  ;;  %v1349_v62 = vor.u32 %v1348_v9, %v6568_v12  ;;  %v1573_v12 = vld [vmem:[%s6057_s23 + $0x50] sm:$0xf] }
 0x144   : > { %1534 = vst.msk [vmem:[#allocation2 + $0x20] sm:$0xf] %vm1525_vm15, %v1458_v33  ;;  %1720 = vrot.lane.b32.xlu1 %v1653_v1, %s6005_s28  ;;  %v2496_v1 = vrot.slane %v2413_v48, 5  ;;  %v6957_v33 = vld [vmem:[%s6057_s23 + $0x50] sm:$0xf]  ;;  %v1664_v0 = vrot.slane %v1573_v12, 5 }
 0x145   : > { %1718 = vrot.lane.b32.xlu0 %v1650_v4, %s6005_s28  ;;  %v2502_v34 = vrot.slane %v6957_v33, 5  ;;  %v1359_v7 = vor.u32 %v1358_v2, %v1354_v63  ;;  %v1350_v28 = vrot.slane %v1349_v62, 4  ;;  %v1825_v9 = vld [vmem:[%s6057_s23 + $0x54] sm:$0xf]  ;;  %v1827_v62 = vld [vmem:[%s6057_s23 + $0x5c] sm:$0xf] }
 0x146   : > { %v1464_v47 = vpop.permute.xlu1 %1463  ;;  %v2498_v16 = vrot.slane %v2496_v1, 4  ;;  %v1666_v50 = vrot.slane %v1664_v0, 4 }
 0x147   : > { %1537 = vst.msk [vmem:[#allocation2 + $0x2c] sm:$0xf] %vm1525_vm15, %v1464_v47  ;;  %v1462_v10 = vpop.permute.xlu0 %1461  ;;  %v1572_v47 = vld [vmem:[%s6057_s23 + $0x4c] sm:$0xf]  ;;  %v1360_v21 = vrot.slane %v1359_v7, 4  ;;  %v1355_v17 = vsel %vm6068_vm2, %v1350_v28, %v1354_v63  ;;  %v2172_v63 = vrot.slane %v2170_v18, 4 }
 0x148   : > { %1536 = vst.msk [vmem:[#allocation2 + $0x28] sm:$0xf] %vm1525_vm15, %v1462_v10  ;;  %1724 = vrot.lane.b32.xlu1 %v1659_v3, %s6005_s28  ;;  %v2497_v3 = vsel %vm6224_vm6, %v2495_v54, %v2496_v1  ;;  %v1661_v19 = vrot.slane %v1572_v47, 5  ;;  %v1668_v1 = vsel %vm6224_vm6, %v1666_v50, %v1667_v36  ;;  %v7061_v36 = vld [vmem:[%s6057_s23 + $0x5c] sm:$0xf] }
 0x149   : > { %1722 = vrot.lane.b32.xlu0 %v1656_v14, %s6005_s28  ;;  %v2173_v13 = vor.u32 %v2172_v63, %v6936_v37  ;;  %v7080_v50 = vld [vmem:[%s6057_s23 + $0x60] sm:$0xf] }
 0x14a   : > { %v1468_v25 = vpop.permute.xlu1 %1467 }
 0x14b   : > { %1539 = vst.msk [vmem:[#allocation2 + $0x34] sm:$0xf] %vm1525_vm15, %v1468_v25  ;;  %v1466_v35 = vpop.permute.xlu0 %1465 }
 0x14c   : > { %1538 = vst.msk [vmem:[#allocation2 + $0x30] sm:$0xf] %vm1525_vm15, %v1466_v35  ;;  %1890 = vrot.lane.b32.xlu1 %v1821_v20, %s6006_s29  ;;  %v2503_v20 = vsel %vm6224_vm6, %v2501_v11, %v2502_v34  ;;  %v1663_v35 = vrot.slane %v1661_v19, 4  ;;  %v1824_v11 = vld [vmem:[%s6057_s23 + $0x50] sm:$0xf] }
 0x14d   : > { %1888 = vrot.lane.b32.xlu0 %v1820_v26, %s6006_s29  ;;  %v2500_v26 = vsel %vm6224_vm6, %v2498_v16, %v2499_v23  ;;  %v2206_v16 = vshll.u32 %v7033_v24, 16 }
 0x14e   : > { %v1472_v40 = vpop.permute.xlu1 %1471  ;;  %v1665_v44 = vsel %vm6224_vm6, %v1663_v35, %v1664_v0 }
 0x14f   : > { %1541 = vst.msk [vmem:[#allocation2 + $0x3c] sm:$0xf] %vm1525_vm15, %v1472_v40  ;;  %v1470_v45 = vpop.permute.xlu0 %1469  ;;  %v1660_v40 = vrot.slane %v1658_v32, 4  ;;  %v7051_v29 = vrot.slane %v2206_v16, 5 }
 0x150   : > { %1540 = vst.msk [vmem:[#allocation2 + $0x38] sm:$0xf] %vm1525_vm15, %v1470_v45  ;;  %1894 = vrot.lane.b32.xlu1 %v1823_v5, %s6006_s29  ;;  %v1365_v5 = vsel %vm6068_vm2, %v1360_v21, %v6982_v22  ;;  %v1997_v45 = vld [vmem:[%s6057_s23 + $0x5c] sm:$0xf]  ;;  %v2174_v21 = vrot.slane %v2173_v13, 4 }
 0x151   : > { %1892 = vrot.lane.b32.xlu0 %v1822_v41, %s6006_s29  ;;  %v7000_v41 = vld [vmem:[%s6057_s23 + $0x58] sm:$0xf]  ;;  %v1662_v49 = vsel %vm6224_vm6, %v1660_v40, %v1661_v19  ;;  %v2200_v56 = vshrl.u32 %v1997_v45, 16  ;;  %v2416_v19 = vld [vmem:[%s6057_s23 + $0x54] sm:$0xf] }
 0x152   : > { %v1476_v52 = vpop.permute.xlu1 %1475  ;;  %v1670_v32 = vrot.slane %v7000_v41, 5  ;;  %v2505_v35 = vrot.slane %v2416_v19, 5  ;;  %v7100_v13 = vld [vmem:[%s6057_s23 + $0x68] sm:$0xf] }
 0x153   : > { %1543 = vst.msk [vmem:[#allocation2 + $0x44] sm:$0xf] %vm1525_vm15, %v1476_v52  ;;  %v1474_v60 = vpop.permute.xlu0 %1473  ;;  %v1996_v52 = vld [vmem:[%s6057_s23 + $0x58] sm:$0xf] }
 0x154   : > { %1542 = vst.msk [vmem:[#allocation2 + $0x40] sm:$0xf] %vm1525_vm15, %v1474_v60  ;;  %2311 = vrot.lane.b32.xlu1 %v2149_v38, %s6007_s9  ;;  %v2176_v38 = vshll.u32 %v1995_v42, 16  ;;  %v1671_v30 = vsel %vm6224_vm6, %v1669_v58, %v1670_v32  ;;  %v2182_v60 = vrot.slane %v2180_v46, 4  ;;  %v2190_v23 = vshrl.u32 %v1996_v52, 16 }
 0x155   : > { %2309 = vrot.lane.b32.xlu0 %v2139_v55, %s6007_s9  ;;  %v2196_v55 = vshll.u32 %v1997_v45, 16  ;;  %v2507_v46 = vrot.slane %v2505_v35, 4 }
 0x156   : > { %v1697_v4 = vpop.permute.xlu1 %1696  ;;  %v7023_v59 = vrot.slane %v2176_v38, 5  ;;  %v2192_v47 = vrot.slane %v2190_v23, 4  ;;  %v1156_v38 = vld [vmem:[%s6057_s23 + $0x60] sm:$0xf] }
 0x157   : > { %1780 = vst.msk [vmem:[#allocation2 + $0x4] sm:$0xf] %vm1778_vm0, %v1697_v4  ;;  %v1695_v53 = vpop.permute.xlu0 %1694  ;;  %v7028_v4 = vrot.slane %v2196_v55, 5  ;;  %v1382_v33 = vshll.u32 %v1156_v38, 16 }
 0x158   : > { %1779 = vst.msk [vmem:[#allocation2] sm:$0xf] %vm1778_vm0, %v1695_v53  ;;  %2315 = vrot.lane.b32.xlu1 %v2169_v61, %s6007_s9  ;;  %v2186_v61 = vshll.u32 %v1996_v52, 16  ;;  %v2183_v53 = vor.u32 %v2182_v60, %v7023_v59 }
 0x159   : > { %2313 = vrot.lane.b32.xlu0 %v2159_v6, %s6007_s9  ;;  %v2202_v6 = vrot.slane %v2200_v56, 4 }
 0x15a   : > { %v1701_v14 = vpop.permute.xlu1 %1700  ;;  %v2188_v7 = vrot.slane %v2186_v61, 5 }
 0x15b   : > { %1782 = vst.msk [vmem:[#allocation2 + $0xc] sm:$0xf] %vm1778_vm0, %v1701_v14  ;;  %v1699_v10 = vpop.permute.xlu0 %1698 }
 0x15c   : > { %1781 = vst.msk [vmem:[#allocation2 + $0x8] sm:$0xf] %vm1778_vm0, %v1699_v10  ;;  %2564 = vrot.lane.b32.xlu1 %v2497_v3, %s6008_s12  ;;  %v2184_v10 = vrot.slane %v2183_v53, 4  ;;  %v2193_v12 = vor.u32 %v2192_v47, %v2188_v7 }
 0x15d   : > { %2562 = vrot.lane.b32.xlu0 %v2494_v15, %s6008_s12  ;;  %v2203_v15 = vor.u32 %v2202_v6, %v7028_v4 }
 0x15e   : > { %v1867_v25 = vpop.permute.xlu1 %1866  ;;  %v2189_v0 = vsel %vm6068_vm2, %v2184_v10, %v2188_v7  ;;  %v2194_v42 = vrot.slane %v2193_v12, 4  ;;  %v1576_v10 = vld [vmem:[%s6057_s23 + $0x5c] sm:$0xf] }
 0x15f   : > { %1950 = vst.msk [vmem:[#allocation2 + $0x4] sm:$0xf] %vm1948_vm1, %v1867_v25  ;;  %v1865_v31 = vpop.permute.xlu0 %1864  ;;  %v1155_v25 = vld [vmem:[%s6057_s23 + $0x5c] sm:$0xf]  ;;  %v2204_v28 = vrot.slane %v2203_v15, 4 }
 0x160   : > { %1949 = vst.msk [vmem:[#allocation2] sm:$0xf] %vm1948_vm1, %v1865_v31  ;;  %2568 = vrot.lane.b32.xlu1 %v2503_v20, %s6008_s12  ;;  %v1826_v20 = vld [vmem:[%s6057_s23 + $0x58] sm:$0xf]  ;;  %v1366_v31 = vshrl.u32 %v6960_v8, 16  ;;  %v2179_v8 = vsel %vm6068_vm2, %v2174_v21, %v7023_v59  ;;  %v2199_v59 = vsel %vm6068_vm2, %v2194_v42, %v7028_v4 }
 0x161   : > { %2566 = vrot.lane.b32.xlu0 %v2500_v26, %s6008_s12  ;;  %v2209_v58 = vsel %vm6068_vm2, %v2204_v28, %v7051_v29 }
 0x162   : > { %v1871_v39 = vpop.permute.xlu1 %1870  ;;  %v1368_v60 = vrot.slane %v1366_v31, 4 }
 0x163   : > { %1952 = vst.msk [vmem:[#allocation2 + $0xc] sm:$0xf] %vm1948_vm1, %v1871_v39  ;;  %v1869_v43 = vpop.permute.xlu0 %1868  ;;  %v1372_v39 = vshll.u32 %v1155_v25, 16 }
 0x164   : > { %1951 = vst.msk [vmem:[#allocation2 + $0x8] sm:$0xf] %vm1948_vm1, %v1869_v43  ;;  %1479 = vrot.lane.b32.xlu1 %v1365_v5, %s6004_s27  ;;  %v2417_v5 = vld [vmem:[%s6057_s23 + $0x58] sm:$0xf]  ;;  %v1157_v43 = vld [vmem:[%s6057_s23 + $0x64] sm:$0xf]  ;;  %v1369_v7 = vor.u32 %v1368_v60, %v6982_v22 }
 0x165   : > { %1477 = vrot.lane.b32.xlu0 %v1355_v17, %s6004_s27  ;;  %v1376_v17 = vshrl.u32 %v1155_v25, 16  ;;  %v2508_v18 = vrot.slane %v2417_v5, 5  ;;  %v1392_v55 = vshll.u32 %v1157_v43, 16  ;;  %v1396_v56 = vshrl.u32 %v1157_v43, 16 }
 0x166   : > { %v2288_v48 = vpop.permute.xlu1 %2287  ;;  %v1402_v22 = vshll.u32 %v7100_v13, 16  ;;  %v1673_v25 = vrot.slane %v1576_v10, 5 }
 0x167   : > { %2371 = vst.msk [vmem:[#allocation2 + $0x4] sm:$0xf] %vm2369_vm3, %v2288_v48  ;;  %v2286_v51 = vpop.permute.xlu0 %2285  ;;  %v2504_v48 = vrot.slane %v2502_v34, 4  ;;  %v1378_v52 = vrot.slane %v1376_v17, 4  ;;  %v1386_v34 = vshrl.u32 %v1156_v38, 16  ;;  %v2509_v61 = vsel %vm6224_vm6, %v2507_v46, %v2508_v18 }
 0x168   : > { %2370 = vst.msk [vmem:[#allocation2] sm:$0xf] %vm2369_vm3, %v2286_v51  ;;  %1728 = vrot.lane.b32.xlu1 %v1665_v44, %s6005_s28  ;;  %v7082_v51 = vrot.slane %v1372_v39, 5  ;;  %v1394_v6 = vrot.slane %v1392_v55, 5  ;;  %v7120_v31 = vrot.slane %v1402_v22, 5  ;;  %v2210_v55 = vshrl.u32 %v7033_v24, 16 }
 0x169   : > { %1726 = vrot.lane.b32.xlu0 %v1662_v49, %s6005_s28  ;;  %v2511_v49 = vrot.slane %v7061_v36, 5  ;;  %v2506_v23 = vsel %vm6224_vm6, %v2504_v48, %v2505_v35  ;;  %v1388_v47 = vrot.slane %v1386_v34, 4  ;;  %v1577_v35 = vld [vmem:[%s6057_s23 + $0x60] sm:$0xf]  ;;  %v1578_v39 = vld [vmem:[%s6057_s23 + $0x64] sm:$0xf] }
 0x16a   : > { %v2292_v54 = vpop.permute.xlu1 %2291  ;;  %v1379_v4 = vor.u32 %v1378_v52, %v7082_v51  ;;  %v1679_v43 = vrot.slane %v1578_v39, 5  ;;  %v7139_v38 = vld [vmem:[%s6057_s23 + $0x68] sm:$0xf]  ;;  %v1999_v46 = vld [vmem:[%s6057_s23 + $0x64] sm:$0xf] }
 0x16b   : > { %2373 = vst.msk [vmem:[#allocation2 + $0xc] sm:$0xf] %vm2369_vm3, %v2292_v54  ;;  %v2290_v2 = vpop.permute.xlu0 %2289  ;;  %v2513_v63 = vrot.slane %v2511_v49, 4  ;;  %v1682_v41 = vrot.slane %v7139_v38, 5  ;;  %v2001_v52 = vld [vmem:[%s6057_s23 + $0x6c] sm:$0xf] }
 0x16c   : > { %2372 = vst.msk [vmem:[#allocation2 + $0x8] sm:$0xf] %vm2369_vm3, %v2290_v2  ;;  %1732 = vrot.lane.b32.xlu1 %v1671_v30, %s6005_s28  ;;  %v2514_v2 = vrot.slane %v7080_v50, 5  ;;  %v1380_v16 = vrot.slane %v1379_v4, 4  ;;  %v2000_v34 = vld [vmem:[%s6057_s23 + $0x68] sm:$0xf] }
 0x16d   : > { %1730 = vrot.lane.b32.xlu0 %v1668_v1, %s6005_s28  ;;  %v2236_v60 = vshll.u32 %v2001_v52, 16  ;;  %v2226_v4 = vshll.u32 %v2000_v34, 16 }
 0x16e   : > { %v2541_v3 = vpop.permute.xlu1 %2540  ;;  %v2515_v15 = vsel %vm6224_vm6, %v2513_v63, %v2514_v2 }
 0x16f   : > { %2624 = vst.msk [vmem:[#allocation2 + $0x4] sm:$0xf] %vm2622_vm4, %v2541_v3  ;;  %v2539_v14 = vpop.permute.xlu0 %2538  ;;  %v2510_v3 = vrot.slane %v2508_v18, 4 }
 0x170   : > { %2623 = vst.msk [vmem:[#allocation2] sm:$0xf] %vm2622_vm4, %v2539_v14  ;;  %1898 = vrot.lane.b32.xlu1 %v1825_v9, %s6006_s29  ;;  %v1398_v9 = vrot.slane %v1396_v56, 4 }
 0x171   : > { %1896 = vrot.lane.b32.xlu0 %v1824_v11, %s6006_s29  ;;  %v1384_v11 = vrot.slane %v1382_v33, 5 }
 0x172   : > { %v2545_v37 = vpop.permute.xlu1 %2544 }
 0x173   : > { %2626 = vst.msk [vmem:[#allocation2 + $0xc] sm:$0xf] %vm2622_vm4, %v2545_v37  ;;  %v2543_v26 = vpop.permute.xlu0 %2542  ;;  %v2512_v37 = vsel %vm6224_vm6, %v2510_v3, %v2511_v49  ;;  %v1389_v21 = vor.u32 %v1388_v47, %v1384_v11  ;;  %v1681_v49 = vrot.slane %v1679_v43, 4  ;;  %v7169_v3 = vrot.slane %v2236_v60, 5 }
 0x174   : > { %2625 = vst.msk [vmem:[#allocation2 + $0x8] sm:$0xf] %vm2622_vm4, %v2543_v26  ;;  %1902 = vrot.lane.b32.xlu1 %v1827_v62, %s6006_s29  ;;  %v1399_v62 = vor.u32 %v1398_v9, %v1394_v6  ;;  %v1385_v26 = vsel %vm6068_vm2, %v1380_v16, %v1384_v11  ;;  %v2212_v9 = vrot.slane %v2210_v55, 4  ;;  %v1828_v16 = vld [vmem:[%s6057_s23 + $0x60] sm:$0xf] }
 0x175   : > { %1900 = vrot.lane.b32.xlu0 %v1826_v20, %s6006_s29  ;;  %v1370_v20 = vrot.slane %v1369_v7, 4  ;;  %v1390_v36 = vrot.slane %v1389_v21, 4  ;;  %v1683_v24 = vsel %vm6224_vm6, %v1681_v49, %v1682_v41  ;;  %v1829_v7 = vld [vmem:[%s6057_s23 + $0x64] sm:$0xf]  ;;  %v2422_v49 = vld [vmem:[%s6057_s23 + $0x6c] sm:$0xf] }
 0x176   : > { %v1705_v40 = vpop.permute.xlu1 %1704  ;;  %v1400_v28 = vrot.slane %v1399_v62, 4  ;;  %v2228_v62 = vrot.slane %v2226_v4, 5  ;;  %v2213_v22 = vor.u32 %v2212_v9, %v7051_v29  ;;  %v1830_v29 = vld [vmem:[%s6057_s23 + $0x68] sm:$0xf] }
 0x177   : > { %1784 = vst.msk [vmem:[#allocation2 + $0x14] sm:$0xf] %vm1778_vm0, %v1705_v40  ;;  %v1703_v44 = vpop.permute.xlu0 %1702  ;;  %v5961_v45 = vld [vmem:[#allocation2] sm:$0xff]   ;;  %v1375_v5 = vsel %vm6068_vm2, %v1370_v20, %v7082_v51  ;;  %v1675_v40 = vrot.slane %v1673_v25, 4  ;;  %v2220_v51 = vshrl.u32 %v1999_v46, 16 }
 0x178   : > { %1783 = vst.msk [vmem:[#allocation2 + $0x10] sm:$0xf] %vm1778_vm0, %v1703_v44  ;;  %2319 = vrot.lane.b32.xlu1 %v2189_v0, %s6007_s9  ;;  %5873 = vmatprep.mubr.msk.bf16.mxu0 %vm2777_vm5, %v5961_v45  ;;  %v1405_v42 = vsel %vm6068_vm2, %v1400_v28, %v7120_v31  ;;  %v1395_v45 = vsel %vm6068_vm2, %v1390_v36, %v1394_v6  ;;  %v2230_v6 = vshrl.u32 %v2000_v34, 16  ;;  %v1831_v20 = vld [vmem:[%s6057_s23 + $0x6c] sm:$0xf] }
 0x179   : > { %2317 = vrot.lane.b32.xlu0 %v2179_v8, %s6007_s9  ;;  %v1676_v8 = vrot.slane %v1577_v35, 5  ;;  %v2214_v35 = vrot.slane %v2213_v22, 4  ;;  %v1161_v34 = vld [vmem:[%s6057_s23 + $0x74] sm:$0xf] }
 0x17a   : > { %v1709_v30 = vpop.permute.xlu1 %1708  ;;  %v2232_v10 = vrot.slane %v2230_v6, 4  ;;  %v1436_v4 = vshrl.u32 %v1161_v34, 16 }
 0x17b   : > { %1786 = vst.msk [vmem:[#allocation2 + $0x1c] sm:$0xf] %vm1778_vm0, %v1709_v30  ;;  %v1707_v54 = vpop.permute.xlu0 %1706  ;;  %v5962_v1 = vld [vmem:[#allocation2 + $0x8] sm:$0xff]   ;;  %v1677_v48 = vsel %vm6224_vm6, %v1675_v40, %v1676_v8 }
 0x17c   : > { %1785 = vst.msk [vmem:[#allocation2 + $0x18] sm:$0xf] %vm1778_vm0, %v1707_v54  ;;  %2323 = vrot.lane.b32.xlu1 %v2209_v58, %s6007_s9  ;;  %5874 = vmatmul.mubr.msk.bf16.vlgmr.msra.gmra.mxu0 %vm2777_vm5, %v5962_v1  ;;  %v1672_v58 = vrot.slane %v1670_v32, 4  ;;  %v2216_v32 = vshll.u32 %v1999_v46, 16  ;;  %v2240_v54 = vshrl.u32 %v2001_v52, 16 }
 0x17d   : > { %2321 = vrot.lane.b32.xlu0 %v2199_v59, %s6007_s9  ;;  %v1678_v59 = vrot.slane %v1676_v8, 4 }
 0x17e   : > { %v1875_v53 = vpop.permute.xlu1 %1874  ;;  %v1674_v30 = vsel %vm6224_vm6, %v1672_v58, %v1673_v25  ;;  %v7162_v1 = vrot.slane %v2216_v32, 5  ;;  %v2242_v11 = vrot.slane %v2240_v54, 4  ;;  %v1406_v58 = vshrl.u32 %v7100_v13, 16 }
 0x17f   : > { %1954 = vst.msk [vmem:[#allocation2 + $0x14] sm:$0xf] %vm1948_vm1, %v1875_v53  ;;  %v1873_v14 = vpop.permute.xlu0 %1872  ;;  %v1680_v63 = vsel %vm6224_vm6, %v1678_v59, %v1679_v43  ;;  %v2421_v43 = vld [vmem:[%s6057_s23 + $0x68] sm:$0xf] }
 0x180   : > { %1953 = vst.msk [vmem:[#allocation2 + $0x10] sm:$0xf] %vm1948_vm1, %v1873_v14  ;;  %2572 = vrot.lane.b32.xlu1 %v2509_v61, %s6008_s12  ;;  %v2222_v61 = vrot.slane %v2220_v51, 4  ;;  %v7175_v14 = vld [vmem:[%s6057_s23 + $0x70] sm:$0xf]  ;;  %v2243_v21 = vor.u32 %v2242_v11, %v7169_v3  ;;  %v2520_v55 = vrot.slane %v2421_v43, 5 }
 0x181   : > { %2570 = vrot.lane.b32.xlu0 %v2506_v23, %s6008_s12  ;;  %v1160_v51 = vld [vmem:[%s6057_s23 + $0x70] sm:$0xf]  ;;  %v2250_v38 = vshrl.u32 %v7175_v14, 16 }
 0x182   : > { %v1879_v19 = vpop.permute.xlu1 %1878  ;;  %v2223_v47 = vor.u32 %v2222_v61, %v7162_v1  ;;  %v1426_v61 = vshrl.u32 %v1160_v51, 16 }
 0x183   : > { %1956 = vst.msk [vmem:[#allocation2 + $0x1c] sm:$0xf] %vm1948_vm1, %v1879_v19  ;;  %v1877_v12 = vpop.permute.xlu0 %1876 }
 0x184   : > { %1955 = vst.msk [vmem:[#allocation2 + $0x18] sm:$0xf] %vm1948_vm1, %v1877_v12  ;;  %2576 = vrot.lane.b32.xlu1 %v2515_v15, %s6008_s12  ;;  %v2246_v12 = vshll.u32 %v7175_v14, 16  ;;  %v2224_v25 = vrot.slane %v2223_v47, 4 }
 0x185   : > { %2574 = vrot.lane.b32.xlu0 %v2512_v37, %s6008_s12 }
 0x186   : > { %v2296_v0 = vpop.permute.xlu1 %2295  ;;  %v7193_v40 = vrot.slane %v2246_v12, 5 }
 0x187   : > { %2375 = vst.msk [vmem:[#allocation2 + $0x14] sm:$0xf] %vm2369_vm3, %v2296_v0  ;;  %v2294_v17 = vpop.permute.xlu0 %2293  ;;  %v2233_v0 = vor.u32 %v2232_v10, %v2228_v62  ;;  %v1438_v10 = vrot.slane %v1436_v4, 4 }
 0x188   : > { %2374 = vst.msk [vmem:[#allocation2 + $0x10] sm:$0xf] %vm2369_vm3, %v2294_v17  ;;  %1483 = vrot.lane.b32.xlu1 %v1385_v26, %s6004_s27  ;;  %v2420_v26 = vld [vmem:[%s6057_s23 + $0x64] sm:$0xf]  ;;  %v2244_v17 = vrot.slane %v2243_v21, 4 }
 0x189   : > { %1481 = vrot.lane.b32.xlu0 %v1375_v5, %s6004_s27  ;;  %v1159_v5 = vld [vmem:[%s6057_s23 + $0x6c] sm:$0xf]  ;;  %v2517_v8 = vrot.slane %v2420_v26, 5 }
 0x18a   : > { %v2300_v44 = vpop.permute.xlu1 %2299  ;;  %v2249_v13 = vsel %vm6068_vm2, %v2244_v17, %v7193_v40 }
 0x18b   : > { %2377 = vst.msk [vmem:[#allocation2 + $0x1c] sm:$0xf] %vm2369_vm3, %v2300_v44  ;;  %v2298_v18 = vpop.permute.xlu0 %2297  ;;  %v1412_v44 = vshll.u32 %v1159_v5, 16  ;;  %v2519_v52 = vrot.slane %v2517_v8, 4 }
 0x18c   : > { %2376 = vst.msk [vmem:[#allocation2 + $0x18] sm:$0xf] %vm2369_vm3, %v2298_v18  ;;  %1487 = vrot.lane.b32.xlu1 %v1405_v42, %s6004_s27  ;;  %v2229_v42 = vsel %vm6068_vm2, %v2224_v25, %v2228_v62  ;;  %v2219_v18 = vsel %vm6068_vm2, %v2214_v35, %v7162_v1  ;;  %v1422_v1 = vshll.u32 %v1160_v51, 16 }
 0x18d   : > { %1485 = vrot.lane.b32.xlu0 %v1395_v45, %s6004_s27  ;;  %v1416_v45 = vshrl.u32 %v1159_v5, 16  ;;  %v1414_v59 = vrot.slane %v1412_v44, 5  ;;  %v2521_v50 = vsel %vm6224_vm6, %v2519_v52, %v2520_v55  ;;  %v1582_v44 = vld [vmem:[%s6057_s23 + $0x74] sm:$0xf] }
 0x18e   : > { %v2549_v56 = vpop.permute.xlu1 %2548  ;;  %v1424_v47 = vrot.slane %v1422_v1, 5 }
 0x18f   : > { %2628 = vst.msk [vmem:[#allocation2 + $0x14] sm:$0xf] %vm2622_vm4, %v2549_v56  ;;  %v2547_v33 = vpop.permute.xlu0 %2546  ;;  %v2516_v56 = vrot.slane %v2514_v2, 4  ;;  %v1432_v2 = vshll.u32 %v1161_v34, 16 }
 0x190   : > { %2627 = vst.msk [vmem:[#allocation2 + $0x10] sm:$0xf] %vm2622_vm4, %v2547_v33  ;;  %1736 = vrot.lane.b32.xlu1 %v1677_v48, %s6005_s28  ;;  %v2234_v48 = vrot.slane %v2233_v0, 4  ;;  %v1418_v33 = vrot.slane %v1416_v45, 4 }
 0x191   : > { %1734 = vrot.lane.b32.xlu0 %v1674_v30, %s6005_s28  ;;  %v2523_v30 = vrot.slane %v2422_v49, 5  ;;  %v2518_v6 = vsel %vm6224_vm6, %v2516_v56, %v2517_v8  ;;  %v1434_v22 = vrot.slane %v1432_v2, 5  ;;  %v1691_v49 = vrot.slane %v1582_v44, 5 }
 0x192   : > { %v2553_v23 = vpop.permute.xlu1 %2552  ;;  %v2239_v54 = vsel %vm6068_vm2, %v2234_v48, %v7169_v3  ;;  %v1419_v3 = vor.u32 %v1418_v33, %v1414_v59 }
 0x193   : > { %2630 = vst.msk [vmem:[#allocation2 + $0x1c] sm:$0xf] %vm2622_vm4, %v2553_v23  ;;  %v2551_v53 = vpop.permute.xlu0 %2550  ;;  %v1408_v23 = vrot.slane %v1406_v58, 4  ;;  %v2525_v9 = vrot.slane %v2523_v30, 4  ;;  %v1439_v26 = vor.u32 %v1438_v10, %v1434_v22  ;;  %v1693_v33 = vrot.slane %v1691_v49, 4 }
 0x194   : > { %2629 = vst.msk [vmem:[#allocation2 + $0x18] sm:$0xf] %vm2622_vm4, %v2551_v53  ;;  %1740 = vrot.lane.b32.xlu1 %v1683_v24, %s6005_s28  ;;  %v7220_v24 = vld [vmem:[%s6057_s23 + $0x70] sm:$0xf] }
 0x195   : > { %1738 = vrot.lane.b32.xlu0 %v1680_v63, %s6005_s28  ;;  %v2526_v53 = vrot.slane %v7220_v24, 5  ;;  %v1440_v8 = vrot.slane %v1439_v26, 4 }
 0x196   : > { %v1713_v15 = vpop.permute.xlu1 %1712 }
 0x197   : > { %1788 = vst.msk [vmem:[#allocation2 + $0x24] sm:$0xf] %vm1778_vm0, %v1713_v15  ;;  %v1711_v19 = vpop.permute.xlu0 %1710  ;;  %v5963_v37 = vld [vmem:[#allocation2 + $0x10] sm:$0xff]   ;;  %v1409_v15 = vor.u32 %v1408_v23, %v7120_v31 }
 0x198   : > { %1787 = vst.msk [vmem:[#allocation2 + $0x20] sm:$0xf] %vm1778_vm0, %v1711_v19  ;;  %1906 = vrot.lane.b32.xlu1 %v1829_v7, %s6006_s29  ;;  %5877 = vmatprep.mubr.msk.bf16.mxu0 %vm2777_vm5, %v5963_v37  ;;  %v2522_v7 = vrot.slane %v2520_v55, 4  ;;  %v2527_v19 = vsel %vm6224_vm6, %v2525_v9, %v2526_v53  ;;  %v1420_v37 = vrot.slane %v1419_v3, 4  ;;  %v1833_v9 = vld [vmem:[%s6057_s23 + $0x74] sm:$0xf] }
 0x199   : > { %1904 = vrot.lane.b32.xlu0 %v1828_v16, %s6006_s29  ;;  %v1428_v16 = vrot.slane %v1426_v61, 4  ;;  %v1410_v21 = vrot.slane %v1409_v15, 4 }
 0x19a   : > { %v1717_v28 = vpop.permute.xlu1 %1716  ;;  %v2524_v31 = vsel %vm6224_vm6, %v2522_v7, %v2523_v30  ;;  %v1832_v7 = vld [vmem:[%s6057_s23 + $0x70] sm:$0xf] }
 0x19b   : > { %1790 = vst.msk [vmem:[#allocation2 + $0x2c] sm:$0xf] %vm1778_vm0, %v1717_v28  ;;  %v1715_v36 = vpop.permute.xlu0 %1714  ;;  %v5964_v39 = vld [vmem:[#allocation2 + $0x18] sm:$0xff]   ;;  %v1429_v12 = vor.u32 %v1428_v16, %v1424_v47  ;;  %v1425_v28 = vsel %vm6068_vm2, %v1420_v37, %v1424_v47  ;;  %v1415_v5 = vsel %vm6068_vm2, %v1410_v21, %v1414_v59 }
 0x19c   : > { %1789 = vst.msk [vmem:[#allocation2 + $0x28] sm:$0xf] %vm1778_vm0, %v1715_v36  ;;  %1910 = vrot.lane.b32.xlu1 %v1831_v20, %s6006_s29  ;;  %5878 = vmatmul.mubr.msk.bf16.gmra.mxu0 %vm2777_vm5, %v5964_v39  ;;  %v1581_v39 = vld [vmem:[%s6057_s23 + $0x70] sm:$0xf]  ;;  %v2004_v59 = vld [vmem:[%s6057_s23 + $0x78] sm:$0xf] }
 0x19d   : > { %1908 = vrot.lane.b32.xlu0 %v1830_v29, %s6006_s29  ;;  %v1580_v29 = vld [vmem:[%s6057_s23 + $0x6c] sm:$0xf]  ;;  %v1430_v36 = vrot.slane %v1429_v12, 4  ;;  %v1688_v43 = vrot.slane %v1581_v39, 5  ;;  %v2266_v61 = vshll.u32 %v2004_v59, 16  ;;  %v2270_v23 = vshrl.u32 %v2004_v59, 16 }
 0x19e   : > { %v1883_v46 = vpop.permute.xlu1 %1882  ;;  %v1685_v35 = vrot.slane %v1580_v29, 5 }
 0x19f   : > { %1958 = vst.msk [vmem:[#allocation2 + $0x24] sm:$0xf] %vm1948_vm1, %v1883_v46  ;;  %v1881_v32 = vpop.permute.xlu0 %1880  ;;  %v1435_v58 = vsel %vm6068_vm2, %v1430_v36, %v1434_v22  ;;  %v1684_v46 = vrot.slane %v1682_v41, 4  ;;  %v1690_v55 = vrot.slane %v1688_v43, 4  ;;  %v2268_v47 = vrot.slane %v2266_v61, 5 }
 0x1a0   : > { %1957 = vst.msk [vmem:[#allocation2 + $0x20] sm:$0xf] %vm1948_vm1, %v1881_v32  ;;  %2327 = vrot.lane.b32.xlu1 %v2229_v42, %s6007_s9  ;;  %v1687_v42 = vrot.slane %v1685_v35, 4  ;;  %v2272_v16 = vrot.slane %v2270_v23, 4  ;;  %v2425_v36 = vld [vmem:[%s6057_s23 + $0x78] sm:$0xf] }
 0x1a1   : > { %2325 = vrot.lane.b32.xlu0 %v2219_v18, %s6007_s9  ;;  %v2003_v18 = vld [vmem:[%s6057_s23 + $0x74] sm:$0xf]  ;;  %v1686_v52 = vsel %vm6224_vm6, %v1684_v46, %v1685_v35  ;;  %v1692_v1 = vsel %vm6224_vm6, %v1690_v55, %v1691_v49 }
 0x1a2   : > { %v1887_v60 = vpop.permute.xlu1 %1886  ;;  %v1689_v32 = vsel %vm6224_vm6, %v1687_v42, %v1688_v43  ;;  %v2256_v51 = vshll.u32 %v2003_v18, 16  ;;  %v2273_v12 = vor.u32 %v2272_v16, %v2268_v47  ;;  %v2532_v42 = vrot.slane %v2425_v36, 5  ;;  %v2426_v43 = vld [vmem:[%s6057_s23 + $0x7c] sm:$0xf] }
 0x1a3   : > { %1960 = vst.msk [vmem:[#allocation2 + $0x2c] sm:$0xf] %vm1948_vm1, %v1887_v60  ;;  %v1885_v63 = vpop.permute.xlu0 %1884  ;;  %v2005_v60 = vld [vmem:[%s6057_s23 + $0x7c] sm:$0xf] }
 0x1a4   : > { %1959 = vst.msk [vmem:[#allocation2 + $0x28] sm:$0xf] %vm1948_vm1, %v1885_v63  ;;  %2331 = vrot.lane.b32.xlu1 %v2249_v13, %s6007_s9  ;;  %v2260_v13 = vshrl.u32 %v2003_v18, 16  ;;  %v2258_v14 = vrot.slane %v2256_v51, 5  ;;  %v2252_v63 = vrot.slane %v2250_v38, 4  ;;  %v2276_v4 = vshll.u32 %v2005_v60, 16 }
 0x1a5   : > { %2329 = vrot.lane.b32.xlu0 %v2239_v54, %s6007_s9  ;;  %v2535_v18 = vrot.slane %v2426_v43, 5  ;;  %v2534_v51 = vrot.slane %v2532_v42, 4 }
 0x1a6   : > { %v2304_v11 = vpop.permute.xlu1 %2303  ;;  %v2262_v34 = vrot.slane %v2260_v13, 4  ;;  %v2253_v15 = vor.u32 %v2252_v63, %v7193_v40  ;;  %v2278_v22 = vrot.slane %v2276_v4, 5  ;;  %v2424_v40 = vld [vmem:[%s6057_s23 + $0x74] sm:$0xf] }
 0x1a7   : > { %2379 = vst.msk [vmem:[#allocation2 + $0x24] sm:$0xf] %vm2369_vm3, %v2304_v11  ;;  %v2302_v62 = vpop.permute.xlu0 %2301  ;;  %v2536_v38 = vsel %vm6224_vm6, %v2534_v51, %v2535_v18 }
 0x1a8   : > { %2378 = vst.msk [vmem:[#allocation2 + $0x20] sm:$0xf] %vm2369_vm3, %v2302_v62  ;;  %2580 = vrot.lane.b32.xlu1 %v2521_v50, %s6008_s12  ;;  %v2263_v3 = vor.u32 %v2262_v34, %v2258_v14  ;;  %v2254_v21 = vrot.slane %v2253_v15, 4 }
 0x1a9   : > { %2578 = vrot.lane.b32.xlu0 %v2518_v6, %s6008_s12  ;;  %v2280_v6 = vshrl.u32 %v2005_v60, 16 }
 0x1aa   : > { %v2308_v20 = vpop.permute.xlu1 %2307  ;;  %v2264_v37 = vrot.slane %v2263_v3, 4 }
 0x1ab   : > { %2381 = vst.msk [vmem:[#allocation2 + $0x2c] sm:$0xf] %vm2369_vm3, %v2308_v20  ;;  %v2306_v25 = vpop.permute.xlu0 %2305  ;;  %v2282_v10 = vrot.slane %v2280_v6, 4 }
 0x1ac   : > { %2380 = vst.msk [vmem:[#allocation2 + $0x28] sm:$0xf] %vm2369_vm3, %v2306_v25  ;;  %2584 = vrot.lane.b32.xlu1 %v2527_v19, %s6008_s12  ;;  %v1835_v19 = vld [vmem:[%s6057_s23 + $0x7c] sm:$0x7]  ;;  %v2269_v26 = vsel %vm6068_vm2, %v2264_v37, %v2268_v47 }
 0x1ad   : > { %2582 = vrot.lane.b32.xlu0 %v2524_v31, %s6008_s12  ;;  %v1834_v31 = vld [vmem:[%s6057_s23 + $0x78] sm:$0xf]  ;;  %v2283_v25 = vor.u32 %v2282_v10, %v2278_v22  ;;  %s6011_s23 = smov 56  }
 0x1ae   : > { %v2557_v0 = vpop.permute.xlu1 %2556 }
 0x1af   : > { %2632 = vst.msk [vmem:[#allocation2 + $0x24] sm:$0xf] %vm2622_vm4, %v2557_v0  ;;  %v2555_v17 = vpop.permute.xlu0 %2554  ;;  %v2259_v0 = vsel %vm6068_vm2, %v2254_v21, %v2258_v14 }
 0x1b0   : > { %2631 = vst.msk [vmem:[#allocation2 + $0x20] sm:$0xf] %vm2622_vm4, %v2555_v17  ;;  %1491 = vrot.lane.b32.xlu1 %v1425_v28, %s6004_s27  ;;  %v2529_v28 = vrot.slane %v2424_v40, 5  ;;  %v2284_v17 = vrot.slane %v2283_v25, 4 }
 0x1b1   : > { %1489 = vrot.lane.b32.xlu0 %v1415_v5, %s6004_s27  ;;  %v2274_v5 = vrot.slane %v2273_v12, 4 }
 0x1b2   : > { %v2561_v45 = vpop.permute.xlu1 %2560 }
 0x1b3   : > { %2634 = vst.msk [vmem:[#allocation2 + $0x2c] sm:$0xf] %vm2622_vm4, %v2561_v45  ;;  %v2559_v48 = vpop.permute.xlu0 %2558  ;;  %v2279_v45 = vsel %vm6068_vm2, %v2274_v5, %v2278_v22 }
 0x1b4   : > { %2633 = vst.msk [vmem:[#allocation2 + $0x28] sm:$0xf] %vm2622_vm4, %v2559_v48  ;;  %1495 = vrot.lane.b32.xlu1 %v1440_v8, %s6004_s27  ;;  %v2531_v8 = vrot.slane %v2529_v28, 4 }
 0x1b5   : > { %1493 = vrot.lane.b32.xlu0 %v1435_v58, %s6004_s27  ;;  %v2528_v58 = vrot.slane %v2526_v53, 4  ;;  %v2537_v53 = vrot.slane %v2535_v18, 4 }
 0x1b6   : > { %v1721_v41 = vpop.permute.xlu1 %1720  ;;  %v2533_v48 = vsel %vm6224_vm6, %v2531_v8, %v2532_v42 }
 0x1b7   : > { %1792 = vst.msk [vmem:[#allocation2 + $0x34] sm:$0xf] %vm1778_vm0, %v1721_v41  ;;  %v1719_v56 = vpop.permute.xlu0 %1718  ;;  %v5965_v30 = vld [vmem:[#allocation2 + $0x20] sm:$0xff]  }
 0x1b8   : > { %1791 = vst.msk [vmem:[#allocation2 + $0x30] sm:$0xf] %vm1778_vm0, %v1719_v56  ;;  %1744 = vrot.lane.b32.xlu1 %v1689_v32, %s6005_s28  ;;  %5881 = vmatprep.mubr.msk.bf16.mxu0 %vm2777_vm5, %v5965_v30  ;;  %v2530_v32 = vsel %vm6224_vm6, %v2528_v58, %v2529_v28 }
 0x1b9   : > { %1742 = vrot.lane.b32.xlu0 %v1686_v52, %s6005_s28 }
 0x1ba   : > { %v1725_v54 = vpop.permute.xlu1 %1724 }
 0x1bb   : > { %1794 = vst.msk [vmem:[#allocation2 + $0x3c] sm:$0xf] %vm1778_vm0, %v1725_v54  ;;  %v1723_v50 = vpop.permute.xlu0 %1722  ;;  %v5966_v2 = vld [vmem:[#allocation2 + $0x28] sm:$0xff]  }
 0x1bc   : > { %1793 = vst.msk [vmem:[#allocation2 + $0x38] sm:$0xf] %vm1778_vm0, %v1723_v50  ;;  %1748 = vrot.lane.b32.xlu1 %v1693_v33, %s6005_s28  ;;  %5882 = vmatmul.mubr.msk.bf16.gmra.mxu0 %vm2777_vm5, %v5966_v2 }
 0x1bd   : > { %1746 = vrot.lane.b32.xlu0 %v1692_v1, %s6005_s28 }
 0x1be   : > { %v1891_v11 = vpop.permute.xlu1 %1890 }
 0x1bf   : > { %1962 = vst.msk [vmem:[#allocation2 + $0x34] sm:$0xf] %vm1948_vm1, %v1891_v11  ;;  %v1889_v62 = vpop.permute.xlu0 %1888 }
 0x1c0   : > { %1961 = vst.msk [vmem:[#allocation2 + $0x30] sm:$0xf] %vm1948_vm1, %v1889_v62  ;;  %1914 = vrot.lane.b32.xlu1 %v1833_v9, %s6006_s29 }
 0x1c1   : > { %1912 = vrot.lane.b32.xlu0 %v1832_v7, %s6006_s29 }
 0x1c2   : > { %v1895_v20 = vpop.permute.xlu1 %1894 }
 0x1c3   : > { %1964 = vst.msk [vmem:[#allocation2 + $0x3c] sm:$0xf] %vm1948_vm1, %v1895_v20  ;;  %v1893_v29 = vpop.permute.xlu0 %1892 }
 0x1c4   : > { %1963 = vst.msk [vmem:[#allocation2 + $0x38] sm:$0xf] %vm1948_vm1, %v1893_v29  ;;  %1918 = vrot.lane.b32.xlu1 %v1835_v19, %s6006_s29 }
 0x1c5   : > { %1916 = vrot.lane.b32.xlu0 %v1834_v31, %s6006_s29 }
 0x1c6   : > { %v2312_v35 = vpop.permute.xlu1 %2311 }
 0x1c7   : > { %2383 = vst.msk [vmem:[#allocation2 + $0x34] sm:$0xf] %vm2369_vm3, %v2312_v35  ;;  %v2310_v39 = vpop.permute.xlu0 %2309 }
 0x1c8   : > { %2382 = vst.msk [vmem:[#allocation2 + $0x30] sm:$0xf] %vm2369_vm3, %v2310_v39  ;;  %2335 = vrot.lane.b32.xlu1 %v2269_v26, %s6007_s9 }
 0x1c9   : > { %2333 = vrot.lane.b32.xlu0 %v2259_v0, %s6007_s9 }
 0x1ca   : > { %v2316_v44 = vpop.permute.xlu1 %2315 }
 0x1cb   : > { %2385 = vst.msk [vmem:[#allocation2 + $0x3c] sm:$0xf] %vm2369_vm3, %v2316_v44  ;;  %v2314_v46 = vpop.permute.xlu0 %2313 }
 0x1cc   : > { %2384 = vst.msk [vmem:[#allocation2 + $0x38] sm:$0xf] %vm2369_vm3, %v2314_v46  ;;  %2339 = vrot.lane.b32.xlu1 %v2284_v17, %s6007_s9 }
 0x1cd   : > { %2337 = vrot.lane.b32.xlu0 %v2279_v45, %s6007_s9 }
 0x1ce   : > { %v2565_v49 = vpop.permute.xlu1 %2564 }
 0x1cf   : > { %2636 = vst.msk [vmem:[#allocation2 + $0x34] sm:$0xf] %vm2622_vm4, %v2565_v49  ;;  %v2563_v24 = vpop.permute.xlu0 %2562 }
 0x1d0   : > { %2635 = vst.msk [vmem:[#allocation2 + $0x30] sm:$0xf] %vm2622_vm4, %v2563_v24  ;;  %2588 = vrot.lane.b32.xlu1 %v2533_v48, %s6008_s12 }
 0x1d1   : > { %2586 = vrot.lane.b32.xlu0 %v2530_v32, %s6008_s12 }
 0x1d2   : > { %v2569_v13 = vpop.permute.xlu1 %2568 }
 0x1d3   : > { %2638 = vst.msk [vmem:[#allocation2 + $0x3c] sm:$0xf] %vm2622_vm4, %v2569_v13  ;;  %v2567_v41 = vpop.permute.xlu0 %2566 }
 0x1d4   : > { %2637 = vst.msk [vmem:[#allocation2 + $0x38] sm:$0xf] %vm2622_vm4, %v2567_v41  ;;  %2592 = vrot.lane.b32.xlu1 %v2537_v53, %s6008_s12  ;;  %v7388_v53 = vld [vmem:[%s8418_s2] ss:$0 sm:$0xff] }
 0x1d5   : > { %2590 = vrot.lane.b32.xlu0 %v2536_v38, %s6008_s12 }
 0x1d6   : > { %v1480_v52 = vpop.permute.xlu1 %1479 }
 0x1d7   : > { %1545 = vst.msk [vmem:[#allocation2 + $0x4c] sm:$0xf] %vm1525_vm15, %v1480_v52  ;;  %v1478_v55 = vpop.permute.xlu0 %1477  ;;  %v5967_v56 = vld [vmem:[#allocation2 + $0x30] sm:$0xff]  }
 0x1d8   : > { %1544 = vst.msk [vmem:[#allocation2 + $0x48] sm:$0xf] %vm1525_vm15, %v1478_v55  ;;  %5885 = vmatprep.mubr.msk.bf16.mxu0 %vm2777_vm5, %v5967_v56 }
 0x1da   : > { %v1729_v30 = vpop.permute.xlu1 %1728 }
 0x1db   : > { %1796 = vst.msk [vmem:[#allocation2 + $0x44] sm:$0xf] %vm1778_vm0, %v1729_v30  ;;  %v1727_v59 = vpop.permute.xlu0 %1726  ;;  %v5968_v33 = vld [vmem:[#allocation2 + $0x38] sm:$0xff]  }
 0x1dc   : > { %1795 = vst.msk [vmem:[#allocation2 + $0x40] sm:$0xf] %vm1778_vm0, %v1727_v59  ;;  %5886 = vmatmul.mubr.msk.bf16.gmra.mxu0 %vm2777_vm5, %v5968_v33 }
 0x1de   : > { %v1733_v14 = vpop.permute.xlu1 %1732 }
 0x1df   : > { %1798 = vst.msk [vmem:[#allocation2 + $0x4c] sm:$0xf] %vm1778_vm0, %v1733_v14  ;;  %v1731_v34 = vpop.permute.xlu0 %1730 }
 0x1e0   : > { %1797 = vst.msk [vmem:[#allocation2 + $0x48] sm:$0xf] %vm1778_vm0, %v1731_v34 }
 0x1e2   : > { %v1899_v60 = vpop.permute.xlu1 %1898 }
 0x1e3   : > { %1966 = vst.msk [vmem:[#allocation2 + $0x44] sm:$0xf] %vm1948_vm1, %v1899_v60  ;;  %v1897_v54 = vpop.permute.xlu0 %1896 }
 0x1e4   : > { %1965 = vst.msk [vmem:[#allocation2 + $0x40] sm:$0xf] %vm1948_vm1, %v1897_v54 }
 0x1e6   : > { %v1903_v1 = vpop.permute.xlu1 %1902 }
 0x1e7   : > { %1968 = vst.msk [vmem:[#allocation2 + $0x4c] sm:$0xf] %vm1948_vm1, %v1903_v1  ;;  %v1901_v61 = vpop.permute.xlu0 %1900 }
 0x1e8   : > { %1967 = vst.msk [vmem:[#allocation2 + $0x48] sm:$0xf] %vm1948_vm1, %v1901_v61 }
 0x1ea   : > { %v2320_v23 = vpop.permute.xlu1 %2319 }
 0x1eb   : > { %2387 = vst.msk [vmem:[#allocation2 + $0x44] sm:$0xf] %vm2369_vm3, %v2320_v23  ;;  %v2318_v63 = vpop.permute.xlu0 %2317 }
 0x1ec   : > { %2386 = vst.msk [vmem:[#allocation2 + $0x40] sm:$0xf] %vm2369_vm3, %v2318_v63 }
 0x1ee   : > { %v2324_v50 = vpop.permute.xlu1 %2323 }
 0x1ef   : > { %2389 = vst.msk [vmem:[#allocation2 + $0x4c] sm:$0xf] %vm2369_vm3, %v2324_v50  ;;  %v2322_v2 = vpop.permute.xlu0 %2321 }
 0x1f0   : > { %2388 = vst.msk [vmem:[#allocation2 + $0x48] sm:$0xf] %vm2369_vm3, %v2322_v2 }
 0x1f2   : > { %v2573_v4 = vpop.permute.xlu1 %2572 }
 0x1f3   : > { %2640 = vst.msk [vmem:[#allocation2 + $0x44] sm:$0xf] %vm2622_vm4, %v2573_v4  ;;  %v2571_v6 = vpop.permute.xlu0 %2570 }
 0x1f4   : > { %2639 = vst.msk [vmem:[#allocation2 + $0x40] sm:$0xf] %vm2622_vm4, %v2571_v6 }
 0x1f6   : > { %v2577_v9 = vpop.permute.xlu1 %2576 }
 0x1f7   : > { %2642 = vst.msk [vmem:[#allocation2 + $0x4c] sm:$0xf] %vm2622_vm4, %v2577_v9  ;;  %v2575_v3 = vpop.permute.xlu0 %2574 }
 0x1f8   : > { %2641 = vst.msk [vmem:[#allocation2 + $0x48] sm:$0xf] %vm2622_vm4, %v2575_v3 }
 0x1fa   : > { %v1484_v11 = vpop.permute.xlu1 %1483 }
 0x1fb   : > { %1547 = vst.msk [vmem:[#allocation2 + $0x54] sm:$0xf] %vm1525_vm15, %v1484_v11  ;;  %v1482_v7 = vpop.permute.xlu0 %1481  ;;  %v5969_v47 = vld [vmem:[#allocation2 + $0x40] sm:$0xff]  }
 0x1fc   : > { %1546 = vst.msk [vmem:[#allocation2 + $0x50] sm:$0xf] %vm1525_vm15, %v1482_v7  ;;  %5889 = vmatprep.mubr.msk.bf16.mxu0 %vm2777_vm5, %v5969_v47 }
 0x1fe   : > { %v1488_v15 = vpop.permute.xlu1 %1487 }
 0x1ff   : > { %1549 = vst.msk [vmem:[#allocation2 + $0x5c] sm:$0xf] %vm1525_vm15, %v1488_v15  ;;  %v1486_v16 = vpop.permute.xlu0 %1485  ;;  %v5970_v62 = vld [vmem:[#allocation2 + $0x48] sm:$0xff]  }
 0x200   : > { %1548 = vst.msk [vmem:[#allocation2 + $0x58] sm:$0xf] %vm1525_vm15, %v1486_v16  ;;  %5890 = vmatmul.mubr.msk.bf16.gmra.mxu0 %vm2777_vm5, %v5970_v62 }
 0x202   : > { %v1737_v22 = vpop.permute.xlu1 %1736 }
 0x203   : > { %1800 = vst.msk [vmem:[#allocation2 + $0x54] sm:$0xf] %vm1778_vm0, %v1737_v22  ;;  %v1735_v10 = vpop.permute.xlu0 %1734 }
 0x204   : > { %1799 = vst.msk [vmem:[#allocation2 + $0x50] sm:$0xf] %vm1778_vm0, %v1735_v10 }
 0x206   : > { %v1741_v19 = vpop.permute.xlu1 %1740 }
 0x207   : > { %1802 = vst.msk [vmem:[#allocation2 + $0x5c] sm:$0xf] %vm1778_vm0, %v1741_v19  ;;  %v1739_v37 = vpop.permute.xlu0 %1738 }
 0x208   : > { %1801 = vst.msk [vmem:[#allocation2 + $0x58] sm:$0xf] %vm1778_vm0, %v1739_v37 }
 0x20a   : > { %v1907_v20 = vpop.permute.xlu1 %1906 }
 0x20b   : > { %1970 = vst.msk [vmem:[#allocation2 + $0x54] sm:$0xf] %vm1948_vm1, %v1907_v20  ;;  %v1905_v31 = vpop.permute.xlu0 %1904 }
 0x20c   : > { %1969 = vst.msk [vmem:[#allocation2 + $0x50] sm:$0xf] %vm1948_vm1, %v1905_v31 }
 0x20e   : > { %v1911_v21 = vpop.permute.xlu1 %1910 }
 0x20f   : > { %1972 = vst.msk [vmem:[#allocation2 + $0x5c] sm:$0xf] %vm1948_vm1, %v1911_v21  ;;  %v1909_v12 = vpop.permute.xlu0 %1908 }
 0x210   : > { %1971 = vst.msk [vmem:[#allocation2 + $0x58] sm:$0xf] %vm1948_vm1, %v1909_v12 }
 0x212   : > { %v2328_v40 = vpop.permute.xlu1 %2327 }
 0x213   : > { %2391 = vst.msk [vmem:[#allocation2 + $0x54] sm:$0xf] %vm2369_vm3, %v2328_v40  ;;  %v2326_v29 = vpop.permute.xlu0 %2325 }
 0x214   : > { %2390 = vst.msk [vmem:[#allocation2 + $0x50] sm:$0xf] %vm2369_vm3, %v2326_v29 }
 0x216   : > { %v2332_v25 = vpop.permute.xlu1 %2331 }
 0x217   : > { %2393 = vst.msk [vmem:[#allocation2 + $0x5c] sm:$0xf] %vm2369_vm3, %v2332_v25  ;;  %v2330_v26 = vpop.permute.xlu0 %2329 }
 0x218   : > { %2392 = vst.msk [vmem:[#allocation2 + $0x58] sm:$0xf] %vm2369_vm3, %v2330_v26 }
 0x21a   : > { %v2581_v28 = vpop.permute.xlu1 %2580 }
 0x21b   : > { %2644 = vst.msk [vmem:[#allocation2 + $0x54] sm:$0xf] %vm2622_vm4, %v2581_v28  ;;  %v2579_v35 = vpop.permute.xlu0 %2578 }
 0x21c   : > { %2643 = vst.msk [vmem:[#allocation2 + $0x50] sm:$0xf] %vm2622_vm4, %v2579_v35 }
 0x21e   : > { %v2585_v0 = vpop.permute.xlu1 %2584 }
 0x21f   : > { %2646 = vst.msk [vmem:[#allocation2 + $0x5c] sm:$0xf] %vm2622_vm4, %v2585_v0  ;;  %v2583_v5 = vpop.permute.xlu0 %2582 }
 0x220   : > { %2645 = vst.msk [vmem:[#allocation2 + $0x58] sm:$0xf] %vm2622_vm4, %v2583_v5 }
 0x222   : > { %v1492_v36 = vpop.permute.xlu1 %1491 }
 0x223   : > { %1551 = vst.msk [vmem:[#allocation2 + $0x64] sm:$0xf] %vm1525_vm15, %v1492_v36  ;;  %v1490_v39 = vpop.permute.xlu0 %1489  ;;  %v5971_v17 = vld [vmem:[#allocation2 + $0x50] sm:$0xff]  }
 0x224   : > { %1550 = vst.msk [vmem:[#allocation2 + $0x60] sm:$0xf] %vm1525_vm15, %v1490_v39  ;;  %5893 = vmatprep.mubr.msk.bf16.mxu0 %vm2777_vm5, %v5971_v17 }
 0x226   : > { %v1496_v8 = vpop.permute.xlu1 %1495 }
 0x227   : > { %1554 = vst.msk [vmem:[#allocation2 + $0x6c] sm:$0x7] %vm1553_vm7, %v1496_v8  ;;  %v1494_v42 = vpop.permute.xlu0 %1493  ;;  %v5972_v43 = vld [vmem:[#allocation2 + $0x58] sm:$0xff]   ;;  %vm4465_vm7 = vcmask 388416  }
 0x228   : > { %1552 = vst.msk [vmem:[#allocation2 + $0x68] sm:$0xf] %vm1525_vm15, %v1494_v42  ;;  %5894 = vmatmul.mubr.msk.bf16.gmra.mxu0 %vm2777_vm5, %v5972_v43  ;;  %vm5379_vm15 = vcmask 1043456  }
 0x22a   : > { %v1745_v44 = vpop.permute.xlu1 %1744 }
 0x22b   : > { %1804 = vst.msk [vmem:[#allocation2 + $0x64] sm:$0xf] %vm1778_vm0, %v1745_v44  ;;  %v1743_v45 = vpop.permute.xlu0 %1742 }
 0x22c   : > { %1803 = vst.msk [vmem:[#allocation2 + $0x60] sm:$0xf] %vm1778_vm0, %v1743_v45 }
 0x22e   : > { %v1749_v58 = vpop.permute.xlu1 %1748 }
 0x22f   : > { %1807 = vst.msk [vmem:[#allocation2 + $0x6c] sm:$0x7] %vm1806_vm8, %v1749_v58  ;;  %v1747_v46 = vpop.permute.xlu0 %1746  ;;  %vm4611_vm8 = vcmask 454016  }
 0x230   : > { %1805 = vst.msk [vmem:[#allocation2 + $0x68] sm:$0xf] %vm1778_vm0, %v1747_v46  ;;  %vm3548_vm0 = vcmask 124992  }
 0x232   : > { %v1915_v18 = vpop.permute.xlu1 %1914 }
 0x233   : > { %1974 = vst.msk [vmem:[#allocation2 + $0x64] sm:$0xf] %vm1948_vm1, %v1915_v18  ;;  %v1913_v48 = vpop.permute.xlu0 %1912 }
 0x234   : > { %1973 = vst.msk [vmem:[#allocation2 + $0x60] sm:$0xf] %vm1948_vm1, %v1913_v48 }
 0x236   : > { %v1919_v49 = vpop.permute.xlu1 %1918 }
 0x237   : > { %1977 = vst.msk [vmem:[#allocation2 + $0x6c] sm:$0x7] %vm1976_vm9, %v1919_v49  ;;  %v1917_v32 = vpop.permute.xlu0 %1916  ;;  %vm4972_vm9 = vcmask 519616  }
 0x238   : > { %1975 = vst.msk [vmem:[#allocation2 + $0x68] sm:$0xf] %vm1948_vm1, %v1917_v32  ;;  %vm3741_vm1 = vcmask 191616  }
 0x23a   : > { %v2336_v51 = vpop.permute.xlu1 %2335 }
 0x23b   : > { %2395 = vst.msk [vmem:[#allocation2 + $0x64] sm:$0xf] %vm2369_vm3, %v2336_v51  ;;  %v2334_v24 = vpop.permute.xlu0 %2333 }
 0x23c   : > { %2394 = vst.msk [vmem:[#allocation2 + $0x60] sm:$0xf] %vm2369_vm3, %v2334_v24  ;;  %v5875_v13 = vpop.f32.mrf.mxu0 }
 0x23d   : > { %v2867_v38 = vadd.f32 %v5875_v13, %v7388_v53 }
 0x23e   : > { %v2340_v41 = vpop.permute.xlu1 %2339  ;;  %v2858_v55 = vpop.f32.mrf.mxu0 }
 0x23f   : > { %2398 = vst.msk [vmem:[#allocation2 + $0x6c] sm:$0x7] %vm2397_vm10, %v2340_v41  ;;  %v2338_v52 = vpop.permute.xlu0 %2337  ;;  %v2971_v56 = vmax.f32 %v2867_v38, 0.0  ;;  %v2859_v30 = vadd.f32 %v7388_v53, %v2858_v55  ;;  %vm5189_vm10 = vcmask 585216  }
 0x240   : > { %2396 = vst.msk [vmem:[#allocation2 + $0x68] sm:$0xf] %vm2369_vm3, %v2338_v52  ;;  %v5876_v59 = vpop.f32.mrf.mxu0  ;;  %vm2997_vm3 = vcmask 1045504  }
 0x241   : > { %v5807_v33 = vpack.c.bf16 %v2971_v56, %v2971_v56  ;;  %v2969_v14 = vmax.f32 %v2859_v30, 0.0  ;;  %v2870_v34 = vadd.f32 %v5876_v59, %v7388_v53 }
 0x242   : > { %v2589_v60 = vpop.permute.xlu1 %2588  ;;  %v2861_v1 = vpop.f32.mrf.mxu0 }
 0x243   : > { %2648 = vst.msk [vmem:[#allocation2 + $0x64] sm:$0xf] %vm2622_vm4, %v2589_v60  ;;  %v2587_v54 = vpop.permute.xlu0 %2586  ;;  %v5805_v61 = vpack.c.bf16 %v2969_v14, %v2969_v14  ;;  %v2972_v23 = vmax.f32 %v2870_v34, 0.0  ;;  %v2862_v63 = vadd.f32 %v7388_v53, %v2861_v1 }
 0x244   : > { %3114 = vst.msk [vmem:[#allocation3 + $0x8] sm:$0xf] %vm3111_vm11, %v5807_v33 }
 0x245   : > { %2647 = vst.msk [vmem:[#allocation2 + $0x60] sm:$0xf] %vm2622_vm4, %v2587_v54  ;;  %v5808_v50 = vpack.c.bf16 %v2972_v23, %v2972_v23  ;;  %v2970_v2 = vmax.f32 %v2862_v63, 0.0 }
 0x246   : > { %3112 = vst.msk [vmem:[#allocation3] sm:$0xf] %vm3111_vm11, %v5805_v61  ;;  %v2593_v4 = vpop.permute.xlu1 %2592 }
 0x247   : > { %2651 = vst.msk [vmem:[#allocation2 + $0x6c] sm:$0x7] %vm2650_vm12, %v2593_v4  ;;  %v2591_v6 = vpop.permute.xlu0 %2590  ;;  %v5806_v9 = vpack.c.bf16 %v2970_v2, %v2970_v2  ;;  %vm3765_vm12 = vcmask 190592  }
 0x248   : > { %3115 = vst.msk [vmem:[#allocation3 + $0xc] sm:$0xf] %vm3111_vm11, %v5808_v50 }
 0x249   : > { %2649 = vst.msk [vmem:[#allocation2 + $0x68] sm:$0xf] %vm2622_vm4, %v2591_v6  ;;  %vm3887_vm4 = vcmask 257216  }
 0x24a   : > { %3113 = vst.msk [vmem:[#allocation3 + $0x4] sm:$0xf] %vm3111_vm11, %v5806_v9 }
 0x24b   : > { %v3191_v11 = vld [vmem:[#allocation3 + $0x8] sm:$0xf] }
 0x24c   : > { %v5973_v3 = vld [vmem:[#allocation2 + $0x60] sm:$0xff]   ;;  %v3233_v7 = vshll.u32 %v3191_v11, 16  ;;  %v3237_v47 = vshrl.u32 %v3191_v11, 16  ;;  %v3142_v15 = vld [vmem:[#allocation3 + $0x8] sm:$0xf] }
 0x24d   : > { %5897 = vmatprep.mubr.msk.bf16.mxu0 %vm2777_vm5, %v5973_v3  ;;  %v3189_v16 = vld [vmem:[#allocation3] sm:$0xf]  ;;  %3166 = vst.msk [vmem:[#allocation4 + $0x8] sm:$0xf] %vm3111_vm11, %v3142_v15 }
 0x24e   : > { %v3140_v62 = vld [vmem:[#allocation3] sm:$0xf]  ;;  %v3214_v22 = vshrl.u32 %v3189_v16, 16  ;;  %v3217_v10 = vshll.u32 %v3189_v16, 16  ;;  %v3235_v19 = vrot.slane %v3233_v7, 5  ;;  %v3239_v37 = vrot.slane %v3237_v47, 4 }
 0x24f   : > { %3164 = vst.msk [vmem:[#allocation4] sm:$0xf] %vm3111_vm11, %v3140_v62  ;;  %v3192_v31 = vld [vmem:[#allocation3 + $0xc] sm:$0xf] }
 0x250   : > { %v5974_v20 = vld [vmem:[#allocation2 + $0x68] sm:$0x7f]   ;;  %v3216_v21 = vrot.slane %v3214_v22, 4  ;;  %v3219_v12 = vrot.slane %v3217_v10, 5  ;;  %v3143_v40 = vld [vmem:[#allocation3 + $0xc] sm:$0xf]  ;;  %v3240_v25 = vor.u32 %v3239_v37, %v3235_v19 }
 0x251   : > { %5898 = vmatmul.mubr.msk.bf16.gmra.mxu0 %vm2777_vm5, %v5974_v20  ;;  %v3190_v29 = vld [vmem:[#allocation3 + $0x4] sm:$0xf]  ;;  %3167 = vst.msk [vmem:[#allocation4 + $0xc] sm:$0xf] %vm3111_vm11, %v3143_v40  ;;  %v3243_v5 = vshll.u32 %v3192_v31, 16  ;;  %v3247_v55 = vshrl.u32 %v3192_v31, 16 }
 0x252   : > { %v3141_v26 = vld [vmem:[#allocation3 + $0x4] sm:$0xf]  ;;  %v3220_v28 = vor.u32 %v3219_v12, %v3216_v21  ;;  %v3223_v35 = vshll.u32 %v3190_v29, 16  ;;  %v3227_v0 = vshrl.u32 %v3190_v29, 16  ;;  %v3241_v43 = vrot.slane %v3240_v25, 4 }
 0x253   : > { %3165 = vst.msk [vmem:[#allocation4 + $0x4] sm:$0xf] %vm3111_vm11, %v3141_v26  ;;  %v3245_v44 = vrot.slane %v3243_v5, 5  ;;  %v3249_v60 = vrot.slane %v3247_v55, 4  ;;  %vm4248_vm5 = vcmask 322816  }
 0x254   : > { %v3221_v36 = vrot.slane %v3220_v28, 4  ;;  %v3225_v39 = vrot.slane %v3223_v35, 5  ;;  %v3229_v17 = vrot.slane %v3227_v0, 4 }
 0x255   : > { %v3246_v46 = vsel %vm6068_vm2, %v3241_v43, %v3245_v44  ;;  %v3250_v61 = vor.u32 %v3249_v60, %v3245_v44 }
 0x256   : > { %v3226_v8 = vsel %vm6068_vm2, %v3221_v36, %v3225_v39  ;;  %v3230_v42 = vor.u32 %v3229_v17, %v3225_v39 }
 0x257   : > { %3452 = vrot.lane.b32.xlu0 %v3226_v8, %s6002_s25  ;;  %v3251_v47 = vrot.slane %v3250_v61, 4 }
 0x258   : > { %v3231_v45 = vrot.slane %v3230_v42, 4 }
 0x25a   : > { %v3236_v58 = vsel %vm6068_vm2, %v3231_v45, %v3235_v19 }
 0x25b   : > { %3454 = vrot.lane.b32.xlu1 %v3236_v58, %s6002_s25  ;;  %3456 = vrot.lane.b32.xlu0 %v3246_v46, %s6002_s25 }
 0x25c   : > { %v5879_v18 = vpop.f32.mrf.mxu0 }
 0x25d   : > { %v2883_v48 = vadd.f32 %v5879_v18, %v7388_v53 }
 0x25e   : > { %v2874_v49 = vpop.f32.mrf.mxu0 }
 0x25f   : > { %v2975_v32 = vmax.f32 %v2883_v48, 0.0  ;;  %v2875_v51 = vadd.f32 %v7388_v53, %v2874_v49 }
 0x260   : > { %v5880_v24 = vpop.f32.mrf.mxu0 }
 0x261   : > { %v5811_v13 = vpack.c.bf16 %v2975_v32, %v2975_v32  ;;  %v2973_v38 = vmax.f32 %v2875_v51, 0.0  ;;  %v2886_v41 = vadd.f32 %v5880_v24, %v7388_v53 }
 0x262   : > { %v2877_v52 = vpop.f32.mrf.mxu0 }
 0x263   : > { %3118 = vst.msk [vmem:[#allocation3 + $0x18] sm:$0xf] %vm3111_vm11, %v5811_v13  ;;  %v5809_v56 = vpack.c.bf16 %v2973_v38, %v2973_v38  ;;  %v2976_v30 = vmax.f32 %v2886_v41, 0.0  ;;  %v2878_v59 = vadd.f32 %v7388_v53, %v2877_v52 }
 0x265   : > { %3116 = vst.msk [vmem:[#allocation3 + $0x10] sm:$0xf] %vm3111_vm11, %v5809_v56  ;;  %v5812_v33 = vpack.c.bf16 %v2976_v30, %v2976_v30  ;;  %v2974_v14 = vmax.f32 %v2878_v59, 0.0 }
 0x267   : > { %3119 = vst.msk [vmem:[#allocation3 + $0x1c] sm:$0xf] %vm3111_vm11, %v5812_v33  ;;  %v5810_v34 = vpack.c.bf16 %v2974_v14, %v2974_v14 }
 0x269   : > { %3117 = vst.msk [vmem:[#allocation3 + $0x14] sm:$0xf] %vm3111_vm11, %v5810_v34 }
 0x26a   : > { %v3195_v54 = vld [vmem:[#allocation3 + $0x18] sm:$0xf] }
 0x26b   : > { %v3146_v1 = vld [vmem:[#allocation3 + $0x18] sm:$0xf]  ;;  %v3273_v23 = vshll.u32 %v3195_v54, 16  ;;  %v3277_v63 = vshrl.u32 %v3195_v54, 16 }
 0x26c   : > { %3170 = vst.msk [vmem:[#allocation4 + $0x18] sm:$0xf] %vm3111_vm11, %v3146_v1  ;;  %v3193_v50 = vld [vmem:[#allocation3 + $0x10] sm:$0xf] }
 0x26d   : > { %v3144_v2 = vld [vmem:[#allocation3 + $0x10] sm:$0xf]  ;;  %v3253_v4 = vshll.u32 %v3193_v50, 16  ;;  %v3257_v6 = vshrl.u32 %v3193_v50, 16  ;;  %v3275_v9 = vrot.slane %v3273_v23, 5  ;;  %v3279_v3 = vrot.slane %v3277_v63, 4 }
 0x26e   : > { %3168 = vst.msk [vmem:[#allocation4 + $0x10] sm:$0xf] %vm3111_vm11, %v3144_v2  ;;  %v3196_v11 = vld [vmem:[#allocation3 + $0x1c] sm:$0xf] }
 0x26f   : > { %v3147_v7 = vld [vmem:[#allocation3 + $0x1c] sm:$0xf]  ;;  %v3255_v15 = vrot.slane %v3253_v4, 5  ;;  %v3259_v16 = vrot.slane %v3257_v6, 4  ;;  %v3280_v22 = vor.u32 %v3279_v3, %v3275_v9  ;;  %v3283_v10 = vshll.u32 %v3196_v11, 16 }
 0x270   : > { %3171 = vst.msk [vmem:[#allocation4 + $0x1c] sm:$0xf] %vm3111_vm11, %v3147_v7  ;;  %v3194_v62 = vld [vmem:[#allocation3 + $0x14] sm:$0xf]  ;;  %v3287_v48 = vshrl.u32 %v3196_v11, 16 }
 0x271   : > { %v3145_v19 = vld [vmem:[#allocation3 + $0x14] sm:$0xf]  ;;  %v3256_v37 = vsel %vm6068_vm2, %v3251_v47, %v3255_v15  ;;  %v3260_v20 = vor.u32 %v3259_v16, %v3255_v15  ;;  %v3263_v31 = vshll.u32 %v3194_v62, 16  ;;  %v3267_v21 = vshrl.u32 %v3194_v62, 16 }
 0x272   : > { %3169 = vst.msk [vmem:[#allocation4 + $0x14] sm:$0xf] %vm3111_vm11, %v3145_v19  ;;  %3458 = vrot.lane.b32.xlu1 %v3256_v37, %s6002_s25  ;;  %v3281_v28 = vrot.slane %v3280_v22, 4  ;;  %v3285_v35 = vrot.slane %v3283_v10, 5  ;;  %v3289_v41 = vrot.slane %v3287_v48, 4 }
 0x273   : > { %v3261_v12 = vrot.slane %v3260_v20, 4  ;;  %v3265_v40 = vrot.slane %v3263_v31, 5  ;;  %v3269_v29 = vrot.slane %v3267_v21, 4 }
 0x274   : > { %v3286_v36 = vsel %vm6068_vm2, %v3281_v28, %v3285_v35  ;;  %v3290_v56 = vor.u32 %v3289_v41, %v3285_v35 }
 0x275   : > { %v3266_v25 = vsel %vm6068_vm2, %v3261_v12, %v3265_v40  ;;  %v3270_v26 = vor.u32 %v3269_v29, %v3265_v40 }
 0x276   : > { %3460 = vrot.lane.b32.xlu0 %v3266_v25, %s6002_s25  ;;  %v3291_v63 = vrot.slane %v3290_v56, 4 }
 0x277   : > { %v3271_v0 = vrot.slane %v3270_v26, 4 }
 0x279   : > { %v3276_v5 = vsel %vm6068_vm2, %v3271_v0, %v3275_v9 }
 0x27a   : > { %3462 = vrot.lane.b32.xlu1 %v3276_v5, %s6002_s25  ;;  %3464 = vrot.lane.b32.xlu0 %v3286_v36, %s6002_s25 }
 0x27c   : > { %v5883_v39 = vpop.f32.mrf.mxu0 }
 0x27d   : > { %v2899_v17 = vadd.f32 %v5883_v39, %v7388_v53 }
 0x27e   : > { %v2890_v8 = vpop.f32.mrf.mxu0 }
 0x27f   : > { %v2979_v42 = vmax.f32 %v2899_v17, 0.0  ;;  %v2891_v43 = vadd.f32 %v7388_v53, %v2890_v8 }
 0x280   : > { %v5884_v44 = vpop.f32.mrf.mxu0 }
 0x281   : > { %v5815_v45 = vpack.c.bf16 %v2979_v42, %v2979_v42  ;;  %v2977_v58 = vmax.f32 %v2891_v43, 0.0  ;;  %v2902_v46 = vadd.f32 %v5884_v44, %v7388_v53 }
 0x282   : > { %v2893_v18 = vpop.f32.mrf.mxu0 }
 0x283   : > { %3122 = vst.msk [vmem:[#allocation3 + $0x28] sm:$0xf] %vm3111_vm11, %v5815_v45  ;;  %v5813_v49 = vpack.c.bf16 %v2977_v58, %v2977_v58  ;;  %v2980_v32 = vmax.f32 %v2902_v46, 0.0  ;;  %v2894_v51 = vadd.f32 %v7388_v53, %v2893_v18 }
 0x285   : > { %3120 = vst.msk [vmem:[#allocation3 + $0x20] sm:$0xf] %vm3111_vm11, %v5813_v49  ;;  %v5816_v24 = vpack.c.bf16 %v2980_v32, %v2980_v32  ;;  %v2978_v13 = vmax.f32 %v2894_v51, 0.0 }
 0x287   : > { %3123 = vst.msk [vmem:[#allocation3 + $0x2c] sm:$0xf] %vm3111_vm11, %v5816_v24  ;;  %v5814_v38 = vpack.c.bf16 %v2978_v13, %v2978_v13 }
 0x289   : > { %3121 = vst.msk [vmem:[#allocation3 + $0x24] sm:$0xf] %vm3111_vm11, %v5814_v38 }
 0x28a   : > { %v3199_v52 = vld [vmem:[#allocation3 + $0x28] sm:$0xf] }
 0x28b   : > { %v3150_v55 = vld [vmem:[#allocation3 + $0x28] sm:$0xf]  ;;  %v3313_v30 = vshll.u32 %v3199_v52, 16  ;;  %v3317_v59 = vshrl.u32 %v3199_v52, 16 }
 0x28c   : > { %3174 = vst.msk [vmem:[#allocation4 + $0x28] sm:$0xf] %vm3111_vm11, %v3150_v55  ;;  %v3197_v33 = vld [vmem:[#allocation3 + $0x20] sm:$0xf] }
 0x28d   : > { %v3148_v14 = vld [vmem:[#allocation3 + $0x20] sm:$0xf]  ;;  %v3293_v34 = vshll.u32 %v3197_v33, 16  ;;  %v3297_v60 = vshrl.u32 %v3197_v33, 16  ;;  %v3315_v54 = vrot.slane %v3313_v30, 5  ;;  %v3319_v1 = vrot.slane %v3317_v59, 4 }
 0x28e   : > { %3172 = vst.msk [vmem:[#allocation4 + $0x20] sm:$0xf] %vm3111_vm11, %v3148_v14  ;;  %v3200_v61 = vld [vmem:[#allocation3 + $0x2c] sm:$0xf] }
 0x28f   : > { %v3151_v23 = vld [vmem:[#allocation3 + $0x2c] sm:$0xf]  ;;  %v3295_v50 = vrot.slane %v3293_v34, 5  ;;  %v3299_v2 = vrot.slane %v3297_v60, 4  ;;  %v3320_v6 = vor.u32 %v3319_v1, %v3315_v54  ;;  %v3323_v9 = vshll.u32 %v3200_v61, 16 }
 0x290   : > { %3175 = vst.msk [vmem:[#allocation4 + $0x2c] sm:$0xf] %vm3111_vm11, %v3151_v23  ;;  %v3198_v4 = vld [vmem:[#allocation3 + $0x24] sm:$0xf]  ;;  %v3327_v17 = vshrl.u32 %v3200_v61, 16 }
 0x291   : > { %v3149_v3 = vld [vmem:[#allocation3 + $0x24] sm:$0xf]  ;;  %v3296_v11 = vsel %vm6068_vm2, %v3291_v63, %v3295_v50  ;;  %v3300_v7 = vor.u32 %v3299_v2, %v3295_v50  ;;  %v3303_v47 = vshll.u32 %v3198_v4, 16  ;;  %v3307_v15 = vshrl.u32 %v3198_v4, 16 }
 0x292   : > { %3173 = vst.msk [vmem:[#allocation4 + $0x24] sm:$0xf] %vm3111_vm11, %v3149_v3  ;;  %3466 = vrot.lane.b32.xlu1 %v3296_v11, %s6002_s25  ;;  %v3321_v37 = vrot.slane %v3320_v6, 4  ;;  %v3325_v20 = vrot.slane %v3323_v9, 5  ;;  %v3329_v46 = vrot.slane %v3327_v17, 4 }
 0x293   : > { %v3301_v16 = vrot.slane %v3300_v7, 4  ;;  %v3305_v62 = vrot.slane %v3303_v47, 5  ;;  %v3309_v22 = vrot.slane %v3307_v15, 4 }
 0x294   : > { %v3326_v12 = vsel %vm6068_vm2, %v3321_v37, %v3325_v20  ;;  %v3330_v49 = vor.u32 %v3329_v46, %v3325_v20 }
 0x295   : > { %v3306_v10 = vsel %vm6068_vm2, %v3301_v16, %v3305_v62  ;;  %v3310_v19 = vor.u32 %v3309_v22, %v3305_v62 }
 0x296   : > { %3468 = vrot.lane.b32.xlu0 %v3306_v10, %s6002_s25  ;;  %v3331_v59 = vrot.slane %v3330_v49, 4 }
 0x297   : > { %v3311_v31 = vrot.slane %v3310_v19, 4 }
 0x299   : > { %v3316_v21 = vsel %vm6068_vm2, %v3311_v31, %v3315_v54 }
 0x29a   : > { %3470 = vrot.lane.b32.xlu1 %v3316_v21, %s6002_s25  ;;  %3472 = vrot.lane.b32.xlu0 %v3326_v12, %s6002_s25 }
 0x29c   : > { %v5887_v40 = vpop.f32.mrf.mxu0 }
 0x29d   : > { %v2915_v29 = vadd.f32 %v5887_v40, %v7388_v53 }
 0x29e   : > { %v2906_v25 = vpop.f32.mrf.mxu0 }
 0x29f   : > { %v2983_v26 = vmax.f32 %v2915_v29, 0.0  ;;  %v2907_v28 = vadd.f32 %v7388_v53, %v2906_v25 }
 0x2a0   : > { %v5888_v35 = vpop.f32.mrf.mxu0 }
 0x2a1   : > { %v5819_v0 = vpack.c.bf16 %v2983_v26, %v2983_v26  ;;  %v2981_v5 = vmax.f32 %v2907_v28, 0.0  ;;  %v2918_v36 = vadd.f32 %v5888_v35, %v7388_v53 }
 0x2a2   : > { %v2909_v39 = vpop.f32.mrf.mxu0 }
 0x2a3   : > { %3126 = vst.msk [vmem:[#allocation3 + $0x38] sm:$0xf] %vm3111_vm11, %v5819_v0  ;;  %v5817_v8 = vpack.c.bf16 %v2981_v5, %v2981_v5  ;;  %v2984_v42 = vmax.f32 %v2918_v36, 0.0  ;;  %v2910_v43 = vadd.f32 %v7388_v53, %v2909_v39 }
 0x2a5   : > { %3124 = vst.msk [vmem:[#allocation3 + $0x30] sm:$0xf] %vm3111_vm11, %v5817_v8  ;;  %v5820_v44 = vpack.c.bf16 %v2984_v42, %v2984_v42  ;;  %v2982_v45 = vmax.f32 %v2910_v43, 0.0 }
 0x2a7   : > { %3127 = vst.msk [vmem:[#allocation3 + $0x3c] sm:$0xf] %vm3111_vm11, %v5820_v44  ;;  %v5818_v58 = vpack.c.bf16 %v2982_v45, %v2982_v45 }
 0x2a9   : > { %3125 = vst.msk [vmem:[#allocation3 + $0x34] sm:$0xf] %vm3111_vm11, %v5818_v58 }
 0x2aa   : > { %v3203_v18 = vld [vmem:[#allocation3 + $0x38] sm:$0xf] }
 0x2ab   : > { %v3154_v48 = vld [vmem:[#allocation3 + $0x38] sm:$0xf]  ;;  %v3353_v32 = vshll.u32 %v3203_v18, 16  ;;  %v3357_v51 = vshrl.u32 %v3203_v18, 16 }
 0x2ac   : > { %3178 = vst.msk [vmem:[#allocation4 + $0x38] sm:$0xf] %vm3111_vm11, %v3154_v48  ;;  %v3201_v24 = vld [vmem:[#allocation3 + $0x30] sm:$0xf] }
 0x2ad   : > { %v3152_v13 = vld [vmem:[#allocation3 + $0x30] sm:$0xf]  ;;  %v3333_v38 = vshll.u32 %v3201_v24, 16  ;;  %v3337_v41 = vshrl.u32 %v3201_v24, 16  ;;  %v3355_v52 = vrot.slane %v3353_v32, 5  ;;  %v3359_v55 = vrot.slane %v3357_v51, 4 }
 0x2ae   : > { %3176 = vst.msk [vmem:[#allocation4 + $0x30] sm:$0xf] %vm3111_vm11, %v3152_v13  ;;  %v3204_v56 = vld [vmem:[#allocation3 + $0x3c] sm:$0xf] }
 0x2af   : > { %v3155_v30 = vld [vmem:[#allocation3 + $0x3c] sm:$0xf]  ;;  %v3335_v33 = vrot.slane %v3333_v38, 5  ;;  %v3339_v14 = vrot.slane %v3337_v41, 4  ;;  %v3360_v60 = vor.u32 %v3359_v55, %v3355_v52  ;;  %v3363_v54 = vshll.u32 %v3204_v56, 16 }
 0x2b0   : > { %3179 = vst.msk [vmem:[#allocation4 + $0x3c] sm:$0xf] %vm3111_vm11, %v3155_v30  ;;  %v3202_v34 = vld [vmem:[#allocation3 + $0x34] sm:$0xf]  ;;  %v3367_v29 = vshrl.u32 %v3204_v56, 16 }
 0x2b1   : > { %v3153_v1 = vld [vmem:[#allocation3 + $0x34] sm:$0xf]  ;;  %v3336_v61 = vsel %vm6068_vm2, %v3331_v59, %v3335_v33  ;;  %v3340_v23 = vor.u32 %v3339_v14, %v3335_v33  ;;  %v3343_v63 = vshll.u32 %v3202_v34, 16  ;;  %v3347_v50 = vshrl.u32 %v3202_v34, 16 }
 0x2b2   : > { %3177 = vst.msk [vmem:[#allocation4 + $0x34] sm:$0xf] %vm3111_vm11, %v3153_v1  ;;  %3474 = vrot.lane.b32.xlu1 %v3336_v61, %s6002_s25  ;;  %v3361_v11 = vrot.slane %v3360_v60, 4  ;;  %v3365_v7 = vrot.slane %v3363_v54, 5  ;;  %v3369_v39 = vrot.slane %v3367_v29, 4 }
 0x2b3   : > { %v3341_v2 = vrot.slane %v3340_v23, 4  ;;  %v3345_v4 = vrot.slane %v3343_v63, 5  ;;  %v3349_v6 = vrot.slane %v3347_v50, 4 }
 0x2b4   : > { %v3366_v16 = vsel %vm6068_vm2, %v3361_v11, %v3365_v7  ;;  %v3370_v44 = vor.u32 %v3369_v39, %v3365_v7 }
 0x2b5   : > { %v3346_v9 = vsel %vm6068_vm2, %v3341_v2, %v3345_v4  ;;  %v3350_v3 = vor.u32 %v3349_v6, %v3345_v4 }
 0x2b6   : > { %3476 = vrot.lane.b32.xlu0 %v3346_v9, %s6002_s25  ;;  %v3371_v38 = vrot.slane %v3370_v44, 4 }
 0x2b7   : > { %v3351_v47 = vrot.slane %v3350_v3, 4 }
 0x2b9   : > { %v3356_v15 = vsel %vm6068_vm2, %v3351_v47, %v3355_v52 }
 0x2ba   : > { %3478 = vrot.lane.b32.xlu1 %v3356_v15, %s6002_s25  ;;  %3480 = vrot.lane.b32.xlu0 %v3366_v16, %s6002_s25 }
 0x2c0   : > { %v5891_v62 = vpop.f32.mrf.mxu0 }
 0x2c1   : > { %v2931_v22 = vadd.f32 %v5891_v62, %v7388_v53 }
 0x2c2   : > { %v2922_v10 = vpop.f32.mrf.mxu0 }
 0x2c3   : > { %v2987_v19 = vmax.f32 %v2931_v22, 0.0  ;;  %v2923_v37 = vadd.f32 %v7388_v53, %v2922_v10 }
 0x2c4   : > { %v5892_v20 = vpop.f32.mrf.mxu0 }
 0x2c5   : > { %v5823_v31 = vpack.c.bf16 %v2987_v19, %v2987_v19  ;;  %v2985_v21 = vmax.f32 %v2923_v37, 0.0  ;;  %v2934_v12 = vadd.f32 %v5892_v20, %v7388_v53 }
 0x2c6   : > { %v2925_v40 = vpop.f32.mrf.mxu0 }
 0x2c7   : > { %3130 = vst.msk [vmem:[#allocation3 + $0x48] sm:$0xf] %vm3111_vm11, %v5823_v31  ;;  %v5821_v25 = vpack.c.bf16 %v2985_v21, %v2985_v21  ;;  %v2988_v26 = vmax.f32 %v2934_v12, 0.0  ;;  %v2926_v28 = vadd.f32 %v7388_v53, %v2925_v40 }
 0x2c9   : > { %v3453_v35 = vpop.permute.xlu0 %3452  ;;  %3128 = vst.msk [vmem:[#allocation3 + $0x40] sm:$0xf] %vm3111_vm11, %v5821_v25  ;;  %v5824_v0 = vpack.c.bf16 %v2988_v26, %v2988_v26  ;;  %v2986_v5 = vmax.f32 %v2926_v28, 0.0 }
 0x2ca   : > { %3525 = vst.msk [vmem:[#allocation4] sm:$0xf] %vm3524_vm13, %v3453_v35 }
 0x2cb   : > { %3131 = vst.msk [vmem:[#allocation3 + $0x4c] sm:$0xf] %vm3111_vm11, %v5824_v0  ;;  %v5822_v36 = vpack.c.bf16 %v2986_v5, %v2986_v5 }
 0x2cd   : > { %v3455_v17 = vpop.permute.xlu1 %3454  ;;  %v3457_v8 = vpop.permute.xlu0 %3456  ;;  %3129 = vst.msk [vmem:[#allocation3 + $0x44] sm:$0xf] %vm3111_vm11, %v5822_v36 }
 0x2ce   : > { %3526 = vst.msk [vmem:[#allocation4 + $0x4] sm:$0xf] %vm3524_vm13, %v3455_v17  ;;  %3527 = vst.msk [vmem:[#allocation4 + $0x8] sm:$0xf] %vm3524_vm13, %v3457_v8  ;;  %v3207_v42 = vld [vmem:[#allocation3 + $0x48] sm:$0xf] }
 0x2cf   : > { %v3158_v43 = vld [vmem:[#allocation3 + $0x48] sm:$0xf]  ;;  %v3393_v45 = vshll.u32 %v3207_v42, 16  ;;  %v3397_v58 = vshrl.u32 %v3207_v42, 16 }
 0x2d0   : > { %3182 = vst.msk [vmem:[#allocation4 + $0x48] sm:$0xf] %vm3111_vm11, %v3158_v43  ;;  %v3205_v46 = vld [vmem:[#allocation3 + $0x40] sm:$0xf] }
 0x2d1   : > { %v3156_v18 = vld [vmem:[#allocation3 + $0x40] sm:$0xf]  ;;  %v3373_v48 = vshll.u32 %v3205_v46, 16  ;;  %v3377_v49 = vshrl.u32 %v3205_v46, 16  ;;  %v3395_v32 = vrot.slane %v3393_v45, 5  ;;  %v3399_v51 = vrot.slane %v3397_v58, 4 }
 0x2d2   : > { %3180 = vst.msk [vmem:[#allocation4 + $0x40] sm:$0xf] %vm3111_vm11, %v3156_v18  ;;  %v3208_v24 = vld [vmem:[#allocation3 + $0x4c] sm:$0xf] }
 0x2d3   : > { %v3159_v13 = vld [vmem:[#allocation3 + $0x4c] sm:$0xf]  ;;  %v3375_v41 = vrot.slane %v3373_v48, 5  ;;  %v3379_v52 = vrot.slane %v3377_v49, 4  ;;  %v3400_v56 = vor.u32 %v3399_v51, %v3395_v32  ;;  %v3403_v30 = vshll.u32 %v3208_v24, 16 }
 0x2d4   : > { %3183 = vst.msk [vmem:[#allocation4 + $0x4c] sm:$0xf] %vm3111_vm11, %v3159_v13  ;;  %v3206_v55 = vld [vmem:[#allocation3 + $0x44] sm:$0xf]  ;;  %v3407_v12 = vshrl.u32 %v3208_v24, 16 }
 0x2d5   : > { %v3157_v59 = vld [vmem:[#allocation3 + $0x44] sm:$0xf]  ;;  %v3376_v33 = vsel %vm6068_vm2, %v3371_v38, %v3375_v41  ;;  %v3380_v14 = vor.u32 %v3379_v52, %v3375_v41  ;;  %v3383_v34 = vshll.u32 %v3206_v55, 16  ;;  %v3387_v60 = vshrl.u32 %v3206_v55, 16 }
 0x2d6   : > { %3181 = vst.msk [vmem:[#allocation4 + $0x44] sm:$0xf] %vm3111_vm11, %v3157_v59  ;;  %3482 = vrot.lane.b32.xlu1 %v3376_v33, %s6002_s25  ;;  %v3401_v50 = vrot.slane %v3400_v56, 4  ;;  %v3405_v2 = vrot.slane %v3403_v30, 5  ;;  %v3409_v0 = vrot.slane %v3407_v12, 4 }
 0x2d7   : > { %v3381_v54 = vrot.slane %v3380_v14, 4  ;;  %v3385_v1 = vrot.slane %v3383_v34, 5  ;;  %v3389_v61 = vrot.slane %v3387_v60, 4  ;;  %v7548_v12 = vld [vmem:[#allocation3 + $0x10] sm:$0xf] }
 0x2d8   : > { %v3406_v9 = vsel %vm6068_vm2, %v3401_v50, %v3405_v2  ;;  %v3410_v39 = vor.u32 %v3409_v0, %v3405_v2 }
 0x2d9   : > { %v3386_v23 = vsel %vm6068_vm2, %v3381_v54, %v3385_v1  ;;  %v3390_v63 = vor.u32 %v3389_v61, %v3385_v1 }
 0x2da   : > { %3484 = vrot.lane.b32.xlu0 %v3386_v23, %s6002_s25  ;;  %v3411_v49 = vrot.slane %v3410_v39, 4 }
 0x2db   : > { %v3391_v4 = vrot.slane %v3390_v63, 4  ;;  %v3551_v63 = vld [vmem:[#allocation3 + $0x4] sm:$0xf] }
 0x2dd   : > { %v3396_v6 = vsel %vm6068_vm2, %v3391_v4, %v3395_v32 }
 0x2de   : > { %3486 = vrot.lane.b32.xlu1 %v3396_v6, %s6002_s25  ;;  %3488 = vrot.lane.b32.xlu0 %v3406_v9, %s6002_s25  ;;  %v3550_v6 = vld [vmem:[#allocation3] sm:$0xe]  ;;  %v3552_v9 = vld [vmem:[#allocation3 + $0x8] sm:$0xf] }
 0x2e4   : > { %v3459_v3 = vpop.permute.xlu1 %3458 }
 0x2e5   : > { %3528 = vst.msk [vmem:[#allocation4 + $0xc] sm:$0xf] %vm3524_vm13, %v3459_v3 }
 0x2e8   : > { %v5895_v11 = vpop.f32.mrf.mxu0  ;;  %v3461_v7 = vpop.permute.xlu0 %3460 }
 0x2e9   : > { %v2947_v47 = vadd.f32 %v5895_v11, %v7388_v53  ;;  %3529 = vst.msk [vmem:[#allocation4 + $0x10] sm:$0xf] %vm3524_vm13, %v3461_v7  ;;  %v3600_v7 = vrot.slane %v3551_v63, 5  ;;  %v7572_v63 = vld [vmem:[#allocation3 + $0x18] sm:$0xf] }
 0x2ea   : > { %v2938_v15 = vpop.f32.mrf.mxu0 }
 0x2eb   : > { %v2991_v16 = vmax.f32 %v2947_v47, 0.0  ;;  %v2939_v62 = vadd.f32 %v7388_v53, %v2938_v15  ;;  %v3913_v47 = vld [vmem:[#allocation3 + $0x8] sm:$0xf]  ;;  %v3553_v15 = vld [vmem:[#allocation3 + $0xc] sm:$0xf] }
 0x2ec   : > { %v5896_v22 = vpop.f32.mrf.mxu0  ;;  %v3463_v10 = vpop.permute.xlu1 %3462 }
 0x2ed   : > { %v5827_v19 = vpack.c.bf16 %v2991_v16, %v2991_v16  ;;  %v2989_v37 = vmax.f32 %v2939_v62, 0.0  ;;  %v2950_v20 = vadd.f32 %v5896_v22, %v7388_v53  ;;  %3530 = vst.msk [vmem:[#allocation4 + $0x14] sm:$0xf] %vm3524_vm13, %v3463_v10  ;;  %v3465_v31 = vpop.permute.xlu0 %3464  ;;  %v5764_v16 = vrot.slane %v3550_v6, 9  ;;  %v4275_v6 = vld [vmem:[#allocation3 + $0xc] sm:$0xf] }
 0x2ee   : > { %3531 = vst.msk [vmem:[#allocation4 + $0x18] sm:$0xf] %vm3524_vm13, %v3465_v31  ;;  %v2941_v21 = vpop.f32.mrf.mxu0  ;;  %v3603_v62 = vrot.slane %v3552_v9, 5  ;;  %v3602_v31 = vrot.slane %v3600_v7, 4 }
 0x2ef   : > { %3134 = vst.msk [vmem:[#allocation3 + $0x58] sm:$0xf] %vm3111_vm11, %v5827_v19  ;;  %v5825_v40 = vpack.c.bf16 %v2989_v37, %v2989_v37  ;;  %v2992_v29 = vmax.f32 %v2950_v20, 0.0  ;;  %v2942_v25 = vadd.f32 %v7388_v53, %v2941_v21  ;;  %v3938_v19 = vshrl.u32 %v3913_v47, 16 }
 0x2f0   : > { %v3941_v37 = vshll.u32 %v3913_v47, 16  ;;  %v3601_v20 = vsel %vm6224_vm6, %v5764_v16, %v3600_v7  ;;  %v3606_v21 = vrot.slane %v3553_v15, 5  ;;  %v4274_v7 = vld [vmem:[#allocation3 + $0x8] sm:$0xe] }
 0x2f1   : > { %3132 = vst.msk [vmem:[#allocation3 + $0x50] sm:$0xf] %vm3111_vm11, %v5825_v40  ;;  %v5828_v26 = vpack.c.bf16 %v2992_v29, %v2992_v29  ;;  %v2990_v28 = vmax.f32 %v2942_v25, 0.0  ;;  %v3915_v40 = vld [vmem:[#allocation3 + $0x10] sm:$0xf]  ;;  %v3605_v29 = vrot.slane %v3603_v62, 4 }
 0x2f2   : > { %v3940_v0 = vrot.slane %v3938_v19, 4 }
 0x2f3   : > { %3135 = vst.msk [vmem:[#allocation3 + $0x5c] sm:$0xf] %vm3111_vm11, %v5828_v26  ;;  %v5826_v35 = vpack.c.bf16 %v2990_v28, %v2990_v28  ;;  %v3609_v28 = vrot.slane %v7548_v12, 5  ;;  %v3607_v39 = vsel %vm6224_vm6, %v3605_v29, %v3606_v21  ;;  %v3919_v12 = vld [vmem:[#allocation3 + $0x20] sm:$0xf] }
 0x2f5   : > { %3133 = vst.msk [vmem:[#allocation3 + $0x54] sm:$0xf] %vm3111_vm11, %v5826_v35  ;;  %v3914_v35 = vld [vmem:[#allocation3 + $0xc] sm:$0xf] }
 0x2f6   : > { %v3211_v5 = vld [vmem:[#allocation3 + $0x58] sm:$0xf] }
 0x2f7   : > { %v3162_v36 = vld [vmem:[#allocation3 + $0x58] sm:$0xf]  ;;  %v3433_v17 = vshll.u32 %v3211_v5, 16  ;;  %v3437_v8 = vshrl.u32 %v3211_v5, 16  ;;  %v3943_v5 = vrot.slane %v3941_v37, 5 }
 0x2f8   : > { %3186 = vst.msk [vmem:[#allocation4 + $0x58] sm:$0xf] %vm3111_vm11, %v3162_v36  ;;  %v3209_v42 = vld [vmem:[#allocation3 + $0x50] sm:$0xf]  ;;  %v3604_v36 = vsel %vm6224_vm6, %v3602_v31, %v3603_v62  ;;  %v4324_v62 = vrot.slane %v4275_v6, 5 }
 0x2f9   : > { %v3160_v43 = vld [vmem:[#allocation3 + $0x50] sm:$0xf]  ;;  %v3413_v44 = vshll.u32 %v3209_v42, 16  ;;  %v3417_v45 = vshrl.u32 %v3209_v42, 16  ;;  %v3435_v58 = vrot.slane %v3433_v17, 5  ;;  %v3439_v46 = vrot.slane %v3437_v8, 4 }
 0x2fa   : > { %3184 = vst.msk [vmem:[#allocation4 + $0x50] sm:$0xf] %vm3111_vm11, %v3160_v43  ;;  %v3212_v18 = vld [vmem:[#allocation3 + $0x5c] sm:$0xf]  ;;  %v3957_v17 = vshll.u32 %v3915_v40, 16  ;;  %v3961_v8 = vshrl.u32 %v3915_v40, 16 }
 0x2fb   : > { %v3163_v48 = vld [vmem:[#allocation3 + $0x5c] sm:$0x7]  ;;  %v3415_v32 = vrot.slane %v3413_v44, 5  ;;  %v3419_v51 = vrot.slane %v3417_v45, 4  ;;  %v3440_v13 = vor.u32 %v3439_v46, %v3435_v58  ;;  %v3443_v38 = vshll.u32 %v3212_v18, 16 }
 0x2fc   : > { %3188 = vst.msk [vmem:[#allocation4 + $0x5c] sm:$0x7] %vm3187_vm14, %v3163_v48  ;;  %v3210_v24 = vld [vmem:[#allocation3 + $0x54] sm:$0xf]  ;;  %v3447_v41 = vshrl.u32 %v3212_v18, 16  ;;  %v3608_v43 = vrot.slane %v3606_v21, 4  ;;  %v3944_v18 = vor.u32 %v3943_v5, %v3940_v0 }
 0x2fd   : > { %v3161_v52 = vld [vmem:[#allocation3 + $0x54] sm:$0xf]  ;;  %v3416_v55 = vsel %vm6068_vm2, %v3411_v49, %v3415_v32  ;;  %v3420_v56 = vor.u32 %v3419_v51, %v3415_v32  ;;  %v3423_v30 = vshll.u32 %v3210_v24, 16  ;;  %v3427_v59 = vshrl.u32 %v3210_v24, 16  ;;  %v3767_v32 = vld [vmem:[#allocation3 + $0x8] sm:$0xf] }
 0x2fe   : > { %3185 = vst.msk [vmem:[#allocation4 + $0x54] sm:$0xf] %vm3111_vm11, %v3161_v52  ;;  %3490 = vrot.lane.b32.xlu1 %v3416_v55, %s6002_s25  ;;  %v3445_v60 = vrot.slane %v3443_v38, 5  ;;  %v3449_v54 = vrot.slane %v3447_v41, 4  ;;  %v3441_v23 = vrot.slane %v3440_v13, 4  ;;  %v3947_v44 = vshll.u32 %v3914_v35, 16 }
 0x2ff   : > { %v3421_v33 = vrot.slane %v3420_v56, 4  ;;  %v3425_v14 = vrot.slane %v3423_v30, 5  ;;  %v3429_v34 = vrot.slane %v3427_v59, 4  ;;  %v3916_v42 = vld [vmem:[#allocation3 + $0x14] sm:$0xf]  ;;  %v3951_v45 = vshrl.u32 %v3914_v35, 16 }
 0x300   : > { %v3450_v4 = vor.u32 %v3449_v54, %v3445_v60  ;;  %v3446_v11 = vsel %vm6068_vm2, %v3441_v23, %v3445_v60  ;;  %v3610_v46 = vsel %vm6224_vm6, %v3608_v43, %v3609_v28  ;;  %v3967_v48 = vshll.u32 %v3916_v42, 16  ;;  %v3769_v60 = vld [vmem:[#allocation3 + $0x10] sm:$0xf]  ;;  %v4639_v5 = vld [vmem:[#allocation3 + $0x18] sm:$0xf] }
 0x301   : > { %v3426_v1 = vsel %vm6068_vm2, %v3421_v33, %v3425_v14  ;;  %v3430_v61 = vor.u32 %v3429_v34, %v3425_v14  ;;  %v3959_v51 = vrot.slane %v3957_v17, 5  ;;  %v3963_v24 = vrot.slane %v3961_v8, 4  ;;  %v3768_v34 = vld [vmem:[#allocation3 + $0xc] sm:$0xf]  ;;  %v4494_v6 = vld [vmem:[#allocation3 + $0x1c] sm:$0xf] }
 0x302   : > { %3492 = vrot.lane.b32.xlu0 %v3426_v1, %s6002_s25  ;;  %v3451_v10 = vrot.slane %v3450_v4, 4  ;;  %v3971_v13 = vshrl.u32 %v3916_v42, 16  ;;  %v3949_v55 = vrot.slane %v3947_v44, 5  ;;  %v3953_v56 = vrot.slane %v3951_v45, 4 }
 0x303   : > { %v3431_v50 = vrot.slane %v3430_v61, 4  ;;  %v3945_v30 = vrot.slane %v3944_v18, 4  ;;  %v3969_v59 = vrot.slane %v3967_v48, 5  ;;  %v3964_v54 = vor.u32 %v3963_v24, %v3959_v51  ;;  %v4640_v24 = vld [vmem:[#allocation3 + $0x1c] sm:$0xf] }
 0x304   : > { %v3467_v2 = vpop.permute.xlu1 %3466  ;;  %v3973_v1 = vrot.slane %v3971_v13, 4  ;;  %v3954_v23 = vor.u32 %v3953_v56, %v3949_v55  ;;  %v4685_v18 = vshrl.u32 %v4639_v5, 16  ;;  %v4491_v13 = vld [vmem:[#allocation3 + $0x10] sm:$0xf]  ;;  %vm4272_vm14 = vcmask 321792  }
 0x305   : > { %3532 = vst.msk [vmem:[#allocation4 + $0x1c] sm:$0xf] %vm3524_vm13, %v3467_v2  ;;  %v3436_v3 = vsel %vm6068_vm2, %v3431_v50, %v3435_v58  ;;  %v3950_v50 = vsel %vm6068_vm2, %v3945_v30, %v3949_v55  ;;  %v3965_v2 = vrot.slane %v3964_v54, 4  ;;  %v5975_v56 = vld [vmem:[%s8419_s3 + $0x20] ss:$0 sps:$4 sm:$0xff]   ;;  %v4691_v30 = vshll.u32 %v4640_v24, 16 }
 0x306   : > { %3494 = vrot.lane.b32.xlu1 %v3436_v3, %s6002_s25  ;;  %3496 = vrot.lane.b32.xlu0 %v3446_v11, %s6002_s25  ;;  %v3974_v4 = vor.u32 %v3973_v1, %v3969_v59  ;;  %v3955_v9 = vrot.slane %v3954_v23, 4  ;;  %v3977_v3 = vshll.u32 %v7572_v63, 16  ;;  %v4276_v11 = vld [vmem:[#allocation3 + $0x10] sm:$0xf]  ;;  %v4687_v55 = vrot.slane %v4685_v18, 4 }
 0x307   : > { %v3970_v15 = vsel %vm6068_vm2, %v3965_v2, %v3969_v59  ;;  %v4327_v19 = vrot.slane %v4276_v11, 5  ;;  %v4695_v59 = vshrl.u32 %v4640_v24, 16  ;;  %5936 = vmatprep.subr.msk.bf16.mxu1 %vm5379_vm15, %v5975_v56  ;;  %v4493_v54 = vld [vmem:[#allocation3 + $0x18] sm:$0xf]  ;;  %v4693_v2 = vrot.slane %v4691_v30, 5 }
 0x308   : > { %v3469_v22 = vpop.permute.xlu0 %3468  ;;  %v3960_v47 = vsel %vm6068_vm2, %v3955_v9, %v3959_v51  ;;  %v3975_v16 = vrot.slane %v3974_v4, 4  ;;  %v7586_v37 = vrot.slane %v3977_v3, 5  ;;  %v3918_v30 = vld [vmem:[#allocation3 + $0x1c] sm:$0xf] }
 0x309   : > { %3533 = vst.msk [vmem:[#allocation4 + $0x20] sm:$0xf] %vm3524_vm13, %v3469_v22  ;;  %v4277_v22 = vld [vmem:[#allocation3 + $0x14] sm:$0xf]  ;;  %v4329_v0 = vrot.slane %v4327_v19, 4  ;;  %v4697_v4 = vrot.slane %v4695_v59, 4 }
 0x30a   : > { %3498 = vrot.lane.b32.xlu1 %v3451_v10, %s6002_s25  ;;  %3669 = vrot.lane.b32.xlu0 %v3601_v20, %s6004_s27  ;;  %v4637_v10 = vld [vmem:[#allocation3 + $0x10] sm:$0xf]  ;;  %v5765_v20 = vrot.slane %v4274_v7, 9  ;;  %v4330_v31 = vrot.slane %v4277_v22, 5  ;;  %v3980_v40 = vsel %vm6068_vm2, %v3975_v16, %v7586_v37  ;;  %v5000_v22 = vld [vmem:[#allocation3 + $0x18] sm:$0xf] }
 0x30b   : > { %v4662_v21 = vshrl.u32 %v4637_v10, 16  ;;  %v4665_v35 = vshll.u32 %v4637_v10, 16  ;;  %v4698_v16 = vor.u32 %v4697_v4, %v4693_v2 }
 0x30c   : > { %v3471_v25 = vpop.permute.xlu1 %3470  ;;  %v3473_v26 = vpop.permute.xlu0 %3472  ;;  %v4325_v29 = vsel %vm6224_vm6, %v5765_v20, %v4324_v62  ;;  %v4331_v8 = vsel %vm6224_vm6, %v4329_v0, %v4330_v31  ;;  %v4332_v42 = vrot.slane %v4330_v31, 4 }
 0x30d   : > { %3534 = vst.msk [vmem:[#allocation4 + $0x24] sm:$0xf] %vm3524_vm13, %v3471_v25  ;;  %3535 = vst.msk [vmem:[#allocation4 + $0x28] sm:$0xf] %vm3524_vm13, %v3473_v26  ;;  %v4326_v25 = vrot.slane %v4324_v62, 4  ;;  %v4664_v43 = vrot.slane %v4662_v21, 4 }
 0x30e   : > { %3671 = vrot.lane.b32.xlu1 %v3604_v36, %s6004_s27  ;;  %3673 = vrot.lane.b32.xlu0 %v3607_v39, %s6004_s27  ;;  %v4638_v26 = vld [vmem:[#allocation3 + $0x14] sm:$0xf]  ;;  %v7597_v39 = vld [vmem:[#allocation3 + $0x18] sm:$0xf]  ;;  %v4667_v45 = vrot.slane %v4665_v35, 5 }
 0x30f   : > { %v4328_v36 = vsel %vm6224_vm6, %v4326_v25, %v4327_v19  ;;  %v4671_v44 = vshll.u32 %v4638_v26, 16  ;;  %v4333_v48 = vrot.slane %v7597_v39, 5  ;;  %v4998_v62 = vld [vmem:[#allocation3 + $0x10] sm:$0xe]  ;;  %v5001_v21 = vld [vmem:[#allocation3 + $0x1c] sm:$0xf] }
 0x310   : > { %v5766_v25 = vrot.slane %v4998_v62, 9  ;;  %v3772_v62 = vld [vmem:[#allocation3 + $0x1c] sm:$0xf] }
 0x311   : > { %v5899_v58 = vpop.f32.mrf.mxu0  ;;  %v4673_v51 = vrot.slane %v4671_v44, 5  ;;  %v3556_v44 = vld [vmem:[#allocation3 + $0x18] sm:$0xf] }
 0x312   : > { %v2963_v49 = vadd.f32 %v5899_v58, %v7388_v53  ;;  %3675 = vrot.lane.b32.xlu1 %v3610_v46, %s6004_s27  ;;  %3815 = vrot.lane.b32.xlu0 %v3767_v32, %s6006_s29  ;;  %v4675_v58 = vshrl.u32 %v4638_v26, 16  ;;  %v4681_v46 = vshll.u32 %v4639_v5, 16  ;;  %v4334_v32 = vsel %vm6224_vm6, %v4332_v42, %v4333_v48  ;;  %v5979_v42 = vld [vmem:[%s8419_s3] sm:$0xff]  }
 0x313   : > { %v2954_v38 = vpop.f32.mrf.mxu0  ;;  %v5051_v26 = vrot.slane %v5000_v22, 5  ;;  %v3615_v24 = vrot.slane %v3556_v44, 5  ;;  %v3773_v22 = vld [vmem:[#allocation3 + $0x20] sm:$0xf] }
 0x314   : > { %v2995_v41 = vmax.f32 %v2963_v49, 0.0  ;;  %v2955_v52 = vadd.f32 %v7388_v53, %v2954_v38  ;;  %v3770_v53 = vld [vmem:[#allocation3 + $0x14] sm:$0xf]  ;;  %v4668_v38 = vor.u32 %v4667_v45, %v4664_v43 }
 0x315   : > { %v5053_v43 = vrot.slane %v5051_v26, 4 }
 0x316   : > { %v5831_v33 = vpack.c.bf16 %v2995_v41, %v2995_v41  ;;  %v2993_v14 = vmax.f32 %v2955_v52, 0.0  ;;  %3817 = vrot.lane.b32.xlu1 %v3768_v34, %s6006_s29  ;;  %3819 = vrot.lane.b32.xlu0 %v3769_v60, %s6006_s29  ;;  %v4677_v41 = vrot.slane %v4675_v58, 4  ;;  %v4683_v52 = vrot.slane %v4681_v46, 5  ;;  %v4492_v60 = vld [vmem:[#allocation3 + $0x14] sm:$0xf] }
 0x317   : > { %v5381_v34 = vsel %vm5379_vm15, %v5975_v56, 0  ;;  %v4669_v1 = vrot.slane %v4668_v38, 4  ;;  %v7671_v56 = vld [vmem:[#allocation3 + $0x20] sm:$0xf]  ;;  %vm4489_vm15 = vcmask 387392  }
 0x318   : > { %3138 = vst.msk [vmem:[#allocation3 + $0x68] sm:$0xf] %vm3111_vm11, %v5831_v33  ;;  %v5829_v61 = vpack.c.bf16 %v2993_v14, %v2993_v14  ;;  %v4688_v23 = vor.u32 %v4687_v55, %v4683_v52  ;;  %5902 = vmatpush3.bf16.msra.mxu1 %v5381_v34  ;;  %v3997_v34 = vshll.u32 %v3919_v12, 16 }
 0x319   : > { %v4674_v9 = vsel %vm6068_vm2, %v4669_v1, %v4673_v51  ;;  %v3920_v1 = vld [vmem:[#allocation3 + $0x24] sm:$0xf] }
 0x31a   : > { %3136 = vst.msk [vmem:[#allocation3 + $0x60] sm:$0xf] %vm3111_vm11, %v5829_v61  ;;  %3821 = vrot.lane.b32.xlu1 %v3770_v53, %s6006_s29  ;;  %4176 = vrot.lane.b32.xlu0 %v3950_v50, %s6008_s12  ;;  %v4678_v61 = vor.u32 %v4677_v41, %v4673_v51  ;;  %v7619_v53 = vld [vmem:[#allocation3 + $0x20] sm:$0xf]  ;;  %v5976_v50 = vld [vmem:[%s8419_s3 + $0x18] sm:$0xff]   ;;  %v4689_v11 = vrot.slane %v4688_v23, 4 }
 0x31b   : > { %5903 = vmatprep.subr.bf16.mxu1 %v5976_v50  ;;  %v4701_v7 = vshll.u32 %v7619_v53, 16  ;;  %v3611_v51 = vrot.slane %v3609_v28, 4  ;;  %v3617_v28 = vrot.slane %v3615_v24, 4  ;;  %v3991_v23 = vshrl.u32 %v3918_v30, 16 }
 0x31c   : > { %v4679_v3 = vrot.slane %v4678_v61, 4  ;;  %5904 = vmatpush3.bf16.msra.mxu1 %v5976_v50  ;;  %v4694_v19 = vsel %vm6068_vm2, %v4689_v11, %v4693_v2  ;;  %v3987_v61 = vshll.u32 %v3918_v30, 16  ;;  %v4007_v11 = vshll.u32 %v3920_v1, 16 }
 0x31d   : > { %v7636_v20 = vrot.slane %v4701_v7, 5  ;;  %v4011_v7 = vshrl.u32 %v3920_v1, 16 }
 0x31e   : > { %4178 = vrot.lane.b32.xlu1 %v3960_v47, %s6008_s12  ;;  %4180 = vrot.lane.b32.xlu0 %v3970_v15, %s6008_s12  ;;  %v4999_v47 = vld [vmem:[#allocation3 + $0x14] sm:$0xf]  ;;  %v5977_v15 = vld [vmem:[%s8419_s3 + $0x10] sm:$0xff]   ;;  %v4684_v10 = vsel %vm6068_vm2, %v4679_v3, %v4683_v52 }
 0x31f   : > { %5905 = vmatprep.subr.bf16.mxu1 %v5977_v15  ;;  %v5048_v31 = vrot.slane %v4999_v47, 5  ;;  %v3989_v47 = vrot.slane %v3987_v61, 5 }
 0x320   : > { %5906 = vmatpush3.bf16.msra.mxu1 %v5977_v15  ;;  %v3993_v15 = vrot.slane %v3991_v23, 4 }
 0x321   : > { %v5049_v0 = vsel %vm6224_vm6, %v5766_v25, %v5048_v31  ;;  %v5050_v5 = vrot.slane %v5048_v31, 4  ;;  %v4013_v31 = vrot.slane %v4011_v7, 4  ;;  %v7693_v25 = vld [vmem:[#allocation3 + $0x28] sm:$0xf] }
 0x322   : > { %4182 = vrot.lane.b32.xlu1 %v3980_v40, %s6008_s12  ;;  %4393 = vrot.lane.b32.xlu0 %v4325_v29, %s6009_s15  ;;  %v5978_v40 = vld [vmem:[%s8419_s3 + $0x8] sm:$0xff]   ;;  %v4699_v29 = vrot.slane %v4698_v16, 4 }
 0x323   : > { %5907 = vmatprep.subr.bf16.mxu1 %v5978_v40  ;;  %v5052_v45 = vsel %vm6224_vm6, %v5050_v5, %v5051_v26  ;;  %v3774_v26 = vld [vmem:[#allocation3 + $0x24] sm:$0xf] }
 0x324   : > { %v3475_v17 = vpop.permute.xlu1 %3474  ;;  %v4704_v35 = vsel %vm6068_vm2, %v4699_v29, %v7636_v20  ;;  %5908 = vmatpush3.bf16.msra.mxu1 %v5978_v40 }
 0x325   : > { %3536 = vst.msk [vmem:[#allocation4 + $0x2c] sm:$0xf] %vm3524_vm13, %v3475_v17  ;;  %v7650_v17 = vld [vmem:[#allocation3 + $0x20] sm:$0xf]  ;;  %5909 = vmatprep.subr.bf16.mxu1 %v5979_v42 }
 0x326   : > { %4395 = vrot.lane.b32.xlu1 %v4328_v36, %s6009_s15  ;;  %4397 = vrot.lane.b32.xlu0 %v4331_v8, %s6009_s15  ;;  %v5054_v36 = vrot.slane %v5001_v21, 5  ;;  %v3555_v8 = vld [vmem:[#allocation3 + $0x14] sm:$0xf]  ;;  %v5057_v46 = vrot.slane %v7650_v17, 5  ;;  %v3994_v21 = vor.u32 %v3993_v15, %v3989_v47  ;;  %v4497_v15 = vld [vmem:[#allocation3 + $0x28] sm:$0xf] }
 0x327   : > { %v3612_v18 = vrot.slane %v3555_v8, 5  ;;  %v3559_v17 = vld [vmem:[#allocation3 + $0x24] sm:$0xf] }
 0x328   : > { %v3477_v49 = vpop.permute.xlu0 %3476  ;;  %v5055_v58 = vsel %vm6224_vm6, %v5053_v43, %v5054_v36  ;;  %5910 = vmatpush3.bf16.msra.mxu1 %v5979_v42  ;;  %v3995_v8 = vrot.slane %v3994_v21, 4  ;;  %v4017_v42 = vshll.u32 %v7693_v25, 16  ;;  %v4280_v43 = vld [vmem:[#allocation3 + $0x20] sm:$0xf] }
 0x329   : > { %3537 = vst.msk [vmem:[#allocation4 + $0x30] sm:$0xf] %vm3524_vm13, %v3477_v49  ;;  %v3557_v49 = vld [vmem:[#allocation3 + $0x1c] sm:$0xf]  ;;  %v3613_v41 = vsel %vm6224_vm6, %v3611_v51, %v3612_v18  ;;  %v3614_v52 = vrot.slane %v3612_v18, 4  ;;  %v4335_v51 = vrot.slane %v4333_v48, 4 }
 0x32a   : > { %4399 = vrot.lane.b32.xlu1 %v4334_v32, %s6009_s15  ;;  %4539 = vrot.lane.b32.xlu0 %v4491_v13, %s6010_s16  ;;  %v5056_v32 = vrot.slane %v5054_v36, 4  ;;  %v3981_v13 = vshrl.u32 %v7572_v63, 16  ;;  %v3618_v55 = vrot.slane %v3557_v49, 5  ;;  %v3621_v63 = vrot.slane %v7671_v56, 5  ;;  %v4279_v36 = vld [vmem:[#allocation3 + $0x1c] sm:$0xf] }
 0x32b   : > { %v4336_v18 = vrot.slane %v4279_v36, 5  ;;  %v4281_v49 = vld [vmem:[#allocation3 + $0x24] sm:$0xf]  ;;  %v7720_v48 = vld [vmem:[#allocation3 + $0x28] sm:$0xf] }
 0x32c   : > { %v3479_v33 = vpop.permute.xlu1 %3478  ;;  %v3481_v14 = vpop.permute.xlu0 %3480  ;;  %v5058_v38 = vsel %vm6224_vm6, %v5056_v32, %v5057_v46  ;;  %v3983_v59 = vrot.slane %v3981_v13, 4  ;;  %v7708_v32 = vrot.slane %v4017_v42, 5  ;;  %v4705_v13 = vshrl.u32 %v7619_v53, 16 }
 0x32d   : > { %3538 = vst.msk [vmem:[#allocation4 + $0x34] sm:$0xf] %vm3524_vm13, %v3479_v33  ;;  %3539 = vst.msk [vmem:[#allocation4 + $0x38] sm:$0xf] %vm3524_vm13, %v3481_v14  ;;  %v3616_v33 = vsel %vm6224_vm6, %v3614_v52, %v3615_v24  ;;  %v3619_v14 = vsel %vm6224_vm6, %v3617_v28, %v3618_v55  ;;  %v4339_v24 = vrot.slane %v4280_v43, 5  ;;  %v4337_v52 = vsel %vm6224_vm6, %v4335_v51, %v4336_v18 }
 0x32e   : > { %4541 = vrot.lane.b32.xlu1 %v4492_v60, %s6010_s16  ;;  %4543 = vrot.lane.b32.xlu0 %v4493_v54, %s6010_s16  ;;  %v4001_v60 = vshrl.u32 %v3919_v12, 16  ;;  %v3620_v54 = vrot.slane %v3618_v55, 4  ;;  %v3984_v4 = vor.u32 %v3983_v59, %v7586_v37  ;;  %v4642_v55 = vld [vmem:[#allocation3 + $0x24] sm:$0xf]  ;;  %v4338_v12 = vrot.slane %v4336_v18, 4 }
 0x32f   : > { %v4643_v28 = vld [vmem:[#allocation3 + $0x28] sm:$0xf]  ;;  %v4341_v39 = vrot.slane %v4339_v24, 4  ;;  %v4707_v59 = vrot.slane %v4705_v13, 4  ;;  %v4345_v1 = vrot.slane %v7720_v48, 5 }
 0x330   : > { %v3622_v2 = vsel %vm6224_vm6, %v3620_v54, %v3621_v63  ;;  %v4003_v3 = vrot.slane %v4001_v60, 4  ;;  %v4340_v53 = vsel %vm6224_vm6, %v4338_v12, %v4339_v24  ;;  %v4721_v60 = vshll.u32 %v4643_v28, 16  ;;  %v5005_v43 = vld [vmem:[#allocation3 + $0x2c] sm:$0xf] }
 0x331   : > { %v4725_v54 = vshrl.u32 %v4643_v28, 16  ;;  %v4708_v23 = vor.u32 %v4707_v59, %v7636_v20  ;;  %v7738_v20 = vld [vmem:[#allocation3 + $0x30] sm:$0xf]  ;;  %v5066_v13 = vrot.slane %v5005_v43, 5  ;;  %v3623_v59 = vrot.slane %v3621_v63, 4 }
 0x332   : > { %4545 = vrot.lane.b32.xlu1 %v4494_v6, %s6010_s16  ;;  %4900 = vrot.lane.b32.xlu0 %v4674_v9, %s6011_s23  ;;  %v3771_v6 = vld [vmem:[#allocation3 + $0x18] sm:$0xf]  ;;  %v3999_v9 = vrot.slane %v3997_v34, 5  ;;  %v4715_v34 = vshrl.u32 %v4642_v55, 16  ;;  %v7784_v63 = vld [vmem:[#allocation3 + $0x30] sm:$0xf] }
 0x334   : > { %v4004_v37 = vor.u32 %v4003_v3, %v3999_v9  ;;  %v4000_v44 = vsel %vm6068_vm2, %v3995_v8, %v3999_v9  ;;  %v4723_v9 = vrot.slane %v4721_v60, 5  ;;  %v4727_v3 = vrot.slane %v4725_v54, 4 }
 0x336   : > { %4902 = vrot.lane.b32.xlu1 %v4684_v10, %s6011_s23  ;;  %4904 = vrot.lane.b32.xlu0 %v4694_v19, %s6011_s23  ;;  %v3985_v10 = vrot.slane %v3984_v4, 4  ;;  %v4009_v19 = vrot.slane %v4007_v11, 5 }
 0x338   : > { %v4014_v5 = vor.u32 %v4013_v31, %v4009_v19 }
 0x33a   : > { %4906 = vrot.lane.b32.xlu1 %v4704_v35, %s6011_s23  ;;  %5117 = vrot.lane.b32.xlu0 %v5049_v0, %s6012_s30  ;;  %v3990_v35 = vsel %vm6068_vm2, %v3985_v10, %v3989_v47  ;;  %v4005_v0 = vrot.slane %v4004_v37, 4  ;;  %v4496_v47 = vld [vmem:[#allocation3 + $0x24] sm:$0xf] }
 0x33e   : > { %5119 = vrot.lane.b32.xlu1 %v5052_v45, %s6012_s30  ;;  %5121 = vrot.lane.b32.xlu0 %v5055_v58, %s6012_s30  ;;  %v4010_v45 = vsel %vm6068_vm2, %v4005_v0, %v4009_v19  ;;  %v4015_v58 = vrot.slane %v4014_v5, 4  ;;  %v4498_v19 = vld [vmem:[#allocation3 + $0x2c] sm:$0xf]  ;;  %v5004_v0 = vld [vmem:[#allocation3 + $0x28] sm:$0xf] }
 0x342   : > { %5123 = vrot.lane.b32.xlu1 %v5058_v38, %s6012_s30  ;;  %3677 = vrot.lane.b32.xlu0 %v3613_v41, %s6004_s27  ;;  %v4342_v38 = vrot.slane %v4281_v49, 5  ;;  %v4020_v41 = vsel %vm6068_vm2, %v4015_v58, %v7708_v32  ;;  %v5063_v58 = vrot.slane %v5004_v0, 5 }
 0x344   : > { %v4344_v30 = vrot.slane %v4342_v38, 4 }
 0x346   : > { %3679 = vrot.lane.b32.xlu1 %v3616_v33, %s6004_s27  ;;  %3681 = vrot.lane.b32.xlu0 %v3619_v14, %s6004_s27  ;;  %v4711_v33 = vshll.u32 %v4642_v55, 16  ;;  %v4343_v14 = vsel %vm6224_vm6, %v4341_v39, %v4342_v38  ;;  %v4346_v61 = vsel %vm6224_vm6, %v4344_v30, %v4345_v1  ;;  %v7763_v38 = vld [vmem:[#allocation3 + $0x30] sm:$0xf]  ;;  %v3624_v39 = vrot.slane %v3559_v17, 5  ;;  %v3776_v17 = vld [vmem:[#allocation3 + $0x2c] sm:$0xf] }
 0x347   : > { %v5069_v28 = vrot.slane %v7763_v38, 5  ;;  %v5068_v30 = vrot.slane %v5066_v13, 4  ;;  %v7900_v38 = vld [vmem:[#allocation3 + $0x40] sm:$0xf] }
 0x348   : > { %v3483_v50 = vpop.permute.xlu1 %3482  ;;  %v4713_v4 = vrot.slane %v4711_v33, 5 }
 0x349   : > { %3540 = vst.msk [vmem:[#allocation4 + $0x3c] sm:$0xf] %vm3524_vm13, %v3483_v50  ;;  %v4644_v50 = vld [vmem:[#allocation3 + $0x2c] sm:$0xf]  ;;  %v5070_v54 = vsel %vm6224_vm6, %v5068_v30, %v5069_v28 }
 0x34a   : > { %3683 = vrot.lane.b32.xlu1 %v3622_v2, %s6004_s27  ;;  %3823 = vrot.lane.b32.xlu0 %v3771_v6, %s6006_s29  ;;  %v4495_v2 = vld [vmem:[#allocation3 + $0x20] sm:$0xf]  ;;  %v4717_v6 = vrot.slane %v4715_v34, 4  ;;  %v4731_v11 = vshll.u32 %v4644_v50, 16  ;;  %v4735_v7 = vshrl.u32 %v4644_v50, 16 }
 0x34c   : > { %v3485_v16 = vpop.permute.xlu0 %3484  ;;  %v4733_v10 = vrot.slane %v4731_v11, 5  ;;  %v4737_v37 = vrot.slane %v4735_v7, 4 }
 0x34d   : > { %3541 = vst.msk [vmem:[#allocation4 + $0x40] sm:$0xf] %vm3524_vm13, %v3485_v16  ;;  %v4709_v16 = vrot.slane %v4708_v23, 4  ;;  %v3626_v23 = vrot.slane %v3624_v39, 4 }
 0x34e   : > { %3825 = vrot.lane.b32.xlu1 %v3772_v62, %s6006_s29  ;;  %3827 = vrot.lane.b32.xlu0 %v3773_v22, %s6006_s29  ;;  %v4718_v62 = vor.u32 %v4717_v6, %v4713_v4  ;;  %v4728_v22 = vor.u32 %v4727_v3, %v4723_v9  ;;  %v3633_v6 = vrot.slane %v7784_v63, 5 }
 0x34f   : > { %v4714_v31 = vsel %vm6068_vm2, %v4709_v16, %v4713_v4  ;;  %v5900_v16 = vpop.f32.mrf.mxu0 }
 0x350   : > { %v3487_v40 = vpop.permute.xlu1 %3486  ;;  %v3489_v29 = vpop.permute.xlu0 %3488  ;;  %v4719_v21 = vrot.slane %v4718_v62, 4 }
 0x351   : > { %3542 = vst.msk [vmem:[#allocation4 + $0x44] sm:$0xf] %vm3524_vm13, %v3487_v40  ;;  %3543 = vst.msk [vmem:[#allocation4 + $0x48] sm:$0xf] %vm3524_vm13, %v3489_v29  ;;  %v4729_v40 = vrot.slane %v4728_v22, 4  ;;  %v4741_v29 = vshll.u32 %v7738_v20, 16 }
 0x352   : > { %3829 = vrot.lane.b32.xlu1 %v3774_v26, %s6006_s29  ;;  %4184 = vrot.lane.b32.xlu0 %v3990_v35, %s6008_s12  ;;  %v5003_v26 = vld [vmem:[#allocation3 + $0x24] sm:$0xf]  ;;  %v4738_v35 = vor.u32 %v4737_v37, %v4733_v10  ;;  %v4724_v5 = vsel %vm6068_vm2, %v4719_v21, %v4723_v9  ;;  %v3922_v9 = vld [vmem:[#allocation3 + $0x2c] sm:$0xf]  ;;  %v3924_v22 = vld [vmem:[#allocation3 + $0x34] sm:$0xf]  ;;  %v2957_v21 = vpop.f32.mrf.mxu0 }
 0x353   : > { %v4734_v36 = vsel %vm6068_vm2, %v4729_v40, %v4733_v10  ;;  %v7749_v8 = vrot.slane %v4741_v29, 5  ;;  %v5060_v42 = vrot.slane %v5003_v26, 5  ;;  %v5992_v10 = vld [vmem:[%s8418_s2] ss:$0 sm:$0xff] }
 0x354   : > { %v2966_v37 = vadd.f32 %v5992_v10, %v5900_v16  ;;  %v4347_v16 = vrot.slane %v4345_v1, 4 }
 0x355   : > { %v5062_v24 = vrot.slane %v5060_v42, 4 }
 0x356   : > { %4186 = vrot.lane.b32.xlu1 %v4000_v44, %s6008_s12  ;;  %4188 = vrot.lane.b32.xlu0 %v4010_v45, %s6008_s12  ;;  %v4739_v44 = vrot.slane %v4738_v35, 4  ;;  %v5059_v45 = vrot.slane %v5057_v46, 4  ;;  %v5065_v46 = vrot.slane %v5063_v58, 4  ;;  %v2996_v0 = vmax.f32 %v2966_v37, 0.0 }
 0x357   : > { %v5064_v55 = vsel %vm6224_vm6, %v5062_v24, %v5063_v58 }
 0x358   : > { %v4744_v49 = vsel %vm6068_vm2, %v4739_v44, %v7749_v8  ;;  %v5061_v51 = vsel %vm6224_vm6, %v5059_v45, %v5060_v42  ;;  %v5067_v12 = vsel %vm6224_vm6, %v5065_v46, %v5066_v13  ;;  %v4047_v44 = vshll.u32 %v3924_v22, 16 }
 0x359   : > { %v4051_v45 = vshrl.u32 %v3924_v22, 16  ;;  %v2998_v58 = vsel %vm2997_vm3, %v2996_v0, 0.0  ;;  %vm5213_vm3 = vcmask 584192  }
 0x35a   : > { %4190 = vrot.lane.b32.xlu1 %v4020_v41, %s6008_s12  ;;  %4401 = vrot.lane.b32.xlu0 %v4337_v52, %s6009_s15  ;;  %v3560_v52 = vld [vmem:[#allocation3 + $0x28] sm:$0xf] }
 0x35b   : > { %v3627_v33 = vrot.slane %v3560_v52, 5 }
 0x35d   : > { %v3629_v50 = vrot.slane %v3627_v33, 4  ;;  %v3628_v11 = vsel %vm6224_vm6, %v3626_v23, %v3627_v33  ;;  %v7815_v33 = vld [vmem:[#allocation3 + $0x38] sm:$0xf] }
 0x35e   : > { %4403 = vrot.lane.b32.xlu1 %v4340_v53, %s6009_s15  ;;  %4405 = vrot.lane.b32.xlu0 %v4343_v14, %s6009_s15  ;;  %v3561_v53 = vld [vmem:[#allocation3 + $0x2c] sm:$0xf]  ;;  %v4021_v14 = vshrl.u32 %v7693_v25, 16  ;;  %v3923_v25 = vld [vmem:[#allocation3 + $0x30] sm:$0xf] }
 0x35f   : > { %v3630_v56 = vrot.slane %v3561_v53, 5 }
 0x360   : > { %v4023_v3 = vrot.slane %v4021_v14, 4  ;;  %v3778_v14 = vld [vmem:[#allocation3 + $0x34] sm:$0xf] }
 0x361   : > { %v3631_v7 = vsel %vm6224_vm6, %v3629_v50, %v3630_v56  ;;  %v3632_v62 = vrot.slane %v3630_v56, 4  ;;  %v4057_v56 = vshll.u32 %v7815_v33, 16 }
 0x362   : > { %4407 = vrot.lane.b32.xlu1 %v4346_v61, %s6009_s15  ;;  %4547 = vrot.lane.b32.xlu0 %v4495_v2, %s6010_s16  ;;  %v3625_v61 = vsel %vm6224_vm6, %v3623_v59, %v3624_v39  ;;  %v4024_v35 = vor.u32 %v4023_v3, %v7708_v32  ;;  %v4053_v39 = vrot.slane %v4051_v45, 4 }
 0x363   : > { %v3634_v26 = vsel %vm6224_vm6, %v3632_v62, %v3633_v6  ;;  %v4745_v62 = vshrl.u32 %v7738_v20, 16  ;;  %v4647_v20 = vld [vmem:[#allocation3 + $0x38] sm:$0xf] }
 0x364   : > { %v4025_v52 = vrot.slane %v4024_v35, 4  ;;  %v4765_v45 = vshrl.u32 %v4647_v20, 16 }
 0x366   : > { %4549 = vrot.lane.b32.xlu1 %v4496_v47, %s6010_s16  ;;  %4551 = vrot.lane.b32.xlu0 %v4497_v15, %s6010_s16  ;;  %v4037_v47 = vshll.u32 %v3923_v25, 16  ;;  %v4041_v15 = vshrl.u32 %v3923_v25, 16  ;;  %v4284_v25 = vld [vmem:[#allocation3 + $0x30] sm:$0xf] }
 0x368   : > { %v4039_v42 = vrot.slane %v4037_v47, 5  ;;  %v4043_v43 = vrot.slane %v4041_v15, 4  ;;  %v4351_v47 = vrot.slane %v4284_v25, 5  ;;  %v7832_v15 = vrot.slane %v4057_v56, 5  ;;  %v4502_v25 = vld [vmem:[#allocation3 + $0x3c] sm:$0xf] }
 0x36a   : > { %4553 = vrot.lane.b32.xlu1 %v4498_v19, %s6010_s16  ;;  %4908 = vrot.lane.b32.xlu0 %v4714_v31, %s6011_s23  ;;  %v4027_v19 = vshll.u32 %v3922_v9, 16  ;;  %v4031_v31 = vshrl.u32 %v3922_v9, 16  ;;  %v4353_v1 = vrot.slane %v4351_v47, 4 }
 0x36c   : > { %v4029_v32 = vrot.slane %v4027_v19, 5 }
 0x36e   : > { %4910 = vrot.lane.b32.xlu1 %v4724_v5, %s6011_s23  ;;  %4912 = vrot.lane.b32.xlu0 %v4734_v36, %s6011_s23  ;;  %v2958_v5 = vadd.f32 %v5992_v10, %v2957_v21  ;;  %v3775_v36 = vld [vmem:[#allocation3 + $0x28] sm:$0xf]  ;;  %v4646_v21 = vld [vmem:[#allocation3 + $0x34] sm:$0xf] }
 0x370   : > { %v3491_v18 = vpop.permute.xlu1 %3490 }
 0x371   : > { %3544 = vst.msk [vmem:[#allocation4 + $0x4c] sm:$0xf] %vm3524_vm13, %v3491_v18  ;;  %v2994_v18 = vmax.f32 %v2958_v5, 0.0 }
 0x372   : > { %4914 = vrot.lane.b32.xlu1 %v4744_v49, %s6011_s23  ;;  %5125 = vrot.lane.b32.xlu0 %v5061_v51, %s6012_s30  ;;  %v4033_v49 = vrot.slane %v4031_v31, 4  ;;  %v5832_v51 = vpack.c.bf16 %v2998_v58, %v2998_v58 }
 0x373   : > { %v5830_v46 = vpack.c.bf16 %v2994_v18, %v2994_v18 }
 0x374   : > { %v3493_v41 = vpop.permute.xlu0 %3492  ;;  %3139 = vst.msk [vmem:[#allocation3 + $0x6c] sm:$0xf] %vm3111_vm11, %v5832_v51  ;;  %v4034_v53 = vor.u32 %v4033_v49, %v4029_v32 }
 0x375   : > { %3545 = vst.msk [vmem:[#allocation4 + $0x50] sm:$0xf] %vm3524_vm13, %v3493_v41  ;;  %v3777_v41 = vld [vmem:[#allocation3 + $0x30] sm:$0xf] }
 0x376   : > { %5127 = vrot.lane.b32.xlu1 %v5064_v55, %s6012_s30  ;;  %5129 = vrot.lane.b32.xlu0 %v5067_v12, %s6012_s30  ;;  %v4044_v55 = vor.u32 %v4043_v43, %v4039_v42  ;;  %v4049_v12 = vrot.slane %v4047_v44, 5  ;;  %3137 = vst.msk [vmem:[#allocation3 + $0x64] sm:$0xf] %vm3111_vm11, %v5830_v46  ;;  %v4035_v23 = vrot.slane %v4034_v53, 4  ;;  %v4755_v43 = vshrl.u32 %v4646_v21, 16 }
 0x377   : > { %v4761_v44 = vshll.u32 %v4647_v20, 16  ;;  %vm5342_vm11 = vcmask 588800  }
 0x378   : > { %v3495_v34 = vpop.permute.xlu1 %3494  ;;  %v3497_v60 = vpop.permute.xlu0 %3496  ;;  %v4757_v46 = vrot.slane %v4755_v43, 4  ;;  %v3564_v43 = vld [vmem:[#allocation3 + $0x38] sm:$0xf] }
 0x379   : > { %3546 = vst.msk [vmem:[#allocation4 + $0x54] sm:$0xf] %vm3524_vm13, %v3495_v34  ;;  %3547 = vst.msk [vmem:[#allocation4 + $0x58] sm:$0xf] %vm3524_vm13, %v3497_v60  ;;  %v4030_v34 = vsel %vm6068_vm2, %v4025_v52, %v4029_v32  ;;  %v4045_v60 = vrot.slane %v4044_v55, 4  ;;  %v4767_v52 = vrot.slane %v4765_v45, 4 }
 0x37a   : > { %5131 = vrot.lane.b32.xlu1 %v5070_v54, %s6012_s30  ;;  %3685 = vrot.lane.b32.xlu0 %v3625_v61, %s6004_s27  ;;  %v4054_v54 = vor.u32 %v4053_v39, %v4049_v12  ;;  %v4283_v61 = vld [vmem:[#allocation3 + $0x2c] sm:$0xf]  ;;  %vm3911_vm13 = vcmask 256192  }
 0x37b   : > { %v4050_v9 = vsel %vm6068_vm2, %v4045_v60, %v4049_v12  ;;  %v7870_v60 = vld [vmem:[#allocation3 + $0x40] sm:$0xf] }
 0x37c   : > { %v3499_v2 = vpop.permute.xlu1 %3498  ;;  %v3670_v4 = vpop.permute.xlu0 %3669  ;;  %v4055_v3 = vrot.slane %v4054_v54, 4 }
 0x37d   : > { %3549 = vst.msk [vmem:[#allocation4 + $0x5c] sm:$0x7] %vm3548_vm0, %v3499_v2  ;;  %vm4635_vm0 = vcmask 452992  }
 0x37e   : > { %3742 = vst.msk [vmem:[#allocation4] sm:$0xf] %vm3741_vm1, %v3670_v4  ;;  %3687 = vrot.lane.b32.xlu1 %v3628_v11, %s6004_s27  ;;  %3689 = vrot.lane.b32.xlu0 %v3631_v7, %s6004_s27  ;;  %v4040_v4 = vsel %vm6068_vm2, %v4035_v23, %v4039_v42  ;;  %v4348_v11 = vrot.slane %v4283_v61, 5  ;;  %v4285_v7 = vld [vmem:[#allocation3 + $0x34] sm:$0xf]  ;;  %v4060_v19 = vsel %vm6068_vm2, %v4055_v3, %v7832_v15  ;;  %v4751_v42 = vshll.u32 %v4646_v21, 16 }
 0x37f   : > { %v4354_v37 = vrot.slane %v4285_v7, 5  ;;  %v5007_v3 = vld [vmem:[#allocation3 + $0x34] sm:$0xf]  ;;  %v5071_v21 = vrot.slane %v5069_v28, 4 }
 0x380   : > { %v3672_v40 = vpop.permute.xlu1 %3671  ;;  %v3674_v29 = vpop.permute.xlu0 %3673  ;;  %v4349_v31 = vsel %vm6224_vm6, %v4347_v16, %v4348_v11  ;;  %v4350_v48 = vrot.slane %v4348_v11, 4  ;;  %v5008_v16 = vld [vmem:[#allocation3 + $0x38] sm:$0xf]  ;;  %v3563_v28 = vld [vmem:[#allocation3 + $0x34] sm:$0xf] }
 0x381   : > { %3743 = vst.msk [vmem:[#allocation4 + $0x4] sm:$0xf] %vm3741_vm1, %v3672_v40  ;;  %3744 = vst.msk [vmem:[#allocation4 + $0x8] sm:$0xf] %vm3741_vm1, %v3674_v29  ;;  %v7846_v40 = vld [vmem:[#allocation3 + $0x38] sm:$0xf]  ;;  %v4355_v0 = vsel %vm6224_vm6, %v4353_v1, %v4354_v37 }
 0x382   : > { %3691 = vrot.lane.b32.xlu1 %v3634_v26, %s6004_s27  ;;  %3831 = vrot.lane.b32.xlu0 %v3775_v36, %s6006_s29  ;;  %v4352_v35 = vsel %vm6224_vm6, %v4350_v48, %v4351_v47  ;;  %v4356_v5 = vrot.slane %v4354_v37, 4  ;;  %v4747_v36 = vrot.slane %v4745_v62, 4  ;;  %v4357_v58 = vrot.slane %v7846_v40, 5 }
 0x383   : > { %v5072_v37 = vrot.slane %v5007_v3, 5  ;;  %v5075_v48 = vrot.slane %v5008_v16, 5 }
 0x384   : > { %v3676_v24 = vpop.permute.xlu1 %3675  ;;  %v3816_v13 = vpop.permute.xlu0 %3815  ;;  %v4358_v49 = vsel %vm6224_vm6, %v4356_v5, %v4357_v58  ;;  %v4748_v51 = vor.u32 %v4747_v36, %v7749_v8  ;;  %v4500_v8 = vld [vmem:[#allocation3 + $0x34] sm:$0xf] }
 0x385   : > { %3745 = vst.msk [vmem:[#allocation4 + $0xc] sm:$0xf] %vm3741_vm1, %v3676_v24  ;;  %v4648_v24 = vld [vmem:[#allocation3 + $0x3c] sm:$0xf]  ;;  %v5077_v5 = vrot.slane %v5075_v48, 4 }
 0x386   : > { %3888 = vst.msk [vmem:[#allocation4] sm:$0xf] %vm3887_vm4, %v3816_v13  ;;  %3833 = vrot.lane.b32.xlu1 %v3776_v17, %s6006_s29  ;;  %3835 = vrot.lane.b32.xlu0 %v3777_v41, %s6006_s29  ;;  %v4499_v13 = vld [vmem:[#allocation3 + $0x30] sm:$0xf]  ;;  %v4753_v17 = vrot.slane %v4751_v42, 5  ;;  %v4763_v41 = vrot.slane %v4761_v44, 5 }
 0x387   : > { %v4771_v55 = vshll.u32 %v4648_v24, 16  ;;  %v4775_v12 = vshrl.u32 %v4648_v24, 16  ;;  %v3635_v24 = vrot.slane %v3633_v6, 4  ;;  %v7922_v6 = vld [vmem:[#allocation3 + $0x40] sm:$0xf] }
 0x388   : > { %v3818_v30 = vpop.permute.xlu1 %3817  ;;  %v3820_v59 = vpop.permute.xlu0 %3819 }
 0x389   : > { %3889 = vst.msk [vmem:[#allocation4 + $0x4] sm:$0xf] %vm3887_vm4, %v3818_v30  ;;  %3890 = vst.msk [vmem:[#allocation4 + $0x8] sm:$0xf] %vm3887_vm4, %v3820_v59  ;;  %v4501_v30 = vld [vmem:[#allocation3 + $0x38] sm:$0xf] }
 0x38a   : > { %3837 = vrot.lane.b32.xlu1 %v3778_v14, %s6006_s29  ;;  %4192 = vrot.lane.b32.xlu0 %v4030_v34, %s6008_s12  ;;  %v4749_v59 = vrot.slane %v4748_v51, 4  ;;  %v4758_v14 = vor.u32 %v4757_v46, %v4753_v17  ;;  %v4768_v34 = vor.u32 %v4767_v52, %v4763_v41  ;;  %v4773_v54 = vrot.slane %v4771_v55, 5 }
 0x38b   : > { %v4777_v61 = vrot.slane %v4775_v12, 4 }
 0x38c   : > { %v3822_v50 = vpop.permute.xlu1 %3821  ;;  %v4177_v2 = vpop.permute.xlu0 %4176 }
 0x38d   : > { %3891 = vst.msk [vmem:[#allocation4 + $0xc] sm:$0xf] %vm3887_vm4, %v3822_v50  ;;  %v4754_v50 = vsel %vm6068_vm2, %v4749_v59, %v4753_v17  ;;  %v4778_v11 = vor.u32 %v4777_v61, %v4773_v54  ;;  %v4061_v17 = vshrl.u32 %v7815_v33, 16  ;;  %v3927_v33 = vld [vmem:[#allocation3 + $0x40] sm:$0xf] }
 0x38e   : > { %4249 = vst.msk [vmem:[#allocation4] sm:$0xf] %vm4248_vm5, %v4177_v2  ;;  %4194 = vrot.lane.b32.xlu1 %v4040_v4, %s6008_s12  ;;  %4196 = vrot.lane.b32.xlu0 %v4050_v9, %s6008_s12  ;;  %v4759_v2 = vrot.slane %v4758_v14, 4  ;;  %v4769_v4 = vrot.slane %v4768_v34, 4  ;;  %v4781_v9 = vshll.u32 %v7870_v60, 16  ;;  %v4077_v61 = vshll.u32 %v3927_v33, 16 }
 0x38f   : > { %v3926_v59 = vld [vmem:[#allocation3 + $0x3c] sm:$0xf]  ;;  %v4063_v14 = vrot.slane %v4061_v17, 4 }
 0x390   : > { %v4179_v22 = vpop.permute.xlu1 %4178  ;;  %v4181_v10 = vpop.permute.xlu0 %4180  ;;  %v4764_v62 = vsel %vm6068_vm2, %v4759_v2, %v4763_v41  ;;  %v4071_v2 = vshrl.u32 %v3926_v59, 16  ;;  %v4079_v16 = vrot.slane %v4077_v61, 5 }
 0x391   : > { %4250 = vst.msk [vmem:[#allocation4 + $0x4] sm:$0xf] %vm4248_vm5, %v4179_v22  ;;  %4251 = vst.msk [vmem:[#allocation4 + $0x8] sm:$0xf] %vm4248_vm5, %v4181_v10  ;;  %v4774_v22 = vsel %vm6068_vm2, %v4769_v4, %v4773_v54  ;;  %v7885_v10 = vrot.slane %v4781_v9, 5 }
 0x392   : > { %4198 = vrot.lane.b32.xlu1 %v4060_v19, %s6008_s12  ;;  %4409 = vrot.lane.b32.xlu0 %v4349_v31, %s6009_s15  ;;  %v5009_v19 = vld [vmem:[#allocation3 + $0x3c] sm:$0xf]  ;;  %v4779_v31 = vrot.slane %v4778_v11, 4 }
 0x394   : > { %v4183_v29 = vpop.permute.xlu1 %4182  ;;  %v4394_v26 = vpop.permute.xlu0 %4393 }
 0x395   : > { %4252 = vst.msk [vmem:[#allocation4 + $0xc] sm:$0xf] %vm4248_vm5, %v4183_v29  ;;  %v4784_v29 = vsel %vm6068_vm2, %v4779_v31, %v7885_v10  ;;  %v4073_v31 = vrot.slane %v4071_v2, 4 }
 0x396   : > { %4466 = vst.msk [vmem:[#allocation4] sm:$0xf] %vm4465_vm7, %v4394_v26  ;;  %4411 = vrot.lane.b32.xlu1 %v4352_v35, %s6009_s15  ;;  %4413 = vrot.lane.b32.xlu0 %v4355_v0, %s6009_s15  ;;  %v5073_v26 = vsel %vm6224_vm6, %v5071_v21, %v5072_v37  ;;  %v5074_v35 = vrot.slane %v5072_v37, 4  ;;  %v5078_v0 = vrot.slane %v5009_v19, 5 }
 0x398   : > { %v4396_v18 = vpop.permute.xlu1 %4395  ;;  %v4398_v32 = vpop.permute.xlu0 %4397  ;;  %v5076_v44 = vsel %vm6224_vm6, %v5074_v35, %v5075_v48  ;;  %v5079_v45 = vsel %vm6224_vm6, %v5077_v5, %v5078_v0  ;;  %v5080_v51 = vrot.slane %v5078_v0, 4 }
 0x399   : > { %4467 = vst.msk [vmem:[#allocation4 + $0x4] sm:$0xf] %vm4465_vm7, %v4396_v18  ;;  %4468 = vst.msk [vmem:[#allocation4 + $0x8] sm:$0xf] %vm4465_vm7, %v4398_v32  ;;  %v5081_v18 = vrot.slane %v7900_v38, 5  ;;  %v3636_v32 = vrot.slane %v3563_v28, 5 }
 0x39a   : > { %4415 = vrot.lane.b32.xlu1 %v4358_v49, %s6009_s15  ;;  %4555 = vrot.lane.b32.xlu0 %v4499_v13, %s6010_s16  ;;  %v3565_v49 = vld [vmem:[#allocation3 + $0x3c] sm:$0xf]  ;;  %v3639_v13 = vrot.slane %v3564_v43, 5  ;;  %v3782_v43 = vld [vmem:[#allocation3 + $0x44] sm:$0xf] }
 0x39b   : > { %v5082_v52 = vsel %vm6224_vm6, %v5080_v51, %v5081_v18  ;;  %v3637_v55 = vsel %vm6224_vm6, %v3635_v24, %v3636_v32  ;;  %v3638_v12 = vrot.slane %v3636_v32, 4  ;;  %v3642_v63 = vrot.slane %v3565_v49, 5  ;;  %v4287_v49 = vld [vmem:[#allocation3 + $0x3c] sm:$0xf]  ;;  %v8035_v38 = vld [vmem:[#allocation3 + $0x50] sm:$0xf] }
 0x39c   : > { %v4400_v39 = vpop.permute.xlu1 %4399  ;;  %v4540_v53 = vpop.permute.xlu0 %4539 }
 0x39d   : > { %4469 = vst.msk [vmem:[#allocation4 + $0xc] sm:$0xf] %vm4465_vm7, %v4400_v39  ;;  %v3641_v39 = vrot.slane %v3639_v13, 4  ;;  %v3640_v34 = vsel %vm6224_vm6, %v3638_v12, %v3639_v13  ;;  %v4360_v12 = vrot.slane %v4287_v49, 5 }
 0x39e   : > { %4612 = vst.msk [vmem:[#allocation4] sm:$0xf] %vm4611_vm8, %v4540_v53  ;;  %4557 = vrot.lane.b32.xlu1 %v4500_v8, %s6010_s16  ;;  %4559 = vrot.lane.b32.xlu0 %v4501_v30, %s6010_s16  ;;  %v3645_v30 = vrot.slane %v7922_v6, 5 }
 0x39f   : > { %v3643_v54 = vsel %vm6224_vm6, %v3641_v39, %v3642_v63  ;;  %v4359_v39 = vrot.slane %v4357_v58, 4  ;;  %v4362_v40 = vrot.slane %v4360_v12, 4  ;;  %v4651_v58 = vld [vmem:[#allocation3 + $0x48] sm:$0xf] }
 0x3a0   : > { %v4542_v23 = vpop.permute.xlu1 %4541  ;;  %v4544_v56 = vpop.permute.xlu0 %4543 }
 0x3a1   : > { %4613 = vst.msk [vmem:[#allocation4 + $0x4] sm:$0xf] %vm4611_vm8, %v4542_v23  ;;  %4614 = vst.msk [vmem:[#allocation4 + $0x8] sm:$0xf] %vm4611_vm8, %v4544_v56  ;;  %v4081_v23 = vshrl.u32 %v3927_v33, 16  ;;  %v3644_v56 = vrot.slane %v3642_v63, 4  ;;  %v4361_v61 = vsel %vm6224_vm6, %v4359_v39, %v4360_v12 }
 0x3a2   : > { %4561 = vrot.lane.b32.xlu1 %v4502_v25, %s6010_s16  ;;  %4916 = vrot.lane.b32.xlu0 %v4754_v50, %s6011_s23  ;;  %v3928_v25 = vld [vmem:[#allocation3 + $0x44] sm:$0xf]  ;;  %v4067_v50 = vshll.u32 %v3926_v59, 16 }
 0x3a3   : > { %v3646_v3 = vsel %vm6224_vm6, %v3644_v56, %v3645_v30  ;;  %v4091_v37 = vshrl.u32 %v3928_v25, 16  ;;  %v4289_v63 = vld [vmem:[#allocation3 + $0x44] sm:$0xf]  ;;  %v7981_v56 = vld [vmem:[#allocation3 + $0x48] sm:$0xf] }
 0x3a4   : > { %v4546_v7 = vpop.permute.xlu1 %4545  ;;  %v4901_v47 = vpop.permute.xlu0 %4900  ;;  %v4069_v19 = vrot.slane %v4067_v50, 5 }
 0x3a5   : > { %4615 = vst.msk [vmem:[#allocation4 + $0xc] sm:$0xf] %vm4611_vm8, %v4546_v7  ;;  %v4064_v7 = vor.u32 %v4063_v14, %v7832_v15  ;;  %v3780_v15 = vld [vmem:[#allocation3 + $0x3c] sm:$0xf]  ;;  %v4093_v0 = vrot.slane %v4091_v37, 4 }
 0x3a6   : > { %4973 = vst.msk [vmem:[#allocation4] sm:$0xf] %vm4972_vm9, %v4901_v47  ;;  %4918 = vrot.lane.b32.xlu1 %v4764_v62, %s6011_s23  ;;  %4920 = vrot.lane.b32.xlu0 %v4774_v22, %s6011_s23  ;;  %v3779_v47 = vld [vmem:[#allocation3 + $0x38] sm:$0xf]  ;;  %v4083_v62 = vrot.slane %v4081_v23, 4  ;;  %v4087_v22 = vshll.u32 %v3928_v25, 16  ;;  %v4074_v28 = vor.u32 %v4073_v31, %v4069_v19 }
 0x3a7   : > { %v4650_v23 = vld [vmem:[#allocation3 + $0x44] sm:$0xf] }
 0x3a8   : > { %v4903_v1 = vpop.permute.xlu1 %4902  ;;  %v4905_v20 = vpop.permute.xlu0 %4904  ;;  %v4089_v35 = vrot.slane %v4087_v22, 5  ;;  %v4075_v51 = vrot.slane %v4074_v28, 4 }
 0x3a9   : > { %4974 = vst.msk [vmem:[#allocation4 + $0x4] sm:$0xf] %vm4972_vm9, %v4903_v1  ;;  %4975 = vst.msk [vmem:[#allocation4 + $0x8] sm:$0xf] %vm4972_vm9, %v4905_v20  ;;  %v3781_v20 = vld [vmem:[#allocation3 + $0x40] sm:$0xf] }
 0x3aa   : > { %4922 = vrot.lane.b32.xlu1 %v4784_v29, %s6011_s23  ;;  %5133 = vrot.lane.b32.xlu0 %v5073_v26, %s6012_s30  ;;  %v4065_v29 = vrot.slane %v4064_v7, 4  ;;  %v4084_v26 = vor.u32 %v4083_v62, %v4079_v16  ;;  %v4094_v32 = vor.u32 %v4093_v0, %v4089_v35  ;;  %v4795_v7 = vshrl.u32 %v4650_v23, 16 }
 0x3ab   : > { %v4369_v62 = vrot.slane %v7981_v56, 5 }
 0x3ac   : > { %v4907_v36 = vpop.permute.xlu1 %4906  ;;  %v5118_v42 = vpop.permute.xlu0 %5117 }
 0x3ad   : > { %4976 = vst.msk [vmem:[#allocation4 + $0xc] sm:$0xf] %vm4972_vm9, %v4907_v36 }
 0x3ae   : > { %5190 = vst.msk [vmem:[#allocation4] sm:$0xf] %vm5189_vm10, %v5118_v42  ;;  %5135 = vrot.lane.b32.xlu1 %v5076_v44, %s6012_s30  ;;  %5137 = vrot.lane.b32.xlu0 %v5079_v45, %s6012_s30  ;;  %v7950_v42 = vld [vmem:[#allocation3 + $0x48] sm:$0xf]  ;;  %v4070_v44 = vsel %vm6068_vm2, %v4065_v29, %v4069_v19  ;;  %v4085_v45 = vrot.slane %v4084_v26, 4 }
 0x3af   : > { %v4097_v24 = vshll.u32 %v7950_v42, 16 }
 0x3b0   : > { %v5120_v46 = vpop.permute.xlu1 %5119  ;;  %v5122_v41 = vpop.permute.xlu0 %5121 }
 0x3b1   : > { %5191 = vst.msk [vmem:[#allocation4 + $0x4] sm:$0xf] %vm5189_vm10, %v5120_v46  ;;  %5192 = vst.msk [vmem:[#allocation4 + $0x8] sm:$0xf] %vm5189_vm10, %v5122_v41  ;;  %v4288_v46 = vld [vmem:[#allocation3 + $0x40] sm:$0xf]  ;;  %v4080_v41 = vsel %vm6068_vm2, %v4075_v51, %v4079_v16 }
 0x3b2   : > { %5139 = vrot.lane.b32.xlu1 %v5082_v52, %s6012_s30  ;;  %3693 = vrot.lane.b32.xlu0 %v3637_v55, %s6004_s27  ;;  %v4090_v52 = vsel %vm6068_vm2, %v4085_v45, %v4089_v35  ;;  %v4095_v55 = vrot.slane %v4094_v32, 4  ;;  %v7967_v33 = vrot.slane %v4097_v24, 5  ;;  %v4805_v16 = vshrl.u32 %v4651_v58, 16  ;;  %v8005_v45 = vld [vmem:[#allocation3 + $0x50] sm:$0xf] }
 0x3b4   : > { %v5124_v53 = vpop.permute.xlu1 %5123  ;;  %v3678_v8 = vpop.permute.xlu0 %3677  ;;  %v4807_v29 = vrot.slane %v4805_v16, 4 }
 0x3b5   : > { %5193 = vst.msk [vmem:[#allocation4 + $0xc] sm:$0xf] %vm5189_vm10, %v5124_v53  ;;  %v4363_v53 = vrot.slane %v4288_v46, 5 }
 0x3b6   : > { %3746 = vst.msk [vmem:[#allocation4 + $0x10] sm:$0xf] %vm3741_vm1, %v3678_v8  ;;  %3695 = vrot.lane.b32.xlu1 %v3640_v34, %s6004_s27  ;;  %3697 = vrot.lane.b32.xlu0 %v3643_v54, %s6004_s27  ;;  %v4785_v8 = vshrl.u32 %v7870_v60, 16  ;;  %v4366_v34 = vrot.slane %v4289_v63, 5  ;;  %v4100_v54 = vsel %vm6068_vm2, %v4095_v55, %v7967_v33  ;;  %v5011_v55 = vld [vmem:[#allocation3 + $0x44] sm:$0xf] }
 0x3b7   : > { %v4365_v60 = vrot.slane %v4363_v53, 4  ;;  %v4364_v2 = vsel %vm6224_vm6, %v4362_v40, %v4363_v53  ;;  %v5012_v53 = vld [vmem:[#allocation3 + $0x48] sm:$0xf] }
 0x3b8   : > { %v3680_v4 = vpop.permute.xlu1 %3679  ;;  %v3682_v9 = vpop.permute.xlu0 %3681  ;;  %v5980_v11 = vld [vmem:[#allocation4] sm:$0xff]   ;;  %v5087_v40 = vrot.slane %v5012_v53, 5 }
 0x3b9   : > { %3747 = vst.msk [vmem:[#allocation4 + $0x14] sm:$0xf] %vm3741_vm1, %v3680_v4  ;;  %3748 = vst.msk [vmem:[#allocation4 + $0x18] sm:$0xf] %vm3741_vm1, %v3682_v9  ;;  %5911 = vmatprep.mubr.msk.bf16.mxu1 %vm5342_vm11, %v5980_v11  ;;  %v4368_v4 = vrot.slane %v4366_v34, 4  ;;  %v4787_v9 = vrot.slane %v4785_v8, 4  ;;  %v4367_v11 = vsel %vm6224_vm6, %v4365_v60, %v4366_v34 }
 0x3ba   : > { %3699 = vrot.lane.b32.xlu1 %v3646_v3, %s6004_s27  ;;  %3839 = vrot.lane.b32.xlu0 %v3779_v47, %s6006_s29  ;;  %v4791_v3 = vshll.u32 %v4650_v23, 16  ;;  %v4801_v47 = vshll.u32 %v4651_v58, 16  ;;  %v5084_v34 = vrot.slane %v5011_v55, 5  ;;  %v5083_v23 = vrot.slane %v5081_v18, 4  ;;  %v3567_v18 = vld [vmem:[#allocation3 + $0x44] sm:$0xf] }
 0x3bb   : > { %v4370_v19 = vsel %vm6224_vm6, %v4368_v4, %v4369_v62  ;;  %v4788_v31 = vor.u32 %v4787_v9, %v7885_v10  ;;  %v4504_v10 = vld [vmem:[#allocation3 + $0x44] sm:$0xf]  ;;  %v5089_v9 = vrot.slane %v5087_v40, 4 }
 0x3bc   : > { %v3684_v21 = vpop.permute.xlu1 %3683  ;;  %v3824_v48 = vpop.permute.xlu0 %3823  ;;  %v5981_v1 = vld [vmem:[#allocation4 + $0x8] sm:$0xff]  }
 0x3bd   : > { %3749 = vst.msk [vmem:[#allocation4 + $0x1c] sm:$0xf] %vm3741_vm1, %v3684_v21  ;;  %5912 = vmatmul.mubr.msk.bf16.vlgmr.msra.gmra.mxu1 %vm5342_vm11, %v5981_v1  ;;  %v4652_v21 = vld [vmem:[#allocation3 + $0x4c] sm:$0xf]  ;;  %v4797_v1 = vrot.slane %v4795_v7, 4 }
 0x3be   : > { %3892 = vst.msk [vmem:[#allocation4 + $0x10] sm:$0xf] %vm3887_vm4, %v3824_v48  ;;  %3841 = vrot.lane.b32.xlu1 %v3780_v15, %s6006_s29  ;;  %3843 = vrot.lane.b32.xlu0 %v3781_v20, %s6006_s29  ;;  %v4503_v48 = vld [vmem:[#allocation3 + $0x40] sm:$0xf]  ;;  %v4793_v15 = vrot.slane %v4791_v3, 5  ;;  %v4803_v20 = vrot.slane %v4801_v47, 5 }
 0x3bf   : > { %v4811_v26 = vshll.u32 %v4652_v21, 16  ;;  %v4815_v35 = vshrl.u32 %v4652_v21, 16  ;;  %v3568_v7 = vld [vmem:[#allocation3 + $0x48] sm:$0xf]  ;;  %v3647_v21 = vrot.slane %v3645_v30, 4 }
 0x3c0   : > { %v3826_v5 = vpop.permute.xlu1 %3825  ;;  %v3828_v36 = vpop.permute.xlu0 %3827  ;;  %v8057_v30 = vld [vmem:[#allocation3 + $0x50] sm:$0xf] }
 0x3c1   : > { %3893 = vst.msk [vmem:[#allocation4 + $0x14] sm:$0xf] %vm3887_vm4, %v3826_v5  ;;  %3894 = vst.msk [vmem:[#allocation4 + $0x18] sm:$0xf] %vm3887_vm4, %v3828_v36  ;;  %v4505_v5 = vld [vmem:[#allocation3 + $0x48] sm:$0xf] }
 0x3c2   : > { %3845 = vrot.lane.b32.xlu1 %v3782_v43, %s6006_s29  ;;  %4200 = vrot.lane.b32.xlu0 %v4070_v44, %s6008_s12  ;;  %v4789_v36 = vrot.slane %v4788_v31, 4  ;;  %v4798_v43 = vor.u32 %v4797_v1, %v4793_v15  ;;  %v4808_v44 = vor.u32 %v4807_v29, %v4803_v20  ;;  %v4813_v32 = vrot.slane %v4811_v26, 5 }
 0x3c3   : > { %v4817_v49 = vrot.slane %v4815_v35, 4 }
 0x3c4   : > { %v3830_v13 = vpop.permute.xlu1 %3829  ;;  %v4185_v17 = vpop.permute.xlu0 %4184  ;;  %v4799_v46 = vrot.slane %v4798_v43, 4 }
 0x3c5   : > { %3895 = vst.msk [vmem:[#allocation4 + $0x1c] sm:$0xf] %vm3887_vm4, %v3830_v13  ;;  %v4506_v13 = vld [vmem:[#allocation3 + $0x4c] sm:$0xf]  ;;  %v4818_v12 = vor.u32 %v4817_v49, %v4813_v32 }
 0x3c6   : > { %4253 = vst.msk [vmem:[#allocation4 + $0x10] sm:$0xf] %vm4248_vm5, %v4185_v17  ;;  %4202 = vrot.lane.b32.xlu1 %v4080_v41, %s6008_s12  ;;  %4204 = vrot.lane.b32.xlu0 %v4090_v52, %s6008_s12  ;;  %v4794_v17 = vsel %vm6068_vm2, %v4789_v36, %v4793_v15  ;;  %v4809_v41 = vrot.slane %v4808_v44, 4  ;;  %v4821_v52 = vshll.u32 %v8005_v45, 16  ;;  %v4804_v8 = vsel %vm6068_vm2, %v4799_v46, %v4803_v20  ;;  %v3930_v36 = vld [vmem:[#allocation3 + $0x4c] sm:$0xf] }
 0x3c7   : > { %v4101_v15 = vshrl.u32 %v7950_v42, 16  ;;  %v3931_v42 = vld [vmem:[#allocation3 + $0x50] sm:$0xf]  ;;  %v4111_v46 = vshrl.u32 %v3930_v36, 16 }
 0x3c8   : > { %v4187_v59 = vpop.permute.xlu1 %4186  ;;  %v4189_v14 = vpop.permute.xlu0 %4188  ;;  %v4117_v49 = vshll.u32 %v3931_v42, 16 }
 0x3c9   : > { %4254 = vst.msk [vmem:[#allocation4 + $0x14] sm:$0xf] %vm4248_vm5, %v4187_v59  ;;  %4255 = vst.msk [vmem:[#allocation4 + $0x18] sm:$0xf] %vm4248_vm5, %v4189_v14  ;;  %v4814_v59 = vsel %vm6068_vm2, %v4809_v41, %v4813_v32  ;;  %v8020_v14 = vrot.slane %v4821_v52, 5  ;;  %v4103_v43 = vrot.slane %v4101_v15, 4 }
 0x3ca   : > { %4206 = vrot.lane.b32.xlu1 %v4100_v54, %s6008_s12  ;;  %4417 = vrot.lane.b32.xlu0 %v4361_v61, %s6009_s15  ;;  %v5013_v54 = vld [vmem:[#allocation3 + $0x4c] sm:$0xf]  ;;  %v4819_v61 = vrot.slane %v4818_v12, 4  ;;  %v4119_v53 = vrot.slane %v4117_v49, 5 }
 0x3cb   : > { %v5090_v4 = vrot.slane %v5013_v54, 5 }
 0x3cc   : > { %v4191_v25 = vpop.permute.xlu1 %4190  ;;  %v4402_v50 = vpop.permute.xlu0 %4401 }
 0x3cd   : > { %4256 = vst.msk [vmem:[#allocation4 + $0x1c] sm:$0xf] %vm4248_vm5, %v4191_v25  ;;  %v4824_v25 = vsel %vm6068_vm2, %v4819_v61, %v8020_v14  ;;  %v5091_v16 = vsel %vm6224_vm6, %v5089_v9, %v5090_v4  ;;  %v5092_v31 = vrot.slane %v5090_v4, 4  ;;  %v4113_v61 = vrot.slane %v4111_v46, 4  ;;  %v8118_v46 = vld [vmem:[#allocation3 + $0x58] sm:$0xf] }
 0x3ce   : > { %4470 = vst.msk [vmem:[#allocation4 + $0x10] sm:$0xf] %vm4465_vm7, %v4402_v50  ;;  %4419 = vrot.lane.b32.xlu1 %v4364_v2, %s6009_s15  ;;  %4421 = vrot.lane.b32.xlu0 %v4367_v11, %s6009_s15  ;;  %v5085_v50 = vsel %vm6224_vm6, %v5083_v23, %v5084_v34  ;;  %v5086_v2 = vrot.slane %v5084_v34, 4 }
 0x3d0   : > { %v4404_v22 = vpop.permute.xlu1 %4403  ;;  %v4406_v37 = vpop.permute.xlu0 %4405  ;;  %v5088_v47 = vsel %vm6224_vm6, %v5086_v2, %v5087_v40 }
 0x3d1   : > { %4471 = vst.msk [vmem:[#allocation4 + $0x14] sm:$0xf] %vm4465_vm7, %v4404_v22  ;;  %4472 = vst.msk [vmem:[#allocation4 + $0x18] sm:$0xf] %vm4465_vm7, %v4406_v37  ;;  %v5093_v22 = vrot.slane %v8035_v38, 5  ;;  %v3648_v37 = vrot.slane %v3567_v18, 5 }
 0x3d2   : > { %4423 = vrot.lane.b32.xlu1 %v4370_v19, %s6009_s15  ;;  %4563 = vrot.lane.b32.xlu0 %v4503_v48, %s6010_s16  ;;  %v3569_v19 = vld [vmem:[#allocation3 + $0x4c] sm:$0xf]  ;;  %v3651_v48 = vrot.slane %v3568_v7, 5  ;;  %v3786_v7 = vld [vmem:[#allocation3 + $0x54] sm:$0xf] }
 0x3d3   : > { %v5094_v29 = vsel %vm6224_vm6, %v5092_v31, %v5093_v22  ;;  %v3649_v26 = vsel %vm6224_vm6, %v3647_v21, %v3648_v37  ;;  %v3650_v35 = vrot.slane %v3648_v37, 4  ;;  %v3654_v6 = vrot.slane %v3569_v19, 5  ;;  %v4291_v19 = vld [vmem:[#allocation3 + $0x4c] sm:$0xf]  ;;  %v8170_v38 = vld [vmem:[#allocation3 + $0x60] sm:$0xf] }
 0x3d4   : > { %v4408_v0 = vpop.permute.xlu1 %4407  ;;  %v4548_v28 = vpop.permute.xlu0 %4547 }
 0x3d5   : > { %4473 = vst.msk [vmem:[#allocation4 + $0x1c] sm:$0xf] %vm4465_vm7, %v4408_v0  ;;  %v3653_v0 = vrot.slane %v3651_v48, 4  ;;  %v3652_v44 = vsel %vm6224_vm6, %v3650_v35, %v3651_v48  ;;  %v4372_v35 = vrot.slane %v4291_v19, 5 }
 0x3d6   : > { %4616 = vst.msk [vmem:[#allocation4 + $0x10] sm:$0xf] %vm4611_vm8, %v4548_v28  ;;  %4565 = vrot.lane.b32.xlu1 %v4504_v10, %s6010_s16  ;;  %4567 = vrot.lane.b32.xlu0 %v4505_v5, %s6010_s16  ;;  %v3657_v5 = vrot.slane %v8057_v30, 5 }
 0x3d7   : > { %v3655_v32 = vsel %vm6224_vm6, %v3653_v0, %v3654_v6  ;;  %v4371_v0 = vrot.slane %v4369_v62, 4  ;;  %v4374_v56 = vrot.slane %v4372_v35, 4  ;;  %v4655_v62 = vld [vmem:[#allocation3 + $0x58] sm:$0xf] }
 0x3d8   : > { %v4550_v51 = vpop.permute.xlu1 %4549  ;;  %v4552_v24 = vpop.permute.xlu0 %4551 }
 0x3d9   : > { %4617 = vst.msk [vmem:[#allocation4 + $0x14] sm:$0xf] %vm4611_vm8, %v4550_v51  ;;  %4618 = vst.msk [vmem:[#allocation4 + $0x18] sm:$0xf] %vm4611_vm8, %v4552_v24  ;;  %v4121_v51 = vshrl.u32 %v3931_v42, 16  ;;  %v3656_v24 = vrot.slane %v3654_v6, 4 }
 0x3da   : > { %4569 = vrot.lane.b32.xlu1 %v4506_v13, %s6010_s16  ;;  %4924 = vrot.lane.b32.xlu0 %v4794_v17, %s6011_s23  ;;  %v3932_v13 = vld [vmem:[#allocation3 + $0x54] sm:$0xf]  ;;  %v4107_v17 = vshll.u32 %v3930_v36, 16 }
 0x3db   : > { %v3658_v55 = vsel %vm6224_vm6, %v3656_v24, %v3657_v5  ;;  %v4131_v34 = vshrl.u32 %v3932_v13, 16  ;;  %v4293_v6 = vld [vmem:[#allocation3 + $0x54] sm:$0xf] }
 0x3dc   : > { %v4554_v63 = vpop.permute.xlu1 %4553  ;;  %v4909_v39 = vpop.permute.xlu0 %4908  ;;  %v4109_v54 = vrot.slane %v4107_v17, 5  ;;  %v4378_v49 = vrot.slane %v4293_v6, 5 }
 0x3dd   : > { %4619 = vst.msk [vmem:[#allocation4 + $0x1c] sm:$0xf] %vm4611_vm8, %v4554_v63  ;;  %v4104_v63 = vor.u32 %v4103_v43, %v7967_v33  ;;  %v3784_v33 = vld [vmem:[#allocation3 + $0x4c] sm:$0xf]  ;;  %v4133_v4 = vrot.slane %v4131_v34, 4 }
 0x3de   : > { %4977 = vst.msk [vmem:[#allocation4 + $0x10] sm:$0xf] %vm4972_vm9, %v4909_v39  ;;  %4926 = vrot.lane.b32.xlu1 %v4804_v8, %s6011_s23  ;;  %4928 = vrot.lane.b32.xlu0 %v4814_v59, %s6011_s23  ;;  %v3783_v39 = vld [vmem:[#allocation3 + $0x48] sm:$0xf]  ;;  %v4123_v8 = vrot.slane %v4121_v51, 4  ;;  %v4127_v59 = vshll.u32 %v3932_v13, 16  ;;  %v4114_v18 = vor.u32 %v4113_v61, %v4109_v54 }
 0x3df   : > { %v4654_v51 = vld [vmem:[#allocation3 + $0x54] sm:$0xf] }
 0x3e0   : > { %v4911_v58 = vpop.permute.xlu1 %4910  ;;  %v4913_v60 = vpop.permute.xlu0 %4912  ;;  %v4129_v2 = vrot.slane %v4127_v59, 5  ;;  %v4115_v31 = vrot.slane %v4114_v18, 4  ;;  %v4508_v18 = vld [vmem:[#allocation3 + $0x54] sm:$0xf] }
 0x3e1   : > { %4978 = vst.msk [vmem:[#allocation4 + $0x14] sm:$0xf] %vm4972_vm9, %v4911_v58  ;;  %4979 = vst.msk [vmem:[#allocation4 + $0x18] sm:$0xf] %vm4972_vm9, %v4913_v60  ;;  %v3785_v60 = vld [vmem:[#allocation3 + $0x50] sm:$0xf] }
 0x3e2   : > { %4930 = vrot.lane.b32.xlu1 %v4824_v25, %s6011_s23  ;;  %5141 = vrot.lane.b32.xlu0 %v5085_v50, %s6012_s30  ;;  %v4105_v25 = vrot.slane %v4104_v63, 4  ;;  %v4124_v50 = vor.u32 %v4123_v8, %v4119_v53  ;;  %v4134_v37 = vor.u32 %v4133_v4, %v4129_v2  ;;  %v4380_v63 = vrot.slane %v4378_v49, 4 }
 0x3e3   : > { %v4381_v8 = vrot.slane %v8118_v46, 5 }
 0x3e4   : > { %v4915_v3 = vpop.permute.xlu1 %4914  ;;  %v5126_v11 = vpop.permute.xlu0 %5125 }
 0x3e5   : > { %4980 = vst.msk [vmem:[#allocation4 + $0x1c] sm:$0xf] %vm4972_vm9, %v4915_v3 }
 0x3e6   : > { %5194 = vst.msk [vmem:[#allocation4 + $0x10] sm:$0xf] %vm5189_vm10, %v5126_v11  ;;  %5143 = vrot.lane.b32.xlu1 %v5088_v47, %s6012_s30  ;;  %5145 = vrot.lane.b32.xlu0 %v5091_v16, %s6012_s30  ;;  %v8085_v11 = vld [vmem:[#allocation3 + $0x58] sm:$0xf]  ;;  %v4110_v47 = vsel %vm6068_vm2, %v4105_v25, %v4109_v54  ;;  %v4125_v16 = vrot.slane %v4124_v50, 4 }
 0x3e7   : > { %v4137_v21 = vshll.u32 %v8085_v11, 16 }
 0x3e8   : > { %v5128_v1 = vpop.permute.xlu1 %5127  ;;  %v5130_v20 = vpop.permute.xlu0 %5129 }
 0x3e9   : > { %5195 = vst.msk [vmem:[#allocation4 + $0x14] sm:$0xf] %vm5189_vm10, %v5128_v1  ;;  %5196 = vst.msk [vmem:[#allocation4 + $0x18] sm:$0xf] %vm5189_vm10, %v5130_v20  ;;  %v4292_v1 = vld [vmem:[#allocation3 + $0x50] sm:$0xf]  ;;  %v4120_v20 = vsel %vm6068_vm2, %v4115_v31, %v4119_v53 }
 0x3ea   : > { %5147 = vrot.lane.b32.xlu1 %v5094_v29, %s6012_s30  ;;  %3701 = vrot.lane.b32.xlu0 %v3649_v26, %s6004_s27  ;;  %v4130_v29 = vsel %vm6068_vm2, %v4125_v16, %v4129_v2  ;;  %v4135_v26 = vrot.slane %v4134_v37, 4  ;;  %v8102_v42 = vrot.slane %v4137_v21, 5  ;;  %v4845_v53 = vshrl.u32 %v4655_v62, 16  ;;  %v8140_v16 = vld [vmem:[#allocation3 + $0x60] sm:$0xf] }
 0x3ec   : > { %v5132_v28 = vpop.permute.xlu1 %5131  ;;  %v3686_v10 = vpop.permute.xlu0 %3685  ;;  %v4847_v25 = vrot.slane %v4845_v53, 4 }
 0x3ed   : > { %5197 = vst.msk [vmem:[#allocation4 + $0x1c] sm:$0xf] %vm5189_vm10, %v5132_v28  ;;  %v4375_v28 = vrot.slane %v4292_v1, 5 }
 0x3ee   : > { %3750 = vst.msk [vmem:[#allocation4 + $0x20] sm:$0xf] %vm3741_vm1, %v3686_v10  ;;  %3703 = vrot.lane.b32.xlu1 %v3652_v44, %s6004_s27  ;;  %3705 = vrot.lane.b32.xlu0 %v3655_v32, %s6004_s27  ;;  %v4825_v10 = vshrl.u32 %v8005_v45, 16  ;;  %v4140_v44 = vsel %vm6068_vm2, %v4135_v26, %v8102_v42  ;;  %v4373_v32 = vsel %vm6224_vm6, %v4371_v0, %v4372_v35  ;;  %v5015_v26 = vld [vmem:[#allocation3 + $0x54] sm:$0xf] }
 0x3ef   : > { %v4377_v45 = vrot.slane %v4375_v28, 4  ;;  %v4376_v17 = vsel %vm6224_vm6, %v4374_v56, %v4375_v28  ;;  %v5016_v28 = vld [vmem:[#allocation3 + $0x58] sm:$0xf] }
 0x3f0   : > { %v3688_v41 = vpop.permute.xlu1 %3687  ;;  %v3690_v52 = vpop.permute.xlu0 %3689  ;;  %v5982_v12 = vld [vmem:[#allocation4 + $0x10] sm:$0xff]   ;;  %v5099_v56 = vrot.slane %v5016_v28, 5 }
 0x3f1   : > { %3751 = vst.msk [vmem:[#allocation4 + $0x24] sm:$0xf] %vm3741_vm1, %v3688_v41  ;;  %3752 = vst.msk [vmem:[#allocation4 + $0x28] sm:$0xf] %vm3741_vm1, %v3690_v52  ;;  %5915 = vmatprep.mubr.msk.bf16.mxu1 %vm5342_vm11, %v5982_v12  ;;  %v4827_v41 = vrot.slane %v4825_v10, 4  ;;  %v4831_v52 = vshll.u32 %v4654_v51, 16  ;;  %v4379_v12 = vsel %vm6224_vm6, %v4377_v45, %v4378_v49 }
 0x3f2   : > { %3707 = vrot.lane.b32.xlu1 %v3658_v55, %s6004_s27  ;;  %3847 = vrot.lane.b32.xlu0 %v3783_v39, %s6006_s29  ;;  %v4835_v55 = vshrl.u32 %v4654_v51, 16  ;;  %v4841_v39 = vshll.u32 %v4655_v62, 16  ;;  %v5095_v51 = vrot.slane %v5093_v22, 4  ;;  %v3571_v22 = vld [vmem:[#allocation3 + $0x54] sm:$0xf] }
 0x3f3   : > { %v4828_v54 = vor.u32 %v4827_v41, %v8020_v14  ;;  %v4833_v61 = vrot.slane %v4831_v52, 5  ;;  %v5101_v52 = vrot.slane %v5099_v56, 4 }
 0x3f4   : > { %v3692_v23 = vpop.permute.xlu1 %3691  ;;  %v3832_v40 = vpop.permute.xlu0 %3831  ;;  %v5983_v58 = vld [vmem:[#allocation4 + $0x18] sm:$0xff]  }
 0x3f5   : > { %3753 = vst.msk [vmem:[#allocation4 + $0x2c] sm:$0xf] %vm3741_vm1, %v3692_v23  ;;  %5916 = vmatmul.mubr.msk.bf16.gmra.mxu1 %vm5342_vm11, %v5983_v58  ;;  %v4656_v23 = vld [vmem:[#allocation3 + $0x5c] sm:$0xf]  ;;  %v4837_v58 = vrot.slane %v4835_v55, 4 }
 0x3f6   : > { %3896 = vst.msk [vmem:[#allocation4 + $0x20] sm:$0xf] %vm3887_vm4, %v3832_v40  ;;  %3849 = vrot.lane.b32.xlu1 %v3784_v33, %s6006_s29  ;;  %3851 = vrot.lane.b32.xlu0 %v3785_v60, %s6006_s29  ;;  %v4382_v40 = vsel %vm6224_vm6, %v4380_v63, %v4381_v8  ;;  %v4507_v33 = vld [vmem:[#allocation3 + $0x50] sm:$0xf]  ;;  %v4843_v60 = vrot.slane %v4841_v39, 5  ;;  %v4851_v14 = vshll.u32 %v4656_v23, 16 }
 0x3f7   : > { %v4855_v50 = vshrl.u32 %v4656_v23, 16  ;;  %v3572_v63 = vld [vmem:[#allocation3 + $0x58] sm:$0xf]  ;;  %v3659_v23 = vrot.slane %v3657_v5, 4 }
 0x3f8   : > { %v3834_v9 = vpop.permute.xlu1 %3833  ;;  %v3836_v3 = vpop.permute.xlu0 %3835  ;;  %v4853_v37 = vrot.slane %v4851_v14, 5 }
 0x3f9   : > { %3897 = vst.msk [vmem:[#allocation4 + $0x24] sm:$0xf] %vm3887_vm4, %v3834_v9  ;;  %3898 = vst.msk [vmem:[#allocation4 + $0x28] sm:$0xf] %vm3887_vm4, %v3836_v3  ;;  %v4509_v9 = vld [vmem:[#allocation3 + $0x58] sm:$0xf] }
 0x3fa   : > { %3853 = vrot.lane.b32.xlu1 %v3786_v7, %s6006_s29  ;;  %4208 = vrot.lane.b32.xlu0 %v4110_v47, %s6008_s12  ;;  %v4829_v3 = vrot.slane %v4828_v54, 4  ;;  %v4838_v7 = vor.u32 %v4837_v58, %v4833_v61  ;;  %v4848_v47 = vor.u32 %v4847_v25, %v4843_v60  ;;  %v4857_v19 = vrot.slane %v4855_v50, 4  ;;  %v3573_v54 = vld [vmem:[#allocation3 + $0x5c] sm:$0xf] }
 0x3fb   : > { %v3666_v30 = vrot.slane %v3573_v54, 5 }
 0x3fc   : > { %v3838_v48 = vpop.permute.xlu1 %3837  ;;  %v4193_v15 = vpop.permute.xlu0 %4192  ;;  %v4839_v1 = vrot.slane %v4838_v7, 4  ;;  %v4858_v35 = vor.u32 %v4857_v19, %v4853_v37 }
 0x3fd   : > { %3899 = vst.msk [vmem:[#allocation4 + $0x2c] sm:$0xf] %vm3887_vm4, %v3838_v48  ;;  %v4510_v48 = vld [vmem:[#allocation3 + $0x5c] sm:$0xf] }
 0x3fe   : > { %4257 = vst.msk [vmem:[#allocation4 + $0x20] sm:$0xf] %vm4248_vm5, %v4193_v15  ;;  %4210 = vrot.lane.b32.xlu1 %v4120_v20, %s6008_s12  ;;  %4212 = vrot.lane.b32.xlu0 %v4130_v29, %s6008_s12  ;;  %v4834_v15 = vsel %vm6068_vm2, %v4829_v3, %v4833_v61  ;;  %v4849_v20 = vrot.slane %v4848_v47, 4  ;;  %v4861_v29 = vshll.u32 %v8140_v16, 16  ;;  %v4844_v10 = vsel %vm6068_vm2, %v4839_v1, %v4843_v60 }
 0x3ff   : > { %v4859_v49 = vrot.slane %v4858_v35, 4 }
 0x400   : > { %v4195_v36 = vpop.permute.xlu1 %4194  ;;  %v4197_v43 = vpop.permute.xlu0 %4196 }
 0x401   : > { %4258 = vst.msk [vmem:[#allocation4 + $0x24] sm:$0xf] %vm4248_vm5, %v4195_v36  ;;  %4259 = vst.msk [vmem:[#allocation4 + $0x28] sm:$0xf] %vm4248_vm5, %v4197_v43  ;;  %v4854_v36 = vsel %vm6068_vm2, %v4849_v20, %v4853_v37  ;;  %v8155_v43 = vrot.slane %v4861_v29, 5 }
 0x402   : > { %4214 = vrot.lane.b32.xlu1 %v4140_v44, %s6008_s12  ;;  %4425 = vrot.lane.b32.xlu0 %v4373_v32, %s6009_s15  ;;  %v5096_v44 = vrot.slane %v5015_v26, 5  ;;  %v5017_v32 = vld [vmem:[#allocation3 + $0x5c] sm:$0xf]  ;;  %v3787_v20 = vld [vmem:[#allocation3 + $0x58] sm:$0xf] }
 0x403   : > { %v5102_v41 = vrot.slane %v5017_v32, 5  ;;  %v3936_v26 = vld [vmem:[#allocation3 + $0x64] sm:$0xf] }
 0x404   : > { %v4199_v24 = vpop.permute.xlu1 %4198  ;;  %v4410_v13 = vpop.permute.xlu0 %4409  ;;  %v4167_v32 = vshll.u32 %v3936_v26, 16 }
 0x405   : > { %4260 = vst.msk [vmem:[#allocation4 + $0x2c] sm:$0xf] %vm4248_vm5, %v4199_v24  ;;  %v4864_v24 = vsel %vm6068_vm2, %v4859_v49, %v8155_v43  ;;  %v5103_v53 = vsel %vm6224_vm6, %v5101_v52, %v5102_v41  ;;  %v5104_v61 = vrot.slane %v5102_v41, 4  ;;  %v4171_v49 = vshrl.u32 %v3936_v26, 16 }
 0x406   : > { %4474 = vst.msk [vmem:[#allocation4 + $0x20] sm:$0xf] %vm4465_vm7, %v4410_v13  ;;  %4427 = vrot.lane.b32.xlu1 %v4376_v17, %s6009_s15  ;;  %4429 = vrot.lane.b32.xlu0 %v4379_v12, %s6009_s15  ;;  %v5097_v13 = vsel %vm6224_vm6, %v5095_v51, %v5096_v44  ;;  %v5098_v17 = vrot.slane %v5096_v44, 4  ;;  %v3789_v51 = vld [vmem:[#allocation3 + $0x60] sm:$0xf] }
 0x407   : > { %v4173_v41 = vrot.slane %v4171_v49, 4  ;;  %v4513_v49 = vld [vmem:[#allocation3 + $0x68] sm:$0xf] }
 0x408   : > { %v4412_v59 = vpop.permute.xlu1 %4411  ;;  %v4414_v34 = vpop.permute.xlu0 %4413  ;;  %v5100_v39 = vsel %vm6224_vm6, %v5098_v17, %v5099_v56  ;;  %v4169_v17 = vrot.slane %v4167_v32, 5  ;;  %v4512_v32 = vld [vmem:[#allocation3 + $0x64] sm:$0xf] }
 0x409   : > { %4475 = vst.msk [vmem:[#allocation4 + $0x24] sm:$0xf] %vm4465_vm7, %v4412_v59  ;;  %4476 = vst.msk [vmem:[#allocation4 + $0x28] sm:$0xf] %vm4465_vm7, %v4414_v34  ;;  %v5105_v59 = vrot.slane %v8170_v38, 5  ;;  %v3660_v34 = vrot.slane %v3571_v22, 5 }
 0x40a   : > { %4431 = vrot.lane.b32.xlu1 %v4382_v40, %s6009_s15  ;;  %4571 = vrot.lane.b32.xlu0 %v4507_v33, %s6010_s16  ;;  %v3663_v40 = vrot.slane %v3572_v63, 5  ;;  %v4141_v33 = vshrl.u32 %v8085_v11, 16  ;;  %v3790_v22 = vld [vmem:[#allocation3 + $0x64] sm:$0x7]  ;;  %v4174_v54 = vor.u32 %v4173_v41, %v4169_v17 }
 0x40b   : > { %v5106_v25 = vsel %vm6224_vm6, %v5104_v61, %v5105_v59  ;;  %v3661_v14 = vsel %vm6224_vm6, %v3659_v23, %v3660_v34  ;;  %v3662_v50 = vrot.slane %v3660_v34, 4 }
 0x40c   : > { %v4416_v2 = vpop.permute.xlu1 %4415  ;;  %v4556_v4 = vpop.permute.xlu0 %4555  ;;  %v3665_v5 = vrot.slane %v3663_v40, 4  ;;  %v4143_v7 = vrot.slane %v4141_v33, 4  ;;  %v4297_v33 = vld [vmem:[#allocation3 + $0x64] sm:$0xf] }
 0x40d   : > { %4477 = vst.msk [vmem:[#allocation4 + $0x2c] sm:$0xf] %vm4465_vm7, %v4416_v2 }
 0x40e   : > { %4620 = vst.msk [vmem:[#allocation4 + $0x20] sm:$0xf] %vm4611_vm8, %v4556_v4  ;;  %4573 = vrot.lane.b32.xlu1 %v4508_v18, %s6010_s16  ;;  %4575 = vrot.lane.b32.xlu0 %v4509_v9, %s6010_s16  ;;  %v3934_v4 = vld [vmem:[#allocation3 + $0x5c] sm:$0xf]  ;;  %v3935_v18 = vld [vmem:[#allocation3 + $0x60] sm:$0xf]  ;;  %v3664_v9 = vsel %vm6224_vm6, %v3662_v50, %v3663_v40  ;;  %v3667_v3 = vsel %vm6224_vm6, %v3665_v5, %v3666_v30 }
 0x40f   : > { %v4161_v47 = vshrl.u32 %v3935_v18, 16  ;;  %v4147_v37 = vshll.u32 %v3934_v4, 16  ;;  %v4151_v19 = vshrl.u32 %v3934_v4, 16  ;;  %v4144_v29 = vor.u32 %v4143_v7, %v8102_v42  ;;  %v3788_v42 = vld [vmem:[#allocation3 + $0x5c] sm:$0xf] }
 0x410   : > { %v4558_v31 = vpop.permute.xlu1 %4557  ;;  %v4560_v21 = vpop.permute.xlu0 %4559  ;;  %v4175_v50 = vrot.slane %v4174_v54, 4  ;;  %v4390_v5 = vrot.slane %v4297_v33, 5  ;;  %v4658_v4 = vld [vmem:[#allocation3 + $0x64] sm:$0xf] }
 0x411   : > { %4621 = vst.msk [vmem:[#allocation4 + $0x24] sm:$0xf] %vm4611_vm8, %v4558_v31  ;;  %4622 = vst.msk [vmem:[#allocation4 + $0x28] sm:$0xf] %vm4611_vm8, %v4560_v21  ;;  %v4157_v31 = vshll.u32 %v3935_v18, 16  ;;  %v4163_v35 = vrot.slane %v4161_v47, 4 }
 0x412   : > { %4577 = vrot.lane.b32.xlu1 %v4510_v48, %s6010_s16  ;;  %4932 = vrot.lane.b32.xlu0 %v4834_v15, %s6011_s23  ;;  %v3668_v15 = vrot.slane %v3666_v30, 4  ;;  %v4145_v56 = vrot.slane %v4144_v29, 4  ;;  %v4871_v7 = vshll.u32 %v4658_v4, 16 }
 0x413   : > { %v4159_v28 = vrot.slane %v4157_v31, 5 }
 0x414   : > { %v4562_v6 = vpop.permute.xlu1 %4561  ;;  %v4917_v0 = vpop.permute.xlu0 %4916 }
 0x415   : > { %4623 = vst.msk [vmem:[#allocation4 + $0x2c] sm:$0xf] %vm4611_vm8, %v4562_v6  ;;  %v4149_v6 = vrot.slane %v4147_v37, 5  ;;  %v4875_v37 = vshrl.u32 %v4658_v4, 16 }
 0x416   : > { %4981 = vst.msk [vmem:[#allocation4 + $0x20] sm:$0xf] %vm4972_vm9, %v4917_v0  ;;  %4934 = vrot.lane.b32.xlu1 %v4844_v10, %s6011_s23  ;;  %4936 = vrot.lane.b32.xlu0 %v4854_v36, %s6011_s23  ;;  %v4153_v0 = vrot.slane %v4151_v19, 4 }
 0x417   : > { %v4150_v52 = vsel %vm6068_vm2, %v4145_v56, %v4149_v6  ;;  %v4877_v26 = vrot.slane %v4875_v37, 4 }
 0x418   : > { %v4919_v62 = vpop.permute.xlu1 %4918  ;;  %v4921_v45 = vpop.permute.xlu0 %4920 }
 0x419   : > { %4982 = vst.msk [vmem:[#allocation4 + $0x24] sm:$0xf] %vm4972_vm9, %v4919_v62  ;;  %4983 = vst.msk [vmem:[#allocation4 + $0x28] sm:$0xf] %vm4972_vm9, %v4921_v45  ;;  %v4164_v62 = vor.u32 %v4163_v35, %v4159_v28  ;;  %v4154_v45 = vor.u32 %v4153_v0, %v4149_v6  ;;  %v4660_v6 = vld [vmem:[#allocation3 + $0x6c] sm:$0xf] }
 0x41a   : > { %4938 = vrot.lane.b32.xlu1 %v4864_v24, %s6011_s23  ;;  %5149 = vrot.lane.b32.xlu0 %v5097_v13, %s6012_s30 }
 0x41b   : > { %v4155_v63 = vrot.slane %v4154_v45, 4 }
 0x41c   : > { %v4923_v55 = vpop.permute.xlu1 %4922  ;;  %v5134_v12 = vpop.permute.xlu0 %5133 }
 0x41d   : > { %4984 = vst.msk [vmem:[#allocation4 + $0x2c] sm:$0xf] %vm4972_vm9, %v4923_v55  ;;  %v4165_v55 = vrot.slane %v4164_v62, 4  ;;  %v4160_v61 = vsel %vm6068_vm2, %v4155_v63, %v4159_v28 }
 0x41e   : > { %5198 = vst.msk [vmem:[#allocation4 + $0x20] sm:$0xf] %vm5189_vm10, %v5134_v12  ;;  %5151 = vrot.lane.b32.xlu1 %v5100_v39, %s6012_s30  ;;  %5153 = vrot.lane.b32.xlu0 %v5103_v53, %s6012_s30  ;;  %v4295_v12 = vld [vmem:[#allocation3 + $0x5c] sm:$0xf]  ;;  %v4296_v39 = vld [vmem:[#allocation3 + $0x60] sm:$0xf] }
 0x41f   : > { %v4170_v23 = vsel %vm6068_vm2, %v4165_v55, %v4169_v17  ;;  %v4384_v40 = vrot.slane %v4295_v12, 5  ;;  %v5020_v55 = vld [vmem:[#allocation3 + $0x68] sm:$0xf] }
 0x420   : > { %v5136_v58 = vpop.permute.xlu1 %5135  ;;  %v5138_v60 = vpop.permute.xlu0 %5137 }
 0x421   : > { %5199 = vst.msk [vmem:[#allocation4 + $0x24] sm:$0xf] %vm5189_vm10, %v5136_v58  ;;  %5200 = vst.msk [vmem:[#allocation4 + $0x28] sm:$0xf] %vm5189_vm10, %v5138_v60  ;;  %v4387_v58 = vrot.slane %v4296_v39, 5  ;;  %v4383_v60 = vrot.slane %v4381_v8, 4 }
 0x422   : > { %5155 = vrot.lane.b32.xlu1 %v5106_v25, %s6012_s30  ;;  %3709 = vrot.lane.b32.xlu0 %v3661_v14, %s6004_s27  ;;  %v4386_v46 = vrot.slane %v4384_v40, 4  ;;  %v4659_v8 = vld [vmem:[#allocation3 + $0x68] sm:$0xf] }
 0x423   : > { %v4389_v30 = vrot.slane %v4387_v58, 4  ;;  %v4881_v19 = vshll.u32 %v4659_v8, 16  ;;  %v4885_v31 = vshrl.u32 %v4659_v8, 16 }
 0x424   : > { %v5140_v11 = vpop.permute.xlu1 %5139  ;;  %v3694_v2 = vpop.permute.xlu0 %3693 }
 0x425   : > { %5201 = vst.msk [vmem:[#allocation4 + $0x2c] sm:$0xf] %vm5189_vm10, %v5140_v11  ;;  %v4865_v11 = vshrl.u32 %v8140_v16, 16  ;;  %v4391_v16 = vsel %vm6224_vm6, %v4389_v30, %v4390_v5  ;;  %v4883_v35 = vrot.slane %v4881_v19, 5  ;;  %v4887_v0 = vrot.slane %v4885_v31, 4 }
 0x426   : > { %3754 = vst.msk [vmem:[#allocation4 + $0x30] sm:$0xf] %vm3741_vm1, %v3694_v2  ;;  %3711 = vrot.lane.b32.xlu1 %v3664_v9, %s6004_s27  ;;  %3713 = vrot.lane.b32.xlu0 %v3667_v3, %s6004_s27  ;;  %v4385_v2 = vsel %vm6224_vm6, %v4383_v60, %v4384_v40  ;;  %v4388_v3 = vsel %vm6224_vm6, %v4386_v46, %v4387_v58  ;;  %v5021_v40 = vld [vmem:[#allocation3 + $0x6c] sm:$0xf] }
 0x427   : > { %v4867_v47 = vrot.slane %v4865_v11, 4  ;;  %v5114_v38 = vrot.slane %v5021_v40, 5 }
 0x428   : > { %v3696_v21 = vpop.permute.xlu1 %3695  ;;  %v3698_v48 = vpop.permute.xlu0 %3697  ;;  %v5984_v1 = vld [vmem:[#allocation4 + $0x20] sm:$0xff]  }
 0x429   : > { %3755 = vst.msk [vmem:[#allocation4 + $0x34] sm:$0xf] %vm3741_vm1, %v3696_v21  ;;  %3756 = vst.msk [vmem:[#allocation4 + $0x38] sm:$0xf] %vm3741_vm1, %v3698_v48  ;;  %5919 = vmatprep.mubr.msk.bf16.mxu1 %vm5342_vm11, %v5984_v1  ;;  %v4511_v1 = vld [vmem:[#allocation3 + $0x60] sm:$0xf]  ;;  %v4868_v29 = vor.u32 %v4867_v47, %v8155_v43 }
 0x42a   : > { %3715 = vrot.lane.b32.xlu1 %v3668_v15, %s6004_s27  ;;  %3855 = vrot.lane.b32.xlu0 %v3787_v20, %s6006_s29  ;;  %v4392_v15 = vrot.slane %v4390_v5, 4  ;;  %v4873_v20 = vrot.slane %v4871_v7, 5  ;;  %v5116_v4 = vrot.slane %v5114_v38, 4 }
 0x42c   : > { %v3700_v10 = vpop.permute.xlu1 %3699  ;;  %v3840_v36 = vpop.permute.xlu0 %3839  ;;  %v5985_v44 = vld [vmem:[#allocation4 + $0x28] sm:$0xff]   ;;  %v4878_v43 = vor.u32 %v4877_v26, %v4873_v20 }
 0x42d   : > { %3757 = vst.msk [vmem:[#allocation4 + $0x3c] sm:$0xf] %vm3741_vm1, %v3700_v10  ;;  %5920 = vmatmul.mubr.msk.bf16.gmra.mxu1 %vm5342_vm11, %v5985_v44  ;;  %v4895_v44 = vshrl.u32 %v4660_v6, 16 }
 0x42e   : > { %3900 = vst.msk [vmem:[#allocation4 + $0x30] sm:$0xf] %vm3887_vm4, %v3840_v36  ;;  %3857 = vrot.lane.b32.xlu1 %v3788_v42, %s6006_s29  ;;  %3859 = vrot.lane.b32.xlu0 %v3789_v51, %s6006_s29  ;;  %v4891_v36 = vshll.u32 %v4660_v6, 16  ;;  %v4869_v42 = vrot.slane %v4868_v29, 4  ;;  %v4888_v51 = vor.u32 %v4887_v0, %v4883_v35  ;;  %v4879_v41 = vrot.slane %v4878_v43, 4 }
 0x42f   : > { %v8309_v6 = vld [vmem:[%s8420_s4] ss:$0 sm:$0xff] }
 0x430   : > { %v3842_v24 = vpop.permute.xlu1 %3841  ;;  %v3844_v13 = vpop.permute.xlu0 %3843  ;;  %v4893_v45 = vrot.slane %v4891_v36, 5  ;;  %v4874_v17 = vsel %vm6068_vm2, %v4869_v42, %v4873_v20 }
 0x431   : > { %3901 = vst.msk [vmem:[#allocation4 + $0x34] sm:$0xf] %vm3887_vm4, %v3842_v24  ;;  %3902 = vst.msk [vmem:[#allocation4 + $0x38] sm:$0xf] %vm3887_vm4, %v3844_v13  ;;  %v4897_v24 = vrot.slane %v4895_v44, 4 }
 0x432   : > { %3861 = vrot.lane.b32.xlu1 %v3790_v22, %s6006_s29  ;;  %4216 = vrot.lane.b32.xlu0 %v4150_v52, %s6008_s12  ;;  %v4514_v13 = vld [vmem:[#allocation3 + $0x6c] sm:$0x7]  ;;  %v4889_v22 = vrot.slane %v4888_v51, 4  ;;  %v5019_v52 = vld [vmem:[#allocation3 + $0x64] sm:$0xf] }
 0x433   : > { %v4898_v39 = vor.u32 %v4897_v24, %v4893_v45 }
 0x434   : > { %v3846_v53 = vpop.permute.xlu1 %3845  ;;  %v4201_v34 = vpop.permute.xlu0 %4200  ;;  %v4894_v54 = vsel %vm6068_vm2, %v4889_v22, %v4893_v45 }
 0x435   : > { %3903 = vst.msk [vmem:[#allocation4 + $0x3c] sm:$0xf] %vm3887_vm4, %v3846_v53  ;;  %v5108_v53 = vrot.slane %v5019_v52, 5  ;;  %v4899_v60 = vrot.slane %v4898_v39, 4 }
 0x436   : > { %4261 = vst.msk [vmem:[#allocation4 + $0x30] sm:$0xf] %vm4248_vm5, %v4201_v34  ;;  %4218 = vrot.lane.b32.xlu1 %v4160_v61, %s6008_s12  ;;  %4220 = vrot.lane.b32.xlu0 %v4170_v23, %s6008_s12  ;;  %v4884_v34 = vsel %vm6068_vm2, %v4879_v41, %v4883_v35  ;;  %v5107_v61 = vrot.slane %v5105_v59, 4  ;;  %v5111_v23 = vrot.slane %v5020_v55, 5  ;;  %vm5536_vm2 = vcmask 64512  }
 0x438   : > { %v4203_v25 = vpop.permute.xlu1 %4202  ;;  %v4205_v14 = vpop.permute.xlu0 %4204  ;;  %v5109_v27 = vsel %vm6224_vm6, %v5107_v61, %v5108_v53 }
 0x439   : > { %4262 = vst.msk [vmem:[#allocation4 + $0x34] sm:$0xf] %vm4248_vm5, %v4203_v25  ;;  %4263 = vst.msk [vmem:[#allocation4 + $0x38] sm:$0xf] %vm4248_vm5, %v4205_v14  ;;  %v5110_v25 = vrot.slane %v5108_v53, 4  ;;  %v5113_v14 = vrot.slane %v5111_v23, 4 }
 0x43a   : > { %4222 = vrot.lane.b32.xlu1 %v4175_v50, %s6008_s12  ;;  %4433 = vrot.lane.b32.xlu0 %v4385_v2, %s6009_s15 }
 0x43b   : > { %v5112_v30 = vsel %vm6224_vm6, %v5110_v25, %v5111_v23  ;;  %v5115_v5 = vsel %vm6224_vm6, %v5113_v14, %v5114_v38  ;;  %vm5560_vm6 = vcmask 62464  }
 0x43c   : > { %v4207_v18 = vpop.permute.xlu1 %4206  ;;  %v4418_v9 = vpop.permute.xlu0 %4417 }
 0x43d   : > { %4264 = vst.msk [vmem:[#allocation4 + $0x3c] sm:$0xf] %vm4248_vm5, %v4207_v18 }
 0x43e   : > { %4478 = vst.msk [vmem:[#allocation4 + $0x30] sm:$0xf] %vm4465_vm7, %v4418_v9  ;;  %4435 = vrot.lane.b32.xlu1 %v4388_v3, %s6009_s15  ;;  %4437 = vrot.lane.b32.xlu0 %v4391_v16, %s6009_s15 }
 0x440   : > { %v4420_v21 = vpop.permute.xlu1 %4419  ;;  %v4422_v48 = vpop.permute.xlu0 %4421 }
 0x441   : > { %4479 = vst.msk [vmem:[#allocation4 + $0x34] sm:$0xf] %vm4465_vm7, %v4420_v21  ;;  %4480 = vst.msk [vmem:[#allocation4 + $0x38] sm:$0xf] %vm4465_vm7, %v4422_v48 }
 0x442   : > { %4439 = vrot.lane.b32.xlu1 %v4392_v15, %s6009_s15  ;;  %4579 = vrot.lane.b32.xlu0 %v4511_v1, %s6010_s16 }
 0x444   : > { %v4424_v28 = vpop.permute.xlu1 %4423  ;;  %v4564_v10 = vpop.permute.xlu0 %4563 }
 0x445   : > { %4481 = vst.msk [vmem:[#allocation4 + $0x3c] sm:$0xf] %vm4465_vm7, %v4424_v28 }
 0x446   : > { %4624 = vst.msk [vmem:[#allocation4 + $0x30] sm:$0xf] %vm4611_vm8, %v4564_v10  ;;  %4581 = vrot.lane.b32.xlu1 %v4512_v32, %s6010_s16  ;;  %4583 = vrot.lane.b32.xlu0 %v4513_v49, %s6010_s16 }
 0x448   : > { %v4566_v56 = vpop.permute.xlu1 %4565  ;;  %v4568_v62 = vpop.permute.xlu0 %4567 }
 0x449   : > { %4625 = vst.msk [vmem:[#allocation4 + $0x34] sm:$0xf] %vm4611_vm8, %v4566_v56  ;;  %4626 = vst.msk [vmem:[#allocation4 + $0x38] sm:$0xf] %vm4611_vm8, %v4568_v62 }
 0x44a   : > { %4585 = vrot.lane.b32.xlu1 %v4514_v13, %s6010_s16  ;;  %4940 = vrot.lane.b32.xlu0 %v4874_v17, %s6011_s23 }
 0x44c   : > { %v4570_v12 = vpop.permute.xlu1 %4569  ;;  %v4925_v63 = vpop.permute.xlu0 %4924 }
 0x44d   : > { %4627 = vst.msk [vmem:[#allocation4 + $0x3c] sm:$0xf] %vm4611_vm8, %v4570_v12 }
 0x44e   : > { %4985 = vst.msk [vmem:[#allocation4 + $0x30] sm:$0xf] %vm4972_vm9, %v4925_v63  ;;  %4942 = vrot.lane.b32.xlu1 %v4884_v34, %s6011_s23  ;;  %4944 = vrot.lane.b32.xlu0 %v4894_v54, %s6011_s23 }
 0x450   : > { %v4927_v33 = vpop.permute.xlu1 %4926  ;;  %v4929_v58 = vpop.permute.xlu0 %4928 }
 0x451   : > { %4986 = vst.msk [vmem:[#allocation4 + $0x34] sm:$0xf] %vm4972_vm9, %v4927_v33  ;;  %4987 = vst.msk [vmem:[#allocation4 + $0x38] sm:$0xf] %vm4972_vm9, %v4929_v58 }
 0x452   : > { %4946 = vrot.lane.b32.xlu1 %v4899_v60, %s6011_s23  ;;  %5157 = vrot.lane.b32.xlu0 %v5109_v27, %s6012_s30 }
 0x454   : > { %v4931_v59 = vpop.permute.xlu1 %4930  ;;  %v5142_v50 = vpop.permute.xlu0 %5141 }
 0x455   : > { %4988 = vst.msk [vmem:[#allocation4 + $0x3c] sm:$0xf] %vm4972_vm9, %v4931_v59 }
 0x456   : > { %5202 = vst.msk [vmem:[#allocation4 + $0x30] sm:$0xf] %vm5189_vm10, %v5142_v50  ;;  %5159 = vrot.lane.b32.xlu1 %v5112_v30, %s6012_s30  ;;  %5161 = vrot.lane.b32.xlu0 %v5115_v5, %s6012_s30 }
 0x458   : > { %v5144_v11 = vpop.permute.xlu1 %5143  ;;  %v5146_v2 = vpop.permute.xlu0 %5145 }
 0x459   : > { %5203 = vst.msk [vmem:[#allocation4 + $0x34] sm:$0xf] %vm5189_vm10, %v5144_v11  ;;  %5204 = vst.msk [vmem:[#allocation4 + $0x38] sm:$0xf] %vm5189_vm10, %v5146_v2 }
 0x45a   : > { %5163 = vrot.lane.b32.xlu1 %v5116_v4, %s6012_s30 }
 0x45c   : > { %v5148_v46 = vpop.permute.xlu1 %5147  ;;  %v3702_v8 = vpop.permute.xlu0 %3701 }
 0x45d   : > { %5205 = vst.msk [vmem:[#allocation4 + $0x3c] sm:$0xf] %vm5189_vm10, %v5148_v46 }
 0x45e   : > { %3758 = vst.msk [vmem:[#allocation4 + $0x40] sm:$0xf] %vm3741_vm1, %v3702_v8 }
 0x460   : > { %v3704_v57 = vpop.permute.xlu1 %3703  ;;  %v3706_v18 = vpop.permute.xlu0 %3705  ;;  %v5986_v9 = vld [vmem:[#allocation4 + $0x30] sm:$0xff]  }
 0x461   : > { %3759 = vst.msk [vmem:[#allocation4 + $0x44] sm:$0xf] %vm3741_vm1, %v3704_v57  ;;  %3760 = vst.msk [vmem:[#allocation4 + $0x48] sm:$0xf] %vm3741_vm1, %v3706_v18  ;;  %5923 = vmatprep.mubr.msk.bf16.mxu1 %vm5342_vm11, %v5986_v9 }
 0x464   : > { %v3708_v3 = vpop.permute.xlu1 %3707  ;;  %v3848_v16 = vpop.permute.xlu0 %3847  ;;  %v5987_v7 = vld [vmem:[#allocation4 + $0x38] sm:$0xff]  }
 0x465   : > { %3761 = vst.msk [vmem:[#allocation4 + $0x4c] sm:$0xf] %vm3741_vm1, %v3708_v3  ;;  %5924 = vmatmul.mubr.msk.bf16.gmra.mxu1 %vm5342_vm11, %v5987_v7 }
 0x466   : > { %3904 = vst.msk [vmem:[#allocation4 + $0x40] sm:$0xf] %vm3887_vm4, %v3848_v16 }
 0x468   : > { %v3850_v47 = vpop.permute.xlu1 %3849  ;;  %v3852_v37 = vpop.permute.xlu0 %3851 }
 0x469   : > { %3905 = vst.msk [vmem:[#allocation4 + $0x44] sm:$0xf] %vm3887_vm4, %v3850_v47  ;;  %3906 = vst.msk [vmem:[#allocation4 + $0x48] sm:$0xf] %vm3887_vm4, %v3852_v37 }
 0x46c   : > { %v3854_v19 = vpop.permute.xlu1 %3853  ;;  %v4209_v31 = vpop.permute.xlu0 %4208 }
 0x46d   : > { %3907 = vst.msk [vmem:[#allocation4 + $0x4c] sm:$0xf] %vm3887_vm4, %v3854_v19 }
 0x46e   : > { %4265 = vst.msk [vmem:[#allocation4 + $0x40] sm:$0xf] %vm4248_vm5, %v4209_v31 }
 0x470   : > { %v4211_v21 = vpop.permute.xlu1 %4210  ;;  %v4213_v48 = vpop.permute.xlu0 %4212 }
 0x471   : > { %4266 = vst.msk [vmem:[#allocation4 + $0x44] sm:$0xf] %vm4248_vm5, %v4211_v21  ;;  %4267 = vst.msk [vmem:[#allocation4 + $0x48] sm:$0xf] %vm4248_vm5, %v4213_v48 }
 0x474   : > { %v4215_v15 = vpop.permute.xlu1 %4214  ;;  %v4426_v1 = vpop.permute.xlu0 %4425 }
 0x475   : > { %4268 = vst.msk [vmem:[#allocation4 + $0x4c] sm:$0xf] %vm4248_vm5, %v4215_v15 }
 0x476   : > { %4482 = vst.msk [vmem:[#allocation4 + $0x40] sm:$0xf] %vm4465_vm7, %v4426_v1 }
 0x478   : > { %v4428_v20 = vpop.permute.xlu1 %4427  ;;  %v4430_v29 = vpop.permute.xlu0 %4429 }
 0x479   : > { %4483 = vst.msk [vmem:[#allocation4 + $0x44] sm:$0xf] %vm4465_vm7, %v4428_v20  ;;  %4484 = vst.msk [vmem:[#allocation4 + $0x48] sm:$0xf] %vm4465_vm7, %v4430_v29 }
 0x47c   : > { %v4432_v26 = vpop.permute.xlu1 %4431  ;;  %v4572_v35 = vpop.permute.xlu0 %4571 }
 0x47d   : > { %4485 = vst.msk [vmem:[#allocation4 + $0x4c] sm:$0xf] %vm4465_vm7, %v4432_v26  ;;  %v5913_v0 = vpop.f32.mrf.mxu1 }
 0x47e   : > { %4628 = vst.msk [vmem:[#allocation4 + $0x40] sm:$0xf] %vm4611_vm8, %v4572_v35  ;;  %v5426_v28 = vadd.f32 %v5913_v0, %v8309_v6 }
 0x47f   : > { %v5417_v44 = vpop.f32.mrf.mxu1 }
 0x480   : > { %v4574_v10 = vpop.permute.xlu1 %4573  ;;  %v4576_v36 = vpop.permute.xlu0 %4575  ;;  %v5514_v32 = vmax.f32 %v5426_v28, 0.0  ;;  %v5418_v49 = vadd.f32 %v8309_v6, %v5417_v44 }
 0x481   : > { %4629 = vst.msk [vmem:[#allocation4 + $0x44] sm:$0xf] %vm4611_vm8, %v4574_v10  ;;  %4630 = vst.msk [vmem:[#allocation4 + $0x48] sm:$0xf] %vm4611_vm8, %v4576_v36  ;;  %v5914_v42 = vpop.f32.mrf.mxu1 }
 0x482   : > { %5539 = vst.msk [vmem:[#allocation5 + $0x10] sm:$0xff] %vm5536_vm2, %v5514_v32  ;;  %v5512_v43 = vmax.f32 %v5418_v49, 0.0  ;;  %v5429_v51 = vadd.f32 %v5914_v42, %v8309_v6 }
 0x483   : > { %v5420_v45 = vpop.f32.mrf.mxu1 }
 0x484   : > { %v4578_v56 = vpop.permute.xlu1 %4577  ;;  %v4933_v62 = vpop.permute.xlu0 %4932  ;;  %5537 = vst.msk [vmem:[#allocation5] sm:$0xff] %vm5536_vm2, %v5512_v43  ;;  %v5515_v24 = vmax.f32 %v5429_v51, 0.0  ;;  %v5421_v13 = vadd.f32 %v8309_v6, %v5420_v45 }
 0x485   : > { %4631 = vst.msk [vmem:[#allocation4 + $0x4c] sm:$0xf] %vm4611_vm8, %v4578_v56 }
 0x486   : > { %4989 = vst.msk [vmem:[#allocation4 + $0x40] sm:$0xf] %vm4972_vm9, %v4933_v62  ;;  %v5513_v17 = vmax.f32 %v5421_v13, 0.0 }
 0x487   : > { %5540 = vst.msk [vmem:[#allocation5 + $0x18] sm:$0xff] %vm5536_vm2, %v5515_v24 }
 0x488   : > { %v4935_v41 = vpop.permute.xlu1 %4934  ;;  %v4937_v22 = vpop.permute.xlu0 %4936  ;;  %5538 = vst.msk [vmem:[#allocation5 + $0x8] sm:$0xff] %vm5536_vm2, %v5513_v17 }
 0x489   : > { %4990 = vst.msk [vmem:[#allocation4 + $0x44] sm:$0xf] %vm4972_vm9, %v4935_v41  ;;  %4991 = vst.msk [vmem:[#allocation4 + $0x48] sm:$0xf] %vm4972_vm9, %v4937_v22 }
 0x48c   : > { %v4939_v52 = vpop.permute.xlu1 %4938  ;;  %v5150_v55 = vpop.permute.xlu0 %5149 }
 0x48d   : > { %4992 = vst.msk [vmem:[#allocation4 + $0x4c] sm:$0xf] %vm4972_vm9, %v4939_v52 }
 0x48e   : > { %5206 = vst.msk [vmem:[#allocation4 + $0x40] sm:$0xf] %vm5189_vm10, %v5150_v55  ;;  %v5567_v12 = vld [vmem:[#allocation5 + $0x10] ss:$2 sm:$0x3f] }
 0x48f   : > { %v5569_v63 = vld [vmem:[#allocation5 + $0x11] ss:$2 sm:$0x3f]  ;;  %v5562_v34 = vld [vmem:[#allocation5] ss:$2 sm:$0x3f] }
 0x490   : > { %v5152_v39 = vpop.permute.xlu1 %5151  ;;  %v5154_v53 = vpop.permute.xlu0 %5153  ;;  %v5564_v54 = vld [vmem:[#allocation5 + $0x1] ss:$2 sm:$0x3f]  ;;  %v5570_v23 = vmax.f32 %v5567_v12, %v5569_v63 }
 0x491   : > { %5207 = vst.msk [vmem:[#allocation4 + $0x44] sm:$0xf] %vm5189_vm10, %v5152_v39  ;;  %5208 = vst.msk [vmem:[#allocation4 + $0x48] sm:$0xf] %vm5189_vm10, %v5154_v53  ;;  %v5565_v61 = vmax.f32 %v5562_v34, %v5564_v54 }
 0x493   : > { %v5571_v58 = vmax.f32 %v5565_v61, %v5570_v23 }
 0x494   : > { %v5156_v40 = vpop.permute.xlu1 %5155  ;;  %v3710_v33 = vpop.permute.xlu0 %3709 }
 0x495   : > { %5209 = vst.msk [vmem:[#allocation4 + $0x4c] sm:$0xf] %vm5189_vm10, %v5156_v40 }
 0x496   : > { %3762 = vst.msk [vmem:[#allocation4 + $0x50] sm:$0xf] %vm3741_vm1, %v3710_v33 }
 0x497   : > { %5572 = vst.msk [vmem:[%s8333_s13] sm:$0x3f] %vm5560_vm6, %v5571_v58 }
 0x498   : > { %v3712_v60 = vpop.permute.xlu1 %3711  ;;  %v3714_v27 = vpop.permute.xlu0 %3713  ;;  %v5988_v25 = vld [vmem:[#allocation4 + $0x40] sm:$0xff]  }
 0x499   : > { %3763 = vst.msk [vmem:[#allocation4 + $0x54] sm:$0xf] %vm3741_vm1, %v3712_v60  ;;  %3764 = vst.msk [vmem:[#allocation4 + $0x58] sm:$0xf] %vm3741_vm1, %v3714_v27  ;;  %5927 = vmatprep.mubr.msk.bf16.mxu1 %vm5342_vm11, %v5988_v25  ;;  %vm4996_vm1 = vcmask 518592  }
 0x49c   : > { %v3716_v14 = vpop.permute.xlu1 %3715  ;;  %v3856_v38 = vpop.permute.xlu0 %3855  ;;  %v5989_v59 = vld [vmem:[#allocation4 + $0x48] sm:$0xff]  }
 0x49d   : > { %3766 = vst.msk [vmem:[#allocation4 + $0x5c] sm:$0x7] %vm3765_vm12, %v3716_v14  ;;  %5928 = vmatmul.mubr.msk.bf16.gmra.mxu1 %vm5342_vm11, %v5989_v59 }
 0x49e   : > { %3908 = vst.msk [vmem:[#allocation4 + $0x50] sm:$0xf] %vm3887_vm4, %v3856_v38 }
 0x4a0   : > { %v3858_v50 = vpop.permute.xlu1 %3857  ;;  %v3860_v30 = vpop.permute.xlu0 %3859 }
 0x4a1   : > { %3909 = vst.msk [vmem:[#allocation4 + $0x54] sm:$0xf] %vm3887_vm4, %v3858_v50  ;;  %3910 = vst.msk [vmem:[#allocation4 + $0x58] sm:$0xf] %vm3887_vm4, %v3860_v30 }
 0x4a4   : > { %v3862_v5 = vpop.permute.xlu1 %3861  ;;  %v4217_v11 = vpop.permute.xlu0 %4216 }
 0x4a5   : > { %3912 = vst.msk [vmem:[#allocation4 + $0x5c] sm:$0x7] %vm3911_vm13, %v3862_v5 }
 0x4a6   : > { %4269 = vst.msk [vmem:[#allocation4 + $0x50] sm:$0xf] %vm4248_vm5, %v4217_v11 }
 0x4a8   : > { %v4219_v2 = vpop.permute.xlu1 %4218  ;;  %v4221_v4 = vpop.permute.xlu0 %4220 }
 0x4a9   : > { %4270 = vst.msk [vmem:[#allocation4 + $0x54] sm:$0xf] %vm4248_vm5, %v4219_v2  ;;  %4271 = vst.msk [vmem:[#allocation4 + $0x58] sm:$0xf] %vm4248_vm5, %v4221_v4 }
 0x4ac   : > { %v4223_v46 = vpop.permute.xlu1 %4222  ;;  %v4434_v8 = vpop.permute.xlu0 %4433 }
 0x4ad   : > { %4273 = vst.msk [vmem:[#allocation4 + $0x5c] sm:$0x7] %vm4272_vm14, %v4223_v46 }
 0x4ae   : > { %4486 = vst.msk [vmem:[#allocation4 + $0x50] sm:$0xf] %vm4465_vm7, %v4434_v8 }
 0x4b0   : > { %v4436_v57 = vpop.permute.xlu1 %4435  ;;  %v4438_v18 = vpop.permute.xlu0 %4437 }
 0x4b1   : > { %4487 = vst.msk [vmem:[#allocation4 + $0x54] sm:$0xf] %vm4465_vm7, %v4436_v57  ;;  %4488 = vst.msk [vmem:[#allocation4 + $0x58] sm:$0xf] %vm4465_vm7, %v4438_v18 }
 0x4b4   : > { %v4440_v9 = vpop.permute.xlu1 %4439  ;;  %v4580_v3 = vpop.permute.xlu0 %4579 }
 0x4b5   : > { %4490 = vst.msk [vmem:[#allocation4 + $0x5c] sm:$0x7] %vm4489_vm15, %v4440_v9  ;;  %v5917_v16 = vpop.f32.mrf.mxu1 }
 0x4b6   : > { %4632 = vst.msk [vmem:[#allocation4 + $0x50] sm:$0xf] %vm4611_vm8, %v4580_v3  ;;  %v5442_v7 = vadd.f32 %v5917_v16, %v8309_v6 }
 0x4b7   : > { %v5433_v19 = vpop.f32.mrf.mxu1 }
 0x4b8   : > { %v4582_v47 = vpop.permute.xlu1 %4581  ;;  %v4584_v37 = vpop.permute.xlu0 %4583  ;;  %v5518_v31 = vmax.f32 %v5442_v7, 0.0  ;;  %v5434_v21 = vadd.f32 %v8309_v6, %v5433_v19 }
 0x4b9   : > { %4633 = vst.msk [vmem:[#allocation4 + $0x54] sm:$0xf] %vm4611_vm8, %v4582_v47  ;;  %4634 = vst.msk [vmem:[#allocation4 + $0x58] sm:$0xf] %vm4611_vm8, %v4584_v37  ;;  %v5918_v48 = vpop.f32.mrf.mxu1 }
 0x4ba   : > { %5543 = vst.msk [vmem:[#allocation5 + $0x30] sm:$0xff] %vm5536_vm2, %v5518_v31  ;;  %v5516_v15 = vmax.f32 %v5434_v21, 0.0  ;;  %v5445_v1 = vadd.f32 %v5918_v48, %v8309_v6 }
 0x4bb   : > { %v5436_v26 = vpop.f32.mrf.mxu1 }
 0x4bc   : > { %v4586_v20 = vpop.permute.xlu1 %4585  ;;  %v4941_v29 = vpop.permute.xlu0 %4940  ;;  %5541 = vst.msk [vmem:[#allocation5 + $0x20] sm:$0xff] %vm5536_vm2, %v5516_v15  ;;  %v5519_v35 = vmax.f32 %v5445_v1, 0.0  ;;  %v5437_v0 = vadd.f32 %v8309_v6, %v5436_v26 }
 0x4bd   : > { %4636 = vst.msk [vmem:[#allocation4 + $0x5c] sm:$0x7] %vm4635_vm0, %v4586_v20 }
 0x4be   : > { %4993 = vst.msk [vmem:[#allocation4 + $0x50] sm:$0xf] %vm4972_vm9, %v4941_v29  ;;  %v5517_v28 = vmax.f32 %v5437_v0, 0.0 }
 0x4bf   : > { %5544 = vst.msk [vmem:[#allocation5 + $0x38] sm:$0xff] %vm5536_vm2, %v5519_v35 }
 0x4c0   : > { %v4943_v10 = vpop.permute.xlu1 %4942  ;;  %v4945_v36 = vpop.permute.xlu0 %4944  ;;  %5542 = vst.msk [vmem:[#allocation5 + $0x28] sm:$0xff] %vm5536_vm2, %v5517_v28 }
 0x4c1   : > { %4994 = vst.msk [vmem:[#allocation4 + $0x54] sm:$0xf] %vm4972_vm9, %v4943_v10  ;;  %4995 = vst.msk [vmem:[#allocation4 + $0x58] sm:$0xf] %vm4972_vm9, %v4945_v36 }
 0x4c4   : > { %v4947_v44 = vpop.permute.xlu1 %4946  ;;  %v5158_v32 = vpop.permute.xlu0 %5157 }
 0x4c5   : > { %4997 = vst.msk [vmem:[#allocation4 + $0x5c] sm:$0x7] %vm4996_vm1, %v4947_v44 }
 0x4c6   : > { %5210 = vst.msk [vmem:[#allocation4 + $0x50] sm:$0xf] %vm5189_vm10, %v5158_v32  ;;  %v5579_v49 = vld [vmem:[#allocation5 + $0x30] ss:$2 sm:$0x3f] }
 0x4c7   : > { %v5581_v42 = vld [vmem:[#allocation5 + $0x31] ss:$2 sm:$0x3f]  ;;  %v5574_v56 = vld [vmem:[#allocation5 + $0x20] ss:$2 sm:$0x3f] }
 0x4c8   : > { %v5160_v43 = vpop.permute.xlu1 %5159  ;;  %v5162_v51 = vpop.permute.xlu0 %5161  ;;  %v5576_v62 = vld [vmem:[#allocation5 + $0x21] ss:$2 sm:$0x3f]  ;;  %v5582_v24 = vmax.f32 %v5579_v49, %v5581_v42 }
 0x4c9   : > { %5211 = vst.msk [vmem:[#allocation4 + $0x54] sm:$0xf] %vm5189_vm10, %v5160_v43  ;;  %5212 = vst.msk [vmem:[#allocation4 + $0x58] sm:$0xf] %vm5189_vm10, %v5162_v51  ;;  %v5577_v45 = vmax.f32 %v5574_v56, %v5576_v62 }
 0x4cb   : > { %v5583_v17 = vmax.f32 %v5577_v45, %v5582_v24 }
 0x4cc   : > { %v5164_v13 = vpop.permute.xlu1 %5163 }
 0x4cd   : > { %5214 = vst.msk [vmem:[#allocation4 + $0x5c] sm:$0x7] %vm5213_vm3, %v5164_v13 }
 0x4ce   : > { %5797 = vst.msk [vmem:[%s8333_s13 + $0x8] sm:$0x3f] %vm5560_vm6, %v5583_v17 }
 0x4d0   : > { %v5990_v41 = vld [vmem:[#allocation4 + $0x50] sm:$0xff]  }
 0x4d1   : > { %5931 = vmatprep.mubr.msk.bf16.mxu1 %vm5342_vm11, %v5990_v41 }
 0x4d4   : > { %v5991_v22 = vld [vmem:[#allocation4 + $0x58] sm:$0x7f]  }
 0x4d5   : > { %5932 = vmatmul.mubr.msk.bf16.gmra.mxu1 %vm5342_vm11, %v5991_v22 }
 0x4ed   : > { %v5921_v52 = vpop.f32.mrf.mxu1 }
 0x4ee   : > { %v5458_v55 = vadd.f32 %v5921_v52, %v8309_v6 }
 0x4ef   : > { %v5449_v12 = vpop.f32.mrf.mxu1 }
 0x4f0   : > { %v5522_v63 = vmax.f32 %v5458_v55, 0.0  ;;  %v5450_v39 = vadd.f32 %v8309_v6, %v5449_v12 }
 0x4f1   : > { %v5922_v53 = vpop.f32.mrf.mxu1 }
 0x4f2   : > { %5547 = vst.msk [vmem:[#allocation5 + $0x50] sm:$0xff] %vm5536_vm2, %v5522_v63  ;;  %v5520_v34 = vmax.f32 %v5450_v39, 0.0  ;;  %v5461_v54 = vadd.f32 %v5922_v53, %v8309_v6 }
 0x4f3   : > { %v5452_v61 = vpop.f32.mrf.mxu1 }
 0x4f4   : > { %5545 = vst.msk [vmem:[#allocation5 + $0x40] sm:$0xff] %vm5536_vm2, %v5520_v34  ;;  %v5523_v23 = vmax.f32 %v5461_v54, 0.0  ;;  %v5453_v40 = vadd.f32 %v8309_v6, %v5452_v61 }
 0x4f6   : > { %5548 = vst.msk [vmem:[#allocation5 + $0x58] sm:$0xff] %vm5536_vm2, %v5523_v23  ;;  %v5521_v33 = vmax.f32 %v5453_v40, 0.0 }
 0x4f8   : > { %5546 = vst.msk [vmem:[#allocation5 + $0x48] sm:$0xff] %vm5536_vm2, %v5521_v33 }
 0x4fd   : > { %v5592_v58 = vld [vmem:[#allocation5 + $0x50] ss:$2 sm:$0x3f]  ;;  %v5594_v60 = vld [vmem:[#allocation5 + $0x51] ss:$2 sm:$0x3f] }
 0x4fe   : > { %v5595_v38 = vmax.f32 %v5592_v58, %v5594_v60 }
 0x4ff   : > { %v5587_v27 = vld [vmem:[#allocation5 + $0x40] ss:$2 sm:$0x3f]  ;;  %v5589_v25 = vld [vmem:[#allocation5 + $0x41] ss:$2 sm:$0x3f] }
 0x500   : > { %v5590_v14 = vmax.f32 %v5587_v27, %v5589_v25 }
 0x502   : > { %v5596_v59 = vmax.f32 %v5590_v14, %v5595_v38 }
 0x504   : > { %5798 = vst.msk [vmem:[%s8333_s13 + $0x10] sm:$0x3f] %vm5560_vm6, %v5596_v59 }
 0x525   : > { %v5925_v50 = vpop.f32.mrf.mxu1 }
 0x526   : > { %v5474_v30 = vadd.f32 %v5925_v50, %v8309_v6 }
 0x527   : > { %v5465_v5 = vpop.f32.mrf.mxu1 }
 0x528   : > { %v5526_v11 = vmax.f32 %v5474_v30, 0.0  ;;  %v5466_v2 = vadd.f32 %v8309_v6, %v5465_v5 }
 0x529   : > { %v5926_v4 = vpop.f32.mrf.mxu1 }
 0x52a   : > { %5551 = vst.msk [vmem:[#allocation5 + $0x70] sm:$0xff] %vm5536_vm2, %v5526_v11  ;;  %v5524_v46 = vmax.f32 %v5466_v2, 0.0  ;;  %v5477_v8 = vadd.f32 %v5926_v4, %v8309_v6 }
 0x52b   : > { %v5468_v57 = vpop.f32.mrf.mxu1 }
 0x52c   : > { %5549 = vst.msk [vmem:[#allocation5 + $0x60] sm:$0xff] %vm5536_vm2, %v5524_v46  ;;  %v5527_v18 = vmax.f32 %v5477_v8, 0.0  ;;  %v5469_v9 = vadd.f32 %v8309_v6, %v5468_v57 }
 0x52e   : > { %5552 = vst.msk [vmem:[#allocation5 + $0x78] sm:$0xff] %vm5536_vm2, %v5527_v18  ;;  %v5525_v3 = vmax.f32 %v5469_v9, 0.0 }
 0x530   : > { %5550 = vst.msk [vmem:[#allocation5 + $0x68] sm:$0xff] %vm5536_vm2, %v5525_v3 }
 0x535   : > { %v5605_v16 = vld [vmem:[#allocation5 + $0x70] ss:$2 sm:$0x3f]  ;;  %v5607_v7 = vld [vmem:[#allocation5 + $0x71] ss:$2 sm:$0x3f] }
 0x536   : > { %v5608_v31 = vmax.f32 %v5605_v16, %v5607_v7 }
 0x537   : > { %v5600_v47 = vld [vmem:[#allocation5 + $0x60] ss:$2 sm:$0x3f]  ;;  %v5602_v37 = vld [vmem:[#allocation5 + $0x61] ss:$2 sm:$0x3f] }
 0x538   : > { %v5603_v19 = vmax.f32 %v5600_v47, %v5602_v37 }
 0x53a   : > { %v5609_v21 = vmax.f32 %v5603_v19, %v5608_v31 }
 0x53c   : > { %5799 = vst.msk [vmem:[%s8333_s13 + $0x18] sm:$0x3f] %vm5560_vm6, %v5609_v21 }
 0x55d   : > { %v5929_v48 = vpop.f32.mrf.mxu1 }
 0x55e   : > { %v5490_v15 = vadd.f32 %v5929_v48, %v8309_v6 }
 0x55f   : > { %v5481_v1 = vpop.f32.mrf.mxu1 }
 0x560   : > { %v5530_v20 = vmax.f32 %v5490_v15, 0.0  ;;  %v5482_v29 = vadd.f32 %v8309_v6, %v5481_v1 }
 0x561   : > { %v5930_v26 = vpop.f32.mrf.mxu1 }
 0x562   : > { %5555 = vst.msk [vmem:[#allocation5 + $0x90] sm:$0xff] %vm5536_vm2, %v5530_v20  ;;  %v5528_v35 = vmax.f32 %v5482_v29, 0.0  ;;  %v5493_v0 = vadd.f32 %v5930_v26, %v8309_v6 }
 0x563   : > { %v5484_v28 = vpop.f32.mrf.mxu1 }
 0x564   : > { %5553 = vst.msk [vmem:[#allocation5 + $0x80] sm:$0xff] %vm5536_vm2, %v5528_v35  ;;  %v5531_v10 = vmax.f32 %v5493_v0, 0.0  ;;  %v5485_v36 = vadd.f32 %v8309_v6, %v5484_v28 }
 0x566   : > { %5556 = vst.msk [vmem:[#allocation5 + $0x98] sm:$0xff] %vm5536_vm2, %v5531_v10  ;;  %v5529_v44 = vmax.f32 %v5485_v36, 0.0 }
 0x568   : > { %5554 = vst.msk [vmem:[#allocation5 + $0x88] sm:$0xff] %vm5536_vm2, %v5529_v44 }
 0x56d   : > { %v5618_v32 = vld [vmem:[#allocation5 + $0x90] ss:$2 sm:$0x3f]  ;;  %v5620_v49 = vld [vmem:[#allocation5 + $0x91] ss:$2 sm:$0x3f] }
 0x56e   : > { %v5621_v56 = vmax.f32 %v5618_v32, %v5620_v49 }
 0x56f   : > { %v5613_v42 = vld [vmem:[#allocation5 + $0x80] ss:$2 sm:$0x3f]  ;;  %v5615_v43 = vld [vmem:[#allocation5 + $0x81] ss:$2 sm:$0x3f] }
 0x570   : > { %v5616_v51 = vmax.f32 %v5613_v42, %v5615_v43 }
 0x572   : > { %v5622_v62 = vmax.f32 %v5616_v51, %v5621_v56 }
 0x574   : > { %5800 = vst.msk [vmem:[%s8333_s13 + $0x20] sm:$0x3f] %vm5560_vm6, %v5622_v62 }
 0x595   : > { %v5933_v45 = vpop.f32.mrf.mxu1 }
 0x596   : > { %v5506_v24 = vadd.f32 %v5933_v45, %v8309_v6 }
 0x597   : > { %v5497_v13 = vpop.f32.mrf.mxu1 }
 0x598   : > { %v5534_v17 = vmax.f32 %v5506_v24, 0.0  ;;  %v5498_v41 = vadd.f32 %v8309_v6, %v5497_v13 }
 0x599   : > { %v5934_v22 = vpop.f32.mrf.mxu1 }
 0x59a   : > { %5559 = vst.msk [vmem:[#allocation5 + $0xb0] sm:$0xff] %vm5536_vm2, %v5534_v17  ;;  %v5532_v52 = vmax.f32 %v5498_v41, 0.0  ;;  %v5509_v55 = vadd.f32 %v5934_v22, %v8309_v6 }
 0x59b   : > { %v5500_v12 = vpop.f32.mrf.mxu1 }
 0x59c   : > { %5557 = vst.msk [vmem:[#allocation5 + $0xa0] sm:$0xff] %vm5536_vm2, %v5532_v52  ;;  %v5535_v63 = vmax.f32 %v5509_v55, 0.0  ;;  %v5501_v39 = vadd.f32 %v8309_v6, %v5500_v12 }
 0x59e   : > { %5561 = vst.msk [vmem:[#allocation5 + $0xb8] sm:$0x3f] %vm5560_vm6, %v5535_v63  ;;  %v5533_v53 = vmax.f32 %v5501_v39, 0.0 }
 0x5a0   : > { %5558 = vst.msk [vmem:[#allocation5 + $0xa8] sm:$0xff] %vm5536_vm2, %v5533_v53 }
 0x5a5   : > { %v5631_v34 = vld [vmem:[#allocation5 + $0xb0] ss:$2 sm:$0x3f]  ;;  %v5633_v54 = vld [vmem:[#allocation5 + $0xb1] ss:$2 sm:$0x3f] }
 0x5a6   : > { %v5634_v40 = vmax.f32 %v5631_v34, %v5633_v54 }
 0x5a7   : > { %v5626_v61 = vld [vmem:[#allocation5 + $0xa0] ss:$2 sm:$0x3f]  ;;  %v5628_v23 = vld [vmem:[#allocation5 + $0xa1] ss:$2 sm:$0x3f] }
 0x5a8   : > { %v5629_v33 = vmax.f32 %v5626_v61, %v5628_v23 }
 0x5aa   : > { %v5635_v58 = vmax.f32 %v5629_v33, %v5634_v40 }
 0x5ac   : > { %5801 = vst.msk [vmem:[%s8333_s13 + $0x28] sm:$0x3f] %vm5560_vm6, %v5635_v58 }
 0x5ad PF: > { %s15_s18 = sadd.s32 1, %s5999_s18  }
 0x5ae   : > { %p12_p4 = scmp.ge.s32.totalorder %s15_s18, 4  }
 0x5b0   :  { %14 = sbr.rel (!%p12_p4) target bundleno = 1 (0x1), region = 98 }

</bundles_post_ra>
